<compile_context>
chip_gen: v7x
topology: tpu7x:2x2x1
jax: 0.10.0
libtpu: 0.0.40
codegen_flags: <defaults>
</compile_context>

<pallas_src>
import math

import numpy as np

import jax
import jax.numpy as jnp
from jax.experimental import pallas as pl
from jax.experimental.pallas import tpu as pltpu

EPS = 1e-5     # PyTorch BatchNorm2d default
PADL = 128     # lane-aligned halo size (>= W+1 for all layers here)


def _round8(n):
    return ((n + 7) // 8) * 8


# --------------------------- fused RWT layer kernel ---------------------------

def _make_rwt_kernel(S, W, cin_pad, cout):
    """Fused ResNetWithTimeEmbed layer: resnet1 -> resnet2 -> (+ time embed).

    All tensors are channel-major (C, S) with S = N*H*W on the lane axis.
    """

    def kernel(x_ref, emb_ref, sel_ref, masks_ref, *rest):
        prm = rest[:24]          # 12 params per ResNetBlock, 2 blocks
        o_ref = rest[24]
        pad_ref = rest[25]       # (cout, PADL + S + PADL) halo-padded scratch

        def conv3x3(cin, w_ref, b_ref):
            # pad_ref rows [0:cin], lanes [PADL:PADL+S) hold the feature map.
            # 9 accumulated MXU dots on lane-dense (cin, S) taps.
            acc = None
            for dy in range(3):
                for dx in range(3):
                    t = dy * 3 + dx
                    k = (dy - 1) * W + (dx - 1)
                    v = pad_ref[:cin, pl.ds(PADL + k, S)]        # (cin, S)
                    if t != 4:                                    # centre tap always valid
                        v = v * masks_ref[t:t + 1, :]             # (1,S) full-lane mask
                    d = jnp.dot(w_ref[t], v,
                                preferred_element_type=jnp.float32)
                    acc = d if acc is None else acc + d
            return acc + b_ref[...]                               # (cout, S)

        def bn(h, g_ref, b_ref):
            # Training-mode BatchNorm2d: batch stats over S lanes (== N*H*W),
            # biased variance, eps=1e-5.  Lane reduce in this layout.
            mu = jnp.mean(h, axis=1, keepdims=True)
            var = jnp.mean(jnp.square(h - mu), axis=1, keepdims=True)
            return (h - mu) * jax.lax.rsqrt(var + EPS) * g_ref[...] + b_ref[...]

        def repad(y, c):
            pad_ref[:c, pl.ds(PADL, S)] = y                       # aligned full-lane store

        def resnet_block(cin, x_val, p):
            (w1, b1, g1, be1, w2, b2, g2, be2, wsc, bsc, gsc, besc) = p
            y = conv3x3(cin, w1, b1)
            y = jnp.maximum(bn(y, g1, be1), 0.0)
            repad(y, cout)
            y = conv3x3(cout, w2, b2)
            y = bn(y, g2, be2)
            s = jnp.dot(wsc[...], x_val,
                        preferred_element_type=jnp.float32) + bsc[...]
            s = bn(s, gsc, besc)
            return jnp.maximum(y + s, 0.0)

        # Zero only the two halo lane ranges (interior is always overwritten).
        pad_ref[:, pl.ds(0, PADL)] = jnp.zeros((cout, PADL), jnp.float32)
        pad_ref[:, pl.ds(PADL + S, PADL)] = jnp.zeros((cout, PADL), jnp.float32)

        x_val = x_ref[...]                                        # (cin_pad, S)
        pad_ref[:cin_pad, pl.ds(PADL, S)] = x_val
        h = resnet_block(cin_pad, x_val, prm[:12])                # resnet1
        repad(h, cout)
        h = resnet_block(cout, h, prm[12:24])                     # resnet2
        # Time embedding broadcast via one tiny MXU matmul: (C, Np) @ (Np, S).
        emb = jnp.dot(emb_ref[...], sel_ref[...],
                      preferred_element_type=jnp.float32)
        o_ref[...] = (h + emb).astype(o_ref.dtype)                # lane-dense store

    return kernel


def _conv_masks(N, H, W):
    """(9, N*H*W) f32: 1 where the shifted tap stays inside its own image."""
    yy = np.arange(H)[:, None]
    xx = np.arange(W)[None, :]
    rows = []
    for dy in range(3):
        for dx in range(3):
            oy, ox = dy - 1, dx - 1
            m = ((yy + oy >= 0) & (yy + oy < H) &
                 (xx + ox >= 0) & (xx + ox < W)).astype(np.float32)
            rows.append(np.tile(m.reshape(H * W), N))
    return jnp.asarray(np.stack(rows, axis=0))


def _batch_select(N, HW, n_pad):
    """(n_pad, N*HW) one-hot batch membership (for in-kernel t_emb broadcast)."""
    sel = np.zeros((n_pad, N * HW), np.float32)
    for n in range(N):
        sel[n, n * HW:(n + 1) * HW] = 1.0
    return jnp.asarray(sel)


def _prep_block(rp, cin_pad):
    """Flatten one ResNetBlock's params into channel-major kernel operands."""
    cout = rp['conv1_w'].shape[3]

    def conv_w(w, cp):
        ci, co = w.shape[2], w.shape[3]
        w = jnp.transpose(w, (0, 1, 3, 2)).reshape(9, co, ci)     # (9, cout, cin)
        if cp > ci:
            w = jnp.pad(w, ((0, 0), (0, 0), (0, cp - ci)))
        return w

    def col(v):
        return v.reshape(-1, 1)                                   # (cout, 1)

    cin = rp['sc_w'].shape[2]
    wsc = rp['sc_w'].reshape(cin, cout).T                         # (cout, cin)
    if cin_pad > cin:
        wsc = jnp.pad(wsc, ((0, 0), (0, cin_pad - cin)))

    return [
        conv_w(rp['conv1_w'], cin_pad), col(rp['conv1_b']),
        col(rp['bn1_g']), col(rp['bn1_b']),
        conv_w(rp['conv2_w'], cout), col(rp['conv2_b']),
        col(rp['bn2_g']), col(rp['bn2_b']),
        wsc, col(rp['sc_b']),
        col(rp['sc_bn_g']), col(rp['sc_bn_b']),
    ]


def rwt_layer(x, t_emb, lp):
    """One fused ResNetWithTimeEmbed layer.  x: (Cin, N, H, W) channel-major."""
    Cin, N, H, W = x.shape
    C = lp['r1']['conv1_w'].shape[-1]
    S = N * H * W
    HW = H * W
    cin_pad = _round8(Cin)
    n_pad = _round8(N)

    x_flat = x.reshape(Cin, S)
    if cin_pad > Cin:
        x_flat = jnp.pad(x_flat, ((0, cin_pad - Cin), (0, 0)))    # (cin_pad, S)
    emb = jnp.pad(t_emb.T, ((0, 0), (0, n_pad - N)))              # (C, n_pad)
    sel = _batch_select(N, HW, n_pad)                             # (n_pad, S) const
    masks = _conv_masks(N, H, W)                                  # (9, S) const

    flat = _prep_block(lp['r1'], cin_pad) + _prep_block(lp['r2'], C)
    inputs = [x_flat, emb, sel, masks] + flat

    vmem = pl.BlockSpec(memory_space=pltpu.MemorySpace.VMEM)
    out = pl.pallas_call(
        _make_rwt_kernel(S, W, cin_pad, C),
        out_shape=jax.ShapeDtypeStruct((C, S), x.dtype),
        in_specs=[vmem] * len(inputs),
        out_specs=vmem,
        scratch_shapes=[pltpu.VMEM((C, S + 2 * PADL), jnp.float32)],
    )(*inputs)
    return out.reshape(C, N, H, W)


# --------------------------------- XLA glue ---------------------------------
# TODO(synk): the inter-layer GELU (exact erf) -> BatchNorm -> MaxPool epilogue
# and the final MaxPool stay in XLA glue; erf has no guaranteed Mosaic lowering
# and bit-parity with torch F.gelu is kept.

def maxpool2(x):  # nn.MaxPool2d(2); x: (C, N, H, W)
    C, N, H, W = x.shape
    return x.reshape(C, N, H // 2, 2, W // 2, 2).max(axis=(3, 5))


def batchnorm_cm(x, gamma, beta):
    # Training-mode BatchNorm2d on channel-major (C, N, H, W).
    mu = jnp.mean(x, axis=(1, 2, 3), keepdims=True)
    var = jnp.mean(jnp.square(x - mu), axis=(1, 2, 3), keepdims=True)
    g = gamma.reshape(-1, 1, 1, 1)
    b = beta.reshape(-1, 1, 1, 1)
    return (x - mu) * jax.lax.rsqrt(var + EPS) * g + b


def positional_encoding(emb_dim, max_seq_len):
    pos = jnp.arange(max_seq_len, dtype=jnp.float32)[:, None]
    div = jnp.exp(-math.log(10000.0)
                  * jnp.arange(0, emb_dim, 2, dtype=jnp.float32) / emb_dim)
    pe = jnp.zeros((max_seq_len, emb_dim), jnp.float32)
    pe = pe.at[:, 0::2].set(jnp.sin(pos * div))
    pe = pe.at[:, 1::2].set(jnp.cos(pos * div))
    return pe


# --------------------------- parameters (synthetic) ---------------------------

def init_resnet_block(key, cin, cout):
    ks = jax.random.split(key, 6)
    s = 0.1
    return dict(
        conv1_w=jax.random.normal(ks[0], (3, 3, cin, cout), jnp.float32) * s,
        conv1_b=jax.random.normal(ks[1], (cout,), jnp.float32) * s,
        bn1_g=jnp.ones((cout,), jnp.float32),
        bn1_b=jnp.zeros((cout,), jnp.float32),
        conv2_w=jax.random.normal(ks[2], (3, 3, cout, cout), jnp.float32) * s,
        conv2_b=jax.random.normal(ks[3], (cout,), jnp.float32) * s,
        bn2_g=jnp.ones((cout,), jnp.float32),
        bn2_b=jnp.zeros((cout,), jnp.float32),
        sc_w=jax.random.normal(ks[4], (1, 1, cin, cout), jnp.float32) * s,
        sc_b=jax.random.normal(ks[5], (cout,), jnp.float32) * s,
        sc_bn_g=jnp.ones((cout,), jnp.float32),
        sc_bn_b=jnp.zeros((cout,), jnp.float32),
    )


def init_rwt(key, cin, cout, max_seq_len):
    k1, k2 = jax.random.split(key)
    return dict(r1=init_resnet_block(k1, cin, cout),
                r2=init_resnet_block(k2, cout, cout),
                pe=positional_encoding(cout, max_seq_len))


def init_down(key, layers, max_seq_len=100):
    pairs = list(zip(layers[:-1], layers[1:]))
    ks = jax.random.split(key, len(pairs))
    return dict(
        layers=[init_rwt(ks[i], ci, co, max_seq_len)
                for i, (ci, co) in enumerate(pairs)],
        bns=[(jnp.ones((c,), jnp.float32), jnp.zeros((c,), jnp.float32))
             for c in layers[1:-1]],
    )


# -------------------------------- forward pass --------------------------------

def down_forward(params, x_nchw, t):
    """Down.forward: x = pool(bn(gelu(layer_i(x, t)))) ... ; return pool(last(x, t))."""
    x = jnp.transpose(x_nchw, (1, 0, 2, 3))                # NCHW -> channel-major CNHW
    lys = params['layers']
    for i, lp in enumerate(lys):
        t_emb = lp['pe'][t]                                 # PositionalEncoding.sample
        y = rwt_layer(x, t_emb, lp)                         # fused Pallas kernel
        if i < len(lys) - 1:
            g, b = params['bns'][i]
            y = jax.nn.gelu(y, approximate=False)           # exact erf GELU (XLA)
            y = batchnorm_cm(y, g, b)
        x = maxpool2(y)
    return jnp.transpose(x, (1, 0, 2, 3))                   # back to NCHW


# ------------------------------------ main ------------------------------------

if __name__ == "__main__":
    layers = (4, 8, 16)
    max_seq_len = 100

    key = jax.random.PRNGKey(0)
    kp, kx, kt = jax.random.split(key, 3)

    params = init_down(kp, layers, max_seq_len)
    x = jax.random.normal(kx, (2, 4, 16, 16), jnp.float32)   # NCHW (PyTorch layout)
    t = jax.random.randint(kt, (2,), 0, max_seq_len)         # LongTensor equivalent

    fwd = jax.jit(down_forward)
    out = jax.block_until_ready(fwd(params, x, t))

    assert out.shape == (2, 16, 4, 4), out.shape
    assert out.dtype == jnp.float32
    assert bool(jnp.all(jnp.isfinite(out)))
    print("KERNEL_OK")
</pallas_src>

<mosaic_0001>
module attributes {stable_mosaic.version = 11 : i64} {
  func.func @kernel(%arg0: memref<8x512xf32, #tpu.memory_space<vmem>>, %arg1: memref<8x8xf32, #tpu.memory_space<vmem>>, %arg2: memref<8x512xf32, #tpu.memory_space<vmem>>, %arg3: memref<9x512xf32, #tpu.memory_space<vmem>>, %arg4: memref<9x8x8xf32, #tpu.memory_space<vmem>>, %arg5: memref<8x1xf32, #tpu.memory_space<vmem>>, %arg6: memref<8x1xf32, #tpu.memory_space<vmem>>, %arg7: memref<8x1xf32, #tpu.memory_space<vmem>>, %arg8: memref<9x8x8xf32, #tpu.memory_space<vmem>>, %arg9: memref<8x1xf32, #tpu.memory_space<vmem>>, %arg10: memref<8x1xf32, #tpu.memory_space<vmem>>, %arg11: memref<8x1xf32, #tpu.memory_space<vmem>>, %arg12: memref<8x8xf32, #tpu.memory_space<vmem>>, %arg13: memref<8x1xf32, #tpu.memory_space<vmem>>, %arg14: memref<8x1xf32, #tpu.memory_space<vmem>>, %arg15: memref<8x1xf32, #tpu.memory_space<vmem>>, %arg16: memref<9x8x8xf32, #tpu.memory_space<vmem>>, %arg17: memref<8x1xf32, #tpu.memory_space<vmem>>, %arg18: memref<8x1xf32, #tpu.memory_space<vmem>>, %arg19: memref<8x1xf32, #tpu.memory_space<vmem>>, %arg20: memref<9x8x8xf32, #tpu.memory_space<vmem>>, %arg21: memref<8x1xf32, #tpu.memory_space<vmem>>, %arg22: memref<8x1xf32, #tpu.memory_space<vmem>>, %arg23: memref<8x1xf32, #tpu.memory_space<vmem>>, %arg24: memref<8x8xf32, #tpu.memory_space<vmem>>, %arg25: memref<8x1xf32, #tpu.memory_space<vmem>>, %arg26: memref<8x1xf32, #tpu.memory_space<vmem>>, %arg27: memref<8x1xf32, #tpu.memory_space<vmem>>, %arg28: memref<8x512xf32, #tpu.memory_space<vmem>>, %arg29: memref<8x768xf32, #tpu.memory_space<vmem>>) attributes {dimension_semantics = [], scalar_prefetch = 0 : i64, scratch_operands = 1 : i64, tpu.core_type = #tpu.core_type<tc>} {
    %cst = arith.constant 0.000000e+00 : f32
    %0 = vector.broadcast %cst : f32 to vector<8x128xf32>
    %c0 = arith.constant 0 : index
    %c0_0 = arith.constant 0 : index
    %1 = vector.load %arg29[%c0, %c0_0] : memref<8x768xf32, #tpu.memory_space<vmem>>, vector<8x128xf32>
    tpu.vector_store %arg29[%c0, %c0_0], %0 {strides = array<i32>} : memref<8x768xf32, #tpu.memory_space<vmem>>, vector<8x128xf32>,
    %cst_1 = arith.constant 0.000000e+00 : f32
    %2 = vector.broadcast %cst_1 : f32 to vector<8x128xf32>
    %c0_2 = arith.constant 0 : index
    %c640 = arith.constant 640 : index
    %3 = vector.load %arg29[%c0_2, %c640] : memref<8x768xf32, #tpu.memory_space<vmem>>, vector<8x128xf32>
    tpu.vector_store %arg29[%c0_2, %c640], %2 {strides = array<i32>} : memref<8x768xf32, #tpu.memory_space<vmem>>, vector<8x128xf32>,
    %c0_3 = arith.constant 0 : index
    %c0_4 = arith.constant 0 : index
    %4 = vector.load %arg0[%c0_3, %c0_4] : memref<8x512xf32, #tpu.memory_space<vmem>>, vector<8x512xf32>
    %c0_5 = arith.constant 0 : index
    %c128 = arith.constant 128 : index
    %5 = vector.load %arg29[%c0_5, %c128] : memref<8x768xf32, #tpu.memory_space<vmem>>, vector<8x512xf32>
    tpu.vector_store %arg29[%c0_5, %c128], %4 {strides = array<i32>} : memref<8x768xf32, #tpu.memory_space<vmem>>, vector<8x512xf32>,
    %c0_6 = arith.constant 0 : index
    %c111 = arith.constant 111 : index
    %6 = vector.load %arg29[%c0_6, %c111] : memref<8x768xf32, #tpu.memory_space<vmem>>, vector<8x512xf32>
    %c0_7 = arith.constant 0 : index
    %c0_8 = arith.constant 0 : index
    %7 = vector.load %arg3[%c0_7, %c0_8] : memref<9x512xf32, #tpu.memory_space<vmem>>, vector<1x512xf32>
    %8 = vector.broadcast %7 : vector<1x512xf32> to vector<8x512xf32>
    %9 = arith.mulf %6, %8 : vector<8x512xf32>
    %c0_9 = arith.constant 0 : index
    %c0_10 = arith.constant 0 : index
    %c0_11 = arith.constant 0 : index
    %10 = vector.load %arg4[%c0_9, %c0_10, %c0_11] : memref<9x8x8xf32, #tpu.memory_space<vmem>>, vector<1x8x8xf32>
    %11 = vector.shape_cast %10 : vector<1x8x8xf32> to vector<8x8xf32>
    %cst_12 = arith.constant dense<0.000000e+00> : vector<8x512xf32>
    %12 = tpu.matmul %11, %9, %cst_12 {dimension_numbers = #tpu.dot_dimension_numbers<[1], [0], [0], [1], [0, 0, 1, 1], [], []>} : vector<8x8xf32>, vector<8x512xf32>, vector<8x512xf32> -> vector<8x512xf32>
    %c0_13 = arith.constant 0 : index
    %c112 = arith.constant 112 : index
    %13 = vector.load %arg29[%c0_13, %c112] : memref<8x768xf32, #tpu.memory_space<vmem>>, vector<8x512xf32>
    %c1 = arith.constant 1 : index
    %c0_14 = arith.constant 0 : index
    %14 = vector.load %arg3[%c1, %c0_14] : memref<9x512xf32, #tpu.memory_space<vmem>>, vector<1x512xf32>
    %15 = vector.broadcast %14 : vector<1x512xf32> to vector<8x512xf32>
    %16 = arith.mulf %13, %15 : vector<8x512xf32>
    %c1_15 = arith.constant 1 : index
    %c0_16 = arith.constant 0 : index
    %c0_17 = arith.constant 0 : index
    %17 = vector.load %arg4[%c1_15, %c0_16, %c0_17] : memref<9x8x8xf32, #tpu.memory_space<vmem>>, vector<1x8x8xf32>
    %18 = vector.shape_cast %17 : vector<1x8x8xf32> to vector<8x8xf32>
    %cst_18 = arith.constant dense<0.000000e+00> : vector<8x512xf32>
    %19 = tpu.matmul %18, %16, %cst_18 {dimension_numbers = #tpu.dot_dimension_numbers<[1], [0], [0], [1], [0, 0, 1, 1], [], []>} : vector<8x8xf32>, vector<8x512xf32>, vector<8x512xf32> -> vector<8x512xf32>
    %20 = arith.addf %12, %19 : vector<8x512xf32>
    %c0_19 = arith.constant 0 : index
    %c113 = arith.constant 113 : index
    %21 = vector.load %arg29[%c0_19, %c113] : memref<8x768xf32, #tpu.memory_space<vmem>>, vector<8x512xf32>
    %c2 = arith.constant 2 : index
    %c0_20 = arith.constant 0 : index
    %22 = vector.load %arg3[%c2, %c0_20] : memref<9x512xf32, #tpu.memory_space<vmem>>, vector<1x512xf32>
    %23 = vector.broadcast %22 : vector<1x512xf32> to vector<8x512xf32>
    %24 = arith.mulf %21, %23 : vector<8x512xf32>
    %c2_21 = arith.constant 2 : index
    %c0_22 = arith.constant 0 : index
    %c0_23 = arith.constant 0 : index
    %25 = vector.load %arg4[%c2_21, %c0_22, %c0_23] : memref<9x8x8xf32, #tpu.memory_space<vmem>>, vector<1x8x8xf32>
    %26 = vector.shape_cast %25 : vector<1x8x8xf32> to vector<8x8xf32>
    %cst_24 = arith.constant dense<0.000000e+00> : vector<8x512xf32>
    %27 = tpu.matmul %26, %24, %cst_24 {dimension_numbers = #tpu.dot_dimension_numbers<[1], [0], [0], [1], [0, 0, 1, 1], [], []>} : vector<8x8xf32>, vector<8x512xf32>, vector<8x512xf32> -> vector<8x512xf32>
    %28 = arith.addf %20, %27 : vector<8x512xf32>
    %c0_25 = arith.constant 0 : index
    %c127 = arith.constant 127 : index
    %29 = vector.load %arg29[%c0_25, %c127] : memref<8x768xf32, #tpu.memory_space<vmem>>, vector<8x512xf32>
    %c3 = arith.constant 3 : index
    %c0_26 = arith.constant 0 : index
    %30 = vector.load %arg3[%c3, %c0_26] : memref<9x512xf32, #tpu.memory_space<vmem>>, vector<1x512xf32>
    %31 = vector.broadcast %30 : vector<1x512xf32> to vector<8x512xf32>
    %32 = arith.mulf %29, %31 : vector<8x512xf32>
    %c3_27 = arith.constant 3 : index
    %c0_28 = arith.constant 0 : index
    %c0_29 = arith.constant 0 : index
    %33 = vector.load %arg4[%c3_27, %c0_28, %c0_29] : memref<9x8x8xf32, #tpu.memory_space<vmem>>, vector<1x8x8xf32>
    %34 = vector.shape_cast %33 : vector<1x8x8xf32> to vector<8x8xf32>
    %cst_30 = arith.constant dense<0.000000e+00> : vector<8x512xf32>
    %35 = tpu.matmul %34, %32, %cst_30 {dimension_numbers = #tpu.dot_dimension_numbers<[1], [0], [0], [1], [0, 0, 1, 1], [], []>} : vector<8x8xf32>, vector<8x512xf32>, vector<8x512xf32> -> vector<8x512xf32>
    %36 = arith.addf %28, %35 : vector<8x512xf32>
    %c0_31 = arith.constant 0 : index
    %c128_32 = arith.constant 128 : index
    %37 = vector.load %arg29[%c0_31, %c128_32] : memref<8x768xf32, #tpu.memory_space<vmem>>, vector<8x512xf32>
    %c4 = arith.constant 4 : index
    %c0_33 = arith.constant 0 : index
    %c0_34 = arith.constant 0 : index
    %38 = vector.load %arg4[%c4, %c0_33, %c0_34] : memref<9x8x8xf32, #tpu.memory_space<vmem>>, vector<1x8x8xf32>
    %39 = vector.shape_cast %38 : vector<1x8x8xf32> to vector<8x8xf32>
    %cst_35 = arith.constant dense<0.000000e+00> : vector<8x512xf32>
    %40 = tpu.matmul %39, %37, %cst_35 {dimension_numbers = #tpu.dot_dimension_numbers<[1], [0], [0], [1], [0, 0, 1, 1], [], []>} : vector<8x8xf32>, vector<8x512xf32>, vector<8x512xf32> -> vector<8x512xf32>
    %41 = arith.addf %36, %40 : vector<8x512xf32>
    %c0_36 = arith.constant 0 : index
    %c129 = arith.constant 129 : index
    %42 = vector.load %arg29[%c0_36, %c129] : memref<8x768xf32, #tpu.memory_space<vmem>>, vector<8x512xf32>
    %c5 = arith.constant 5 : index
    %c0_37 = arith.constant 0 : index
    %43 = vector.load %arg3[%c5, %c0_37] : memref<9x512xf32, #tpu.memory_space<vmem>>, vector<1x512xf32>
    %44 = vector.broadcast %43 : vector<1x512xf32> to vector<8x512xf32>
    %45 = arith.mulf %42, %44 : vector<8x512xf32>
    %c5_38 = arith.constant 5 : index
    %c0_39 = arith.constant 0 : index
    %c0_40 = arith.constant 0 : index
    %46 = vector.load %arg4[%c5_38, %c0_39, %c0_40] : memref<9x8x8xf32, #tpu.memory_space<vmem>>, vector<1x8x8xf32>
    %47 = vector.shape_cast %46 : vector<1x8x8xf32> to vector<8x8xf32>
    %cst_41 = arith.constant dense<0.000000e+00> : vector<8x512xf32>
    %48 = tpu.matmul %47, %45, %cst_41 {dimension_numbers = #tpu.dot_dimension_numbers<[1], [0], [0], [1], [0, 0, 1, 1], [], []>} : vector<8x8xf32>, vector<8x512xf32>, vector<8x512xf32> -> vector<8x512xf32>
    %49 = arith.addf %41, %48 : vector<8x512xf32>
    %c0_42 = arith.constant 0 : index
    %c143 = arith.constant 143 : index
    %50 = vector.load %arg29[%c0_42, %c143] : memref<8x768xf32, #tpu.memory_space<vmem>>, vector<8x512xf32>
    %c6 = arith.constant 6 : index
    %c0_43 = arith.constant 0 : index
    %51 = vector.load %arg3[%c6, %c0_43] : memref<9x512xf32, #tpu.memory_space<vmem>>, vector<1x512xf32>
    %52 = vector.broadcast %51 : vector<1x512xf32> to vector<8x512xf32>
    %53 = arith.mulf %50, %52 : vector<8x512xf32>
    %c6_44 = arith.constant 6 : index
    %c0_45 = arith.constant 0 : index
    %c0_46 = arith.constant 0 : index
    %54 = vector.load %arg4[%c6_44, %c0_45, %c0_46] : memref<9x8x8xf32, #tpu.memory_space<vmem>>, vector<1x8x8xf32>
    %55 = vector.shape_cast %54 : vector<1x8x8xf32> to vector<8x8xf32>
    %cst_47 = arith.constant dense<0.000000e+00> : vector<8x512xf32>
    %56 = tpu.matmul %55, %53, %cst_47 {dimension_numbers = #tpu.dot_dimension_numbers<[1], [0], [0], [1], [0, 0, 1, 1], [], []>} : vector<8x8xf32>, vector<8x512xf32>, vector<8x512xf32> -> vector<8x512xf32>
    %57 = arith.addf %49, %56 : vector<8x512xf32>
    %c0_48 = arith.constant 0 : index
    %c144 = arith.constant 144 : index
    %58 = vector.load %arg29[%c0_48, %c144] : memref<8x768xf32, #tpu.memory_space<vmem>>, vector<8x512xf32>
    %c7 = arith.constant 7 : index
    %c0_49 = arith.constant 0 : index
    %59 = vector.load %arg3[%c7, %c0_49] : memref<9x512xf32, #tpu.memory_space<vmem>>, vector<1x512xf32>
    %60 = vector.broadcast %59 : vector<1x512xf32> to vector<8x512xf32>
    %61 = arith.mulf %58, %60 : vector<8x512xf32>
    %c7_50 = arith.constant 7 : index
    %c0_51 = arith.constant 0 : index
    %c0_52 = arith.constant 0 : index
    %62 = vector.load %arg4[%c7_50, %c0_51, %c0_52] : memref<9x8x8xf32, #tpu.memory_space<vmem>>, vector<1x8x8xf32>
    %63 = vector.shape_cast %62 : vector<1x8x8xf32> to vector<8x8xf32>
    %cst_53 = arith.constant dense<0.000000e+00> : vector<8x512xf32>
    %64 = tpu.matmul %63, %61, %cst_53 {dimension_numbers = #tpu.dot_dimension_numbers<[1], [0], [0], [1], [0, 0, 1, 1], [], []>} : vector<8x8xf32>, vector<8x512xf32>, vector<8x512xf32> -> vector<8x512xf32>
    %65 = arith.addf %57, %64 : vector<8x512xf32>
    %c0_54 = arith.constant 0 : index
    %c145 = arith.constant 145 : index
    %66 = vector.load %arg29[%c0_54, %c145] : memref<8x768xf32, #tpu.memory_space<vmem>>, vector<8x512xf32>
    %c8 = arith.constant 8 : index
    %c0_55 = arith.constant 0 : index
    %67 = vector.load %arg3[%c8, %c0_55] : memref<9x512xf32, #tpu.memory_space<vmem>>, vector<1x512xf32>
    %68 = vector.broadcast %67 : vector<1x512xf32> to vector<8x512xf32>
    %69 = arith.mulf %66, %68 : vector<8x512xf32>
    %c8_56 = arith.constant 8 : index
    %c0_57 = arith.constant 0 : index
    %c0_58 = arith.constant 0 : index
    %70 = vector.load %arg4[%c8_56, %c0_57, %c0_58] : memref<9x8x8xf32, #tpu.memory_space<vmem>>, vector<1x8x8xf32>
    %71 = vector.shape_cast %70 : vector<1x8x8xf32> to vector<8x8xf32>
    %cst_59 = arith.constant dense<0.000000e+00> : vector<8x512xf32>
    %72 = tpu.matmul %71, %69, %cst_59 {dimension_numbers = #tpu.dot_dimension_numbers<[1], [0], [0], [1], [0, 0, 1, 1], [], []>} : vector<8x8xf32>, vector<8x512xf32>, vector<8x512xf32> -> vector<8x512xf32>
    %73 = arith.addf %65, %72 : vector<8x512xf32>
    %c0_60 = arith.constant 0 : index
    %c0_61 = arith.constant 0 : index
    %74 = vector.load %arg5[%c0_60, %c0_61] : memref<8x1xf32, #tpu.memory_space<vmem>>, vector<8x1xf32>
    %75 = vector.broadcast %74 : vector<8x1xf32> to vector<8x512xf32>
    %76 = arith.addf %73, %75 : vector<8x512xf32>
    %cst_62 = arith.constant dense<0.000000e+00> : vector<8xf32>
    %77 = vector.multi_reduction <add>, %76, %cst_62 [1] : vector<8x512xf32> to vector<8xf32>
    %78 = vector.shape_cast %77 : vector<8xf32> to vector<8x1xf32>
    %cst_63 = arith.constant 5.120000e+02 : f32
    %79 = vector.broadcast %cst_63 : f32 to vector<8x1xf32>
    %80 = arith.divf %78, %79 : vector<8x1xf32>
    %81 = vector.broadcast %80 : vector<8x1xf32> to vector<8x512xf32>
    %82 = arith.subf %76, %81 : vector<8x512xf32>
    %83 = arith.mulf %82, %82 : vector<8x512xf32>
    %cst_64 = arith.constant dense<0.000000e+00> : vector<8xf32>
    %84 = vector.multi_reduction <add>, %83, %cst_64 [1] : vector<8x512xf32> to vector<8xf32>
    %85 = vector.shape_cast %84 : vector<8xf32> to vector<8x1xf32>
    %cst_65 = arith.constant 5.120000e+02 : f32
    %86 = vector.broadcast %cst_65 : f32 to vector<8x1xf32>
    %87 = arith.divf %85, %86 : vector<8x1xf32>
    %88 = vector.broadcast %80 : vector<8x1xf32> to vector<8x512xf32>
    %89 = arith.subf %76, %88 : vector<8x512xf32>
    %cst_66 = arith.constant 9.99999974E-6 : f32
    %90 = vector.broadcast %cst_66 : f32 to vector<8x1xf32>
    %91 = arith.addf %87, %90 : vector<8x1xf32>
    %92 = math.rsqrt %91 : vector<8x1xf32>
    %93 = vector.broadcast %92 : vector<8x1xf32> to vector<8x512xf32>
    %94 = arith.mulf %89, %93 : vector<8x512xf32>
    %c0_67 = arith.constant 0 : index
    %c0_68 = arith.constant 0 : index
    %95 = vector.load %arg6[%c0_67, %c0_68] : memref<8x1xf32, #tpu.memory_space<vmem>>, vector<8x1xf32>
    %96 = vector.broadcast %95 : vector<8x1xf32> to vector<8x512xf32>
    %97 = arith.mulf %94, %96 : vector<8x512xf32>
    %c0_69 = arith.constant 0 : index
    %c0_70 = arith.constant 0 : index
    %98 = vector.load %arg7[%c0_69, %c0_70] : memref<8x1xf32, #tpu.memory_space<vmem>>, vector<8x1xf32>
    %99 = vector.broadcast %98 : vector<8x1xf32> to vector<8x512xf32>
    %100 = arith.addf %97, %99 : vector<8x512xf32>
    %cst_71 = arith.constant 0.000000e+00 : f32
    %101 = vector.broadcast %cst_71 : f32 to vector<8x512xf32>
    %102 = arith.maximumf %100, %101 : vector<8x512xf32>
    %c0_72 = arith.constant 0 : index
    %c128_73 = arith.constant 128 : index
    %103 = vector.load %arg29[%c0_72, %c128_73] : memref<8x768xf32, #tpu.memory_space<vmem>>, vector<8x512xf32>
    tpu.vector_store %arg29[%c0_72, %c128_73], %102 {strides = array<i32>} : memref<8x768xf32, #tpu.memory_space<vmem>>, vector<8x512xf32>,
    %c0_74 = arith.constant 0 : index
    %c111_75 = arith.constant 111 : index
    %104 = vector.load %arg29[%c0_74, %c111_75] : memref<8x768xf32, #tpu.memory_space<vmem>>, vector<8x512xf32>
    %c0_76 = arith.constant 0 : index
    %c0_77 = arith.constant 0 : index
    %105 = vector.load %arg3[%c0_76, %c0_77] : memref<9x512xf32, #tpu.memory_space<vmem>>, vector<1x512xf32>
    %106 = vector.broadcast %105 : vector<1x512xf32> to vector<8x512xf32>
    %107 = arith.mulf %104, %106 : vector<8x512xf32>
    %c0_78 = arith.constant 0 : index
    %c0_79 = arith.constant 0 : index
    %c0_80 = arith.constant 0 : index
    %108 = vector.load %arg8[%c0_78, %c0_79, %c0_80] : memref<9x8x8xf32, #tpu.memory_space<vmem>>, vector<1x8x8xf32>
    %109 = vector.shape_cast %108 : vector<1x8x8xf32> to vector<8x8xf32>
    %cst_81 = arith.constant dense<0.000000e+00> : vector<8x512xf32>
    %110 = tpu.matmul %109, %107, %cst_81 {dimension_numbers = #tpu.dot_dimension_numbers<[1], [0], [0], [1], [0, 0, 1, 1], [], []>} : vector<8x8xf32>, vector<8x512xf32>, vector<8x512xf32> -> vector<8x512xf32>
    %c0_82 = arith.constant 0 : index
    %c112_83 = arith.constant 112 : index
    %111 = vector.load %arg29[%c0_82, %c112_83] : memref<8x768xf32, #tpu.memory_space<vmem>>, vector<8x512xf32>
    %c1_84 = arith.constant 1 : index
    %c0_85 = arith.constant 0 : index
    %112 = vector.load %arg3[%c1_84, %c0_85] : memref<9x512xf32, #tpu.memory_space<vmem>>, vector<1x512xf32>
    %113 = vector.broadcast %112 : vector<1x512xf32> to vector<8x512xf32>
    %114 = arith.mulf %111, %113 : vector<8x512xf32>
    %c1_86 = arith.constant 1 : index
    %c0_87 = arith.constant 0 : index
    %c0_88 = arith.constant 0 : index
    %115 = vector.load %arg8[%c1_86, %c0_87, %c0_88] : memref<9x8x8xf32, #tpu.memory_space<vmem>>, vector<1x8x8xf32>
    %116 = vector.shape_cast %115 : vector<1x8x8xf32> to vector<8x8xf32>
    %cst_89 = arith.constant dense<0.000000e+00> : vector<8x512xf32>
    %117 = tpu.matmul %116, %114, %cst_89 {dimension_numbers = #tpu.dot_dimension_numbers<[1], [0], [0], [1], [0, 0, 1, 1], [], []>} : vector<8x8xf32>, vector<8x512xf32>, vector<8x512xf32> -> vector<8x512xf32>
    %118 = arith.addf %110, %117 : vector<8x512xf32>
    %c0_90 = arith.constant 0 : index
    %c113_91 = arith.constant 113 : index
    %119 = vector.load %arg29[%c0_90, %c113_91] : memref<8x768xf32, #tpu.memory_space<vmem>>, vector<8x512xf32>
    %c2_92 = arith.constant 2 : index
    %c0_93 = arith.constant 0 : index
    %120 = vector.load %arg3[%c2_92, %c0_93] : memref<9x512xf32, #tpu.memory_space<vmem>>, vector<1x512xf32>
    %121 = vector.broadcast %120 : vector<1x512xf32> to vector<8x512xf32>
    %122 = arith.mulf %119, %121 : vector<8x512xf32>
    %c2_94 = arith.constant 2 : index
    %c0_95 = arith.constant 0 : index
    %c0_96 = arith.constant 0 : index
    %123 = vector.load %arg8[%c2_94, %c0_95, %c0_96] : memref<9x8x8xf32, #tpu.memory_space<vmem>>, vector<1x8x8xf32>
    %124 = vector.shape_cast %123 : vector<1x8x8xf32> to vector<8x8xf32>
    %cst_97 = arith.constant dense<0.000000e+00> : vector<8x512xf32>
    %125 = tpu.matmul %124, %122, %cst_97 {dimension_numbers = #tpu.dot_dimension_numbers<[1], [0], [0], [1], [0, 0, 1, 1], [], []>} : vector<8x8xf32>, vector<8x512xf32>, vector<8x512xf32> -> vector<8x512xf32>
    %126 = arith.addf %118, %125 : vector<8x512xf32>
    %c0_98 = arith.constant 0 : index
    %c127_99 = arith.constant 127 : index
    %127 = vector.load %arg29[%c0_98, %c127_99] : memref<8x768xf32, #tpu.memory_space<vmem>>, vector<8x512xf32>
    %c3_100 = arith.constant 3 : index
    %c0_101 = arith.constant 0 : index
    %128 = vector.load %arg3[%c3_100, %c0_101] : memref<9x512xf32, #tpu.memory_space<vmem>>, vector<1x512xf32>
    %129 = vector.broadcast %128 : vector<1x512xf32> to vector<8x512xf32>
    %130 = arith.mulf %127, %129 : vector<8x512xf32>
    %c3_102 = arith.constant 3 : index
    %c0_103 = arith.constant 0 : index
    %c0_104 = arith.constant 0 : index
    %131 = vector.load %arg8[%c3_102, %c0_103, %c0_104] : memref<9x8x8xf32, #tpu.memory_space<vmem>>, vector<1x8x8xf32>
    %132 = vector.shape_cast %131 : vector<1x8x8xf32> to vector<8x8xf32>
    %cst_105 = arith.constant dense<0.000000e+00> : vector<8x512xf32>
    %133 = tpu.matmul %132, %130, %cst_105 {dimension_numbers = #tpu.dot_dimension_numbers<[1], [0], [0], [1], [0, 0, 1, 1], [], []>} : vector<8x8xf32>, vector<8x512xf32>, vector<8x512xf32> -> vector<8x512xf32>
    %134 = arith.addf %126, %133 : vector<8x512xf32>
    %c0_106 = arith.constant 0 : index
    %c128_107 = arith.constant 128 : index
    %135 = vector.load %arg29[%c0_106, %c128_107] : memref<8x768xf32, #tpu.memory_space<vmem>>, vector<8x512xf32>
    %c4_108 = arith.constant 4 : index
    %c0_109 = arith.constant 0 : index
    %c0_110 = arith.constant 0 : index
    %136 = vector.load %arg8[%c4_108, %c0_109, %c0_110] : memref<9x8x8xf32, #tpu.memory_space<vmem>>, vector<1x8x8xf32>
    %137 = vector.shape_cast %136 : vector<1x8x8xf32> to vector<8x8xf32>
    %cst_111 = arith.constant dense<0.000000e+00> : vector<8x512xf32>
    %138 = tpu.matmul %137, %135, %cst_111 {dimension_numbers = #tpu.dot_dimension_numbers<[1], [0], [0], [1], [0, 0, 1, 1], [], []>} : vector<8x8xf32>, vector<8x512xf32>, vector<8x512xf32> -> vector<8x512xf32>
    %139 = arith.addf %134, %138 : vector<8x512xf32>
    %c0_112 = arith.constant 0 : index
    %c129_113 = arith.constant 129 : index
    %140 = vector.load %arg29[%c0_112, %c129_113] : memref<8x768xf32, #tpu.memory_space<vmem>>, vector<8x512xf32>
    %c5_114 = arith.constant 5 : index
    %c0_115 = arith.constant 0 : index
    %141 = vector.load %arg3[%c5_114, %c0_115] : memref<9x512xf32, #tpu.memory_space<vmem>>, vector<1x512xf32>
    %142 = vector.broadcast %141 : vector<1x512xf32> to vector<8x512xf32>
    %143 = arith.mulf %140, %142 : vector<8x512xf32>
    %c5_116 = arith.constant 5 : index
    %c0_117 = arith.constant 0 : index
    %c0_118 = arith.constant 0 : index
    %144 = vector.load %arg8[%c5_116, %c0_117, %c0_118] : memref<9x8x8xf32, #tpu.memory_space<vmem>>, vector<1x8x8xf32>
    %145 = vector.shape_cast %144 : vector<1x8x8xf32> to vector<8x8xf32>
    %cst_119 = arith.constant dense<0.000000e+00> : vector<8x512xf32>
    %146 = tpu.matmul %145, %143, %cst_119 {dimension_numbers = #tpu.dot_dimension_numbers<[1], [0], [0], [1], [0, 0, 1, 1], [], []>} : vector<8x8xf32>, vector<8x512xf32>, vector<8x512xf32> -> vector<8x512xf32>
    %147 = arith.addf %139, %146 : vector<8x512xf32>
    %c0_120 = arith.constant 0 : index
    %c143_121 = arith.constant 143 : index
    %148 = vector.load %arg29[%c0_120, %c143_121] : memref<8x768xf32, #tpu.memory_space<vmem>>, vector<8x512xf32>
    %c6_122 = arith.constant 6 : index
    %c0_123 = arith.constant 0 : index
    %149 = vector.load %arg3[%c6_122, %c0_123] : memref<9x512xf32, #tpu.memory_space<vmem>>, vector<1x512xf32>
    %150 = vector.broadcast %149 : vector<1x512xf32> to vector<8x512xf32>
    %151 = arith.mulf %148, %150 : vector<8x512xf32>
    %c6_124 = arith.constant 6 : index
    %c0_125 = arith.constant 0 : index
    %c0_126 = arith.constant 0 : index
    %152 = vector.load %arg8[%c6_124, %c0_125, %c0_126] : memref<9x8x8xf32, #tpu.memory_space<vmem>>, vector<1x8x8xf32>
    %153 = vector.shape_cast %152 : vector<1x8x8xf32> to vector<8x8xf32>
    %cst_127 = arith.constant dense<0.000000e+00> : vector<8x512xf32>
    %154 = tpu.matmul %153, %151, %cst_127 {dimension_numbers = #tpu.dot_dimension_numbers<[1], [0], [0], [1], [0, 0, 1, 1], [], []>} : vector<8x8xf32>, vector<8x512xf32>, vector<8x512xf32> -> vector<8x512xf32>
    %155 = arith.addf %147, %154 : vector<8x512xf32>
    %c0_128 = arith.constant 0 : index
    %c144_129 = arith.constant 144 : index
    %156 = vector.load %arg29[%c0_128, %c144_129] : memref<8x768xf32, #tpu.memory_space<vmem>>, vector<8x512xf32>
    %c7_130 = arith.constant 7 : index
    %c0_131 = arith.constant 0 : index
    %157 = vector.load %arg3[%c7_130, %c0_131] : memref<9x512xf32, #tpu.memory_space<vmem>>, vector<1x512xf32>
    %158 = vector.broadcast %157 : vector<1x512xf32> to vector<8x512xf32>
    %159 = arith.mulf %156, %158 : vector<8x512xf32>
    %c7_132 = arith.constant 7 : index
    %c0_133 = arith.constant 0 : index
    %c0_134 = arith.constant 0 : index
    %160 = vector.load %arg8[%c7_132, %c0_133, %c0_134] : memref<9x8x8xf32, #tpu.memory_space<vmem>>, vector<1x8x8xf32>
    %161 = vector.shape_cast %160 : vector<1x8x8xf32> to vector<8x8xf32>
    %cst_135 = arith.constant dense<0.000000e+00> : vector<8x512xf32>
    %162 = tpu.matmul %161, %159, %cst_135 {dimension_numbers = #tpu.dot_dimension_numbers<[1], [0], [0], [1], [0, 0, 1, 1], [], []>} : vector<8x8xf32>, vector<8x512xf32>, vector<8x512xf32> -> vector<8x512xf32>
    %163 = arith.addf %155, %162 : vector<8x512xf32>
    %c0_136 = arith.constant 0 : index
    %c145_137 = arith.constant 145 : index
    %164 = vector.load %arg29[%c0_136, %c145_137] : memref<8x768xf32, #tpu.memory_space<vmem>>, vector<8x512xf32>
    %c8_138 = arith.constant 8 : index
    %c0_139 = arith.constant 0 : index
    %165 = vector.load %arg3[%c8_138, %c0_139] : memref<9x512xf32, #tpu.memory_space<vmem>>, vector<1x512xf32>
    %166 = vector.broadcast %165 : vector<1x512xf32> to vector<8x512xf32>
    %167 = arith.mulf %164, %166 : vector<8x512xf32>
    %c8_140 = arith.constant 8 : index
    %c0_141 = arith.constant 0 : index
    %c0_142 = arith.constant 0 : index
    %168 = vector.load %arg8[%c8_140, %c0_141, %c0_142] : memref<9x8x8xf32, #tpu.memory_space<vmem>>, vector<1x8x8xf32>
    %169 = vector.shape_cast %168 : vector<1x8x8xf32> to vector<8x8xf32>
    %cst_143 = arith.constant dense<0.000000e+00> : vector<8x512xf32>
    %170 = tpu.matmul %169, %167, %cst_143 {dimension_numbers = #tpu.dot_dimension_numbers<[1], [0], [0], [1], [0, 0, 1, 1], [], []>} : vector<8x8xf32>, vector<8x512xf32>, vector<8x512xf32> -> vector<8x512xf32>
    %171 = arith.addf %163, %170 : vector<8x512xf32>
    %c0_144 = arith.constant 0 : index
    %c0_145 = arith.constant 0 : index
    %172 = vector.load %arg9[%c0_144, %c0_145] : memref<8x1xf32, #tpu.memory_space<vmem>>, vector<8x1xf32>
    %173 = vector.broadcast %172 : vector<8x1xf32> to vector<8x512xf32>
    %174 = arith.addf %171, %173 : vector<8x512xf32>
    %cst_146 = arith.constant dense<0.000000e+00> : vector<8xf32>
    %175 = vector.multi_reduction <add>, %174, %cst_146 [1] : vector<8x512xf32> to vector<8xf32>
    %176 = vector.shape_cast %175 : vector<8xf32> to vector<8x1xf32>
    %cst_147 = arith.constant 5.120000e+02 : f32
    %177 = vector.broadcast %cst_147 : f32 to vector<8x1xf32>
    %178 = arith.divf %176, %177 : vector<8x1xf32>
    %179 = vector.broadcast %178 : vector<8x1xf32> to vector<8x512xf32>
    %180 = arith.subf %174, %179 : vector<8x512xf32>
    %181 = arith.mulf %180, %180 : vector<8x512xf32>
    %cst_148 = arith.constant dense<0.000000e+00> : vector<8xf32>
    %182 = vector.multi_reduction <add>, %181, %cst_148 [1] : vector<8x512xf32> to vector<8xf32>
    %183 = vector.shape_cast %182 : vector<8xf32> to vector<8x1xf32>
    %cst_149 = arith.constant 5.120000e+02 : f32
    %184 = vector.broadcast %cst_149 : f32 to vector<8x1xf32>
    %185 = arith.divf %183, %184 : vector<8x1xf32>
    %186 = vector.broadcast %178 : vector<8x1xf32> to vector<8x512xf32>
    %187 = arith.subf %174, %186 : vector<8x512xf32>
    %cst_150 = arith.constant 9.99999974E-6 : f32
    %188 = vector.broadcast %cst_150 : f32 to vector<8x1xf32>
    %189 = arith.addf %185, %188 : vector<8x1xf32>
    %190 = math.rsqrt %189 : vector<8x1xf32>
    %191 = vector.broadcast %190 : vector<8x1xf32> to vector<8x512xf32>
    %192 = arith.mulf %187, %191 : vector<8x512xf32>
    %c0_151 = arith.constant 0 : index
    %c0_152 = arith.constant 0 : index
    %193 = vector.load %arg10[%c0_151, %c0_152] : memref<8x1xf32, #tpu.memory_space<vmem>>, vector<8x1xf32>
    %194 = vector.broadcast %193 : vector<8x1xf32> to vector<8x512xf32>
    %195 = arith.mulf %192, %194 : vector<8x512xf32>
    %c0_153 = arith.constant 0 : index
    %c0_154 = arith.constant 0 : index
    %196 = vector.load %arg11[%c0_153, %c0_154] : memref<8x1xf32, #tpu.memory_space<vmem>>, vector<8x1xf32>
    %197 = vector.broadcast %196 : vector<8x1xf32> to vector<8x512xf32>
    %198 = arith.addf %195, %197 : vector<8x512xf32>
    %c0_155 = arith.constant 0 : index
    %c0_156 = arith.constant 0 : index
    %199 = vector.load %arg12[%c0_155, %c0_156] : memref<8x8xf32, #tpu.memory_space<vmem>>, vector<8x8xf32>
    %cst_157 = arith.constant dense<0.000000e+00> : vector<8x512xf32>
    %200 = tpu.matmul %199, %4, %cst_157 {dimension_numbers = #tpu.dot_dimension_numbers<[1], [0], [0], [1], [0, 0, 1, 1], [], []>} : vector<8x8xf32>, vector<8x512xf32>, vector<8x512xf32> -> vector<8x512xf32>
    %c0_158 = arith.constant 0 : index
    %c0_159 = arith.constant 0 : index
    %201 = vector.load %arg13[%c0_158, %c0_159] : memref<8x1xf32, #tpu.memory_space<vmem>>, vector<8x1xf32>
    %202 = vector.broadcast %201 : vector<8x1xf32> to vector<8x512xf32>
    %203 = arith.addf %200, %202 : vector<8x512xf32>
    %cst_160 = arith.constant dense<0.000000e+00> : vector<8xf32>
    %204 = vector.multi_reduction <add>, %203, %cst_160 [1] : vector<8x512xf32> to vector<8xf32>
    %205 = vector.shape_cast %204 : vector<8xf32> to vector<8x1xf32>
    %cst_161 = arith.constant 5.120000e+02 : f32
    %206 = vector.broadcast %cst_161 : f32 to vector<8x1xf32>
    %207 = arith.divf %205, %206 : vector<8x1xf32>
    %208 = vector.broadcast %207 : vector<8x1xf32> to vector<8x512xf32>
    %209 = arith.subf %203, %208 : vector<8x512xf32>
    %210 = arith.mulf %209, %209 : vector<8x512xf32>
    %cst_162 = arith.constant dense<0.000000e+00> : vector<8xf32>
    %211 = vector.multi_reduction <add>, %210, %cst_162 [1] : vector<8x512xf32> to vector<8xf32>
    %212 = vector.shape_cast %211 : vector<8xf32> to vector<8x1xf32>
    %cst_163 = arith.constant 5.120000e+02 : f32
    %213 = vector.broadcast %cst_163 : f32 to vector<8x1xf32>
    %214 = arith.divf %212, %213 : vector<8x1xf32>
    %215 = vector.broadcast %207 : vector<8x1xf32> to vector<8x512xf32>
    %216 = arith.subf %203, %215 : vector<8x512xf32>
    %cst_164 = arith.constant 9.99999974E-6 : f32
    %217 = vector.broadcast %cst_164 : f32 to vector<8x1xf32>
    %218 = arith.addf %214, %217 : vector<8x1xf32>
    %219 = math.rsqrt %218 : vector<8x1xf32>
    %220 = vector.broadcast %219 : vector<8x1xf32> to vector<8x512xf32>
    %221 = arith.mulf %216, %220 : vector<8x512xf32>
    %c0_165 = arith.constant 0 : index
    %c0_166 = arith.constant 0 : index
    %222 = vector.load %arg14[%c0_165, %c0_166] : memref<8x1xf32, #tpu.memory_space<vmem>>, vector<8x1xf32>
    %223 = vector.broadcast %222 : vector<8x1xf32> to vector<8x512xf32>
    %224 = arith.mulf %221, %223 : vector<8x512xf32>
    %c0_167 = arith.constant 0 : index
    %c0_168 = arith.constant 0 : index
    %225 = vector.load %arg15[%c0_167, %c0_168] : memref<8x1xf32, #tpu.memory_space<vmem>>, vector<8x1xf32>
    %226 = vector.broadcast %225 : vector<8x1xf32> to vector<8x512xf32>
    %227 = arith.addf %224, %226 : vector<8x512xf32>
    %228 = arith.addf %198, %227 : vector<8x512xf32>
    %cst_169 = arith.constant 0.000000e+00 : f32
    %229 = vector.broadcast %cst_169 : f32 to vector<8x512xf32>
    %230 = arith.maximumf %228, %229 : vector<8x512xf32>
    %c0_170 = arith.constant 0 : index
    %c128_171 = arith.constant 128 : index
    %231 = vector.load %arg29[%c0_170, %c128_171] : memref<8x768xf32, #tpu.memory_space<vmem>>, vector<8x512xf32>
    tpu.vector_store %arg29[%c0_170, %c128_171], %230 {strides = array<i32>} : memref<8x768xf32, #tpu.memory_space<vmem>>, vector<8x512xf32>,
    %c0_172 = arith.constant 0 : index
    %c111_173 = arith.constant 111 : index
    %232 = vector.load %arg29[%c0_172, %c111_173] : memref<8x768xf32, #tpu.memory_space<vmem>>, vector<8x512xf32>
    %c0_174 = arith.constant 0 : index
    %c0_175 = arith.constant 0 : index
    %233 = vector.load %arg3[%c0_174, %c0_175] : memref<9x512xf32, #tpu.memory_space<vmem>>, vector<1x512xf32>
    %234 = vector.broadcast %233 : vector<1x512xf32> to vector<8x512xf32>
    %235 = arith.mulf %232, %234 : vector<8x512xf32>
    %c0_176 = arith.constant 0 : index
    %c0_177 = arith.constant 0 : index
    %c0_178 = arith.constant 0 : index
    %236 = vector.load %arg16[%c0_176, %c0_177, %c0_178] : memref<9x8x8xf32, #tpu.memory_space<vmem>>, vector<1x8x8xf32>
    %237 = vector.shape_cast %236 : vector<1x8x8xf32> to vector<8x8xf32>
    %cst_179 = arith.constant dense<0.000000e+00> : vector<8x512xf32>
    %238 = tpu.matmul %237, %235, %cst_179 {dimension_numbers = #tpu.dot_dimension_numbers<[1], [0], [0], [1], [0, 0, 1, 1], [], []>} : vector<8x8xf32>, vector<8x512xf32>, vector<8x512xf32> -> vector<8x512xf32>
    %c0_180 = arith.constant 0 : index
    %c112_181 = arith.constant 112 : index
    %239 = vector.load %arg29[%c0_180, %c112_181] : memref<8x768xf32, #tpu.memory_space<vmem>>, vector<8x512xf32>
    %c1_182 = arith.constant 1 : index
    %c0_183 = arith.constant 0 : index
    %240 = vector.load %arg3[%c1_182, %c0_183] : memref<9x512xf32, #tpu.memory_space<vmem>>, vector<1x512xf32>
    %241 = vector.broadcast %240 : vector<1x512xf32> to vector<8x512xf32>
    %242 = arith.mulf %239, %241 : vector<8x512xf32>
    %c1_184 = arith.constant 1 : index
    %c0_185 = arith.constant 0 : index
    %c0_186 = arith.constant 0 : index
    %243 = vector.load %arg16[%c1_184, %c0_185, %c0_186] : memref<9x8x8xf32, #tpu.memory_space<vmem>>, vector<1x8x8xf32>
    %244 = vector.shape_cast %243 : vector<1x8x8xf32> to vector<8x8xf32>
    %cst_187 = arith.constant dense<0.000000e+00> : vector<8x512xf32>
    %245 = tpu.matmul %244, %242, %cst_187 {dimension_numbers = #tpu.dot_dimension_numbers<[1], [0], [0], [1], [0, 0, 1, 1], [], []>} : vector<8x8xf32>, vector<8x512xf32>, vector<8x512xf32> -> vector<8x512xf32>
    %246 = arith.addf %238, %245 : vector<8x512xf32>
    %c0_188 = arith.constant 0 : index
    %c113_189 = arith.constant 113 : index
    %247 = vector.load %arg29[%c0_188, %c113_189] : memref<8x768xf32, #tpu.memory_space<vmem>>, vector<8x512xf32>
    %c2_190 = arith.constant 2 : index
    %c0_191 = arith.constant 0 : index
    %248 = vector.load %arg3[%c2_190, %c0_191] : memref<9x512xf32, #tpu.memory_space<vmem>>, vector<1x512xf32>
    %249 = vector.broadcast %248 : vector<1x512xf32> to vector<8x512xf32>
    %250 = arith.mulf %247, %249 : vector<8x512xf32>
    %c2_192 = arith.constant 2 : index
    %c0_193 = arith.constant 0 : index
    %c0_194 = arith.constant 0 : index
    %251 = vector.load %arg16[%c2_192, %c0_193, %c0_194] : memref<9x8x8xf32, #tpu.memory_space<vmem>>, vector<1x8x8xf32>
    %252 = vector.shape_cast %251 : vector<1x8x8xf32> to vector<8x8xf32>
    %cst_195 = arith.constant dense<0.000000e+00> : vector<8x512xf32>
    %253 = tpu.matmul %252, %250, %cst_195 {dimension_numbers = #tpu.dot_dimension_numbers<[1], [0], [0], [1], [0, 0, 1, 1], [], []>} : vector<8x8xf32>, vector<8x512xf32>, vector<8x512xf32> -> vector<8x512xf32>
    %254 = arith.addf %246, %253 : vector<8x512xf32>
    %c0_196 = arith.constant 0 : index
    %c127_197 = arith.constant 127 : index
    %255 = vector.load %arg29[%c0_196, %c127_197] : memref<8x768xf32, #tpu.memory_space<vmem>>, vector<8x512xf32>
    %c3_198 = arith.constant 3 : index
    %c0_199 = arith.constant 0 : index
    %256 = vector.load %arg3[%c3_198, %c0_199] : memref<9x512xf32, #tpu.memory_space<vmem>>, vector<1x512xf32>
    %257 = vector.broadcast %256 : vector<1x512xf32> to vector<8x512xf32>
    %258 = arith.mulf %255, %257 : vector<8x512xf32>
    %c3_200 = arith.constant 3 : index
    %c0_201 = arith.constant 0 : index
    %c0_202 = arith.constant 0 : index
    %259 = vector.load %arg16[%c3_200, %c0_201, %c0_202] : memref<9x8x8xf32, #tpu.memory_space<vmem>>, vector<1x8x8xf32>
    %260 = vector.shape_cast %259 : vector<1x8x8xf32> to vector<8x8xf32>
    %cst_203 = arith.constant dense<0.000000e+00> : vector<8x512xf32>
    %261 = tpu.matmul %260, %258, %cst_203 {dimension_numbers = #tpu.dot_dimension_numbers<[1], [0], [0], [1], [0, 0, 1, 1], [], []>} : vector<8x8xf32>, vector<8x512xf32>, vector<8x512xf32> -> vector<8x512xf32>
    %262 = arith.addf %254, %261 : vector<8x512xf32>
    %c0_204 = arith.constant 0 : index
    %c128_205 = arith.constant 128 : index
    %263 = vector.load %arg29[%c0_204, %c128_205] : memref<8x768xf32, #tpu.memory_space<vmem>>, vector<8x512xf32>
    %c4_206 = arith.constant 4 : index
    %c0_207 = arith.constant 0 : index
    %c0_208 = arith.constant 0 : index
    %264 = vector.load %arg16[%c4_206, %c0_207, %c0_208] : memref<9x8x8xf32, #tpu.memory_space<vmem>>, vector<1x8x8xf32>
    %265 = vector.shape_cast %264 : vector<1x8x8xf32> to vector<8x8xf32>
    %cst_209 = arith.constant dense<0.000000e+00> : vector<8x512xf32>
    %266 = tpu.matmul %265, %263, %cst_209 {dimension_numbers = #tpu.dot_dimension_numbers<[1], [0], [0], [1], [0, 0, 1, 1], [], []>} : vector<8x8xf32>, vector<8x512xf32>, vector<8x512xf32> -> vector<8x512xf32>
    %267 = arith.addf %262, %266 : vector<8x512xf32>
    %c0_210 = arith.constant 0 : index
    %c129_211 = arith.constant 129 : index
    %268 = vector.load %arg29[%c0_210, %c129_211] : memref<8x768xf32, #tpu.memory_space<vmem>>, vector<8x512xf32>
    %c5_212 = arith.constant 5 : index
    %c0_213 = arith.constant 0 : index
    %269 = vector.load %arg3[%c5_212, %c0_213] : memref<9x512xf32, #tpu.memory_space<vmem>>, vector<1x512xf32>
    %270 = vector.broadcast %269 : vector<1x512xf32> to vector<8x512xf32>
    %271 = arith.mulf %268, %270 : vector<8x512xf32>
    %c5_214 = arith.constant 5 : index
    %c0_215 = arith.constant 0 : index
    %c0_216 = arith.constant 0 : index
    %272 = vector.load %arg16[%c5_214, %c0_215, %c0_216] : memref<9x8x8xf32, #tpu.memory_space<vmem>>, vector<1x8x8xf32>
    %273 = vector.shape_cast %272 : vector<1x8x8xf32> to vector<8x8xf32>
    %cst_217 = arith.constant dense<0.000000e+00> : vector<8x512xf32>
    %274 = tpu.matmul %273, %271, %cst_217 {dimension_numbers = #tpu.dot_dimension_numbers<[1], [0], [0], [1], [0, 0, 1, 1], [], []>} : vector<8x8xf32>, vector<8x512xf32>, vector<8x512xf32> -> vector<8x512xf32>
    %275 = arith.addf %267, %274 : vector<8x512xf32>
    %c0_218 = arith.constant 0 : index
    %c143_219 = arith.constant 143 : index
    %276 = vector.load %arg29[%c0_218, %c143_219] : memref<8x768xf32, #tpu.memory_space<vmem>>, vector<8x512xf32>
    %c6_220 = arith.constant 6 : index
    %c0_221 = arith.constant 0 : index
    %277 = vector.load %arg3[%c6_220, %c0_221] : memref<9x512xf32, #tpu.memory_space<vmem>>, vector<1x512xf32>
    %278 = vector.broadcast %277 : vector<1x512xf32> to vector<8x512xf32>
    %279 = arith.mulf %276, %278 : vector<8x512xf32>
    %c6_222 = arith.constant 6 : index
    %c0_223 = arith.constant 0 : index
    %c0_224 = arith.constant 0 : index
    %280 = vector.load %arg16[%c6_222, %c0_223, %c0_224] : memref<9x8x8xf32, #tpu.memory_space<vmem>>, vector<1x8x8xf32>
    %281 = vector.shape_cast %280 : vector<1x8x8xf32> to vector<8x8xf32>
    %cst_225 = arith.constant dense<0.000000e+00> : vector<8x512xf32>
    %282 = tpu.matmul %281, %279, %cst_225 {dimension_numbers = #tpu.dot_dimension_numbers<[1], [0], [0], [1], [0, 0, 1, 1], [], []>} : vector<8x8xf32>, vector<8x512xf32>, vector<8x512xf32> -> vector<8x512xf32>
    %283 = arith.addf %275, %282 : vector<8x512xf32>
    %c0_226 = arith.constant 0 : index
    %c144_227 = arith.constant 144 : index
    %284 = vector.load %arg29[%c0_226, %c144_227] : memref<8x768xf32, #tpu.memory_space<vmem>>, vector<8x512xf32>
    %c7_228 = arith.constant 7 : index
    %c0_229 = arith.constant 0 : index
    %285 = vector.load %arg3[%c7_228, %c0_229] : memref<9x512xf32, #tpu.memory_space<vmem>>, vector<1x512xf32>
    %286 = vector.broadcast %285 : vector<1x512xf32> to vector<8x512xf32>
    %287 = arith.mulf %284, %286 : vector<8x512xf32>
    %c7_230 = arith.constant 7 : index
    %c0_231 = arith.constant 0 : index
    %c0_232 = arith.constant 0 : index
    %288 = vector.load %arg16[%c7_230, %c0_231, %c0_232] : memref<9x8x8xf32, #tpu.memory_space<vmem>>, vector<1x8x8xf32>
    %289 = vector.shape_cast %288 : vector<1x8x8xf32> to vector<8x8xf32>
    %cst_233 = arith.constant dense<0.000000e+00> : vector<8x512xf32>
    %290 = tpu.matmul %289, %287, %cst_233 {dimension_numbers = #tpu.dot_dimension_numbers<[1], [0], [0], [1], [0, 0, 1, 1], [], []>} : vector<8x8xf32>, vector<8x512xf32>, vector<8x512xf32> -> vector<8x512xf32>
    %291 = arith.addf %283, %290 : vector<8x512xf32>
    %c0_234 = arith.constant 0 : index
    %c145_235 = arith.constant 145 : index
    %292 = vector.load %arg29[%c0_234, %c145_235] : memref<8x768xf32, #tpu.memory_space<vmem>>, vector<8x512xf32>
    %c8_236 = arith.constant 8 : index
    %c0_237 = arith.constant 0 : index
    %293 = vector.load %arg3[%c8_236, %c0_237] : memref<9x512xf32, #tpu.memory_space<vmem>>, vector<1x512xf32>
    %294 = vector.broadcast %293 : vector<1x512xf32> to vector<8x512xf32>
    %295 = arith.mulf %292, %294 : vector<8x512xf32>
    %c8_238 = arith.constant 8 : index
    %c0_239 = arith.constant 0 : index
    %c0_240 = arith.constant 0 : index
    %296 = vector.load %arg16[%c8_238, %c0_239, %c0_240] : memref<9x8x8xf32, #tpu.memory_space<vmem>>, vector<1x8x8xf32>
    %297 = vector.shape_cast %296 : vector<1x8x8xf32> to vector<8x8xf32>
    %cst_241 = arith.constant dense<0.000000e+00> : vector<8x512xf32>
    %298 = tpu.matmul %297, %295, %cst_241 {dimension_numbers = #tpu.dot_dimension_numbers<[1], [0], [0], [1], [0, 0, 1, 1], [], []>} : vector<8x8xf32>, vector<8x512xf32>, vector<8x512xf32> -> vector<8x512xf32>
    %299 = arith.addf %291, %298 : vector<8x512xf32>
    %c0_242 = arith.constant 0 : index
    %c0_243 = arith.constant 0 : index
    %300 = vector.load %arg17[%c0_242, %c0_243] : memref<8x1xf32, #tpu.memory_space<vmem>>, vector<8x1xf32>
    %301 = vector.broadcast %300 : vector<8x1xf32> to vector<8x512xf32>
    %302 = arith.addf %299, %301 : vector<8x512xf32>
    %cst_244 = arith.constant dense<0.000000e+00> : vector<8xf32>
    %303 = vector.multi_reduction <add>, %302, %cst_244 [1] : vector<8x512xf32> to vector<8xf32>
    %304 = vector.shape_cast %303 : vector<8xf32> to vector<8x1xf32>
    %cst_245 = arith.constant 5.120000e+02 : f32
    %305 = vector.broadcast %cst_245 : f32 to vector<8x1xf32>
    %306 = arith.divf %304, %305 : vector<8x1xf32>
    %307 = vector.broadcast %306 : vector<8x1xf32> to vector<8x512xf32>
    %308 = arith.subf %302, %307 : vector<8x512xf32>
    %309 = arith.mulf %308, %308 : vector<8x512xf32>
    %cst_246 = arith.constant dense<0.000000e+00> : vector<8xf32>
    %310 = vector.multi_reduction <add>, %309, %cst_246 [1] : vector<8x512xf32> to vector<8xf32>
    %311 = vector.shape_cast %310 : vector<8xf32> to vector<8x1xf32>
    %cst_247 = arith.constant 5.120000e+02 : f32
    %312 = vector.broadcast %cst_247 : f32 to vector<8x1xf32>
    %313 = arith.divf %311, %312 : vector<8x1xf32>
    %314 = vector.broadcast %306 : vector<8x1xf32> to vector<8x512xf32>
    %315 = arith.subf %302, %314 : vector<8x512xf32>
    %cst_248 = arith.constant 9.99999974E-6 : f32
    %316 = vector.broadcast %cst_248 : f32 to vector<8x1xf32>
    %317 = arith.addf %313, %316 : vector<8x1xf32>
    %318 = math.rsqrt %317 : vector<8x1xf32>
    %319 = vector.broadcast %318 : vector<8x1xf32> to vector<8x512xf32>
    %320 = arith.mulf %315, %319 : vector<8x512xf32>
    %c0_249 = arith.constant 0 : index
    %c0_250 = arith.constant 0 : index
    %321 = vector.load %arg18[%c0_249, %c0_250] : memref<8x1xf32, #tpu.memory_space<vmem>>, vector<8x1xf32>
    %322 = vector.broadcast %321 : vector<8x1xf32> to vector<8x512xf32>
    %323 = arith.mulf %320, %322 : vector<8x512xf32>
    %c0_251 = arith.constant 0 : index
    %c0_252 = arith.constant 0 : index
    %324 = vector.load %arg19[%c0_251, %c0_252] : memref<8x1xf32, #tpu.memory_space<vmem>>, vector<8x1xf32>
    %325 = vector.broadcast %324 : vector<8x1xf32> to vector<8x512xf32>
    %326 = arith.addf %323, %325 : vector<8x512xf32>
    %cst_253 = arith.constant 0.000000e+00 : f32
    %327 = vector.broadcast %cst_253 : f32 to vector<8x512xf32>
    %328 = arith.maximumf %326, %327 : vector<8x512xf32>
    %c0_254 = arith.constant 0 : index
    %c128_255 = arith.constant 128 : index
    %329 = vector.load %arg29[%c0_254, %c128_255] : memref<8x768xf32, #tpu.memory_space<vmem>>, vector<8x512xf32>
    tpu.vector_store %arg29[%c0_254, %c128_255], %328 {strides = array<i32>} : memref<8x768xf32, #tpu.memory_space<vmem>>, vector<8x512xf32>,
    %c0_256 = arith.constant 0 : index
    %c111_257 = arith.constant 111 : index
    %330 = vector.load %arg29[%c0_256, %c111_257] : memref<8x768xf32, #tpu.memory_space<vmem>>, vector<8x512xf32>
    %c0_258 = arith.constant 0 : index
    %c0_259 = arith.constant 0 : index
    %331 = vector.load %arg3[%c0_258, %c0_259] : memref<9x512xf32, #tpu.memory_space<vmem>>, vector<1x512xf32>
    %332 = vector.broadcast %331 : vector<1x512xf32> to vector<8x512xf32>
    %333 = arith.mulf %330, %332 : vector<8x512xf32>
    %c0_260 = arith.constant 0 : index
    %c0_261 = arith.constant 0 : index
    %c0_262 = arith.constant 0 : index
    %334 = vector.load %arg20[%c0_260, %c0_261, %c0_262] : memref<9x8x8xf32, #tpu.memory_space<vmem>>, vector<1x8x8xf32>
    %335 = vector.shape_cast %334 : vector<1x8x8xf32> to vector<8x8xf32>
    %cst_263 = arith.constant dense<0.000000e+00> : vector<8x512xf32>
    %336 = tpu.matmul %335, %333, %cst_263 {dimension_numbers = #tpu.dot_dimension_numbers<[1], [0], [0], [1], [0, 0, 1, 1], [], []>} : vector<8x8xf32>, vector<8x512xf32>, vector<8x512xf32> -> vector<8x512xf32>
    %c0_264 = arith.constant 0 : index
    %c112_265 = arith.constant 112 : index
    %337 = vector.load %arg29[%c0_264, %c112_265] : memref<8x768xf32, #tpu.memory_space<vmem>>, vector<8x512xf32>
    %c1_266 = arith.constant 1 : index
    %c0_267 = arith.constant 0 : index
    %338 = vector.load %arg3[%c1_266, %c0_267] : memref<9x512xf32, #tpu.memory_space<vmem>>, vector<1x512xf32>
    %339 = vector.broadcast %338 : vector<1x512xf32> to vector<8x512xf32>
    %340 = arith.mulf %337, %339 : vector<8x512xf32>
    %c1_268 = arith.constant 1 : index
    %c0_269 = arith.constant 0 : index
    %c0_270 = arith.constant 0 : index
    %341 = vector.load %arg20[%c1_268, %c0_269, %c0_270] : memref<9x8x8xf32, #tpu.memory_space<vmem>>, vector<1x8x8xf32>
    %342 = vector.shape_cast %341 : vector<1x8x8xf32> to vector<8x8xf32>
    %cst_271 = arith.constant dense<0.000000e+00> : vector<8x512xf32>
    %343 = tpu.matmul %342, %340, %cst_271 {dimension_numbers = #tpu.dot_dimension_numbers<[1], [0], [0], [1], [0, 0, 1, 1], [], []>} : vector<8x8xf32>, vector<8x512xf32>, vector<8x512xf32> -> vector<8x512xf32>
    %344 = arith.addf %336, %343 : vector<8x512xf32>
    %c0_272 = arith.constant 0 : index
    %c113_273 = arith.constant 113 : index
    %345 = vector.load %arg29[%c0_272, %c113_273] : memref<8x768xf32, #tpu.memory_space<vmem>>, vector<8x512xf32>
    %c2_274 = arith.constant 2 : index
    %c0_275 = arith.constant 0 : index
    %346 = vector.load %arg3[%c2_274, %c0_275] : memref<9x512xf32, #tpu.memory_space<vmem>>, vector<1x512xf32>
    %347 = vector.broadcast %346 : vector<1x512xf32> to vector<8x512xf32>
    %348 = arith.mulf %345, %347 : vector<8x512xf32>
    %c2_276 = arith.constant 2 : index
    %c0_277 = arith.constant 0 : index
    %c0_278 = arith.constant 0 : index
    %349 = vector.load %arg20[%c2_276, %c0_277, %c0_278] : memref<9x8x8xf32, #tpu.memory_space<vmem>>, vector<1x8x8xf32>
    %350 = vector.shape_cast %349 : vector<1x8x8xf32> to vector<8x8xf32>
    %cst_279 = arith.constant dense<0.000000e+00> : vector<8x512xf32>
    %351 = tpu.matmul %350, %348, %cst_279 {dimension_numbers = #tpu.dot_dimension_numbers<[1], [0], [0], [1], [0, 0, 1, 1], [], []>} : vector<8x8xf32>, vector<8x512xf32>, vector<8x512xf32> -> vector<8x512xf32>
    %352 = arith.addf %344, %351 : vector<8x512xf32>
    %c0_280 = arith.constant 0 : index
    %c127_281 = arith.constant 127 : index
    %353 = vector.load %arg29[%c0_280, %c127_281] : memref<8x768xf32, #tpu.memory_space<vmem>>, vector<8x512xf32>
    %c3_282 = arith.constant 3 : index
    %c0_283 = arith.constant 0 : index
    %354 = vector.load %arg3[%c3_282, %c0_283] : memref<9x512xf32, #tpu.memory_space<vmem>>, vector<1x512xf32>
    %355 = vector.broadcast %354 : vector<1x512xf32> to vector<8x512xf32>
    %356 = arith.mulf %353, %355 : vector<8x512xf32>
    %c3_284 = arith.constant 3 : index
    %c0_285 = arith.constant 0 : index
    %c0_286 = arith.constant 0 : index
    %357 = vector.load %arg20[%c3_284, %c0_285, %c0_286] : memref<9x8x8xf32, #tpu.memory_space<vmem>>, vector<1x8x8xf32>
    %358 = vector.shape_cast %357 : vector<1x8x8xf32> to vector<8x8xf32>
    %cst_287 = arith.constant dense<0.000000e+00> : vector<8x512xf32>
    %359 = tpu.matmul %358, %356, %cst_287 {dimension_numbers = #tpu.dot_dimension_numbers<[1], [0], [0], [1], [0, 0, 1, 1], [], []>} : vector<8x8xf32>, vector<8x512xf32>, vector<8x512xf32> -> vector<8x512xf32>
    %360 = arith.addf %352, %359 : vector<8x512xf32>
    %c0_288 = arith.constant 0 : index
    %c128_289 = arith.constant 128 : index
    %361 = vector.load %arg29[%c0_288, %c128_289] : memref<8x768xf32, #tpu.memory_space<vmem>>, vector<8x512xf32>
    %c4_290 = arith.constant 4 : index
    %c0_291 = arith.constant 0 : index
    %c0_292 = arith.constant 0 : index
    %362 = vector.load %arg20[%c4_290, %c0_291, %c0_292] : memref<9x8x8xf32, #tpu.memory_space<vmem>>, vector<1x8x8xf32>
    %363 = vector.shape_cast %362 : vector<1x8x8xf32> to vector<8x8xf32>
    %cst_293 = arith.constant dense<0.000000e+00> : vector<8x512xf32>
    %364 = tpu.matmul %363, %361, %cst_293 {dimension_numbers = #tpu.dot_dimension_numbers<[1], [0], [0], [1], [0, 0, 1, 1], [], []>} : vector<8x8xf32>, vector<8x512xf32>, vector<8x512xf32> -> vector<8x512xf32>
    %365 = arith.addf %360, %364 : vector<8x512xf32>
    %c0_294 = arith.constant 0 : index
    %c129_295 = arith.constant 129 : index
    %366 = vector.load %arg29[%c0_294, %c129_295] : memref<8x768xf32, #tpu.memory_space<vmem>>, vector<8x512xf32>
    %c5_296 = arith.constant 5 : index
    %c0_297 = arith.constant 0 : index
    %367 = vector.load %arg3[%c5_296, %c0_297] : memref<9x512xf32, #tpu.memory_space<vmem>>, vector<1x512xf32>
    %368 = vector.broadcast %367 : vector<1x512xf32> to vector<8x512xf32>
    %369 = arith.mulf %366, %368 : vector<8x512xf32>
    %c5_298 = arith.constant 5 : index
    %c0_299 = arith.constant 0 : index
    %c0_300 = arith.constant 0 : index
    %370 = vector.load %arg20[%c5_298, %c0_299, %c0_300] : memref<9x8x8xf32, #tpu.memory_space<vmem>>, vector<1x8x8xf32>
    %371 = vector.shape_cast %370 : vector<1x8x8xf32> to vector<8x8xf32>
    %cst_301 = arith.constant dense<0.000000e+00> : vector<8x512xf32>
    %372 = tpu.matmul %371, %369, %cst_301 {dimension_numbers = #tpu.dot_dimension_numbers<[1], [0], [0], [1], [0, 0, 1, 1], [], []>} : vector<8x8xf32>, vector<8x512xf32>, vector<8x512xf32> -> vector<8x512xf32>
    %373 = arith.addf %365, %372 : vector<8x512xf32>
    %c0_302 = arith.constant 0 : index
    %c143_303 = arith.constant 143 : index
    %374 = vector.load %arg29[%c0_302, %c143_303] : memref<8x768xf32, #tpu.memory_space<vmem>>, vector<8x512xf32>
    %c6_304 = arith.constant 6 : index
    %c0_305 = arith.constant 0 : index
    %375 = vector.load %arg3[%c6_304, %c0_305] : memref<9x512xf32, #tpu.memory_space<vmem>>, vector<1x512xf32>
    %376 = vector.broadcast %375 : vector<1x512xf32> to vector<8x512xf32>
    %377 = arith.mulf %374, %376 : vector<8x512xf32>
    %c6_306 = arith.constant 6 : index
    %c0_307 = arith.constant 0 : index
    %c0_308 = arith.constant 0 : index
    %378 = vector.load %arg20[%c6_306, %c0_307, %c0_308] : memref<9x8x8xf32, #tpu.memory_space<vmem>>, vector<1x8x8xf32>
    %379 = vector.shape_cast %378 : vector<1x8x8xf32> to vector<8x8xf32>
    %cst_309 = arith.constant dense<0.000000e+00> : vector<8x512xf32>
    %380 = tpu.matmul %379, %377, %cst_309 {dimension_numbers = #tpu.dot_dimension_numbers<[1], [0], [0], [1], [0, 0, 1, 1], [], []>} : vector<8x8xf32>, vector<8x512xf32>, vector<8x512xf32> -> vector<8x512xf32>
    %381 = arith.addf %373, %380 : vector<8x512xf32>
    %c0_310 = arith.constant 0 : index
    %c144_311 = arith.constant 144 : index
    %382 = vector.load %arg29[%c0_310, %c144_311] : memref<8x768xf32, #tpu.memory_space<vmem>>, vector<8x512xf32>
    %c7_312 = arith.constant 7 : index
    %c0_313 = arith.constant 0 : index
    %383 = vector.load %arg3[%c7_312, %c0_313] : memref<9x512xf32, #tpu.memory_space<vmem>>, vector<1x512xf32>
    %384 = vector.broadcast %383 : vector<1x512xf32> to vector<8x512xf32>
    %385 = arith.mulf %382, %384 : vector<8x512xf32>
    %c7_314 = arith.constant 7 : index
    %c0_315 = arith.constant 0 : index
    %c0_316 = arith.constant 0 : index
    %386 = vector.load %arg20[%c7_314, %c0_315, %c0_316] : memref<9x8x8xf32, #tpu.memory_space<vmem>>, vector<1x8x8xf32>
    %387 = vector.shape_cast %386 : vector<1x8x8xf32> to vector<8x8xf32>
    %cst_317 = arith.constant dense<0.000000e+00> : vector<8x512xf32>
    %388 = tpu.matmul %387, %385, %cst_317 {dimension_numbers = #tpu.dot_dimension_numbers<[1], [0], [0], [1], [0, 0, 1, 1], [], []>} : vector<8x8xf32>, vector<8x512xf32>, vector<8x512xf32> -> vector<8x512xf32>
    %389 = arith.addf %381, %388 : vector<8x512xf32>
    %c0_318 = arith.constant 0 : index
    %c145_319 = arith.constant 145 : index
    %390 = vector.load %arg29[%c0_318, %c145_319] : memref<8x768xf32, #tpu.memory_space<vmem>>, vector<8x512xf32>
    %c8_320 = arith.constant 8 : index
    %c0_321 = arith.constant 0 : index
    %391 = vector.load %arg3[%c8_320, %c0_321] : memref<9x512xf32, #tpu.memory_space<vmem>>, vector<1x512xf32>
    %392 = vector.broadcast %391 : vector<1x512xf32> to vector<8x512xf32>
    %393 = arith.mulf %390, %392 : vector<8x512xf32>
    %c8_322 = arith.constant 8 : index
    %c0_323 = arith.constant 0 : index
    %c0_324 = arith.constant 0 : index
    %394 = vector.load %arg20[%c8_322, %c0_323, %c0_324] : memref<9x8x8xf32, #tpu.memory_space<vmem>>, vector<1x8x8xf32>
    %395 = vector.shape_cast %394 : vector<1x8x8xf32> to vector<8x8xf32>
    %cst_325 = arith.constant dense<0.000000e+00> : vector<8x512xf32>
    %396 = tpu.matmul %395, %393, %cst_325 {dimension_numbers = #tpu.dot_dimension_numbers<[1], [0], [0], [1], [0, 0, 1, 1], [], []>} : vector<8x8xf32>, vector<8x512xf32>, vector<8x512xf32> -> vector<8x512xf32>
    %397 = arith.addf %389, %396 : vector<8x512xf32>
    %c0_326 = arith.constant 0 : index
    %c0_327 = arith.constant 0 : index
    %398 = vector.load %arg21[%c0_326, %c0_327] : memref<8x1xf32, #tpu.memory_space<vmem>>, vector<8x1xf32>
    %399 = vector.broadcast %398 : vector<8x1xf32> to vector<8x512xf32>
    %400 = arith.addf %397, %399 : vector<8x512xf32>
    %cst_328 = arith.constant dense<0.000000e+00> : vector<8xf32>
    %401 = vector.multi_reduction <add>, %400, %cst_328 [1] : vector<8x512xf32> to vector<8xf32>
    %402 = vector.shape_cast %401 : vector<8xf32> to vector<8x1xf32>
    %cst_329 = arith.constant 5.120000e+02 : f32
    %403 = vector.broadcast %cst_329 : f32 to vector<8x1xf32>
    %404 = arith.divf %402, %403 : vector<8x1xf32>
    %405 = vector.broadcast %404 : vector<8x1xf32> to vector<8x512xf32>
    %406 = arith.subf %400, %405 : vector<8x512xf32>
    %407 = arith.mulf %406, %406 : vector<8x512xf32>
    %cst_330 = arith.constant dense<0.000000e+00> : vector<8xf32>
    %408 = vector.multi_reduction <add>, %407, %cst_330 [1] : vector<8x512xf32> to vector<8xf32>
    %409 = vector.shape_cast %408 : vector<8xf32> to vector<8x1xf32>
    %cst_331 = arith.constant 5.120000e+02 : f32
    %410 = vector.broadcast %cst_331 : f32 to vector<8x1xf32>
    %411 = arith.divf %409, %410 : vector<8x1xf32>
    %412 = vector.broadcast %404 : vector<8x1xf32> to vector<8x512xf32>
    %413 = arith.subf %400, %412 : vector<8x512xf32>
    %cst_332 = arith.constant 9.99999974E-6 : f32
    %414 = vector.broadcast %cst_332 : f32 to vector<8x1xf32>
    %415 = arith.addf %411, %414 : vector<8x1xf32>
    %416 = math.rsqrt %415 : vector<8x1xf32>
    %417 = vector.broadcast %416 : vector<8x1xf32> to vector<8x512xf32>
    %418 = arith.mulf %413, %417 : vector<8x512xf32>
    %c0_333 = arith.constant 0 : index
    %c0_334 = arith.constant 0 : index
    %419 = vector.load %arg22[%c0_333, %c0_334] : memref<8x1xf32, #tpu.memory_space<vmem>>, vector<8x1xf32>
    %420 = vector.broadcast %419 : vector<8x1xf32> to vector<8x512xf32>
    %421 = arith.mulf %418, %420 : vector<8x512xf32>
    %c0_335 = arith.constant 0 : index
    %c0_336 = arith.constant 0 : index
    %422 = vector.load %arg23[%c0_335, %c0_336] : memref<8x1xf32, #tpu.memory_space<vmem>>, vector<8x1xf32>
    %423 = vector.broadcast %422 : vector<8x1xf32> to vector<8x512xf32>
    %424 = arith.addf %421, %423 : vector<8x512xf32>
    %c0_337 = arith.constant 0 : index
    %c0_338 = arith.constant 0 : index
    %425 = vector.load %arg24[%c0_337, %c0_338] : memref<8x8xf32, #tpu.memory_space<vmem>>, vector<8x8xf32>
    %cst_339 = arith.constant dense<0.000000e+00> : vector<8x512xf32>
    %426 = tpu.matmul %425, %230, %cst_339 {dimension_numbers = #tpu.dot_dimension_numbers<[1], [0], [0], [1], [0, 0, 1, 1], [], []>} : vector<8x8xf32>, vector<8x512xf32>, vector<8x512xf32> -> vector<8x512xf32>
    %c0_340 = arith.constant 0 : index
    %c0_341 = arith.constant 0 : index
    %427 = vector.load %arg25[%c0_340, %c0_341] : memref<8x1xf32, #tpu.memory_space<vmem>>, vector<8x1xf32>
    %428 = vector.broadcast %427 : vector<8x1xf32> to vector<8x512xf32>
    %429 = arith.addf %426, %428 : vector<8x512xf32>
    %cst_342 = arith.constant dense<0.000000e+00> : vector<8xf32>
    %430 = vector.multi_reduction <add>, %429, %cst_342 [1] : vector<8x512xf32> to vector<8xf32>
    %431 = vector.shape_cast %430 : vector<8xf32> to vector<8x1xf32>
    %cst_343 = arith.constant 5.120000e+02 : f32
    %432 = vector.broadcast %cst_343 : f32 to vector<8x1xf32>
    %433 = arith.divf %431, %432 : vector<8x1xf32>
    %434 = vector.broadcast %433 : vector<8x1xf32> to vector<8x512xf32>
    %435 = arith.subf %429, %434 : vector<8x512xf32>
    %436 = arith.mulf %435, %435 : vector<8x512xf32>
    %cst_344 = arith.constant dense<0.000000e+00> : vector<8xf32>
    %437 = vector.multi_reduction <add>, %436, %cst_344 [1] : vector<8x512xf32> to vector<8xf32>
    %438 = vector.shape_cast %437 : vector<8xf32> to vector<8x1xf32>
    %cst_345 = arith.constant 5.120000e+02 : f32
    %439 = vector.broadcast %cst_345 : f32 to vector<8x1xf32>
    %440 = arith.divf %438, %439 : vector<8x1xf32>
    %441 = vector.broadcast %433 : vector<8x1xf32> to vector<8x512xf32>
    %442 = arith.subf %429, %441 : vector<8x512xf32>
    %cst_346 = arith.constant 9.99999974E-6 : f32
    %443 = vector.broadcast %cst_346 : f32 to vector<8x1xf32>
    %444 = arith.addf %440, %443 : vector<8x1xf32>
    %445 = math.rsqrt %444 : vector<8x1xf32>
    %446 = vector.broadcast %445 : vector<8x1xf32> to vector<8x512xf32>
    %447 = arith.mulf %442, %446 : vector<8x512xf32>
    %c0_347 = arith.constant 0 : index
    %c0_348 = arith.constant 0 : index
    %448 = vector.load %arg26[%c0_347, %c0_348] : memref<8x1xf32, #tpu.memory_space<vmem>>, vector<8x1xf32>
    %449 = vector.broadcast %448 : vector<8x1xf32> to vector<8x512xf32>
    %450 = arith.mulf %447, %449 : vector<8x512xf32>
    %c0_349 = arith.constant 0 : index
    %c0_350 = arith.constant 0 : index
    %451 = vector.load %arg27[%c0_349, %c0_350] : memref<8x1xf32, #tpu.memory_space<vmem>>, vector<8x1xf32>
    %452 = vector.broadcast %451 : vector<8x1xf32> to vector<8x512xf32>
    %453 = arith.addf %450, %452 : vector<8x512xf32>
    %454 = arith.addf %424, %453 : vector<8x512xf32>
    %cst_351 = arith.constant 0.000000e+00 : f32
    %455 = vector.broadcast %cst_351 : f32 to vector<8x512xf32>
    %456 = arith.maximumf %454, %455 : vector<8x512xf32>
    %c0_352 = arith.constant 0 : index
    %c0_353 = arith.constant 0 : index
    %457 = vector.load %arg1[%c0_352, %c0_353] : memref<8x8xf32, #tpu.memory_space<vmem>>, vector<8x8xf32>
    %c0_354 = arith.constant 0 : index
    %c0_355 = arith.constant 0 : index
    %458 = vector.load %arg2[%c0_354, %c0_355] : memref<8x512xf32, #tpu.memory_space<vmem>>, vector<8x512xf32>
    %cst_356 = arith.constant dense<0.000000e+00> : vector<8x512xf32>
    %459 = tpu.matmul %457, %458, %cst_356 {dimension_numbers = #tpu.dot_dimension_numbers<[1], [0], [0], [1], [0, 0, 1, 1], [], []>} : vector<8x8xf32>, vector<8x512xf32>, vector<8x512xf32> -> vector<8x512xf32>
    %460 = arith.addf %456, %459 : vector<8x512xf32>
    %c0_357 = arith.constant 0 : index
    %c0_358 = arith.constant 0 : index
    %461 = vector.load %arg28[%c0_357, %c0_358] : memref<8x512xf32, #tpu.memory_space<vmem>>, vector<8x512xf32>
    tpu.vector_store %arg28[%c0_357, %c0_358], %460 {strides = array<i32>} : memref<8x512xf32, #tpu.memory_space<vmem>>, vector<8x512xf32>,
    return
  }
}

module attributes {stable_mosaic.version = 11 : i64} {
  func.func @kernel(%arg0: memref<8x128xf32, #tpu.memory_space<vmem>>, %arg1: memref<16x8xf32, #tpu.memory_space<vmem>>, %arg2: memref<8x128xf32, #tpu.memory_space<vmem>>, %arg3: memref<9x128xf32, #tpu.memory_space<vmem>>, %arg4: memref<9x16x8xf32, #tpu.memory_space<vmem>>, %arg5: memref<16x1xf32, #tpu.memory_space<vmem>>, %arg6: memref<16x1xf32, #tpu.memory_space<vmem>>, %arg7: memref<16x1xf32, #tpu.memory_space<vmem>>, %arg8: memref<9x16x16xf32, #tpu.memory_space<vmem>>, %arg9: memref<16x1xf32, #tpu.memory_space<vmem>>, %arg10: memref<16x1xf32, #tpu.memory_space<vmem>>, %arg11: memref<16x1xf32, #tpu.memory_space<vmem>>, %arg12: memref<16x8xf32, #tpu.memory_space<vmem>>, %arg13: memref<16x1xf32, #tpu.memory_space<vmem>>, %arg14: memref<16x1xf32, #tpu.memory_space<vmem>>, %arg15: memref<16x1xf32, #tpu.memory_space<vmem>>, %arg16: memref<9x16x16xf32, #tpu.memory_space<vmem>>, %arg17: memref<16x1xf32, #tpu.memory_space<vmem>>, %arg18: memref<16x1xf32, #tpu.memory_space<vmem>>, %arg19: memref<16x1xf32, #tpu.memory_space<vmem>>, %arg20: memref<9x16x16xf32, #tpu.memory_space<vmem>>, %arg21: memref<16x1xf32, #tpu.memory_space<vmem>>, %arg22: memref<16x1xf32, #tpu.memory_space<vmem>>, %arg23: memref<16x1xf32, #tpu.memory_space<vmem>>, %arg24: memref<16x16xf32, #tpu.memory_space<vmem>>, %arg25: memref<16x1xf32, #tpu.memory_space<vmem>>, %arg26: memref<16x1xf32, #tpu.memory_space<vmem>>, %arg27: memref<16x1xf32, #tpu.memory_space<vmem>>, %arg28: memref<16x128xf32, #tpu.memory_space<vmem>>, %arg29: memref<16x384xf32, #tpu.memory_space<vmem>>) attributes {dimension_semantics = [], scalar_prefetch = 0 : i64, scratch_operands = 1 : i64, tpu.core_type = #tpu.core_type<tc>} {
    %cst = arith.constant 0.000000e+00 : f32
    %0 = vector.broadcast %cst : f32 to vector<16x128xf32>
    %c0 = arith.constant 0 : index
    %c0_0 = arith.constant 0 : index
    %1 = vector.load %arg29[%c0, %c0_0] : memref<16x384xf32, #tpu.memory_space<vmem>>, vector<16x128xf32>
    tpu.vector_store %arg29[%c0, %c0_0], %0 {strides = array<i32>} : memref<16x384xf32, #tpu.memory_space<vmem>>, vector<16x128xf32>,
    %cst_1 = arith.constant 0.000000e+00 : f32
    %2 = vector.broadcast %cst_1 : f32 to vector<16x128xf32>
    %c0_2 = arith.constant 0 : index
    %c256 = arith.constant 256 : index
    %3 = vector.load %arg29[%c0_2, %c256] : memref<16x384xf32, #tpu.memory_space<vmem>>, vector<16x128xf32>
    tpu.vector_store %arg29[%c0_2, %c256], %2 {strides = array<i32>} : memref<16x384xf32, #tpu.memory_space<vmem>>, vector<16x128xf32>,
    %c0_3 = arith.constant 0 : index
    %c0_4 = arith.constant 0 : index
    %4 = vector.load %arg0[%c0_3, %c0_4] : memref<8x128xf32, #tpu.memory_space<vmem>>, vector<8x128xf32>
    %c0_5 = arith.constant 0 : index
    %c128 = arith.constant 128 : index
    %5 = vector.load %arg29[%c0_5, %c128] : memref<16x384xf32, #tpu.memory_space<vmem>>, vector<8x128xf32>
    tpu.vector_store %arg29[%c0_5, %c128], %4 {strides = array<i32>} : memref<16x384xf32, #tpu.memory_space<vmem>>, vector<8x128xf32>,
    %c0_6 = arith.constant 0 : index
    %c119 = arith.constant 119 : index
    %6 = vector.load %arg29[%c0_6, %c119] : memref<16x384xf32, #tpu.memory_space<vmem>>, vector<8x128xf32>
    %c0_7 = arith.constant 0 : index
    %c0_8 = arith.constant 0 : index
    %7 = vector.load %arg3[%c0_7, %c0_8] : memref<9x128xf32, #tpu.memory_space<vmem>>, vector<1x128xf32>
    %8 = vector.broadcast %7 : vector<1x128xf32> to vector<8x128xf32>
    %9 = arith.mulf %6, %8 : vector<8x128xf32>
    %c0_9 = arith.constant 0 : index
    %c0_10 = arith.constant 0 : index
    %c0_11 = arith.constant 0 : index
    %10 = vector.load %arg4[%c0_9, %c0_10, %c0_11] : memref<9x16x8xf32, #tpu.memory_space<vmem>>, vector<1x16x8xf32>
    %11 = vector.shape_cast %10 : vector<1x16x8xf32> to vector<16x8xf32>
    %cst_12 = arith.constant dense<0.000000e+00> : vector<16x128xf32>
    %12 = tpu.matmul %11, %9, %cst_12 {dimension_numbers = #tpu.dot_dimension_numbers<[1], [0], [0], [1], [0, 0, 1, 1], [], []>} : vector<16x8xf32>, vector<8x128xf32>, vector<16x128xf32> -> vector<16x128xf32>
    %c0_13 = arith.constant 0 : index
    %c120 = arith.constant 120 : index
    %13 = vector.load %arg29[%c0_13, %c120] : memref<16x384xf32, #tpu.memory_space<vmem>>, vector<8x128xf32>
    %c1 = arith.constant 1 : index
    %c0_14 = arith.constant 0 : index
    %14 = vector.load %arg3[%c1, %c0_14] : memref<9x128xf32, #tpu.memory_space<vmem>>, vector<1x128xf32>
    %15 = vector.broadcast %14 : vector<1x128xf32> to vector<8x128xf32>
    %16 = arith.mulf %13, %15 : vector<8x128xf32>
    %c1_15 = arith.constant 1 : index
    %c0_16 = arith.constant 0 : index
    %c0_17 = arith.constant 0 : index
    %17 = vector.load %arg4[%c1_15, %c0_16, %c0_17] : memref<9x16x8xf32, #tpu.memory_space<vmem>>, vector<1x16x8xf32>
    %18 = vector.shape_cast %17 : vector<1x16x8xf32> to vector<16x8xf32>
    %cst_18 = arith.constant dense<0.000000e+00> : vector<16x128xf32>
    %19 = tpu.matmul %18, %16, %cst_18 {dimension_numbers = #tpu.dot_dimension_numbers<[1], [0], [0], [1], [0, 0, 1, 1], [], []>} : vector<16x8xf32>, vector<8x128xf32>, vector<16x128xf32> -> vector<16x128xf32>
    %20 = arith.addf %12, %19 : vector<16x128xf32>
    %c0_19 = arith.constant 0 : index
    %c121 = arith.constant 121 : index
    %21 = vector.load %arg29[%c0_19, %c121] : memref<16x384xf32, #tpu.memory_space<vmem>>, vector<8x128xf32>
    %c2 = arith.constant 2 : index
    %c0_20 = arith.constant 0 : index
    %22 = vector.load %arg3[%c2, %c0_20] : memref<9x128xf32, #tpu.memory_space<vmem>>, vector<1x128xf32>
    %23 = vector.broadcast %22 : vector<1x128xf32> to vector<8x128xf32>
    %24 = arith.mulf %21, %23 : vector<8x128xf32>
    %c2_21 = arith.constant 2 : index
    %c0_22 = arith.constant 0 : index
    %c0_23 = arith.constant 0 : index
    %25 = vector.load %arg4[%c2_21, %c0_22, %c0_23] : memref<9x16x8xf32, #tpu.memory_space<vmem>>, vector<1x16x8xf32>
    %26 = vector.shape_cast %25 : vector<1x16x8xf32> to vector<16x8xf32>
    %cst_24 = arith.constant dense<0.000000e+00> : vector<16x128xf32>
    %27 = tpu.matmul %26, %24, %cst_24 {dimension_numbers = #tpu.dot_dimension_numbers<[1], [0], [0], [1], [0, 0, 1, 1], [], []>} : vector<16x8xf32>, vector<8x128xf32>, vector<16x128xf32> -> vector<16x128xf32>
    %28 = arith.addf %20, %27 : vector<16x128xf32>
    %c0_25 = arith.constant 0 : index
    %c127 = arith.constant 127 : index
    %29 = vector.load %arg29[%c0_25, %c127] : memref<16x384xf32, #tpu.memory_space<vmem>>, vector<8x128xf32>
    %c3 = arith.constant 3 : index
    %c0_26 = arith.constant 0 : index
    %30 = vector.load %arg3[%c3, %c0_26] : memref<9x128xf32, #tpu.memory_space<vmem>>, vector<1x128xf32>
    %31 = vector.broadcast %30 : vector<1x128xf32> to vector<8x128xf32>
    %32 = arith.mulf %29, %31 : vector<8x128xf32>
    %c3_27 = arith.constant 3 : index
    %c0_28 = arith.constant 0 : index
    %c0_29 = arith.constant 0 : index
    %33 = vector.load %arg4[%c3_27, %c0_28, %c0_29] : memref<9x16x8xf32, #tpu.memory_space<vmem>>, vector<1x16x8xf32>
    %34 = vector.shape_cast %33 : vector<1x16x8xf32> to vector<16x8xf32>
    %cst_30 = arith.constant dense<0.000000e+00> : vector<16x128xf32>
    %35 = tpu.matmul %34, %32, %cst_30 {dimension_numbers = #tpu.dot_dimension_numbers<[1], [0], [0], [1], [0, 0, 1, 1], [], []>} : vector<16x8xf32>, vector<8x128xf32>, vector<16x128xf32> -> vector<16x128xf32>
    %36 = arith.addf %28, %35 : vector<16x128xf32>
    %c0_31 = arith.constant 0 : index
    %c128_32 = arith.constant 128 : index
    %37 = vector.load %arg29[%c0_31, %c128_32] : memref<16x384xf32, #tpu.memory_space<vmem>>, vector<8x128xf32>
    %c4 = arith.constant 4 : index
    %c0_33 = arith.constant 0 : index
    %c0_34 = arith.constant 0 : index
    %38 = vector.load %arg4[%c4, %c0_33, %c0_34] : memref<9x16x8xf32, #tpu.memory_space<vmem>>, vector<1x16x8xf32>
    %39 = vector.shape_cast %38 : vector<1x16x8xf32> to vector<16x8xf32>
    %cst_35 = arith.constant dense<0.000000e+00> : vector<16x128xf32>
    %40 = tpu.matmul %39, %37, %cst_35 {dimension_numbers = #tpu.dot_dimension_numbers<[1], [0], [0], [1], [0, 0, 1, 1], [], []>} : vector<16x8xf32>, vector<8x128xf32>, vector<16x128xf32> -> vector<16x128xf32>
    %41 = arith.addf %36, %40 : vector<16x128xf32>
    %c0_36 = arith.constant 0 : index
    %c129 = arith.constant 129 : index
    %42 = vector.load %arg29[%c0_36, %c129] : memref<16x384xf32, #tpu.memory_space<vmem>>, vector<8x128xf32>
    %c5 = arith.constant 5 : index
    %c0_37 = arith.constant 0 : index
    %43 = vector.load %arg3[%c5, %c0_37] : memref<9x128xf32, #tpu.memory_space<vmem>>, vector<1x128xf32>
    %44 = vector.broadcast %43 : vector<1x128xf32> to vector<8x128xf32>
    %45 = arith.mulf %42, %44 : vector<8x128xf32>
    %c5_38 = arith.constant 5 : index
    %c0_39 = arith.constant 0 : index
    %c0_40 = arith.constant 0 : index
    %46 = vector.load %arg4[%c5_38, %c0_39, %c0_40] : memref<9x16x8xf32, #tpu.memory_space<vmem>>, vector<1x16x8xf32>
    %47 = vector.shape_cast %46 : vector<1x16x8xf32> to vector<16x8xf32>
    %cst_41 = arith.constant dense<0.000000e+00> : vector<16x128xf32>
    %48 = tpu.matmul %47, %45, %cst_41 {dimension_numbers = #tpu.dot_dimension_numbers<[1], [0], [0], [1], [0, 0, 1, 1], [], []>} : vector<16x8xf32>, vector<8x128xf32>, vector<16x128xf32> -> vector<16x128xf32>
    %49 = arith.addf %41, %48 : vector<16x128xf32>
    %c0_42 = arith.constant 0 : index
    %c135 = arith.constant 135 : index
    %50 = vector.load %arg29[%c0_42, %c135] : memref<16x384xf32, #tpu.memory_space<vmem>>, vector<8x128xf32>
    %c6 = arith.constant 6 : index
    %c0_43 = arith.constant 0 : index
    %51 = vector.load %arg3[%c6, %c0_43] : memref<9x128xf32, #tpu.memory_space<vmem>>, vector<1x128xf32>
    %52 = vector.broadcast %51 : vector<1x128xf32> to vector<8x128xf32>
    %53 = arith.mulf %50, %52 : vector<8x128xf32>
    %c6_44 = arith.constant 6 : index
    %c0_45 = arith.constant 0 : index
    %c0_46 = arith.constant 0 : index
    %54 = vector.load %arg4[%c6_44, %c0_45, %c0_46] : memref<9x16x8xf32, #tpu.memory_space<vmem>>, vector<1x16x8xf32>
    %55 = vector.shape_cast %54 : vector<1x16x8xf32> to vector<16x8xf32>
    %cst_47 = arith.constant dense<0.000000e+00> : vector<16x128xf32>
    %56 = tpu.matmul %55, %53, %cst_47 {dimension_numbers = #tpu.dot_dimension_numbers<[1], [0], [0], [1], [0, 0, 1, 1], [], []>} : vector<16x8xf32>, vector<8x128xf32>, vector<16x128xf32> -> vector<16x128xf32>
    %57 = arith.addf %49, %56 : vector<16x128xf32>
    %c0_48 = arith.constant 0 : index
    %c136 = arith.constant 136 : index
    %58 = vector.load %arg29[%c0_48, %c136] : memref<16x384xf32, #tpu.memory_space<vmem>>, vector<8x128xf32>
    %c7 = arith.constant 7 : index
    %c0_49 = arith.constant 0 : index
    %59 = vector.load %arg3[%c7, %c0_49] : memref<9x128xf32, #tpu.memory_space<vmem>>, vector<1x128xf32>
    %60 = vector.broadcast %59 : vector<1x128xf32> to vector<8x128xf32>
    %61 = arith.mulf %58, %60 : vector<8x128xf32>
    %c7_50 = arith.constant 7 : index
    %c0_51 = arith.constant 0 : index
    %c0_52 = arith.constant 0 : index
    %62 = vector.load %arg4[%c7_50, %c0_51, %c0_52] : memref<9x16x8xf32, #tpu.memory_space<vmem>>, vector<1x16x8xf32>
    %63 = vector.shape_cast %62 : vector<1x16x8xf32> to vector<16x8xf32>
    %cst_53 = arith.constant dense<0.000000e+00> : vector<16x128xf32>
    %64 = tpu.matmul %63, %61, %cst_53 {dimension_numbers = #tpu.dot_dimension_numbers<[1], [0], [0], [1], [0, 0, 1, 1], [], []>} : vector<16x8xf32>, vector<8x128xf32>, vector<16x128xf32> -> vector<16x128xf32>
    %65 = arith.addf %57, %64 : vector<16x128xf32>
    %c0_54 = arith.constant 0 : index
    %c137 = arith.constant 137 : index
    %66 = vector.load %arg29[%c0_54, %c137] : memref<16x384xf32, #tpu.memory_space<vmem>>, vector<8x128xf32>
    %c8 = arith.constant 8 : index
    %c0_55 = arith.constant 0 : index
    %67 = vector.load %arg3[%c8, %c0_55] : memref<9x128xf32, #tpu.memory_space<vmem>>, vector<1x128xf32>
    %68 = vector.broadcast %67 : vector<1x128xf32> to vector<8x128xf32>
    %69 = arith.mulf %66, %68 : vector<8x128xf32>
    %c8_56 = arith.constant 8 : index
    %c0_57 = arith.constant 0 : index
    %c0_58 = arith.constant 0 : index
    %70 = vector.load %arg4[%c8_56, %c0_57, %c0_58] : memref<9x16x8xf32, #tpu.memory_space<vmem>>, vector<1x16x8xf32>
    %71 = vector.shape_cast %70 : vector<1x16x8xf32> to vector<16x8xf32>
    %cst_59 = arith.constant dense<0.000000e+00> : vector<16x128xf32>
    %72 = tpu.matmul %71, %69, %cst_59 {dimension_numbers = #tpu.dot_dimension_numbers<[1], [0], [0], [1], [0, 0, 1, 1], [], []>} : vector<16x8xf32>, vector<8x128xf32>, vector<16x128xf32> -> vector<16x128xf32>
    %73 = arith.addf %65, %72 : vector<16x128xf32>
    %c0_60 = arith.constant 0 : index
    %c0_61 = arith.constant 0 : index
    %74 = vector.load %arg5[%c0_60, %c0_61] : memref<16x1xf32, #tpu.memory_space<vmem>>, vector<16x1xf32>
    %75 = vector.broadcast %74 : vector<16x1xf32> to vector<16x128xf32>
    %76 = arith.addf %73, %75 : vector<16x128xf32>
    %cst_62 = arith.constant dense<0.000000e+00> : vector<16xf32>
    %77 = vector.multi_reduction <add>, %76, %cst_62 [1] : vector<16x128xf32> to vector<16xf32>
    %78 = vector.shape_cast %77 : vector<16xf32> to vector<16x1xf32>
    %cst_63 = arith.constant 1.280000e+02 : f32
    %79 = vector.broadcast %cst_63 : f32 to vector<16x1xf32>
    %80 = arith.divf %78, %79 : vector<16x1xf32>
    %81 = vector.broadcast %80 : vector<16x1xf32> to vector<16x128xf32>
    %82 = arith.subf %76, %81 : vector<16x128xf32>
    %83 = arith.mulf %82, %82 : vector<16x128xf32>
    %cst_64 = arith.constant dense<0.000000e+00> : vector<16xf32>
    %84 = vector.multi_reduction <add>, %83, %cst_64 [1] : vector<16x128xf32> to vector<16xf32>
    %85 = vector.shape_cast %84 : vector<16xf32> to vector<16x1xf32>
    %cst_65 = arith.constant 1.280000e+02 : f32
    %86 = vector.broadcast %cst_65 : f32 to vector<16x1xf32>
    %87 = arith.divf %85, %86 : vector<16x1xf32>
    %88 = vector.broadcast %80 : vector<16x1xf32> to vector<16x128xf32>
    %89 = arith.subf %76, %88 : vector<16x128xf32>
    %cst_66 = arith.constant 9.99999974E-6 : f32
    %90 = vector.broadcast %cst_66 : f32 to vector<16x1xf32>
    %91 = arith.addf %87, %90 : vector<16x1xf32>
    %92 = math.rsqrt %91 : vector<16x1xf32>
    %93 = vector.broadcast %92 : vector<16x1xf32> to vector<16x128xf32>
    %94 = arith.mulf %89, %93 : vector<16x128xf32>
    %c0_67 = arith.constant 0 : index
    %c0_68 = arith.constant 0 : index
    %95 = vector.load %arg6[%c0_67, %c0_68] : memref<16x1xf32, #tpu.memory_space<vmem>>, vector<16x1xf32>
    %96 = vector.broadcast %95 : vector<16x1xf32> to vector<16x128xf32>
    %97 = arith.mulf %94, %96 : vector<16x128xf32>
    %c0_69 = arith.constant 0 : index
    %c0_70 = arith.constant 0 : index
    %98 = vector.load %arg7[%c0_69, %c0_70] : memref<16x1xf32, #tpu.memory_space<vmem>>, vector<16x1xf32>
    %99 = vector.broadcast %98 : vector<16x1xf32> to vector<16x128xf32>
    %100 = arith.addf %97, %99 : vector<16x128xf32>
    %cst_71 = arith.constant 0.000000e+00 : f32
    %101 = vector.broadcast %cst_71 : f32 to vector<16x128xf32>
    %102 = arith.maximumf %100, %101 : vector<16x128xf32>
    %c0_72 = arith.constant 0 : index
    %c128_73 = arith.constant 128 : index
    %103 = vector.load %arg29[%c0_72, %c128_73] : memref<16x384xf32, #tpu.memory_space<vmem>>, vector<16x128xf32>
    tpu.vector_store %arg29[%c0_72, %c128_73], %102 {strides = array<i32>} : memref<16x384xf32, #tpu.memory_space<vmem>>, vector<16x128xf32>,
    %c0_74 = arith.constant 0 : index
    %c119_75 = arith.constant 119 : index
    %104 = vector.load %arg29[%c0_74, %c119_75] : memref<16x384xf32, #tpu.memory_space<vmem>>, vector<16x128xf32>
    %c0_76 = arith.constant 0 : index
    %c0_77 = arith.constant 0 : index
    %105 = vector.load %arg3[%c0_76, %c0_77] : memref<9x128xf32, #tpu.memory_space<vmem>>, vector<1x128xf32>
    %106 = vector.broadcast %105 : vector<1x128xf32> to vector<16x128xf32>
    %107 = arith.mulf %104, %106 : vector<16x128xf32>
    %c0_78 = arith.constant 0 : index
    %c0_79 = arith.constant 0 : index
    %c0_80 = arith.constant 0 : index
    %108 = vector.load %arg8[%c0_78, %c0_79, %c0_80] : memref<9x16x16xf32, #tpu.memory_space<vmem>>, vector<1x16x16xf32>
    %109 = vector.shape_cast %108 : vector<1x16x16xf32> to vector<16x16xf32>
    %cst_81 = arith.constant dense<0.000000e+00> : vector<16x128xf32>
    %110 = tpu.matmul %109, %107, %cst_81 {dimension_numbers = #tpu.dot_dimension_numbers<[1], [0], [0], [1], [0, 0, 1, 1], [], []>} : vector<16x16xf32>, vector<16x128xf32>, vector<16x128xf32> -> vector<16x128xf32>
    %c0_82 = arith.constant 0 : index
    %c120_83 = arith.constant 120 : index
    %111 = vector.load %arg29[%c0_82, %c120_83] : memref<16x384xf32, #tpu.memory_space<vmem>>, vector<16x128xf32>
    %c1_84 = arith.constant 1 : index
    %c0_85 = arith.constant 0 : index
    %112 = vector.load %arg3[%c1_84, %c0_85] : memref<9x128xf32, #tpu.memory_space<vmem>>, vector<1x128xf32>
    %113 = vector.broadcast %112 : vector<1x128xf32> to vector<16x128xf32>
    %114 = arith.mulf %111, %113 : vector<16x128xf32>
    %c1_86 = arith.constant 1 : index
    %c0_87 = arith.constant 0 : index
    %c0_88 = arith.constant 0 : index
    %115 = vector.load %arg8[%c1_86, %c0_87, %c0_88] : memref<9x16x16xf32, #tpu.memory_space<vmem>>, vector<1x16x16xf32>
    %116 = vector.shape_cast %115 : vector<1x16x16xf32> to vector<16x16xf32>
    %cst_89 = arith.constant dense<0.000000e+00> : vector<16x128xf32>
    %117 = tpu.matmul %116, %114, %cst_89 {dimension_numbers = #tpu.dot_dimension_numbers<[1], [0], [0], [1], [0, 0, 1, 1], [], []>} : vector<16x16xf32>, vector<16x128xf32>, vector<16x128xf32> -> vector<16x128xf32>
    %118 = arith.addf %110, %117 : vector<16x128xf32>
    %c0_90 = arith.constant 0 : index
    %c121_91 = arith.constant 121 : index
    %119 = vector.load %arg29[%c0_90, %c121_91] : memref<16x384xf32, #tpu.memory_space<vmem>>, vector<16x128xf32>
    %c2_92 = arith.constant 2 : index
    %c0_93 = arith.constant 0 : index
    %120 = vector.load %arg3[%c2_92, %c0_93] : memref<9x128xf32, #tpu.memory_space<vmem>>, vector<1x128xf32>
    %121 = vector.broadcast %120 : vector<1x128xf32> to vector<16x128xf32>
    %122 = arith.mulf %119, %121 : vector<16x128xf32>
    %c2_94 = arith.constant 2 : index
    %c0_95 = arith.constant 0 : index
    %c0_96 = arith.constant 0 : index
    %123 = vector.load %arg8[%c2_94, %c0_95, %c0_96] : memref<9x16x16xf32, #tpu.memory_space<vmem>>, vector<1x16x16xf32>
    %124 = vector.shape_cast %123 : vector<1x16x16xf32> to vector<16x16xf32>
    %cst_97 = arith.constant dense<0.000000e+00> : vector<16x128xf32>
    %125 = tpu.matmul %124, %122, %cst_97 {dimension_numbers = #tpu.dot_dimension_numbers<[1], [0], [0], [1], [0, 0, 1, 1], [], []>} : vector<16x16xf32>, vector<16x128xf32>, vector<16x128xf32> -> vector<16x128xf32>
    %126 = arith.addf %118, %125 : vector<16x128xf32>
    %c0_98 = arith.constant 0 : index
    %c127_99 = arith.constant 127 : index
    %127 = vector.load %arg29[%c0_98, %c127_99] : memref<16x384xf32, #tpu.memory_space<vmem>>, vector<16x128xf32>
    %c3_100 = arith.constant 3 : index
    %c0_101 = arith.constant 0 : index
    %128 = vector.load %arg3[%c3_100, %c0_101] : memref<9x128xf32, #tpu.memory_space<vmem>>, vector<1x128xf32>
    %129 = vector.broadcast %128 : vector<1x128xf32> to vector<16x128xf32>
    %130 = arith.mulf %127, %129 : vector<16x128xf32>
    %c3_102 = arith.constant 3 : index
    %c0_103 = arith.constant 0 : index
    %c0_104 = arith.constant 0 : index
    %131 = vector.load %arg8[%c3_102, %c0_103, %c0_104] : memref<9x16x16xf32, #tpu.memory_space<vmem>>, vector<1x16x16xf32>
    %132 = vector.shape_cast %131 : vector<1x16x16xf32> to vector<16x16xf32>
    %cst_105 = arith.constant dense<0.000000e+00> : vector<16x128xf32>
    %133 = tpu.matmul %132, %130, %cst_105 {dimension_numbers = #tpu.dot_dimension_numbers<[1], [0], [0], [1], [0, 0, 1, 1], [], []>} : vector<16x16xf32>, vector<16x128xf32>, vector<16x128xf32> -> vector<16x128xf32>
    %134 = arith.addf %126, %133 : vector<16x128xf32>
    %c0_106 = arith.constant 0 : index
    %c128_107 = arith.constant 128 : index
    %135 = vector.load %arg29[%c0_106, %c128_107] : memref<16x384xf32, #tpu.memory_space<vmem>>, vector<16x128xf32>
    %c4_108 = arith.constant 4 : index
    %c0_109 = arith.constant 0 : index
    %c0_110 = arith.constant 0 : index
    %136 = vector.load %arg8[%c4_108, %c0_109, %c0_110] : memref<9x16x16xf32, #tpu.memory_space<vmem>>, vector<1x16x16xf32>
    %137 = vector.shape_cast %136 : vector<1x16x16xf32> to vector<16x16xf32>
    %cst_111 = arith.constant dense<0.000000e+00> : vector<16x128xf32>
    %138 = tpu.matmul %137, %135, %cst_111 {dimension_numbers = #tpu.dot_dimension_numbers<[1], [0], [0], [1], [0, 0, 1, 1], [], []>} : vector<16x16xf32>, vector<16x128xf32>, vector<16x128xf32> -> vector<16x128xf32>
    %139 = arith.addf %134, %138 : vector<16x128xf32>
    %c0_112 = arith.constant 0 : index
    %c129_113 = arith.constant 129 : index
    %140 = vector.load %arg29[%c0_112, %c129_113] : memref<16x384xf32, #tpu.memory_space<vmem>>, vector<16x128xf32>
    %c5_114 = arith.constant 5 : index
    %c0_115 = arith.constant 0 : index
    %141 = vector.load %arg3[%c5_114, %c0_115] : memref<9x128xf32, #tpu.memory_space<vmem>>, vector<1x128xf32>
    %142 = vector.broadcast %141 : vector<1x128xf32> to vector<16x128xf32>
    %143 = arith.mulf %140, %142 : vector<16x128xf32>
    %c5_116 = arith.constant 5 : index
    %c0_117 = arith.constant 0 : index
    %c0_118 = arith.constant 0 : index
    %144 = vector.load %arg8[%c5_116, %c0_117, %c0_118] : memref<9x16x16xf32, #tpu.memory_space<vmem>>, vector<1x16x16xf32>
    %145 = vector.shape_cast %144 : vector<1x16x16xf32> to vector<16x16xf32>
    %cst_119 = arith.constant dense<0.000000e+00> : vector<16x128xf32>
    %146 = tpu.matmul %145, %143, %cst_119 {dimension_numbers = #tpu.dot_dimension_numbers<[1], [0], [0], [1], [0, 0, 1, 1], [], []>} : vector<16x16xf32>, vector<16x128xf32>, vector<16x128xf32> -> vector<16x128xf32>
    %147 = arith.addf %139, %146 : vector<16x128xf32>
    %c0_120 = arith.constant 0 : index
    %c135_121 = arith.constant 135 : index
    %148 = vector.load %arg29[%c0_120, %c135_121] : memref<16x384xf32, #tpu.memory_space<vmem>>, vector<16x128xf32>
    %c6_122 = arith.constant 6 : index
    %c0_123 = arith.constant 0 : index
    %149 = vector.load %arg3[%c6_122, %c0_123] : memref<9x128xf32, #tpu.memory_space<vmem>>, vector<1x128xf32>
    %150 = vector.broadcast %149 : vector<1x128xf32> to vector<16x128xf32>
    %151 = arith.mulf %148, %150 : vector<16x128xf32>
    %c6_124 = arith.constant 6 : index
    %c0_125 = arith.constant 0 : index
    %c0_126 = arith.constant 0 : index
    %152 = vector.load %arg8[%c6_124, %c0_125, %c0_126] : memref<9x16x16xf32, #tpu.memory_space<vmem>>, vector<1x16x16xf32>
    %153 = vector.shape_cast %152 : vector<1x16x16xf32> to vector<16x16xf32>
    %cst_127 = arith.constant dense<0.000000e+00> : vector<16x128xf32>
    %154 = tpu.matmul %153, %151, %cst_127 {dimension_numbers = #tpu.dot_dimension_numbers<[1], [0], [0], [1], [0, 0, 1, 1], [], []>} : vector<16x16xf32>, vector<16x128xf32>, vector<16x128xf32> -> vector<16x128xf32>
    %155 = arith.addf %147, %154 : vector<16x128xf32>
    %c0_128 = arith.constant 0 : index
    %c136_129 = arith.constant 136 : index
    %156 = vector.load %arg29[%c0_128, %c136_129] : memref<16x384xf32, #tpu.memory_space<vmem>>, vector<16x128xf32>
    %c7_130 = arith.constant 7 : index
    %c0_131 = arith.constant 0 : index
    %157 = vector.load %arg3[%c7_130, %c0_131] : memref<9x128xf32, #tpu.memory_space<vmem>>, vector<1x128xf32>
    %158 = vector.broadcast %157 : vector<1x128xf32> to vector<16x128xf32>
    %159 = arith.mulf %156, %158 : vector<16x128xf32>
    %c7_132 = arith.constant 7 : index
    %c0_133 = arith.constant 0 : index
    %c0_134 = arith.constant 0 : index
    %160 = vector.load %arg8[%c7_132, %c0_133, %c0_134] : memref<9x16x16xf32, #tpu.memory_space<vmem>>, vector<1x16x16xf32>
    %161 = vector.shape_cast %160 : vector<1x16x16xf32> to vector<16x16xf32>
    %cst_135 = arith.constant dense<0.000000e+00> : vector<16x128xf32>
    %162 = tpu.matmul %161, %159, %cst_135 {dimension_numbers = #tpu.dot_dimension_numbers<[1], [0], [0], [1], [0, 0, 1, 1], [], []>} : vector<16x16xf32>, vector<16x128xf32>, vector<16x128xf32> -> vector<16x128xf32>
    %163 = arith.addf %155, %162 : vector<16x128xf32>
    %c0_136 = arith.constant 0 : index
    %c137_137 = arith.constant 137 : index
    %164 = vector.load %arg29[%c0_136, %c137_137] : memref<16x384xf32, #tpu.memory_space<vmem>>, vector<16x128xf32>
    %c8_138 = arith.constant 8 : index
    %c0_139 = arith.constant 0 : index
    %165 = vector.load %arg3[%c8_138, %c0_139] : memref<9x128xf32, #tpu.memory_space<vmem>>, vector<1x128xf32>
    %166 = vector.broadcast %165 : vector<1x128xf32> to vector<16x128xf32>
    %167 = arith.mulf %164, %166 : vector<16x128xf32>
    %c8_140 = arith.constant 8 : index
    %c0_141 = arith.constant 0 : index
    %c0_142 = arith.constant 0 : index
    %168 = vector.load %arg8[%c8_140, %c0_141, %c0_142] : memref<9x16x16xf32, #tpu.memory_space<vmem>>, vector<1x16x16xf32>
    %169 = vector.shape_cast %168 : vector<1x16x16xf32> to vector<16x16xf32>
    %cst_143 = arith.constant dense<0.000000e+00> : vector<16x128xf32>
    %170 = tpu.matmul %169, %167, %cst_143 {dimension_numbers = #tpu.dot_dimension_numbers<[1], [0], [0], [1], [0, 0, 1, 1], [], []>} : vector<16x16xf32>, vector<16x128xf32>, vector<16x128xf32> -> vector<16x128xf32>
    %171 = arith.addf %163, %170 : vector<16x128xf32>
    %c0_144 = arith.constant 0 : index
    %c0_145 = arith.constant 0 : index
    %172 = vector.load %arg9[%c0_144, %c0_145] : memref<16x1xf32, #tpu.memory_space<vmem>>, vector<16x1xf32>
    %173 = vector.broadcast %172 : vector<16x1xf32> to vector<16x128xf32>
    %174 = arith.addf %171, %173 : vector<16x128xf32>
    %cst_146 = arith.constant dense<0.000000e+00> : vector<16xf32>
    %175 = vector.multi_reduction <add>, %174, %cst_146 [1] : vector<16x128xf32> to vector<16xf32>
    %176 = vector.shape_cast %175 : vector<16xf32> to vector<16x1xf32>
    %cst_147 = arith.constant 1.280000e+02 : f32
    %177 = vector.broadcast %cst_147 : f32 to vector<16x1xf32>
    %178 = arith.divf %176, %177 : vector<16x1xf32>
    %179 = vector.broadcast %178 : vector<16x1xf32> to vector<16x128xf32>
    %180 = arith.subf %174, %179 : vector<16x128xf32>
    %181 = arith.mulf %180, %180 : vector<16x128xf32>
    %cst_148 = arith.constant dense<0.000000e+00> : vector<16xf32>
    %182 = vector.multi_reduction <add>, %181, %cst_148 [1] : vector<16x128xf32> to vector<16xf32>
    %183 = vector.shape_cast %182 : vector<16xf32> to vector<16x1xf32>
    %cst_149 = arith.constant 1.280000e+02 : f32
    %184 = vector.broadcast %cst_149 : f32 to vector<16x1xf32>
    %185 = arith.divf %183, %184 : vector<16x1xf32>
    %186 = vector.broadcast %178 : vector<16x1xf32> to vector<16x128xf32>
    %187 = arith.subf %174, %186 : vector<16x128xf32>
    %cst_150 = arith.constant 9.99999974E-6 : f32
    %188 = vector.broadcast %cst_150 : f32 to vector<16x1xf32>
    %189 = arith.addf %185, %188 : vector<16x1xf32>
    %190 = math.rsqrt %189 : vector<16x1xf32>
    %191 = vector.broadcast %190 : vector<16x1xf32> to vector<16x128xf32>
    %192 = arith.mulf %187, %191 : vector<16x128xf32>
    %c0_151 = arith.constant 0 : index
    %c0_152 = arith.constant 0 : index
    %193 = vector.load %arg10[%c0_151, %c0_152] : memref<16x1xf32, #tpu.memory_space<vmem>>, vector<16x1xf32>
    %194 = vector.broadcast %193 : vector<16x1xf32> to vector<16x128xf32>
    %195 = arith.mulf %192, %194 : vector<16x128xf32>
    %c0_153 = arith.constant 0 : index
    %c0_154 = arith.constant 0 : index
    %196 = vector.load %arg11[%c0_153, %c0_154] : memref<16x1xf32, #tpu.memory_space<vmem>>, vector<16x1xf32>
    %197 = vector.broadcast %196 : vector<16x1xf32> to vector<16x128xf32>
    %198 = arith.addf %195, %197 : vector<16x128xf32>
    %c0_155 = arith.constant 0 : index
    %c0_156 = arith.constant 0 : index
    %199 = vector.load %arg12[%c0_155, %c0_156] : memref<16x8xf32, #tpu.memory_space<vmem>>, vector<16x8xf32>
    %cst_157 = arith.constant dense<0.000000e+00> : vector<16x128xf32>
    %200 = tpu.matmul %199, %4, %cst_157 {dimension_numbers = #tpu.dot_dimension_numbers<[1], [0], [0], [1], [0, 0, 1, 1], [], []>} : vector<16x8xf32>, vector<8x128xf32>, vector<16x128xf32> -> vector<16x128xf32>
    %c0_158 = arith.constant 0 : index
    %c0_159 = arith.constant 0 : index
    %201 = vector.load %arg13[%c0_158, %c0_159] : memref<16x1xf32, #tpu.memory_space<vmem>>, vector<16x1xf32>
    %202 = vector.broadcast %201 : vector<16x1xf32> to vector<16x128xf32>
    %203 = arith.addf %200, %202 : vector<16x128xf32>
    %cst_160 = arith.constant dense<0.000000e+00> : vector<16xf32>
    %204 = vector.multi_reduction <add>, %203, %cst_160 [1] : vector<16x128xf32> to vector<16xf32>
    %205 = vector.shape_cast %204 : vector<16xf32> to vector<16x1xf32>
    %cst_161 = arith.constant 1.280000e+02 : f32
    %206 = vector.broadcast %cst_161 : f32 to vector<16x1xf32>
    %207 = arith.divf %205, %206 : vector<16x1xf32>
    %208 = vector.broadcast %207 : vector<16x1xf32> to vector<16x128xf32>
    %209 = arith.subf %203, %208 : vector<16x128xf32>
    %210 = arith.mulf %209, %209 : vector<16x128xf32>
    %cst_162 = arith.constant dense<0.000000e+00> : vector<16xf32>
    %211 = vector.multi_reduction <add>, %210, %cst_162 [1] : vector<16x128xf32> to vector<16xf32>
    %212 = vector.shape_cast %211 : vector<16xf32> to vector<16x1xf32>
    %cst_163 = arith.constant 1.280000e+02 : f32
    %213 = vector.broadcast %cst_163 : f32 to vector<16x1xf32>
    %214 = arith.divf %212, %213 : vector<16x1xf32>
    %215 = vector.broadcast %207 : vector<16x1xf32> to vector<16x128xf32>
    %216 = arith.subf %203, %215 : vector<16x128xf32>
    %cst_164 = arith.constant 9.99999974E-6 : f32
    %217 = vector.broadcast %cst_164 : f32 to vector<16x1xf32>
    %218 = arith.addf %214, %217 : vector<16x1xf32>
    %219 = math.rsqrt %218 : vector<16x1xf32>
    %220 = vector.broadcast %219 : vector<16x1xf32> to vector<16x128xf32>
    %221 = arith.mulf %216, %220 : vector<16x128xf32>
    %c0_165 = arith.constant 0 : index
    %c0_166 = arith.constant 0 : index
    %222 = vector.load %arg14[%c0_165, %c0_166] : memref<16x1xf32, #tpu.memory_space<vmem>>, vector<16x1xf32>
    %223 = vector.broadcast %222 : vector<16x1xf32> to vector<16x128xf32>
    %224 = arith.mulf %221, %223 : vector<16x128xf32>
    %c0_167 = arith.constant 0 : index
    %c0_168 = arith.constant 0 : index
    %225 = vector.load %arg15[%c0_167, %c0_168] : memref<16x1xf32, #tpu.memory_space<vmem>>, vector<16x1xf32>
    %226 = vector.broadcast %225 : vector<16x1xf32> to vector<16x128xf32>
    %227 = arith.addf %224, %226 : vector<16x128xf32>
    %228 = arith.addf %198, %227 : vector<16x128xf32>
    %cst_169 = arith.constant 0.000000e+00 : f32
    %229 = vector.broadcast %cst_169 : f32 to vector<16x128xf32>
    %230 = arith.maximumf %228, %229 : vector<16x128xf32>
    %c0_170 = arith.constant 0 : index
    %c128_171 = arith.constant 128 : index
    %231 = vector.load %arg29[%c0_170, %c128_171] : memref<16x384xf32, #tpu.memory_space<vmem>>, vector<16x128xf32>
    tpu.vector_store %arg29[%c0_170, %c128_171], %230 {strides = array<i32>} : memref<16x384xf32, #tpu.memory_space<vmem>>, vector<16x128xf32>,
    %c0_172 = arith.constant 0 : index
    %c119_173 = arith.constant 119 : index
    %232 = vector.load %arg29[%c0_172, %c119_173] : memref<16x384xf32, #tpu.memory_space<vmem>>, vector<16x128xf32>
    %c0_174 = arith.constant 0 : index
    %c0_175 = arith.constant 0 : index
    %233 = vector.load %arg3[%c0_174, %c0_175] : memref<9x128xf32, #tpu.memory_space<vmem>>, vector<1x128xf32>
    %234 = vector.broadcast %233 : vector<1x128xf32> to vector<16x128xf32>
    %235 = arith.mulf %232, %234 : vector<16x128xf32>
    %c0_176 = arith.constant 0 : index
    %c0_177 = arith.constant 0 : index
    %c0_178 = arith.constant 0 : index
    %236 = vector.load %arg16[%c0_176, %c0_177, %c0_178] : memref<9x16x16xf32, #tpu.memory_space<vmem>>, vector<1x16x16xf32>
    %237 = vector.shape_cast %236 : vector<1x16x16xf32> to vector<16x16xf32>
    %cst_179 = arith.constant dense<0.000000e+00> : vector<16x128xf32>
    %238 = tpu.matmul %237, %235, %cst_179 {dimension_numbers = #tpu.dot_dimension_numbers<[1], [0], [0], [1], [0, 0, 1, 1], [], []>} : vector<16x16xf32>, vector<16x128xf32>, vector<16x128xf32> -> vector<16x128xf32>
    %c0_180 = arith.constant 0 : index
    %c120_181 = arith.constant 120 : index
    %239 = vector.load %arg29[%c0_180, %c120_181] : memref<16x384xf32, #tpu.memory_space<vmem>>, vector<16x128xf32>
    %c1_182 = arith.constant 1 : index
    %c0_183 = arith.constant 0 : index
    %240 = vector.load %arg3[%c1_182, %c0_183] : memref<9x128xf32, #tpu.memory_space<vmem>>, vector<1x128xf32>
    %241 = vector.broadcast %240 : vector<1x128xf32> to vector<16x128xf32>
    %242 = arith.mulf %239, %241 : vector<16x128xf32>
    %c1_184 = arith.constant 1 : index
    %c0_185 = arith.constant 0 : index
    %c0_186 = arith.constant 0 : index
    %243 = vector.load %arg16[%c1_184, %c0_185, %c0_186] : memref<9x16x16xf32, #tpu.memory_space<vmem>>, vector<1x16x16xf32>
    %244 = vector.shape_cast %243 : vector<1x16x16xf32> to vector<16x16xf32>
    %cst_187 = arith.constant dense<0.000000e+00> : vector<16x128xf32>
    %245 = tpu.matmul %244, %242, %cst_187 {dimension_numbers = #tpu.dot_dimension_numbers<[1], [0], [0], [1], [0, 0, 1, 1], [], []>} : vector<16x16xf32>, vector<16x128xf32>, vector<16x128xf32> -> vector<16x128xf32>
    %246 = arith.addf %238, %245 : vector<16x128xf32>
    %c0_188 = arith.constant 0 : index
    %c121_189 = arith.constant 121 : index
    %247 = vector.load %arg29[%c0_188, %c121_189] : memref<16x384xf32, #tpu.memory_space<vmem>>, vector<16x128xf32>
    %c2_190 = arith.constant 2 : index
    %c0_191 = arith.constant 0 : index
    %248 = vector.load %arg3[%c2_190, %c0_191] : memref<9x128xf32, #tpu.memory_space<vmem>>, vector<1x128xf32>
    %249 = vector.broadcast %248 : vector<1x128xf32> to vector<16x128xf32>
    %250 = arith.mulf %247, %249 : vector<16x128xf32>
    %c2_192 = arith.constant 2 : index
    %c0_193 = arith.constant 0 : index
    %c0_194 = arith.constant 0 : index
    %251 = vector.load %arg16[%c2_192, %c0_193, %c0_194] : memref<9x16x16xf32, #tpu.memory_space<vmem>>, vector<1x16x16xf32>
    %252 = vector.shape_cast %251 : vector<1x16x16xf32> to vector<16x16xf32>
    %cst_195 = arith.constant dense<0.000000e+00> : vector<16x128xf32>
    %253 = tpu.matmul %252, %250, %cst_195 {dimension_numbers = #tpu.dot_dimension_numbers<[1], [0], [0], [1], [0, 0, 1, 1], [], []>} : vector<16x16xf32>, vector<16x128xf32>, vector<16x128xf32> -> vector<16x128xf32>
    %254 = arith.addf %246, %253 : vector<16x128xf32>
    %c0_196 = arith.constant 0 : index
    %c127_197 = arith.constant 127 : index
    %255 = vector.load %arg29[%c0_196, %c127_197] : memref<16x384xf32, #tpu.memory_space<vmem>>, vector<16x128xf32>
    %c3_198 = arith.constant 3 : index
    %c0_199 = arith.constant 0 : index
    %256 = vector.load %arg3[%c3_198, %c0_199] : memref<9x128xf32, #tpu.memory_space<vmem>>, vector<1x128xf32>
    %257 = vector.broadcast %256 : vector<1x128xf32> to vector<16x128xf32>
    %258 = arith.mulf %255, %257 : vector<16x128xf32>
    %c3_200 = arith.constant 3 : index
    %c0_201 = arith.constant 0 : index
    %c0_202 = arith.constant 0 : index
    %259 = vector.load %arg16[%c3_200, %c0_201, %c0_202] : memref<9x16x16xf32, #tpu.memory_space<vmem>>, vector<1x16x16xf32>
    %260 = vector.shape_cast %259 : vector<1x16x16xf32> to vector<16x16xf32>
    %cst_203 = arith.constant dense<0.000000e+00> : vector<16x128xf32>
    %261 = tpu.matmul %260, %258, %cst_203 {dimension_numbers = #tpu.dot_dimension_numbers<[1], [0], [0], [1], [0, 0, 1, 1], [], []>} : vector<16x16xf32>, vector<16x128xf32>, vector<16x128xf32> -> vector<16x128xf32>
    %262 = arith.addf %254, %261 : vector<16x128xf32>
    %c0_204 = arith.constant 0 : index
    %c128_205 = arith.constant 128 : index
    %263 = vector.load %arg29[%c0_204, %c128_205] : memref<16x384xf32, #tpu.memory_space<vmem>>, vector<16x128xf32>
    %c4_206 = arith.constant 4 : index
    %c0_207 = arith.constant 0 : index
    %c0_208 = arith.constant 0 : index
    %264 = vector.load %arg16[%c4_206, %c0_207, %c0_208] : memref<9x16x16xf32, #tpu.memory_space<vmem>>, vector<1x16x16xf32>
    %265 = vector.shape_cast %264 : vector<1x16x16xf32> to vector<16x16xf32>
    %cst_209 = arith.constant dense<0.000000e+00> : vector<16x128xf32>
    %266 = tpu.matmul %265, %263, %cst_209 {dimension_numbers = #tpu.dot_dimension_numbers<[1], [0], [0], [1], [0, 0, 1, 1], [], []>} : vector<16x16xf32>, vector<16x128xf32>, vector<16x128xf32> -> vector<16x128xf32>
    %267 = arith.addf %262, %266 : vector<16x128xf32>
    %c0_210 = arith.constant 0 : index
    %c129_211 = arith.constant 129 : index
    %268 = vector.load %arg29[%c0_210, %c129_211] : memref<16x384xf32, #tpu.memory_space<vmem>>, vector<16x128xf32>
    %c5_212 = arith.constant 5 : index
    %c0_213 = arith.constant 0 : index
    %269 = vector.load %arg3[%c5_212, %c0_213] : memref<9x128xf32, #tpu.memory_space<vmem>>, vector<1x128xf32>
    %270 = vector.broadcast %269 : vector<1x128xf32> to vector<16x128xf32>
    %271 = arith.mulf %268, %270 : vector<16x128xf32>
    %c5_214 = arith.constant 5 : index
    %c0_215 = arith.constant 0 : index
    %c0_216 = arith.constant 0 : index
    %272 = vector.load %arg16[%c5_214, %c0_215, %c0_216] : memref<9x16x16xf32, #tpu.memory_space<vmem>>, vector<1x16x16xf32>
    %273 = vector.shape_cast %272 : vector<1x16x16xf32> to vector<16x16xf32>
    %cst_217 = arith.constant dense<0.000000e+00> : vector<16x128xf32>
    %274 = tpu.matmul %273, %271, %cst_217 {dimension_numbers = #tpu.dot_dimension_numbers<[1], [0], [0], [1], [0, 0, 1, 1], [], []>} : vector<16x16xf32>, vector<16x128xf32>, vector<16x128xf32> -> vector<16x128xf32>
    %275 = arith.addf %267, %274 : vector<16x128xf32>
    %c0_218 = arith.constant 0 : index
    %c135_219 = arith.constant 135 : index
    %276 = vector.load %arg29[%c0_218, %c135_219] : memref<16x384xf32, #tpu.memory_space<vmem>>, vector<16x128xf32>
    %c6_220 = arith.constant 6 : index
    %c0_221 = arith.constant 0 : index
    %277 = vector.load %arg3[%c6_220, %c0_221] : memref<9x128xf32, #tpu.memory_space<vmem>>, vector<1x128xf32>
    %278 = vector.broadcast %277 : vector<1x128xf32> to vector<16x128xf32>
    %279 = arith.mulf %276, %278 : vector<16x128xf32>
    %c6_222 = arith.constant 6 : index
    %c0_223 = arith.constant 0 : index
    %c0_224 = arith.constant 0 : index
    %280 = vector.load %arg16[%c6_222, %c0_223, %c0_224] : memref<9x16x16xf32, #tpu.memory_space<vmem>>, vector<1x16x16xf32>
    %281 = vector.shape_cast %280 : vector<1x16x16xf32> to vector<16x16xf32>
    %cst_225 = arith.constant dense<0.000000e+00> : vector<16x128xf32>
    %282 = tpu.matmul %281, %279, %cst_225 {dimension_numbers = #tpu.dot_dimension_numbers<[1], [0], [0], [1], [0, 0, 1, 1], [], []>} : vector<16x16xf32>, vector<16x128xf32>, vector<16x128xf32> -> vector<16x128xf32>
    %283 = arith.addf %275, %282 : vector<16x128xf32>
    %c0_226 = arith.constant 0 : index
    %c136_227 = arith.constant 136 : index
    %284 = vector.load %arg29[%c0_226, %c136_227] : memref<16x384xf32, #tpu.memory_space<vmem>>, vector<16x128xf32>
    %c7_228 = arith.constant 7 : index
    %c0_229 = arith.constant 0 : index
    %285 = vector.load %arg3[%c7_228, %c0_229] : memref<9x128xf32, #tpu.memory_space<vmem>>, vector<1x128xf32>
    %286 = vector.broadcast %285 : vector<1x128xf32> to vector<16x128xf32>
    %287 = arith.mulf %284, %286 : vector<16x128xf32>
    %c7_230 = arith.constant 7 : index
    %c0_231 = arith.constant 0 : index
    %c0_232 = arith.constant 0 : index
    %288 = vector.load %arg16[%c7_230, %c0_231, %c0_232] : memref<9x16x16xf32, #tpu.memory_space<vmem>>, vector<1x16x16xf32>
    %289 = vector.shape_cast %288 : vector<1x16x16xf32> to vector<16x16xf32>
    %cst_233 = arith.constant dense<0.000000e+00> : vector<16x128xf32>
    %290 = tpu.matmul %289, %287, %cst_233 {dimension_numbers = #tpu.dot_dimension_numbers<[1], [0], [0], [1], [0, 0, 1, 1], [], []>} : vector<16x16xf32>, vector<16x128xf32>, vector<16x128xf32> -> vector<16x128xf32>
    %291 = arith.addf %283, %290 : vector<16x128xf32>
    %c0_234 = arith.constant 0 : index
    %c137_235 = arith.constant 137 : index
    %292 = vector.load %arg29[%c0_234, %c137_235] : memref<16x384xf32, #tpu.memory_space<vmem>>, vector<16x128xf32>
    %c8_236 = arith.constant 8 : index
    %c0_237 = arith.constant 0 : index
    %293 = vector.load %arg3[%c8_236, %c0_237] : memref<9x128xf32, #tpu.memory_space<vmem>>, vector<1x128xf32>
    %294 = vector.broadcast %293 : vector<1x128xf32> to vector<16x128xf32>
    %295 = arith.mulf %292, %294 : vector<16x128xf32>
    %c8_238 = arith.constant 8 : index
    %c0_239 = arith.constant 0 : index
    %c0_240 = arith.constant 0 : index
    %296 = vector.load %arg16[%c8_238, %c0_239, %c0_240] : memref<9x16x16xf32, #tpu.memory_space<vmem>>, vector<1x16x16xf32>
    %297 = vector.shape_cast %296 : vector<1x16x16xf32> to vector<16x16xf32>
    %cst_241 = arith.constant dense<0.000000e+00> : vector<16x128xf32>
    %298 = tpu.matmul %297, %295, %cst_241 {dimension_numbers = #tpu.dot_dimension_numbers<[1], [0], [0], [1], [0, 0, 1, 1], [], []>} : vector<16x16xf32>, vector<16x128xf32>, vector<16x128xf32> -> vector<16x128xf32>
    %299 = arith.addf %291, %298 : vector<16x128xf32>
    %c0_242 = arith.constant 0 : index
    %c0_243 = arith.constant 0 : index
    %300 = vector.load %arg17[%c0_242, %c0_243] : memref<16x1xf32, #tpu.memory_space<vmem>>, vector<16x1xf32>
    %301 = vector.broadcast %300 : vector<16x1xf32> to vector<16x128xf32>
    %302 = arith.addf %299, %301 : vector<16x128xf32>
    %cst_244 = arith.constant dense<0.000000e+00> : vector<16xf32>
    %303 = vector.multi_reduction <add>, %302, %cst_244 [1] : vector<16x128xf32> to vector<16xf32>
    %304 = vector.shape_cast %303 : vector<16xf32> to vector<16x1xf32>
    %cst_245 = arith.constant 1.280000e+02 : f32
    %305 = vector.broadcast %cst_245 : f32 to vector<16x1xf32>
    %306 = arith.divf %304, %305 : vector<16x1xf32>
    %307 = vector.broadcast %306 : vector<16x1xf32> to vector<16x128xf32>
    %308 = arith.subf %302, %307 : vector<16x128xf32>
    %309 = arith.mulf %308, %308 : vector<16x128xf32>
    %cst_246 = arith.constant dense<0.000000e+00> : vector<16xf32>
    %310 = vector.multi_reduction <add>, %309, %cst_246 [1] : vector<16x128xf32> to vector<16xf32>
    %311 = vector.shape_cast %310 : vector<16xf32> to vector<16x1xf32>
    %cst_247 = arith.constant 1.280000e+02 : f32
    %312 = vector.broadcast %cst_247 : f32 to vector<16x1xf32>
    %313 = arith.divf %311, %312 : vector<16x1xf32>
    %314 = vector.broadcast %306 : vector<16x1xf32> to vector<16x128xf32>
    %315 = arith.subf %302, %314 : vector<16x128xf32>
    %cst_248 = arith.constant 9.99999974E-6 : f32
    %316 = vector.broadcast %cst_248 : f32 to vector<16x1xf32>
    %317 = arith.addf %313, %316 : vector<16x1xf32>
    %318 = math.rsqrt %317 : vector<16x1xf32>
    %319 = vector.broadcast %318 : vector<16x1xf32> to vector<16x128xf32>
    %320 = arith.mulf %315, %319 : vector<16x128xf32>
    %c0_249 = arith.constant 0 : index
    %c0_250 = arith.constant 0 : index
    %321 = vector.load %arg18[%c0_249, %c0_250] : memref<16x1xf32, #tpu.memory_space<vmem>>, vector<16x1xf32>
    %322 = vector.broadcast %321 : vector<16x1xf32> to vector<16x128xf32>
    %323 = arith.mulf %320, %322 : vector<16x128xf32>
    %c0_251 = arith.constant 0 : index
    %c0_252 = arith.constant 0 : index
    %324 = vector.load %arg19[%c0_251, %c0_252] : memref<16x1xf32, #tpu.memory_space<vmem>>, vector<16x1xf32>
    %325 = vector.broadcast %324 : vector<16x1xf32> to vector<16x128xf32>
    %326 = arith.addf %323, %325 : vector<16x128xf32>
    %cst_253 = arith.constant 0.000000e+00 : f32
    %327 = vector.broadcast %cst_253 : f32 to vector<16x128xf32>
    %328 = arith.maximumf %326, %327 : vector<16x128xf32>
    %c0_254 = arith.constant 0 : index
    %c128_255 = arith.constant 128 : index
    %329 = vector.load %arg29[%c0_254, %c128_255] : memref<16x384xf32, #tpu.memory_space<vmem>>, vector<16x128xf32>
    tpu.vector_store %arg29[%c0_254, %c128_255], %328 {strides = array<i32>} : memref<16x384xf32, #tpu.memory_space<vmem>>, vector<16x128xf32>,
    %c0_256 = arith.constant 0 : index
    %c119_257 = arith.constant 119 : index
    %330 = vector.load %arg29[%c0_256, %c119_257] : memref<16x384xf32, #tpu.memory_space<vmem>>, vector<16x128xf32>
    %c0_258 = arith.constant 0 : index
    %c0_259 = arith.constant 0 : index
    %331 = vector.load %arg3[%c0_258, %c0_259] : memref<9x128xf32, #tpu.memory_space<vmem>>, vector<1x128xf32>
    %332 = vector.broadcast %331 : vector<1x128xf32> to vector<16x128xf32>
    %333 = arith.mulf %330, %332 : vector<16x128xf32>
    %c0_260 = arith.constant 0 : index
    %c0_261 = arith.constant 0 : index
    %c0_262 = arith.constant 0 : index
    %334 = vector.load %arg20[%c0_260, %c0_261, %c0_262] : memref<9x16x16xf32, #tpu.memory_space<vmem>>, vector<1x16x16xf32>
    %335 = vector.shape_cast %334 : vector<1x16x16xf32> to vector<16x16xf32>
    %cst_263 = arith.constant dense<0.000000e+00> : vector<16x128xf32>
    %336 = tpu.matmul %335, %333, %cst_263 {dimension_numbers = #tpu.dot_dimension_numbers<[1], [0], [0], [1], [0, 0, 1, 1], [], []>} : vector<16x16xf32>, vector<16x128xf32>, vector<16x128xf32> -> vector<16x128xf32>
    %c0_264 = arith.constant 0 : index
    %c120_265 = arith.constant 120 : index
    %337 = vector.load %arg29[%c0_264, %c120_265] : memref<16x384xf32, #tpu.memory_space<vmem>>, vector<16x128xf32>
    %c1_266 = arith.constant 1 : index
    %c0_267 = arith.constant 0 : index
    %338 = vector.load %arg3[%c1_266, %c0_267] : memref<9x128xf32, #tpu.memory_space<vmem>>, vector<1x128xf32>
    %339 = vector.broadcast %338 : vector<1x128xf32> to vector<16x128xf32>
    %340 = arith.mulf %337, %339 : vector<16x128xf32>
    %c1_268 = arith.constant 1 : index
    %c0_269 = arith.constant 0 : index
    %c0_270 = arith.constant 0 : index
    %341 = vector.load %arg20[%c1_268, %c0_269, %c0_270] : memref<9x16x16xf32, #tpu.memory_space<vmem>>, vector<1x16x16xf32>
    %342 = vector.shape_cast %341 : vector<1x16x16xf32> to vector<16x16xf32>
    %cst_271 = arith.constant dense<0.000000e+00> : vector<16x128xf32>
    %343 = tpu.matmul %342, %340, %cst_271 {dimension_numbers = #tpu.dot_dimension_numbers<[1], [0], [0], [1], [0, 0, 1, 1], [], []>} : vector<16x16xf32>, vector<16x128xf32>, vector<16x128xf32> -> vector<16x128xf32>
    %344 = arith.addf %336, %343 : vector<16x128xf32>
    %c0_272 = arith.constant 0 : index
    %c121_273 = arith.constant 121 : index
    %345 = vector.load %arg29[%c0_272, %c121_273] : memref<16x384xf32, #tpu.memory_space<vmem>>, vector<16x128xf32>
    %c2_274 = arith.constant 2 : index
    %c0_275 = arith.constant 0 : index
    %346 = vector.load %arg3[%c2_274, %c0_275] : memref<9x128xf32, #tpu.memory_space<vmem>>, vector<1x128xf32>
    %347 = vector.broadcast %346 : vector<1x128xf32> to vector<16x128xf32>
    %348 = arith.mulf %345, %347 : vector<16x128xf32>
    %c2_276 = arith.constant 2 : index
    %c0_277 = arith.constant 0 : index
    %c0_278 = arith.constant 0 : index
    %349 = vector.load %arg20[%c2_276, %c0_277, %c0_278] : memref<9x16x16xf32, #tpu.memory_space<vmem>>, vector<1x16x16xf32>
    %350 = vector.shape_cast %349 : vector<1x16x16xf32> to vector<16x16xf32>
    %cst_279 = arith.constant dense<0.000000e+00> : vector<16x128xf32>
    %351 = tpu.matmul %350, %348, %cst_279 {dimension_numbers = #tpu.dot_dimension_numbers<[1], [0], [0], [1], [0, 0, 1, 1], [], []>} : vector<16x16xf32>, vector<16x128xf32>, vector<16x128xf32> -> vector<16x128xf32>
    %352 = arith.addf %344, %351 : vector<16x128xf32>
    %c0_280 = arith.constant 0 : index
    %c127_281 = arith.constant 127 : index
    %353 = vector.load %arg29[%c0_280, %c127_281] : memref<16x384xf32, #tpu.memory_space<vmem>>, vector<16x128xf32>
    %c3_282 = arith.constant 3 : index
    %c0_283 = arith.constant 0 : index
    %354 = vector.load %arg3[%c3_282, %c0_283] : memref<9x128xf32, #tpu.memory_space<vmem>>, vector<1x128xf32>
    %355 = vector.broadcast %354 : vector<1x128xf32> to vector<16x128xf32>
    %356 = arith.mulf %353, %355 : vector<16x128xf32>
    %c3_284 = arith.constant 3 : index
    %c0_285 = arith.constant 0 : index
    %c0_286 = arith.constant 0 : index
    %357 = vector.load %arg20[%c3_284, %c0_285, %c0_286] : memref<9x16x16xf32, #tpu.memory_space<vmem>>, vector<1x16x16xf32>
    %358 = vector.shape_cast %357 : vector<1x16x16xf32> to vector<16x16xf32>
    %cst_287 = arith.constant dense<0.000000e+00> : vector<16x128xf32>
    %359 = tpu.matmul %358, %356, %cst_287 {dimension_numbers = #tpu.dot_dimension_numbers<[1], [0], [0], [1], [0, 0, 1, 1], [], []>} : vector<16x16xf32>, vector<16x128xf32>, vector<16x128xf32> -> vector<16x128xf32>
    %360 = arith.addf %352, %359 : vector<16x128xf32>
    %c0_288 = arith.constant 0 : index
    %c128_289 = arith.constant 128 : index
    %361 = vector.load %arg29[%c0_288, %c128_289] : memref<16x384xf32, #tpu.memory_space<vmem>>, vector<16x128xf32>
    %c4_290 = arith.constant 4 : index
    %c0_291 = arith.constant 0 : index
    %c0_292 = arith.constant 0 : index
    %362 = vector.load %arg20[%c4_290, %c0_291, %c0_292] : memref<9x16x16xf32, #tpu.memory_space<vmem>>, vector<1x16x16xf32>
    %363 = vector.shape_cast %362 : vector<1x16x16xf32> to vector<16x16xf32>
    %cst_293 = arith.constant dense<0.000000e+00> : vector<16x128xf32>
    %364 = tpu.matmul %363, %361, %cst_293 {dimension_numbers = #tpu.dot_dimension_numbers<[1], [0], [0], [1], [0, 0, 1, 1], [], []>} : vector<16x16xf32>, vector<16x128xf32>, vector<16x128xf32> -> vector<16x128xf32>
    %365 = arith.addf %360, %364 : vector<16x128xf32>
    %c0_294 = arith.constant 0 : index
    %c129_295 = arith.constant 129 : index
    %366 = vector.load %arg29[%c0_294, %c129_295] : memref<16x384xf32, #tpu.memory_space<vmem>>, vector<16x128xf32>
    %c5_296 = arith.constant 5 : index
    %c0_297 = arith.constant 0 : index
    %367 = vector.load %arg3[%c5_296, %c0_297] : memref<9x128xf32, #tpu.memory_space<vmem>>, vector<1x128xf32>
    %368 = vector.broadcast %367 : vector<1x128xf32> to vector<16x128xf32>
    %369 = arith.mulf %366, %368 : vector<16x128xf32>
    %c5_298 = arith.constant 5 : index
    %c0_299 = arith.constant 0 : index
    %c0_300 = arith.constant 0 : index
    %370 = vector.load %arg20[%c5_298, %c0_299, %c0_300] : memref<9x16x16xf32, #tpu.memory_space<vmem>>, vector<1x16x16xf32>
    %371 = vector.shape_cast %370 : vector<1x16x16xf32> to vector<16x16xf32>
    %cst_301 = arith.constant dense<0.000000e+00> : vector<16x128xf32>
    %372 = tpu.matmul %371, %369, %cst_301 {dimension_numbers = #tpu.dot_dimension_numbers<[1], [0], [0], [1], [0, 0, 1, 1], [], []>} : vector<16x16xf32>, vector<16x128xf32>, vector<16x128xf32> -> vector<16x128xf32>
    %373 = arith.addf %365, %372 : vector<16x128xf32>
    %c0_302 = arith.constant 0 : index
    %c135_303 = arith.constant 135 : index
    %374 = vector.load %arg29[%c0_302, %c135_303] : memref<16x384xf32, #tpu.memory_space<vmem>>, vector<16x128xf32>
    %c6_304 = arith.constant 6 : index
    %c0_305 = arith.constant 0 : index
    %375 = vector.load %arg3[%c6_304, %c0_305] : memref<9x128xf32, #tpu.memory_space<vmem>>, vector<1x128xf32>
    %376 = vector.broadcast %375 : vector<1x128xf32> to vector<16x128xf32>
    %377 = arith.mulf %374, %376 : vector<16x128xf32>
    %c6_306 = arith.constant 6 : index
    %c0_307 = arith.constant 0 : index
    %c0_308 = arith.constant 0 : index
    %378 = vector.load %arg20[%c6_306, %c0_307, %c0_308] : memref<9x16x16xf32, #tpu.memory_space<vmem>>, vector<1x16x16xf32>
    %379 = vector.shape_cast %378 : vector<1x16x16xf32> to vector<16x16xf32>
    %cst_309 = arith.constant dense<0.000000e+00> : vector<16x128xf32>
    %380 = tpu.matmul %379, %377, %cst_309 {dimension_numbers = #tpu.dot_dimension_numbers<[1], [0], [0], [1], [0, 0, 1, 1], [], []>} : vector<16x16xf32>, vector<16x128xf32>, vector<16x128xf32> -> vector<16x128xf32>
    %381 = arith.addf %373, %380 : vector<16x128xf32>
    %c0_310 = arith.constant 0 : index
    %c136_311 = arith.constant 136 : index
    %382 = vector.load %arg29[%c0_310, %c136_311] : memref<16x384xf32, #tpu.memory_space<vmem>>, vector<16x128xf32>
    %c7_312 = arith.constant 7 : index
    %c0_313 = arith.constant 0 : index
    %383 = vector.load %arg3[%c7_312, %c0_313] : memref<9x128xf32, #tpu.memory_space<vmem>>, vector<1x128xf32>
    %384 = vector.broadcast %383 : vector<1x128xf32> to vector<16x128xf32>
    %385 = arith.mulf %382, %384 : vector<16x128xf32>
    %c7_314 = arith.constant 7 : index
    %c0_315 = arith.constant 0 : index
    %c0_316 = arith.constant 0 : index
    %386 = vector.load %arg20[%c7_314, %c0_315, %c0_316] : memref<9x16x16xf32, #tpu.memory_space<vmem>>, vector<1x16x16xf32>
    %387 = vector.shape_cast %386 : vector<1x16x16xf32> to vector<16x16xf32>
    %cst_317 = arith.constant dense<0.000000e+00> : vector<16x128xf32>
    %388 = tpu.matmul %387, %385, %cst_317 {dimension_numbers = #tpu.dot_dimension_numbers<[1], [0], [0], [1], [0, 0, 1, 1], [], []>} : vector<16x16xf32>, vector<16x128xf32>, vector<16x128xf32> -> vector<16x128xf32>
    %389 = arith.addf %381, %388 : vector<16x128xf32>
    %c0_318 = arith.constant 0 : index
    %c137_319 = arith.constant 137 : index
    %390 = vector.load %arg29[%c0_318, %c137_319] : memref<16x384xf32, #tpu.memory_space<vmem>>, vector<16x128xf32>
    %c8_320 = arith.constant 8 : index
    %c0_321 = arith.constant 0 : index
    %391 = vector.load %arg3[%c8_320, %c0_321] : memref<9x128xf32, #tpu.memory_space<vmem>>, vector<1x128xf32>
    %392 = vector.broadcast %391 : vector<1x128xf32> to vector<16x128xf32>
    %393 = arith.mulf %390, %392 : vector<16x128xf32>
    %c8_322 = arith.constant 8 : index
    %c0_323 = arith.constant 0 : index
    %c0_324 = arith.constant 0 : index
    %394 = vector.load %arg20[%c8_322, %c0_323, %c0_324] : memref<9x16x16xf32, #tpu.memory_space<vmem>>, vector<1x16x16xf32>
    %395 = vector.shape_cast %394 : vector<1x16x16xf32> to vector<16x16xf32>
    %cst_325 = arith.constant dense<0.000000e+00> : vector<16x128xf32>
    %396 = tpu.matmul %395, %393, %cst_325 {dimension_numbers = #tpu.dot_dimension_numbers<[1], [0], [0], [1], [0, 0, 1, 1], [], []>} : vector<16x16xf32>, vector<16x128xf32>, vector<16x128xf32> -> vector<16x128xf32>
    %397 = arith.addf %389, %396 : vector<16x128xf32>
    %c0_326 = arith.constant 0 : index
    %c0_327 = arith.constant 0 : index
    %398 = vector.load %arg21[%c0_326, %c0_327] : memref<16x1xf32, #tpu.memory_space<vmem>>, vector<16x1xf32>
    %399 = vector.broadcast %398 : vector<16x1xf32> to vector<16x128xf32>
    %400 = arith.addf %397, %399 : vector<16x128xf32>
    %cst_328 = arith.constant dense<0.000000e+00> : vector<16xf32>
    %401 = vector.multi_reduction <add>, %400, %cst_328 [1] : vector<16x128xf32> to vector<16xf32>
    %402 = vector.shape_cast %401 : vector<16xf32> to vector<16x1xf32>
    %cst_329 = arith.constant 1.280000e+02 : f32
    %403 = vector.broadcast %cst_329 : f32 to vector<16x1xf32>
    %404 = arith.divf %402, %403 : vector<16x1xf32>
    %405 = vector.broadcast %404 : vector<16x1xf32> to vector<16x128xf32>
    %406 = arith.subf %400, %405 : vector<16x128xf32>
    %407 = arith.mulf %406, %406 : vector<16x128xf32>
    %cst_330 = arith.constant dense<0.000000e+00> : vector<16xf32>
    %408 = vector.multi_reduction <add>, %407, %cst_330 [1] : vector<16x128xf32> to vector<16xf32>
    %409 = vector.shape_cast %408 : vector<16xf32> to vector<16x1xf32>
    %cst_331 = arith.constant 1.280000e+02 : f32
    %410 = vector.broadcast %cst_331 : f32 to vector<16x1xf32>
    %411 = arith.divf %409, %410 : vector<16x1xf32>
    %412 = vector.broadcast %404 : vector<16x1xf32> to vector<16x128xf32>
    %413 = arith.subf %400, %412 : vector<16x128xf32>
    %cst_332 = arith.constant 9.99999974E-6 : f32
    %414 = vector.broadcast %cst_332 : f32 to vector<16x1xf32>
    %415 = arith.addf %411, %414 : vector<16x1xf32>
    %416 = math.rsqrt %415 : vector<16x1xf32>
    %417 = vector.broadcast %416 : vector<16x1xf32> to vector<16x128xf32>
    %418 = arith.mulf %413, %417 : vector<16x128xf32>
    %c0_333 = arith.constant 0 : index
    %c0_334 = arith.constant 0 : index
    %419 = vector.load %arg22[%c0_333, %c0_334] : memref<16x1xf32, #tpu.memory_space<vmem>>, vector<16x1xf32>
    %420 = vector.broadcast %419 : vector<16x1xf32> to vector<16x128xf32>
    %421 = arith.mulf %418, %420 : vector<16x128xf32>
    %c0_335 = arith.constant 0 : index
    %c0_336 = arith.constant 0 : index
    %422 = vector.load %arg23[%c0_335, %c0_336] : memref<16x1xf32, #tpu.memory_space<vmem>>, vector<16x1xf32>
    %423 = vector.broadcast %422 : vector<16x1xf32> to vector<16x128xf32>
    %424 = arith.addf %421, %423 : vector<16x128xf32>
    %c0_337 = arith.constant 0 : index
    %c0_338 = arith.constant 0 : index
    %425 = vector.load %arg24[%c0_337, %c0_338] : memref<16x16xf32, #tpu.memory_space<vmem>>, vector<16x16xf32>
    %cst_339 = arith.constant dense<0.000000e+00> : vector<16x128xf32>
    %426 = tpu.matmul %425, %230, %cst_339 {dimension_numbers = #tpu.dot_dimension_numbers<[1], [0], [0], [1], [0, 0, 1, 1], [], []>} : vector<16x16xf32>, vector<16x128xf32>, vector<16x128xf32> -> vector<16x128xf32>
    %c0_340 = arith.constant 0 : index
    %c0_341 = arith.constant 0 : index
    %427 = vector.load %arg25[%c0_340, %c0_341] : memref<16x1xf32, #tpu.memory_space<vmem>>, vector<16x1xf32>
    %428 = vector.broadcast %427 : vector<16x1xf32> to vector<16x128xf32>
    %429 = arith.addf %426, %428 : vector<16x128xf32>
    %cst_342 = arith.constant dense<0.000000e+00> : vector<16xf32>
    %430 = vector.multi_reduction <add>, %429, %cst_342 [1] : vector<16x128xf32> to vector<16xf32>
    %431 = vector.shape_cast %430 : vector<16xf32> to vector<16x1xf32>
    %cst_343 = arith.constant 1.280000e+02 : f32
    %432 = vector.broadcast %cst_343 : f32 to vector<16x1xf32>
    %433 = arith.divf %431, %432 : vector<16x1xf32>
    %434 = vector.broadcast %433 : vector<16x1xf32> to vector<16x128xf32>
    %435 = arith.subf %429, %434 : vector<16x128xf32>
    %436 = arith.mulf %435, %435 : vector<16x128xf32>
    %cst_344 = arith.constant dense<0.000000e+00> : vector<16xf32>
    %437 = vector.multi_reduction <add>, %436, %cst_344 [1] : vector<16x128xf32> to vector<16xf32>
    %438 = vector.shape_cast %437 : vector<16xf32> to vector<16x1xf32>
    %cst_345 = arith.constant 1.280000e+02 : f32
    %439 = vector.broadcast %cst_345 : f32 to vector<16x1xf32>
    %440 = arith.divf %438, %439 : vector<16x1xf32>
    %441 = vector.broadcast %433 : vector<16x1xf32> to vector<16x128xf32>
    %442 = arith.subf %429, %441 : vector<16x128xf32>
    %cst_346 = arith.constant 9.99999974E-6 : f32
    %443 = vector.broadcast %cst_346 : f32 to vector<16x1xf32>
    %444 = arith.addf %440, %443 : vector<16x1xf32>
    %445 = math.rsqrt %444 : vector<16x1xf32>
    %446 = vector.broadcast %445 : vector<16x1xf32> to vector<16x128xf32>
    %447 = arith.mulf %442, %446 : vector<16x128xf32>
    %c0_347 = arith.constant 0 : index
    %c0_348 = arith.constant 0 : index
    %448 = vector.load %arg26[%c0_347, %c0_348] : memref<16x1xf32, #tpu.memory_space<vmem>>, vector<16x1xf32>
    %449 = vector.broadcast %448 : vector<16x1xf32> to vector<16x128xf32>
    %450 = arith.mulf %447, %449 : vector<16x128xf32>
    %c0_349 = arith.constant 0 : index
    %c0_350 = arith.constant 0 : index
    %451 = vector.load %arg27[%c0_349, %c0_350] : memref<16x1xf32, #tpu.memory_space<vmem>>, vector<16x1xf32>
    %452 = vector.broadcast %451 : vector<16x1xf32> to vector<16x128xf32>
    %453 = arith.addf %450, %452 : vector<16x128xf32>
    %454 = arith.addf %424, %453 : vector<16x128xf32>
    %cst_351 = arith.constant 0.000000e+00 : f32
    %455 = vector.broadcast %cst_351 : f32 to vector<16x128xf32>
    %456 = arith.maximumf %454, %455 : vector<16x128xf32>
    %c0_352 = arith.constant 0 : index
    %c0_353 = arith.constant 0 : index
    %457 = vector.load %arg1[%c0_352, %c0_353] : memref<16x8xf32, #tpu.memory_space<vmem>>, vector<16x8xf32>
    %c0_354 = arith.constant 0 : index
    %c0_355 = arith.constant 0 : index
    %458 = vector.load %arg2[%c0_354, %c0_355] : memref<8x128xf32, #tpu.memory_space<vmem>>, vector<8x128xf32>
    %cst_356 = arith.constant dense<0.000000e+00> : vector<16x128xf32>
    %459 = tpu.matmul %457, %458, %cst_356 {dimension_numbers = #tpu.dot_dimension_numbers<[1], [0], [0], [1], [0, 0, 1, 1], [], []>} : vector<16x8xf32>, vector<8x128xf32>, vector<16x128xf32> -> vector<16x128xf32>
    %460 = arith.addf %456, %459 : vector<16x128xf32>
    %c0_357 = arith.constant 0 : index
    %c0_358 = arith.constant 0 : index
    %461 = vector.load %arg28[%c0_357, %c0_358] : memref<16x128xf32, #tpu.memory_space<vmem>>, vector<16x128xf32>
    tpu.vector_store %arg28[%c0_357, %c0_358], %460 {strides = array<i32>} : memref<16x128xf32, #tpu.memory_space<vmem>>, vector<16x128xf32>,
    return
  }
}

</mosaic_0001>

<bundles_post_ra>
// kernel: down_forward.3
= control target key start
LH: loop header
LB: loop body
LE: loop exit
PB: predicated region body
PF: predicated region fallthrough
CT: control target
= control target key end

     0   :  { %s6722_s30 = smov 1   ;;  %s6718_s29 = smov 8   ;;  %vm130_vm0 = vcmask 64512   ;;  %v5742_v31 = vmov 0   ;;  %vm220_vm1 = vcmask 72704   ;;  %vm324_vm2 = vcmask 56320   ;;  %s6671_s3 = inlined_call_operand.vmem [shape: f32[9,128], index: 3, kind: input, shape index: {}]   ;;  %s6672_s0 = inlined_call_operand.vmem [shape: f32[8,128], index: 0, kind: input, shape index: {}]   ;;  %s6673_s4 = inlined_call_operand.vmem [shape: f32[9,16,8], index: 4, kind: input, shape index: {}]   ;;  %s6674_s5 = inlined_call_operand.vmem [shape: f32[16,1], index: 5, kind: input, shape index: {}]   ;;  %s6675_s6 = inlined_call_operand.vmem [shape: f32[16,1], index: 6, kind: input, shape index: {}]   ;;  %s6676_s7 = inlined_call_operand.vmem [shape: f32[16,1], index: 7, kind: input, shape index: {}]   ;;  %s6677_s12 = inlined_call_operand.vmem [shape: f32[16,8], index: 12, kind: input, shape index: {}]   ;;  %s6678_s8 = inlined_call_operand.vmem [shape: f32[9,16,16], index: 8, kind: input, shape index: {}]   ;;  %s6679_s9 = inlined_call_operand.vmem [shape: f32[16,1], index: 9, kind: input, shape index: {}]   ;;  %s6680_s13 = inlined_call_operand.vmem [shape: f32[16,1], index: 13, kind: input, shape index: {}]   ;;  %s6681_s10 = inlined_call_operand.vmem [shape: f32[16,1], index: 10, kind: input, shape index: {}]   ;;  %s6682_s14 = inlined_call_operand.vmem [shape: f32[16,1], index: 14, kind: input, shape index: {}]   ;;  %s6683_s11 = inlined_call_operand.vmem [shape: f32[16,1], index: 11, kind: input, shape index: {}]   ;;  %s6684_s15 = inlined_call_operand.vmem [shape: f32[16,1], index: 15, kind: input, shape index: {}]   ;;  %s6685_s16 = inlined_call_operand.vmem [shape: f32[9,16,16], index: 16, kind: input, shape index: {}]   ;;  %s6686_s17 = inlined_call_operand.vmem [shape: f32[16,1], index: 17, kind: input, shape index: {}]   ;;  %s6687_s18 = inlined_call_operand.vmem [shape: f32[16,1], index: 18, kind: input, shape index: {}]   ;;  %s6688_s19 = inlined_call_operand.vmem [shape: f32[16,1], index: 19, kind: input, shape index: {}]   ;;  %s6689_s24 = inlined_call_operand.vmem [shape: f32[16,16], index: 24, kind: input, shape index: {}]   ;;  %s6690_s20 = inlined_call_operand.vmem [shape: f32[9,16,16], index: 20, kind: input, shape index: {}]   ;;  %s6691_s21 = inlined_call_operand.vmem [shape: f32[16,1], index: 21, kind: input, shape index: {}]   ;;  %s6692_s25 = inlined_call_operand.vmem [shape: f32[16,1], index: 25, kind: input, shape index: {}]   ;;  %s6693_s22 = inlined_call_operand.vmem [shape: f32[16,1], index: 22, kind: input, shape index: {}]   ;;  %s6694_s2 = inlined_call_operand.vmem [shape: f32[8,128], index: 2, kind: input, shape index: {}]   ;;  %s6695_s1 = inlined_call_operand.vmem [shape: f32[16,8], index: 1, kind: input, shape index: {}]   ;;  %s6696_s26 = inlined_call_operand.vmem [shape: f32[16,1], index: 26, kind: input, shape index: {}]   ;;  %s6697_s23 = inlined_call_operand.vmem [shape: f32[16,1], index: 23, kind: input, shape index: {}]   ;;  %s6698_s27 = inlined_call_operand.vmem [shape: f32[16,1], index: 27, kind: input, shape index: {}]   ;;  %s6699_s28 = inlined_call_operand.vmem [shape: f32[16,128], index: 28, kind: output, shape index: {}]  }
   0x1   :  { %6732 = sst [smem:[#allocation3_spill]] %s6671_s3  ;;  %5469 = vset.pattern.permute.xlu1 %v5742_v31  ;;  %5468 = vset.pattern.permute.xlu0 %v5742_v31  ;;  %vm430_vm3 = vcmask 7168   ;;  %vm624_vm4 = vcmask 1039360   ;;  %vm730_vm5 = vcmask 990208   ;;  %vm836_vm6 = vcmask 982016  }
   0x2   :  { %6733 = sst [smem:[#allocation4_spill]] %s6672_s0  ;;  %vm942_vm7 = vcmask 973824   ;;  %vm1148_vm8 = vcmask 130048  }
   0x3   :  { %6734 = sst [smem:[#allocation5_spill]] %s6673_s4 }
   0x4   :  { %6735 = sst [smem:[#allocation6_spill]] %s6674_s5  ;;  %s6726_s5 = smov 120  }
   0x5   :  { %6736 = sst [smem:[#allocation7_spill]] %s6675_s6  ;;  %s6750_s6 = sld [smem:[#allocation5_spill]] }
   0x6   :  { %6737 = sst [smem:[#allocation8_spill]] %s6676_s7  ;;  %s6753_s3 = sld [smem:[#allocation6_spill]] }
   0x7   :  { %6738 = sst [smem:[#allocation9_spill]] %s6677_s12  ;;  %s6752_s12 = smov 119  }
   0x8   :  { %6739 = sst [smem:[#allocation10_spill]] %s6678_s8  ;;  %s6712_s8 = smov 119  }
   0x9   :  { %6740 = sst [smem:[#allocation11_spill]] %s6679_s9  ;;  %s6755_s4 = sld [smem:[#allocation8_spill]] }
   0xa   :  { %6741 = sst [smem:[#allocation12_spill]] %s6680_s13  ;;  %s6749_s13 = sld [smem:[#allocation3_spill]] }
   0xb   :  { %6742 = sst [smem:[#allocation13_spill]] %s6681_s10  ;;  %s6716_s10 = smov 7   ;;  %v4715_v7 = vld [vmem:[%s6750_s6 + $0x10] sm:$0xff]  ;;  %v4716_v35 = vld [vmem:[%s6750_s6 + $0x18] sm:$0xff]  ;;  %v108_v36 = vld [vmem:[%s6750_s6] sm:$0xff] }
   0xc   :  { %6743 = sst [smem:[#allocation14_spill]] %s6682_s14  ;;  %s6724_s14 = smov 121   ;;  %5034 = vmatprep.mubr.msk.f32.mxu0 %vm130_vm0, %v4715_v7  ;;  %v1029_v42 = vld [vmem:[%s6753_s3 + $0x8] sm:$0xff]  ;;  %v1028_v45 = vld [vmem:[%s6753_s3] sm:$0xff]  ;;  %v4727_v54 = vld [vmem:[%s6750_s6 + $0x30] sm:$0xff] }
   0xd   :  { %6744 = sst [smem:[#allocation15_spill]] %s6683_s11  ;;  %s6720_s11 = smov 127   ;;  %v109_v44 = vld [vmem:[%s6750_s6 + $0x8] sm:$0xff]  ;;  %v4722_v47 = vld [vmem:[%s6750_s6 + $0x20] sm:$0xff]  ;;  %v4728_v57 = vld [vmem:[%s6750_s6 + $0x38] sm:$0xff] }
   0xe   :  { %6745 = sst [smem:[#allocation16_spill]] %s6696_s26  ;;  %v4723_v52 = vld [vmem:[%s6750_s6 + $0x28] sm:$0xff]  ;;  %v4731_v58 = vld [vmem:[%s6750_s6 + $0x40] sm:$0xff]  ;;  %v4736_v63 = vld [vmem:[%s6750_s6 + $0x50] sm:$0xff]  ;;  %s6756_s7 = smov 127  }
   0xf   :  { %6746 = sst [smem:[#allocation17_spill]] %s6697_s23  ;;  %v4732_v62 = vld [vmem:[%s6750_s6 + $0x48] sm:$0xff]  ;;  %s6763_s3 = sld [smem:[#allocation12_spill]] }
  0x10   :  { %6747 = sst [smem:[#allocation18_spill]] %s6698_s27  ;;  %v5891_v0 = vld [vmem:[%s6749_s13 + $0x1] ss:$0 sm:$0xff]  ;;  %v5896_v1 = vld [vmem:[%s6749_s13 + $0x2] ss:$0 sm:$0xff]  ;;  %s6764_s0 = sld [smem:[#allocation13_spill]] }
  0x11   :  { %6748 = sst [smem:[#allocation19_spill]] %s6699_s28  ;;  %116 = vrot.lane.b32.xlu0 %v5891_v0, %s6726_s5  ;;  %v5903_v2 = vld [vmem:[%s6749_s13] ss:$0 sm:$0xff]  ;;  %310 = vrot.lane.b32.xlu1 %v5896_v1, %s6724_s14  ;;  %v5910_v3 = vld [vmem:[%s6749_s13 + $0x3] ss:$0 sm:$0xff]  ;;  %s6765_s9 = sld [smem:[#allocation14_spill]] }
  0x12   :  { %v5919_v4 = vld [vmem:[%s6749_s13 + $0x5] ss:$0 sm:$0xff]  ;;  %v5924_v5 = vld [vmem:[%s6749_s13 + $0x6] ss:$0 sm:$0xff]  ;;  %v5933_v6 = vld [vmem:[%s6749_s13 + $0x7] ss:$0 sm:$0xff] }
  0x13   :  { %v5952_v12 = vld [vmem:[%s6749_s13 + $0x8] ss:$0 sm:$0xff]  ;;  %s6766_s26 = sld [smem:[#allocation15_spill]] }
  0x15   :  { %103 = vrot.lane.b32.xlu0 %v5903_v2, %s6712_s8  ;;  %416 = vrot.lane.b32.xlu1 %v5910_v3, %s6720_s11  ;;  %s6751_s8 = sld [smem:[#allocation4_spill]] }
  0x19   :  { %610 = vrot.lane.b32.xlu0 %v5919_v4, %s6722_s30  ;;  %716 = vrot.lane.b32.xlu1 %v5924_v5, %s6716_s10 }
  0x1b   :  { %v5943_v8 = vld [vmem:[%s6751_s8] sm:$0xff]  ;;  %s6714_s8 = smov 9  }
  0x1d   :  { %822 = vrot.lane.b32.xlu0 %v5933_v6, %s6718_s29 }
  0x83   :  { %v117_v9 = vpop.permute.xlu0 %116  ;;  %v311_v14 = vpop.permute.xlu1 %310 }
  0x84   :  { %v119_v10 = vmul.f32 0.0, %v117_v9  ;;  %v120_v11 = vmul.f32 %v117_v9, %v5943_v8  ;;  %v313_v17 = vmul.f32 0.0, %v311_v14  ;;  %v314_v19 = vmul.f32 %v311_v14, %v5943_v8 }
  0x86   :  { %126 = vrot.lane.b32.xlu1 %v119_v10, %s6718_s29  ;;  %128 = vrot.lane.b32.xlu0 %v120_v11, %s6718_s29  ;;  %v4737_v11 = vld [vmem:[%s6750_s6 + $0x58] sm:$0xff]  ;;  %s6759_s29 = sld [smem:[#allocation9_spill]] }
  0x87   :  { %v104_v13 = vpop.permute.xlu0 %103  ;;  %v417_v18 = vpop.permute.xlu1 %416 }
  0x88   :  { %v106_v15 = vmul.f32 0.0, %v104_v13  ;;  %v107_v16 = vmul.f32 %v104_v13, %v5943_v8  ;;  %v419_v20 = vmul.f32 0.0, %v417_v18  ;;  %v420_v22 = vmul.f32 %v417_v18, %v5943_v8  ;;  %v4741_v13 = vld [vmem:[%s6750_s6 + $0x60] sm:$0xff] }
  0x89   :  { %v4751_v18 = vld [vmem:[%s6750_s6 + $0x80] sm:$0xff] }
  0x8a   :  { %928 = vrot.lane.b32.xlu1 %v5952_v12, %s6714_s8  ;;  %216 = vrot.lane.b32.xlu0 %v106_v15, %s6714_s8  ;;  %v4742_v15 = vld [vmem:[%s6750_s6 + $0x68] sm:$0xff] }
  0x8b   :  { %v611_v21 = vpop.permute.xlu0 %610  ;;  %v717_v24 = vpop.permute.xlu1 %716 }
  0x8c   :  { %v613_v23 = vmul.f32 %v611_v21, %v5943_v8  ;;  %v614_v25 = vmul.f32 0.0, %v611_v21  ;;  %v719_v26 = vmul.f32 %v717_v24, %v5943_v8  ;;  %v720_v28 = vmul.f32 0.0, %v717_v24 }
  0x8e   :  { %218 = vrot.lane.b32.xlu1 %v107_v16, %s6714_s8  ;;  %320 = vrot.lane.b32.xlu0 %v313_v17, %s6716_s10  ;;  %v4746_v16 = vld [vmem:[%s6750_s6 + $0x70] sm:$0xff]  ;;  %v4747_v17 = vld [vmem:[%s6750_s6 + $0x78] sm:$0xff]  ;;  %s6754_s8 = sld [smem:[#allocation7_spill]] }
  0x8f   :  { %v823_v27 = vpop.permute.xlu0 %822 }
  0x90   :  { %v825_v29 = vmul.f32 %v823_v27, %v5943_v8  ;;  %v826_v30 = vmul.f32 0.0, %v823_v27 }
  0x92   :  { %322 = vrot.lane.b32.xlu1 %v314_v19, %s6716_s10  ;;  %426 = vrot.lane.b32.xlu0 %v419_v20, %s6722_s30  ;;  %s6757_s10 = smov 8  }
  0x96   :  { %428 = vrot.lane.b32.xlu1 %v420_v22, %s6722_s30  ;;  %620 = vrot.lane.b32.xlu0 %v613_v23, %s6720_s11  ;;  %v4752_v22 = vld [vmem:[%s6750_s6 + $0x88] sm:$0xff]  ;;  %s6760_s6 = sld [smem:[#allocation10_spill]] }
  0x9a   :  { %622 = vrot.lane.b32.xlu1 %v614_v25, %s6720_s11  ;;  %726 = vrot.lane.b32.xlu0 %v719_v26, %s6724_s14  ;;  %s6761_s11 = smov 9  }
  0x9e   :  { %728 = vrot.lane.b32.xlu1 %v720_v28, %s6724_s14  ;;  %832 = vrot.lane.b32.xlu0 %v825_v29, %s6726_s5  ;;  %v1066_v29 = vld [vmem:[%s6754_s8 + $0x8] sm:$0xff] }
  0xa2   :  { %834 = vrot.lane.b32.xlu1 %v826_v30, %s6726_s5  ;;  %v1065_v30 = vld [vmem:[%s6754_s8] sm:$0xff]  ;;  %s6758_s8 = smov 7  }
  0xf8   :  { %v127_v32 = vpop.permute.xlu1 %126  ;;  %v129_v33 = vpop.permute.xlu0 %128 }
  0xf9   :  { %v131_v34 = vsel %vm130_vm0, %v127_v32, %v129_v33 }
  0xfa   :  { %5032 = vmatprep.subr.mxu0 %v131_v34 }
  0xfb   :  { %5033 = vmatpush3.msra.mxu0 %v131_v34 }
  0xfc   :  { %v929_v37 = vpop.permute.xlu1 %928  ;;  %5035 = vmatmul.mubr.msk.f32.vlgmr.msra.gmra.mrb[0].mxu0 %vm130_vm0, %v4716_v35  ;;  %v217_v40 = vpop.permute.xlu0 %216 }
  0xfd   :  { %v931_v38 = vmul.f32 %v929_v37, %v5943_v8  ;;  %v932_v39 = vmul.f32 0.0, %v929_v37  ;;  %5039 = vmatprep.mubr.msk.f32.mxu0 %vm130_vm0, %v108_v36 }
  0xff   :  { %938 = vrot.lane.b32.xlu0 %v931_v38, %s6752_s12  ;;  %940 = vrot.lane.b32.xlu1 %v932_v39, %s6752_s12  ;;  %v1079_v38 = vld [vmem:[%s6755_s4] sm:$0xff]  ;;  %v1080_v39 = vld [vmem:[%s6755_s4 + $0x8] sm:$0xff]  ;;  %s6769_s4 = smov 1  }
 0x100   :  { %v219_v41 = vpop.permute.xlu1 %218  ;;  %v321_v46 = vpop.permute.xlu0 %320 }
 0x101   :  { %v221_v43 = vsel %vm220_vm1, %v217_v40, %v219_v41  ;;  %v2171_v40 = vld [vmem:[%s6759_s29] sm:$0xff]  ;;  %v2172_v41 = vld [vmem:[%s6759_s29 + $0x8] sm:$0xff] }
 0x102   :  { %5037 = vmatprep.subr.mxu0 %v221_v43 }
 0x103   :  { %5038 = vmatpush3.msra.mxu0 %v221_v43  ;;  %1037 = vperm.xlu1 %5469, %v1029_v42  }
 0x104   :  { %5040 = vmatmul.mubr.msk.f32.vlgmr.msra.gmra.mrb[0].mxu0 %vm130_vm0, %v109_v44  ;;  %v323_v48 = vpop.permute.xlu1 %322  ;;  %1032 = vperm.xlu0 %5468, %v1028_v45   ;;  %v427_v50 = vpop.permute.xlu0 %426 }
 0x105   :  { %v325_v49 = vsel %vm324_vm2, %v321_v46, %v323_v48  ;;  %5044 = vmatprep.mubr.msk.f32.mxu0 %vm130_vm0, %v4722_v47 }
 0x106   :  { %5042 = vmatprep.subr.mxu0 %v325_v49 }
 0x107   :  { %5043 = vmatpush3.msra.mxu0 %v325_v49 }
 0x108   :  { %v429_v51 = vpop.permute.xlu1 %428  ;;  %v621_v55 = vpop.permute.xlu0 %620 }
 0x109   :  { %v431_v53 = vsel %vm430_vm3, %v427_v50, %v429_v51 }
 0x10a   :  { %5047 = vmatprep.subr.mxu0 %v431_v53 }
 0x10c   :  { %5045 = vmatmul.mubr.msk.f32.vlgmr.msra.gmra.mrb[0].mxu0 %vm130_vm0, %v4723_v52  ;;  %v623_v56 = vpop.permute.xlu1 %622  ;;  %v727_v60 = vpop.permute.xlu0 %726 }
 0x10d   :  { %5048 = vmatpush3.msra.mxu0 %v431_v53  ;;  %5049 = vmatprep.mubr.msk.f32.mxu0 %vm130_vm0, %v4727_v54  ;;  %v625_v59 = vsel %vm624_vm4, %v621_v55, %v623_v56 }
 0x10e   :  { %5052 = vmatprep.subr.mxu0 %v5943_v8 }
 0x110   :  { %v729_v61 = vpop.permute.xlu1 %728  ;;  %v833_v9 = vpop.permute.xlu0 %832 }
 0x111   :  { %v731_v7 = vsel %vm730_vm5, %v727_v60, %v729_v61 }
 0x114   :  { %5050 = vmatmul.mubr.msk.f32.vlgmr.msra.gmra.mrb[0].mxu0 %vm130_vm0, %v4728_v57  ;;  %v835_v10 = vpop.permute.xlu1 %834 }
 0x115   :  { %5053 = vmatpush3.msra.mxu0 %v5943_v8  ;;  %5054 = vmatprep.mubr.msk.f32.mxu0 %vm130_vm0, %v4731_v58  ;;  %v837_v14 = vsel %vm836_vm6, %v833_v9, %v835_v10 }
 0x116   :  { %5057 = vmatprep.subr.mxu0 %v625_v59 }
 0x11c   :  { %5055 = vmatmul.mubr.msk.f32.vlgmr.msra.gmra.mrb[0].mxu0 %vm130_vm0, %v4732_v62 }
 0x11d   :  { %5058 = vmatpush3.msra.mxu0 %v625_v59  ;;  %5059 = vmatprep.mubr.msk.f32.mxu0 %vm130_vm0, %v4736_v63 }
 0x11e   :  { %5062 = vmatprep.subr.mxu0 %v731_v7 }
 0x124   :  { %5060 = vmatmul.mubr.msk.f32.vlgmr.msra.gmra.mrb[0].mxu0 %vm130_vm0, %v4737_v11 }
 0x125   :  { %5063 = vmatpush3.msra.mxu0 %v731_v7  ;;  %5064 = vmatprep.mubr.msk.f32.mxu0 %vm130_vm0, %v4741_v13 }
 0x126   :  { %5067 = vmatprep.subr.mxu0 %v837_v14 }
 0x12c   :  { %5065 = vmatmul.mubr.msk.f32.vlgmr.msra.gmra.mrb[0].mxu0 %vm130_vm0, %v4742_v15 }
 0x12d   :  { %5068 = vmatpush3.msra.mxu0 %v837_v14  ;;  %5069 = vmatprep.mubr.msk.f32.mxu0 %vm130_vm0, %v4746_v16  ;;  %v4757_v16 = vld [vmem:[%s6760_s6 + $0x10] sm:$0xff] }
 0x12e   :  { %5081 = vmatprep.mubr.msk.f32.mxu1 %vm1148_vm8, %v4757_v16  ;;  %v1114_v16 = vld [vmem:[%s6760_s6] sm:$0xff] }
 0x134   :  { %5070 = vmatmul.mubr.msk.f32.vlgmr.msra.gmra.mrb[0].mxu0 %vm130_vm0, %v4747_v17 }
 0x135   :  { %5074 = vmatprep.mubr.msk.f32.mxu0 %vm130_vm0, %v4751_v18 }
 0x171   :  { %v939_v19 = vpop.permute.xlu0 %938  ;;  %v941_v20 = vpop.permute.xlu1 %940 }
 0x172   :  { %v943_v21 = vsel %vm942_vm7, %v939_v19, %v941_v20 }
 0x173   :  { %5072 = vmatprep.subr.mxu0 %v943_v21 }
 0x174   :  { %5073 = vmatpush3.msra.mxu0 %v943_v21 }
 0x175   :  { %5075 = vmatmul.mubr.msk.f32.vlgmr.msra.gmra.mrb[0].mxu0 %vm130_vm0, %v4752_v22  ;;  %5140 = vmatprep.subr.mxu0 %v5943_v8 }
 0x176   :  { %5141 = vmatpush3.msra.mxu0 %v5943_v8  ;;  %5142 = vmatprep.mubr.msk.f32.mxu0 %vm130_vm0, %v2171_v40 }
 0x179   :  { %5143 = vmatmul.mubr.msk.f32.vlgmr.msra.gmra.mrb[2].mxu0 %vm130_vm0, %v2172_v41 }
 0x182   :  { %v1038_v23 = vpop.permute.xlu1 %1037 }
 0x183   :  { %v1033_v24 = vpop.permute.xlu0 %1032 }
 0x248   :  { %v5076_v25 = vpop.f32.mrb[0].mxu0 }
 0x249   :  { %v1017_v26 = vpop.f32.mrb[1].mxu0  ;;  %v1041_v27 = vadd.f32 %v5076_v25, %v1038_v23 }
 0x24a   :  { %v1040_v28 = vadd.f32 %v1033_v24, %v1017_v26 }
 0x24b   :  { %1044 = vadd.xlane.f32.xlu0 %v1041_v27 }
 0x24c   :  { %1042 = vadd.xlane.f32.xlu1 %v1040_v28 }
 0x25d   :  { %1074 = vperm.xlu1 %5469, %v1066_v29  }
 0x261   :  { %1069 = vperm.xlu0 %5468, %v1065_v30  }
 0x2d8   :  { %v1045_v31 = vpop.xlane.xlu0 %1044 }
 0x2d9   :  { %v1048_v8 = vmul.f32 0.0078125, %v1045_v31  ;;  %v1043_v32 = vpop.xlane.xlu1 %1042 }
 0x2da   :  { %v1047_v33 = vmul.f32 0.0078125, %v1043_v32 }
 0x2db   :  { %v1050_v34 = vsub.f32 %v1041_v27, %v1048_v8 }
 0x2dc   :  { %v1049_v35 = vsub.f32 %v1040_v28, %v1047_v33 }
 0x2dd   :  { %v1052_v36 = vmul.f32 %v1050_v34, %v1050_v34  ;;  %v1075_v42 = vpop.permute.xlu1 %1074 }
 0x2de   :  { %v1051_v37 = vmul.f32 %v1049_v35, %v1049_v35 }
 0x2df   :  { %1055 = vadd.xlane.f32.xlu1 %v1052_v36 }
 0x2e0   :  { %1053 = vadd.xlane.f32.xlu0 %v1051_v37  ;;  %v1070_v43 = vpop.permute.xlu0 %1069 }
 0x2f0   :  { %1083 = vperm.xlu1 %5469, %v1079_v38  }
 0x2f4   :  { %1122 = vrot.lane.b32.xlu1 %v5891_v0, %s6726_s5 }
 0x2f6   :  { %1088 = vperm.xlu0 %5468, %v1080_v39  }
 0x2f8   :  { %1333 = vrot.lane.b32.xlu1 %v5896_v1, %s6724_s14 }
 0x2fa   :  { %1107 = vrot.lane.b32.xlu0 %v5903_v2, %s6752_s12 }
 0x2fc   :  { %1653 = vrot.lane.b32.xlu1 %v5919_v4, %s6722_s30 }
 0x2fe   :  { %1448 = vrot.lane.b32.xlu0 %v5910_v3, %s6756_s7 }
 0x300   :  { %1883 = vrot.lane.b32.xlu1 %v5933_v6, %s6757_s10 }
 0x302   :  { %1768 = vrot.lane.b32.xlu0 %v5924_v5, %s6758_s8 }
 0x36c   :  { %v1056_v44 = vpop.xlane.xlu1 %1055 }
 0x36d   :  { %v1058_v45 = vmul.f32 0.0078125, %v1056_v44  ;;  %v1054_v46 = vpop.xlane.xlu0 %1053 }
 0x36e   :  { %v1057_v47 = vmul.f32 0.0078125, %v1054_v46 }
 0x36f   :  { %v1060_v48 = vadd.f32 1e-05, %v1058_v45 }
 0x370   :  { %v1059_v49 = vadd.f32 1e-05, %v1057_v47  ;;  %v1084_v54 = vpop.permute.xlu1 %1083 }
 0x371   :  { %5710 = vrsqrt.f32 %v1060_v48 }
 0x372   :  { %5712 = vrsqrt.f32 %v1059_v49 }
 0x374   :  { %v1123_v61 = vpop.permute.xlu1 %1122 }
 0x375   :  { %v1089_v57 = vpop.permute.xlu0 %1088  ;;  %v1125_v63 = vmul.f32 0.0, %v1123_v61 }
 0x378   :  { %v1334_v17 = vpop.permute.xlu1 %1333 }
 0x379   :  { %v1108_v10 = vpop.permute.xlu0 %1107  ;;  %v1336_v19 = vmul.f32 0.0, %v1334_v17 }
 0x37a   :  { %v1110_v11 = vmul.f32 0.0, %v1108_v10 }
 0x37b   :  { %v5711_v50 = vpop.eup %5710 }
 0x37c   :  { %v5713_v51 = vpop.eup %5712  ;;  %v1064_v52 = vmul.f32 %v5711_v50, %v1050_v34  ;;  %v1654_v28 = vpop.permute.xlu1 %1653 }
 0x37d   :  { %v1063_v53 = vmul.f32 %v5713_v51, %v1049_v35  ;;  %v1449_v22 = vpop.permute.xlu0 %1448  ;;  %v1657_v29 = vmul.f32 0.0, %v1654_v28 }
 0x37e   :  { %v1078_v55 = vmul.f32 %v1075_v42, %v1064_v52  ;;  %v1451_v23 = vmul.f32 0.0, %v1449_v22 }
 0x37f   :  { %v1077_v56 = vmul.f32 %v1070_v43, %v1063_v53 }
 0x380   :  { %v1092_v58 = vadd.f32 %v1089_v57, %v1078_v55  ;;  %v1884_v36 = vpop.permute.xlu1 %1883 }
 0x381   :  { %v1091_v59 = vadd.f32 %v1084_v54, %v1077_v56  ;;  %v1769_v8 = vpop.permute.xlu0 %1768  ;;  %v1887_v39 = vmul.f32 0.0, %v1884_v36 }
 0x382   :  { %v6097_v60 = vmax.f32 %v1092_v58, 0.0  ;;  %v1772_v33 = vmul.f32 0.0, %v1769_v8 }
 0x383   :  { %v6099_v62 = vmax.f32 %v1091_v59, 0.0 }
 0x384   :  { %v1128_v7 = vmul.f32 %v1123_v61, %v6097_v60  ;;  %v1113_v18 = vmul.f32 %v1108_v10, %v6097_v60  ;;  %v1339_v24 = vmul.f32 %v1334_v17, %v6097_v60  ;;  %v1454_v30 = vmul.f32 %v1449_v22, %v6097_v60 }
 0x385   :  { %v1126_v9 = vmul.f32 %v1123_v61, %v6099_v62  ;;  %v1111_v13 = vmul.f32 %v1108_v10, %v6099_v62  ;;  %v1337_v20 = vmul.f32 %v1334_v17, %v6099_v62  ;;  %v1452_v25 = vmul.f32 %v1449_v22, %v6099_v62 }
 0x386   :  { %v5470_v14 = vpack.i.bf16 %v1128_v7, %v1125_v63  ;;  %v5485_v27 = vpack.i.bf16 %v1113_v18, %v1110_v11  ;;  %v1656_v31 = vmul.f32 %v1654_v28, %v6099_v62  ;;  %v1658_v34 = vmul.f32 %v1654_v28, %v6097_v60 }
 0x387   :  { %v5475_v15 = vpack.i.bf16 %v1126_v9, %v1125_v63  ;;  %v5480_v21 = vpack.i.bf16 %v1111_v13, %v1110_v11  ;;  %v5490_v26 = vpack.i.bf16 %v1337_v20, %v1336_v19  ;;  %v5500_v32 = vpack.i.bf16 %v1452_v25, %v1451_v23  ;;  %v4758_v11 = vld [vmem:[%s6760_s6 + $0x18] sm:$0xff] }
 0x388   :  { %5471 = vrot.lane.b32.xlu1 %v5470_v14, %s6757_s10  ;;  %v1771_v35 = vmul.f32 %v1769_v8, %v6099_v62  ;;  %v5510_v37 = vpack.i.bf16 %v1657_v29, %v1656_v31  ;;  %v5505_v38 = vpack.i.bf16 %v1454_v30, %v1451_v23  ;;  %v1773_v40 = vmul.f32 %v1769_v8, %v6097_v60  ;;  %v6157_v30 = vpop.f32.mrb[2].mxu0  ;;  %v2173_v31 = vld [vmem:[%s6763_s3] sm:$0xff] }
 0x389   :  { %5476 = vrot.lane.b32.xlu0 %v5475_v15, %s6757_s10  ;;  %v1886_v41 = vmul.f32 %v1884_v36, %v6099_v62  ;;  %v5515_v43 = vpack.i.bf16 %v1657_v29, %v1658_v34  ;;  %v1888_v44 = vmul.f32 %v1884_v36, %v6097_v60  ;;  %v6162_v8 = vpop.f32.mrb[3].mxu0  ;;  %v1115_v34 = vld [vmem:[%s6760_s6 + $0x8] sm:$0xff] }
 0x38a   :  { %v5520_v42 = vpack.i.bf16 %v1772_v33, %v1771_v35  ;;  %v5525_v46 = vpack.i.bf16 %v1772_v33, %v1773_v40  ;;  %v2174_v33 = vld [vmem:[%s6763_s3 + $0x8] sm:$0xff]  ;;  %s6770_s3 = sld [smem:[#allocation16_spill]] }
 0x38b   :  { %v5530_v45 = vpack.i.bf16 %v1887_v39, %v1886_v41  ;;  %v5535_v47 = vpack.i.bf16 %v1887_v39, %v1888_v44  ;;  %v4764_v39 = vld [vmem:[%s6760_s6 + $0x20] sm:$0xff] }
 0x38c   :  { %5481 = vrot.lane.b32.xlu1 %v5480_v21, %s6761_s11 }
 0x38d   :  { %1998 = vrot.lane.b32.xlu0 %v5952_v12, %s6761_s11  ;;  %v5495_v12 = vpack.i.bf16 %v1339_v24, %v1336_v19 }
 0x390   :  { %5491 = vrot.lane.b32.xlu1 %v5490_v26, %s6758_s8 }
 0x391   :  { %5486 = vrot.lane.b32.xlu0 %v5485_v27, %s6761_s11 }
 0x394   :  { %5501 = vrot.lane.b32.xlu1 %v5500_v32, %s6722_s30 }
 0x395   :  { %5496 = vrot.lane.b32.xlu0 %v5495_v12, %s6758_s8 }
 0x398   :  { %5511 = vrot.lane.b32.xlu1 %v5510_v37, %s6756_s7 }
 0x399   :  { %5506 = vrot.lane.b32.xlu0 %v5505_v38, %s6722_s30  ;;  %s6768_s30 = smov 121  }
 0x39c   :  { %5521 = vrot.lane.b32.xlu1 %v5520_v42, %s6724_s14 }
 0x39d   :  { %5516 = vrot.lane.b32.xlu0 %v5515_v43, %s6756_s7 }
 0x3a0   :  { %5531 = vrot.lane.b32.xlu1 %v5530_v45, %s6726_s5  ;;  %v4765_v45 = vld [vmem:[%s6760_s6 + $0x28] sm:$0xff] }
 0x3a1   :  { %5526 = vrot.lane.b32.xlu0 %v5525_v46, %s6724_s14  ;;  %s6762_s14 = sld [smem:[#allocation11_spill]] }
 0x3a5   :  { %5536 = vrot.lane.b32.xlu0 %v5535_v47, %s6726_s5  ;;  %v4769_v47 = vld [vmem:[%s6760_s6 + $0x30] sm:$0xff] }
 0x3a7   :  { %v2107_v19 = vld [vmem:[%s6762_s14] sm:$0xff]  ;;  %v2108_v22 = vld [vmem:[%s6762_s14 + $0x8] sm:$0xff] }
 0x3fa   :  { %v5472_v48 = vpop.permute.xlu1 %5471 }
 0x3fb   :  { %v5477_v49 = vpop.permute.xlu0 %5476  ;;  %v5474_v50 = vunpack.i.h.bf16 %v5472_v48  ;;  %v5473_v51 = vunpack.i.l.bf16 %v5472_v48 }
 0x3fc   :  { %v5479_v52 = vunpack.i.h.bf16 %v5477_v49  ;;  %v5478_v53 = vunpack.i.l.bf16 %v5477_v49  ;;  %v5299_v49 = vpack.c.bf16 %v6097_v60, %v6099_v62 }
 0x3fd   :  { %v1145_v55 = vsel %vm130_vm0, %v5473_v51, %v5474_v50 }
 0x3fe   :  { %v1144_v54 = vsel %vm130_vm0, %v5478_v53, %v5479_v52  ;;  %v5482_v56 = vpop.permute.xlu1 %5481 }
 0x3ff   :  { %v1999_v57 = vpop.permute.xlu0 %1998  ;;  %v5283_v58 = vpack.c.bf16 %v1145_v55, %v1144_v54  ;;  %v5484_v7 = vunpack.i.h.bf16 %v5482_v56  ;;  %v5483_v9 = vunpack.i.l.bf16 %v5482_v56  ;;  %v4770_v54 = vld [vmem:[%s6760_s6 + $0x38] sm:$0xff] }
 0x400   :  { %v2001_v59 = vmul.f32 %v1999_v57, %v6099_v62  ;;  %v2002_v61 = vmul.f32 0.0, %v1999_v57  ;;  %v2003_v63 = vmul.f32 %v1999_v57, %v6097_v60  ;;  %v4773_v57 = vld [vmem:[%s6760_s6 + $0x40] sm:$0xff] }
 0x401   :  { %5284 = vmatprep.subr.bf16.mxu1 %v5283_v58  ;;  %v1242_v23 = vsel %vm220_vm1, %v5483_v9, %v5484_v7  ;;  %v4774_v9 = vld [vmem:[%s6760_s6 + $0x48] sm:$0xff] }
 0x402   :  { %5286 = vmatpush3.bf16.msra.mxu1 %v5283_v58  ;;  %v5540_v10 = vpack.i.bf16 %v2002_v61, %v2001_v59  ;;  %v5492_v13 = vpop.permute.xlu1 %5491  ;;  %v5545_v15 = vpack.i.bf16 %v2002_v61, %v2003_v63 }
 0x403   :  { %v5487_v14 = vpop.permute.xlu0 %5486  ;;  %v5494_v20 = vunpack.i.h.bf16 %v5492_v13  ;;  %v5493_v21 = vunpack.i.l.bf16 %v5492_v13  ;;  %v4778_v13 = vld [vmem:[%s6760_s6 + $0x50] sm:$0xff] }
 0x404   :  { %v5489_v17 = vunpack.i.h.bf16 %v5487_v14  ;;  %v5488_v18 = vunpack.i.l.bf16 %v5487_v14  ;;  %5541 = vrot.lane.b32.xlu1 %v5540_v10, %s6752_s12  ;;  %5546 = vrot.lane.b32.xlu0 %v5545_v15, %s6752_s12 }
 0x405   :  { %5082 = vmatmul.mubr.msk.f32.vlgmr.msra.gmra.mrb[0].mxu1 %vm1148_vm8, %v4758_v11  ;;  %v1355_v35 = vsel %vm324_vm2, %v5493_v21, %v5494_v20  ;;  %v4779_v21 = vld [vmem:[%s6760_s6 + $0x58] sm:$0xff] }
 0x406   :  { %v1243_v24 = vsel %vm220_vm1, %v5488_v18, %v5489_v17  ;;  %5088 = vmatprep.mubr.msk.f32.mxu1 %vm1148_vm8, %v1114_v16  ;;  %v5502_v25 = vpop.permute.xlu1 %5501 }
 0x407   :  { %v5497_v26 = vpop.permute.xlu0 %5496  ;;  %v5287_v27 = vpack.c.bf16 %v1243_v24, %v1242_v23  ;;  %v5504_v32 = vunpack.i.h.bf16 %v5502_v25  ;;  %v5503_v12 = vunpack.i.l.bf16 %v5502_v25  ;;  %v4783_v23 = vld [vmem:[%s6760_s6 + $0x60] sm:$0xff] }
 0x408   :  { %v5499_v28 = vunpack.i.h.bf16 %v5497_v26  ;;  %v5498_v29 = vunpack.i.l.bf16 %v5497_v26  ;;  %2111 = vperm.xlu1 %5469, %v2107_v19   ;;  %2116 = vperm.xlu0 %5468, %v2108_v22   ;;  %v4784_v26 = vld [vmem:[%s6760_s6 + $0x68] sm:$0xff] }
 0x409   :  { %5288 = vmatprep.subr.bf16.mxu1 %v5287_v27  ;;  %v1470_v42 = vsel %vm430_vm3, %v5503_v12, %v5504_v32 }
 0x40a   :  { %5290 = vmatpush3.bf16.msra.mxu1 %v5287_v27  ;;  %v1356_v36 = vsel %vm324_vm2, %v5498_v29, %v5499_v28  ;;  %v5512_v48 = vpop.permute.xlu1 %5511  ;;  %v4788_v27 = vld [vmem:[%s6760_s6 + $0x70] sm:$0xff]  ;;  %v4789_v28 = vld [vmem:[%s6760_s6 + $0x78] sm:$0xff]  ;;  %v4793_v29 = vld [vmem:[%s6760_s6 + $0x80] sm:$0xff] }
 0x40b   :  { %v5507_v37 = vpop.permute.xlu0 %5506  ;;  %v5291_v38 = vpack.c.bf16 %v1356_v36, %v1355_v35  ;;  %v5514_v52 = vunpack.i.h.bf16 %v5512_v48  ;;  %v5513_v53 = vunpack.i.l.bf16 %v5512_v48 }
 0x40c   :  { %v5509_v40 = vunpack.i.h.bf16 %v5507_v37  ;;  %v5508_v41 = vunpack.i.l.bf16 %v5507_v37  ;;  %2177 = vperm.xlu1 %5469, %v2173_v31   ;;  %2182 = vperm.xlu0 %5468, %v2174_v33  }
 0x40d   :  { %5089 = vmatmul.mubr.msk.f32.vlgmr.msra.gmra.mrb[0].mxu1 %vm1148_vm8, %v1115_v34  ;;  %5292 = vmatprep.subr.bf16.mxu1 %v5291_v38  ;;  %v1675_v60 = vsel %vm624_vm4, %v5513_v53, %v5514_v52 }
 0x40e   :  { %v1471_v43 = vsel %vm430_vm3, %v5508_v41, %v5509_v40  ;;  %5095 = vmatprep.mubr.msk.f32.mxu1 %vm1148_vm8, %v4764_v39  ;;  %5294 = vmatpush3.bf16.msra.mxu1 %v5291_v38  ;;  %v5522_v62 = vpop.permute.xlu1 %5521  ;;  %v4794_v39 = vld [vmem:[%s6760_s6 + $0x88] sm:$0xff]  ;;  %s6773_s6 = sld [smem:[#allocation19_spill]] }
 0x40f   :  { %v5295_v44 = vpack.c.bf16 %v1471_v43, %v1470_v42  ;;  %v5517_v46 = vpop.permute.xlu0 %5516  ;;  %v5524_v63 = vunpack.i.h.bf16 %v5522_v62  ;;  %v5523_v7 = vunpack.i.l.bf16 %v5522_v62  ;;  %v2143_v62 = vld [vmem:[%s6764_s0] sm:$0xff] }
 0x410   :  { %v5519_v50 = vunpack.i.h.bf16 %v5517_v46  ;;  %v5518_v51 = vunpack.i.l.bf16 %v5517_v46 }
 0x411   :  { %5296 = vmatprep.subr.bf16.mxu1 %v5295_v44  ;;  %v1790_v14 = vsel %vm730_vm5, %v5523_v7, %v5524_v63  ;;  %v2158_v63 = vld [vmem:[%s6766_s26 + $0x8] sm:$0xff] }
 0x412   :  { %v1676_v55 = vsel %vm624_vm4, %v5518_v51, %v5519_v50  ;;  %v5532_v15 = vpop.permute.xlu1 %5531 }
 0x413   :  { %v5527_v56 = vpop.permute.xlu0 %5526  ;;  %v5303_v58 = vpack.c.bf16 %v1676_v55, %v1675_v60  ;;  %v5534_v19 = vunpack.i.h.bf16 %v5532_v15  ;;  %v5533_v20 = vunpack.i.l.bf16 %v5532_v15  ;;  %v2302_v15 = vld [vmem:[%s6684_s15] sm:$0xff] }
 0x414   :  { %v5529_v59 = vunpack.i.h.bf16 %v5527_v56  ;;  %v5528_v61 = vunpack.i.l.bf16 %v5527_v56 }
 0x415   :  { %5096 = vmatmul.mubr.msk.f32.vlgmr.msra.gmra.mrb[0].mxu1 %vm1148_vm8, %v4765_v45  ;;  %v1905_v24 = vsel %vm836_vm6, %v5533_v20, %v5534_v19 }
 0x416   :  { %5298 = vmatpush3.bf16.msra.mxu1 %v5295_v44  ;;  %5102 = vmatprep.mubr.msk.f32.mxu1 %vm1148_vm8, %v4769_v47  ;;  %v1791_v10 = vsel %vm730_vm5, %v5528_v61, %v5529_v59  ;;  %v2289_v59 = vld [vmem:[%s6765_s9 + $0x8] sm:$0xff]  ;;  %v2157_v61 = vld [vmem:[%s6766_s26] sm:$0xff]  ;;  %s6767_s26 = smov 120  }
 0x417   :  { %5300 = vmatprep.subr.bf16.mxu1 %v5299_v49  ;;  %v5537_v11 = vpop.permute.xlu0 %5536  ;;  %v5307_v16 = vpack.c.bf16 %v1791_v10, %v1790_v14 }
 0x418   :  { %v5539_v17 = vunpack.i.h.bf16 %v5537_v11  ;;  %v5538_v18 = vunpack.i.l.bf16 %v5537_v11 }
 0x41a   :  { %v1906_v22 = vsel %vm836_vm6, %v5538_v18, %v5539_v17 }
 0x41b   :  { %v5311_v25 = vpack.c.bf16 %v1906_v22, %v1905_v24 }
 0x41d   :  { %5103 = vmatmul.mubr.msk.f32.vlgmr.msra.gmra.mrb[0].mxu1 %vm1148_vm8, %v4770_v54 }
 0x41e   :  { %5302 = vmatpush3.bf16.msra.mxu1 %v5299_v49  ;;  %5109 = vmatprep.mubr.msk.f32.mxu1 %vm1148_vm8, %v4773_v57 }
 0x41f   :  { %5304 = vmatprep.subr.bf16.mxu1 %v5303_v58 }
 0x425   :  { %5110 = vmatmul.mubr.msk.f32.vlgmr.msra.gmra.mrb[0].mxu1 %vm1148_vm8, %v4774_v9 }
 0x426   :  { %5306 = vmatpush3.bf16.msra.mxu1 %v5303_v58  ;;  %5116 = vmatprep.mubr.msk.f32.mxu1 %vm1148_vm8, %v4778_v13  ;;  %v2288_v58 = vld [vmem:[%s6765_s9] sm:$0xff] }
 0x427   :  { %5308 = vmatprep.subr.bf16.mxu1 %v5307_v16 }
 0x42d   :  { %5117 = vmatmul.mubr.msk.f32.vlgmr.msra.gmra.mrb[0].mxu1 %vm1148_vm8, %v4779_v21 }
 0x42e   :  { %5310 = vmatpush3.bf16.msra.mxu1 %v5307_v16  ;;  %5123 = vmatprep.mubr.msk.f32.mxu1 %vm1148_vm8, %v4783_v23  ;;  %v2303_v16 = vld [vmem:[%s6684_s15 + $0x8] sm:$0xff] }
 0x42f   :  { %5312 = vmatprep.subr.bf16.mxu1 %v5311_v25 }
 0x435   :  { %5124 = vmatmul.mubr.msk.f32.vlgmr.msra.gmra.mrb[0].mxu1 %vm1148_vm8, %v4784_v26 }
 0x436   :  { %5314 = vmatpush3.bf16.msra.mxu1 %v5311_v25  ;;  %5130 = vmatprep.mubr.msk.f32.mxu1 %vm1148_vm8, %v4788_v27 }
 0x43d   :  { %5131 = vmatmul.mubr.msk.f32.vlgmr.msra.gmra.mrb[0].mxu1 %vm1148_vm8, %v4789_v28 }
 0x43e   :  { %5137 = vmatprep.mubr.msk.f32.mxu1 %vm1148_vm8, %v4793_v29 }
 0x476   :  { %v5542_v31 = vpop.permute.xlu1 %5541  ;;  %v5547_v32 = vpop.permute.xlu0 %5546 }
 0x477   :  { %v5544_v12 = vunpack.i.h.bf16 %v5542_v31  ;;  %v5543_v33 = vunpack.i.l.bf16 %v5542_v31  ;;  %v5549_v34 = vunpack.i.h.bf16 %v5547_v32  ;;  %v5548_v35 = vunpack.i.l.bf16 %v5547_v32 }
 0x479   :  { %v2020_v36 = vsel %vm942_vm7, %v5543_v33, %v5544_v12  ;;  %v2021_v37 = vsel %vm942_vm7, %v5548_v35, %v5549_v34 }
 0x47a   :  { %v5315_v38 = vpack.c.bf16 %v2021_v37, %v2020_v36 }
 0x47c   :  { %5316 = vmatprep.subr.bf16.mxu1 %v5315_v38 }
 0x47d   :  { %5318 = vmatpush3.bf16.msra.mxu1 %v5315_v38 }
 0x480   :  { %5138 = vmatmul.mubr.msk.f32.vlgmr.msra.gmra.mrb[0].mxu1 %vm1148_vm8, %v4794_v39 }
 0x487   :  { %v2112_v40 = vpop.permute.xlu1 %2111  ;;  %v2117_v41 = vpop.permute.xlu0 %2116 }
 0x48b   :  { %v2178_v45 = vpop.permute.xlu1 %2177  ;;  %v2183_v47 = vpop.permute.xlu0 %2182 }
 0x48c   :  { %v2258_v48 = vadd.f32 %v6162_v8, %v2178_v45  ;;  %v2263_v49 = vadd.f32 %v6157_v30, %v2183_v47  ;;  %v2144_v30 = vld [vmem:[%s6764_s0 + $0x8] sm:$0xff] }
 0x553   :  { %v5139_v42 = vpop.f32.mrb[0].mxu1 }
 0x554   :  { %v2120_v43 = vadd.f32 %v5139_v42, %v2117_v41  ;;  %v2096_v44 = vpop.f32.mrb[1].mxu1 }
 0x555   :  { %v2119_v46 = vadd.f32 %v2112_v40, %v2096_v44 }
 0x556   :  { %2123 = vadd.xlane.f32.xlu0 %v2120_v43 }
 0x557   :  { %2121 = vadd.xlane.f32.xlu1 %v2119_v46 }
 0x55a   :  { %2266 = vadd.xlane.f32.xlu0 %v2258_v48 }
 0x55b   :  { %2268 = vadd.xlane.f32.xlu1 %v2263_v49 }
 0x5e3   :  { %v2124_v50 = vpop.xlane.xlu0 %2123 }
 0x5e4   :  { %v2122_v51 = vpop.xlane.xlu1 %2121  ;;  %v2126_v9 = vmul.f32 0.0078125, %v2124_v50 }
 0x5e5   :  { %v2125_v7 = vmul.f32 0.0078125, %v2122_v51 }
 0x5e6   :  { %v2128_v11 = vsub.f32 %v2120_v43, %v2126_v9 }
 0x5e7   :  { %v2267_v52 = vpop.xlane.xlu0 %2266  ;;  %v2127_v10 = vsub.f32 %v2119_v46, %v2125_v7 }
 0x5e8   :  { %v2270_v53 = vmul.f32 0.0078125, %v2267_v52  ;;  %v2269_v54 = vpop.xlane.xlu1 %2268  ;;  %v2130_v14 = vmul.f32 %v2128_v11, %v2128_v11 }
 0x5e9   :  { %v2271_v55 = vmul.f32 0.0078125, %v2269_v54  ;;  %v2129_v13 = vmul.f32 %v2127_v10, %v2127_v10  ;;  %v4801_v54 = vld [vmem:[%s6685_s16 + $0x10] sm:$0xff] }
 0x5ea   :  { %v6243_v56 = vsub.f32 %v2258_v48, %v2270_v53  ;;  %5149 = vmatprep.mubr.msk.f32.mxu1 %vm1148_vm8, %v4801_v54 }
 0x5eb   :  { %v6245_v57 = vsub.f32 %v2263_v49, %v2271_v55 }
 0x5ec   :  { %v2274_v60 = vmul.f32 %v6243_v56, %v6243_v56 }
 0x5ed   :  { %v2275_v8 = vmul.f32 %v6245_v57, %v6245_v57 }
 0x5ee   :  { %2276 = vadd.xlane.f32.xlu0 %v2274_v60 }
 0x5ef   :  { %2278 = vadd.xlane.f32.xlu1 %v2275_v8 }
 0x600   :  { %2152 = vperm.xlu1 %5469, %v2144_v30  }
 0x604   :  { %2147 = vperm.xlu0 %5468, %v2143_v62   ;;  %2292 = vperm.xlu1 %5469, %v2288_v58   ;;  %v6307_v62 = vld [vmem:[%s6749_s13 + $0x8] ss:$0 sm:$0xff] }
 0x608   :  { %2297 = vperm.xlu0 %5468, %v2289_v59   ;;  %2161 = vperm.xlu1 %5469, %v2157_v61  }
 0x60c   :  { %2166 = vperm.xlu0 %5468, %v2158_v63  }
 0x62b   :  { %2131 = vadd.xlane.f32.xlu0 %v2129_v13 }
 0x62c   :  { %2133 = vadd.xlane.f32.xlu1 %v2130_v14 }
 0x63d   :  { %2306 = vperm.xlu1 %5469, %v2302_v15  }
 0x641   :  { %2311 = vperm.xlu0 %5468, %v2303_v16   ;;  %2347 = vrot.lane.b32.xlu1 %v5891_v0, %s6767_s26 }
 0x645   :  { %2332 = vrot.lane.b32.xlu0 %v5903_v2, %s6752_s12  ;;  %2557 = vrot.lane.b32.xlu1 %v5896_v1, %s6768_s30 }
 0x649   :  { %2672 = vrot.lane.b32.xlu0 %v5910_v3, %s6756_s7  ;;  %2877 = vrot.lane.b32.xlu1 %v5919_v4, %s6769_s4 }
 0x64d   :  { %2992 = vrot.lane.b32.xlu0 %v5924_v5, %s6758_s8  ;;  %3107 = vrot.lane.b32.xlu1 %v5933_v6, %s6757_s10 }
 0x67b   :  { %v2277_v0 = vpop.xlane.xlu0 %2276 }
 0x67c   :  { %v2279_v17 = vpop.xlane.xlu1 %2278  ;;  %v2280_v21 = vmul.f32 0.0078125, %v2277_v0 }
 0x67d   :  { %v2281_v1 = vmul.f32 0.0078125, %v2279_v17 }
 0x67e   :  { %v2282_v23 = vadd.f32 1e-05, %v2280_v21 }
 0x67f   :  { %v2283_v24 = vadd.f32 1e-05, %v2281_v1 }
 0x680   :  { %v2153_v19 = vpop.permute.xlu1 %2152  ;;  %5714 = vrsqrt.f32 %v2282_v23 }
 0x681   :  { %5716 = vrsqrt.f32 %v2283_v24 }
 0x683   :  { %v2148_v18 = vpop.permute.xlu0 %2147 }
 0x684   :  { %v2293_v20 = vpop.permute.xlu1 %2292 }
 0x687   :  { %v2298_v2 = vpop.permute.xlu0 %2297 }
 0x688   :  { %v2162_v3 = vpop.permute.xlu1 %2161 }
 0x68a   :  { %v5715_v28 = vpop.eup %5714 }
 0x68b   :  { %v2167_v22 = vpop.permute.xlu0 %2166  ;;  %v5717_v29 = vpop.eup %5716  ;;  %v2286_v31 = vmul.f32 %v5715_v28, %v6243_v56 }
 0x68c   :  { %v2287_v12 = vmul.f32 %v5717_v29, %v6245_v57 }
 0x68d   :  { %v2300_v37 = vmul.f32 %v2293_v20, %v2286_v31 }
 0x68e   :  { %v2301_v40 = vmul.f32 %v2298_v2, %v2287_v12 }
 0x6b8   :  { %v2132_v25 = vpop.xlane.xlu0 %2131 }
 0x6b9   :  { %v2135_v4 = vmul.f32 0.0078125, %v2132_v25  ;;  %v2134_v26 = vpop.xlane.xlu1 %2133 }
 0x6ba   :  { %v2136_v5 = vmul.f32 0.0078125, %v2134_v26 }
 0x6bb   :  { %v2137_v27 = vadd.f32 1e-05, %v2135_v4 }
 0x6bc   :  { %v2138_v6 = vadd.f32 1e-05, %v2136_v5 }
 0x6bd   :  { %5718 = vrsqrt.f32 %v2137_v27  ;;  %v2307_v35 = vpop.permute.xlu1 %2306 }
 0x6be   :  { %5720 = vrsqrt.f32 %v2138_v6  ;;  %v2314_v43 = vadd.f32 %v2307_v35, %v2300_v37 }
 0x6c0   :  { %v2312_v39 = vpop.permute.xlu0 %2311 }
 0x6c1   :  { %v2315_v45 = vadd.f32 %v2312_v39, %v2301_v40  ;;  %v2348_v49 = vpop.permute.xlu1 %2347 }
 0x6c2   :  { %v2350_v51 = vmul.f32 0.0, %v2348_v49 }
 0x6c4   :  { %v2333_v55 = vpop.permute.xlu0 %2332 }
 0x6c5   :  { %v2335_v56 = vmul.f32 0.0, %v2333_v55  ;;  %v2558_v30 = vpop.permute.xlu1 %2557 }
 0x6c6   :  { %v2560_v59 = vmul.f32 0.0, %v2558_v30 }
 0x6c7   :  { %v5719_v32 = vpop.eup %5718 }
 0x6c8   :  { %v5721_v33 = vpop.eup %5720  ;;  %v2141_v34 = vmul.f32 %v5719_v32, %v2127_v10  ;;  %v2673_v7 = vpop.permute.xlu0 %2672 }
 0x6c9   :  { %v2142_v36 = vmul.f32 %v5721_v33, %v2128_v11  ;;  %v2675_v9 = vmul.f32 0.0, %v2673_v7  ;;  %v2878_v15 = vpop.permute.xlu1 %2877 }
 0x6ca   :  { %v2155_v38 = vmul.f32 %v2148_v18, %v2141_v34  ;;  %v2881_v16 = vmul.f32 0.0, %v2878_v15 }
 0x6cb   :  { %v2156_v41 = vmul.f32 %v2153_v19, %v2142_v36 }
 0x6cc   :  { %v2169_v42 = vadd.f32 %v2162_v3, %v2155_v38  ;;  %v2993_v18 = vpop.permute.xlu0 %2992 }
 0x6cd   :  { %v2170_v44 = vadd.f32 %v2167_v22, %v2156_v41  ;;  %v2996_v20 = vmul.f32 0.0, %v2993_v18  ;;  %v3108_v22 = vpop.permute.xlu1 %3107 }
 0x6ce   :  { %v2316_v46 = vadd.f32 %v2314_v43, %v2169_v42  ;;  %v3111_v24 = vmul.f32 0.0, %v3108_v22 }
 0x6cf   :  { %v2317_v47 = vadd.f32 %v2315_v45, %v2170_v44 }
 0x6d0   :  { %v6291_v48 = vmax.f32 %v2316_v46, 0.0 }
 0x6d1   :  { %v6293_v50 = vmax.f32 %v2317_v47, 0.0 }
 0x6d2   :  { %v2351_v52 = vmul.f32 %v2348_v49, %v6291_v48  ;;  %v2336_v57 = vmul.f32 %v2333_v55, %v6291_v48  ;;  %v2561_v61 = vmul.f32 %v2558_v30, %v6291_v48  ;;  %v2676_v11 = vmul.f32 %v2673_v7, %v6291_v48 }
 0x6d3   :  { %v2353_v53 = vmul.f32 %v2348_v49, %v6293_v50  ;;  %v2338_v58 = vmul.f32 %v2333_v55, %v6293_v50  ;;  %v2563_v10 = vmul.f32 %v2558_v30, %v6293_v50  ;;  %v2678_v17 = vmul.f32 %v2673_v7, %v6293_v50  ;;  %v4802_v49 = vld [vmem:[%s6685_s16 + $0x18] sm:$0xff] }
 0x6d4   :  { %v5555_v60 = vpack.i.bf16 %v2351_v52, %v2350_v51  ;;  %v5560_v63 = vpack.i.bf16 %v2336_v57, %v2335_v56  ;;  %v5570_v14 = vpack.i.bf16 %v2561_v61, %v2560_v59  ;;  %v2880_v0 = vmul.f32 %v2878_v15, %v6291_v48  ;;  %v3331_v57 = vld [vmem:[%s6686_s17] sm:$0xff] }
 0x6d5   :  { %v5550_v8 = vpack.i.bf16 %v2353_v53, %v2350_v51  ;;  %v5565_v13 = vpack.i.bf16 %v2338_v58, %v2335_v56  ;;  %v5575_v19 = vpack.i.bf16 %v2563_v10, %v2560_v59  ;;  %v5580_v2 = vpack.i.bf16 %v2676_v11, %v2675_v9  ;;  %v2339_v53 = vld [vmem:[%s6685_s16] sm:$0xff]  ;;  %v3332_v56 = vld [vmem:[%s6686_s17 + $0x8] sm:$0xff] }
 0x6d6   :  { %5556 = vrot.lane.b32.xlu0 %v5555_v60, %s6757_s10  ;;  %v2882_v21 = vmul.f32 %v2878_v15, %v6293_v50  ;;  %v2995_v1 = vmul.f32 %v2993_v18, %v6291_v48  ;;  %v5585_v23 = vpack.i.bf16 %v2678_v17, %v2675_v9  ;;  %v5590_v3 = vpack.i.bf16 %v2881_v16, %v2880_v0  ;;  %v2340_v15 = vld [vmem:[%s6685_s16 + $0x8] sm:$0xff]  ;;  %v4808_v0 = vld [vmem:[%s6685_s16 + $0x20] sm:$0xff] }
 0x6d7   :  { %5551 = vrot.lane.b32.xlu1 %v5550_v8, %s6757_s10  ;;  %v2997_v25 = vmul.f32 %v2993_v18, %v6293_v50  ;;  %v3110_v4 = vmul.f32 %v3108_v22, %v6291_v48  ;;  %v3112_v27 = vmul.f32 %v3108_v22, %v6293_v50 }
 0x6d8   :  { %v5595_v26 = vpack.i.bf16 %v2881_v16, %v2882_v21  ;;  %v5600_v5 = vpack.i.bf16 %v2996_v20, %v2995_v1  ;;  %v4809_v1 = vld [vmem:[%s6685_s16 + $0x28] sm:$0xff] }
 0x6d9   :  { %v5610_v6 = vpack.i.bf16 %v3111_v24, %v3110_v4  ;;  %v5605_v28 = vpack.i.bf16 %v2996_v20, %v2997_v25  ;;  %v5615_v29 = vpack.i.bf16 %v3111_v24, %v3112_v27  ;;  %v6377_v24 = vpack.c.bf16 %v6293_v50, %v6291_v48  ;;  %v4814_v27 = vld [vmem:[%s6685_s16 + $0x38] sm:$0xff] }
 0x6da   :  { %3222 = vrot.lane.b32.xlu0 %v6307_v62, %s6761_s11 }
 0x6db   :  { %5561 = vrot.lane.b32.xlu1 %v5560_v63, %s6761_s11 }
 0x6de   :  { %5566 = vrot.lane.b32.xlu0 %v5565_v13, %s6761_s11 }
 0x6df   :  { %5571 = vrot.lane.b32.xlu1 %v5570_v14, %s6758_s8 }
 0x6e2   :  { %5576 = vrot.lane.b32.xlu0 %v5575_v19, %s6758_s8 }
 0x6e3   :  { %5581 = vrot.lane.b32.xlu1 %v5580_v2, %s6769_s4 }
 0x6e6   :  { %5586 = vrot.lane.b32.xlu0 %v5585_v23, %s6769_s4  ;;  %v4813_v23 = vld [vmem:[%s6685_s16 + $0x30] sm:$0xff] }
 0x6e7   :  { %5591 = vrot.lane.b32.xlu1 %v5590_v3, %s6756_s7 }
 0x6ea   :  { %5596 = vrot.lane.b32.xlu0 %v5595_v26, %s6756_s7 }
 0x6eb   :  { %5601 = vrot.lane.b32.xlu1 %v5600_v5, %s6768_s30 }
 0x6ee   :  { %5606 = vrot.lane.b32.xlu0 %v5605_v28, %s6768_s30 }
 0x6ef   :  { %5611 = vrot.lane.b32.xlu1 %v5610_v6, %s6767_s26 }
 0x6f2   :  { %5616 = vrot.lane.b32.xlu0 %v5615_v29, %s6767_s26 }
 0x748   :  { %v5557_v31 = vpop.permute.xlu0 %5556 }
 0x749   :  { %v5552_v32 = vpop.permute.xlu1 %5551  ;;  %v5559_v12 = vunpack.i.h.bf16 %v5557_v31  ;;  %v5558_v33 = vunpack.i.l.bf16 %v5557_v31 }
 0x74a   :  { %v5554_v34 = vunpack.i.h.bf16 %v5552_v32  ;;  %v5553_v35 = vunpack.i.l.bf16 %v5552_v32 }
 0x74b   :  { %v2369_v36 = vsel %vm130_vm0, %v5558_v33, %v5559_v12 }
 0x74c   :  { %v2370_v37 = vsel %vm130_vm0, %v5553_v35, %v5554_v34  ;;  %v3223_v38 = vpop.permute.xlu0 %3222  ;;  %v4818_v35 = vld [vmem:[%s6685_s16 + $0x48] sm:$0xff] }
 0x74d   :  { %v5562_v39 = vpop.permute.xlu1 %5561  ;;  %v5319_v40 = vpack.c.bf16 %v2370_v37, %v2369_v36  ;;  %v3225_v41 = vmul.f32 %v3223_v38, %v6291_v48  ;;  %v3226_v42 = vmul.f32 0.0, %v3223_v38  ;;  %v3227_v43 = vmul.f32 %v3223_v38, %v6293_v50  ;;  %v4817_v48 = vld [vmem:[%s6685_s16 + $0x40] sm:$0xff]  ;;  %v4822_v38 = vld [vmem:[%s6685_s16 + $0x50] sm:$0xff] }
 0x74e   :  { %v5564_v46 = vunpack.i.h.bf16 %v5562_v39  ;;  %v5563_v47 = vunpack.i.l.bf16 %v5562_v39 }
 0x74f   :  { %5320 = vmatprep.subr.bf16.mxu1 %v5319_v40  ;;  %v5625_v44 = vpack.i.bf16 %v3226_v42, %v3227_v43  ;;  %v5620_v45 = vpack.i.bf16 %v3226_v42, %v3225_v41 }
 0x750   :  { %5322 = vmatpush3.bf16.msra.mxu1 %v5319_v40  ;;  %v5567_v51 = vpop.permute.xlu0 %5566  ;;  %v2466_v30 = vsel %vm220_vm1, %v5563_v47, %v5564_v46  ;;  %v4823_v46 = vld [vmem:[%s6685_s16 + $0x58] sm:$0xff] }
 0x751   :  { %v5572_v52 = vpop.permute.xlu1 %5571  ;;  %v5569_v54 = vunpack.i.h.bf16 %v5567_v51  ;;  %v5568_v55 = vunpack.i.l.bf16 %v5567_v51  ;;  %5626 = vrot.lane.b32.xlu0 %v5625_v44, %s6752_s12  ;;  %5621 = vrot.lane.b32.xlu1 %v5620_v45, %s6752_s12 }
 0x752   :  { %v5574_v60 = vunpack.i.h.bf16 %v5572_v52  ;;  %v5573_v8 = vunpack.i.l.bf16 %v5572_v52 }
 0x753   :  { %5150 = vmatmul.mubr.msk.f32.vlgmr.msra.gmra.mrb[2].mxu1 %vm1148_vm8, %v4802_v49  ;;  %v2467_v58 = vsel %vm220_vm1, %v5568_v55, %v5569_v54  ;;  %v4827_v49 = vld [vmem:[%s6685_s16 + $0x60] sm:$0xff]  ;;  %v4832_v54 = vld [vmem:[%s6685_s16 + $0x70] sm:$0xff]  ;;  %v4833_v55 = vld [vmem:[%s6685_s16 + $0x78] sm:$0xff] }
 0x754   :  { %5156 = vmatprep.mubr.msk.f32.mxu1 %vm1148_vm8, %v2339_v53  ;;  %v5577_v59 = vpop.permute.xlu0 %5576  ;;  %v5323_v63 = vpack.c.bf16 %v2467_v58, %v2466_v30  ;;  %v2579_v13 = vsel %vm324_vm2, %v5573_v8, %v5574_v60  ;;  %v4828_v53 = vld [vmem:[%s6685_s16 + $0x68] sm:$0xff] }
 0x755   :  { %v5582_v61 = vpop.permute.xlu1 %5581  ;;  %v5579_v7 = vunpack.i.h.bf16 %v5577_v59  ;;  %v5578_v9 = vunpack.i.l.bf16 %v5577_v59  ;;  %3340 = vperm.xlu0 %5468, %v3332_v56   ;;  %3335 = vperm.xlu1 %5469, %v3331_v57   ;;  %v4837_v56 = vld [vmem:[%s6685_s16 + $0x80] sm:$0xff] }
 0x756   :  { %5324 = vmatprep.subr.bf16.mxu1 %v5323_v63  ;;  %v5584_v10 = vunpack.i.h.bf16 %v5582_v61  ;;  %v5583_v11 = vunpack.i.l.bf16 %v5582_v61 }
 0x757   :  { %5326 = vmatpush3.bf16.msra.mxu1 %v5323_v63  ;;  %v2580_v14 = vsel %vm324_vm2, %v5578_v9, %v5579_v7  ;;  %v4838_v9 = vld [vmem:[%s6685_s16 + $0x88] sm:$0xff] }
 0x758   :  { %v5587_v16 = vpop.permute.xlu0 %5586  ;;  %v5327_v17 = vpack.c.bf16 %v2580_v14, %v2579_v13  ;;  %v2694_v2 = vsel %vm430_vm3, %v5583_v11, %v5584_v10 }
 0x759   :  { %v5589_v18 = vunpack.i.h.bf16 %v5587_v16  ;;  %v5588_v19 = vunpack.i.l.bf16 %v5587_v16  ;;  %v5592_v3 = vpop.permute.xlu1 %5591 }
 0x75a   :  { %5328 = vmatprep.subr.bf16.mxu1 %v5327_v17  ;;  %v5594_v26 = vunpack.i.h.bf16 %v5592_v3  ;;  %v5593_v5 = vunpack.i.l.bf16 %v5592_v3  ;;  %v3381_v3 = vld [vmem:[%s6688_s19] sm:$0xff] }
 0x75b   :  { %5157 = vmatmul.mubr.msk.f32.vlgmr.msra.gmra.mrb[2].mxu1 %vm1148_vm8, %v2340_v15  ;;  %v2695_v20 = vsel %vm430_vm3, %v5588_v19, %v5589_v18 }
 0x75c   :  { %5330 = vmatpush3.bf16.msra.mxu1 %v5327_v17  ;;  %5163 = vmatprep.mubr.msk.f32.mxu1 %vm1148_vm8, %v4808_v0  ;;  %v5331_v21 = vpack.c.bf16 %v2695_v20, %v2694_v2  ;;  %v5597_v22 = vpop.permute.xlu0 %5596  ;;  %v2899_v50 = vsel %vm624_vm4, %v5593_v5, %v5594_v26  ;;  %v3368_v17 = vld [vmem:[%s6687_s18 + $0x8] sm:$0xff]  ;;  %v3367_v0 = vld [vmem:[%s6687_s18] sm:$0xff] }
 0x75d   :  { %v5599_v25 = vunpack.i.h.bf16 %v5597_v22  ;;  %v5598_v4 = vunpack.i.l.bf16 %v5597_v22  ;;  %v5602_v29 = vpop.permute.xlu1 %5601  ;;  %v4841_v26 = vld [vmem:[%s6749_s13] ss:$0 sm:$0xff]  ;;  %v4863_v5 = vld [vmem:[%s6749_s13 + $0x5] ss:$0 sm:$0xff] }
 0x75e   :  { %5332 = vmatprep.subr.bf16.mxu1 %v5331_v21  ;;  %v5604_v33 = vunpack.i.h.bf16 %v5602_v29  ;;  %v5603_v34 = vunpack.i.l.bf16 %v5602_v29 }
 0x75f   :  { %v2900_v6 = vsel %vm624_vm4, %v5598_v4, %v5599_v25  ;;  %v3382_v25 = vld [vmem:[%s6688_s19 + $0x8] sm:$0xff]  ;;  %v4849_v4 = vld [vmem:[%s6749_s13 + $0x2] ss:$0 sm:$0xff] }
 0x760   :  { %v5607_v28 = vpop.permute.xlu0 %5606  ;;  %v5339_v31 = vpack.c.bf16 %v2900_v6, %v2899_v50  ;;  %v3014_v39 = vsel %vm730_vm5, %v5603_v34, %v5604_v33  ;;  %v4873_v6 = vld [vmem:[%s6749_s13 + $0x7] ss:$0 sm:$0xff]  ;;  %v4473_v50 = vld [vmem:[%s6689_s24 + $0x8] sm:$0xff] }
 0x761   :  { %v5609_v32 = vunpack.i.h.bf16 %v5607_v28  ;;  %v5608_v12 = vunpack.i.l.bf16 %v5607_v28  ;;  %v5612_v40 = vpop.permute.xlu1 %5611  ;;  %v4868_v28 = vld [vmem:[%s6749_s13 + $0x6] ss:$0 sm:$0xff] }
 0x762   :  { %v5614_v44 = vunpack.i.h.bf16 %v5612_v40  ;;  %v5613_v45 = vunpack.i.l.bf16 %v5612_v40 }
 0x763   :  { %5164 = vmatmul.mubr.msk.f32.vlgmr.msra.gmra.mrb[2].mxu1 %vm1148_vm8, %v4809_v1  ;;  %v3015_v36 = vsel %vm730_vm5, %v5608_v12, %v5609_v32 }
 0x764   :  { %5334 = vmatpush3.bf16.msra.mxu1 %v5331_v21  ;;  %5170 = vmatprep.mubr.msk.f32.mxu1 %vm1148_vm8, %v4813_v23  ;;  %v5617_v37 = vpop.permute.xlu0 %5616  ;;  %v5343_v41 = vpack.c.bf16 %v3015_v36, %v3014_v39  ;;  %v3129_v51 = vsel %vm836_vm6, %v5613_v45, %v5614_v44 }
 0x765   :  { %5336 = vmatprep.subr.bf16.mxu1 %v6377_v24  ;;  %v5619_v42 = vunpack.i.h.bf16 %v5617_v37  ;;  %v5618_v43 = vunpack.i.l.bf16 %v5617_v37 }
 0x767   :  { %v3130_v47 = vsel %vm836_vm6, %v5618_v43, %v5619_v42 }
 0x768   :  { %v5347_v52 = vpack.c.bf16 %v3130_v47, %v3129_v51 }
 0x76b   :  { %5171 = vmatmul.mubr.msk.f32.vlgmr.msra.gmra.mrb[2].mxu1 %vm1148_vm8, %v4814_v27  ;;  %v4854_v27 = vld [vmem:[%s6749_s13 + $0x3] ss:$0 sm:$0xff] }
 0x76c   :  { %5338 = vmatpush3.bf16.msra.mxu1 %v6377_v24  ;;  %5177 = vmatprep.mubr.msk.f32.mxu1 %vm1148_vm8, %v4817_v48  ;;  %v4472_v48 = vld [vmem:[%s6689_s24] sm:$0xff] }
 0x76d   :  { %5340 = vmatprep.subr.bf16.mxu1 %v5339_v31 }
 0x773   :  { %5178 = vmatmul.mubr.msk.f32.vlgmr.msra.gmra.mrb[2].mxu1 %vm1148_vm8, %v4818_v35 }
 0x774   :  { %5342 = vmatpush3.bf16.msra.mxu1 %v5339_v31  ;;  %5184 = vmatprep.mubr.msk.f32.mxu1 %vm1148_vm8, %v4822_v38 }
 0x775   :  { %5344 = vmatprep.subr.bf16.mxu1 %v5343_v41 }
 0x77b   :  { %5185 = vmatmul.mubr.msk.f32.vlgmr.msra.gmra.mrb[2].mxu1 %vm1148_vm8, %v4823_v46 }
 0x77c   :  { %5346 = vmatpush3.bf16.msra.mxu1 %v5343_v41  ;;  %5191 = vmatprep.mubr.msk.f32.mxu1 %vm1148_vm8, %v4827_v49 }
 0x77d   :  { %5348 = vmatprep.subr.bf16.mxu1 %v5347_v52 }
 0x783   :  { %5192 = vmatmul.mubr.msk.f32.vlgmr.msra.gmra.mrb[2].mxu1 %vm1148_vm8, %v4828_v53 }
 0x784   :  { %5350 = vmatpush3.bf16.msra.mxu1 %v5347_v52  ;;  %5198 = vmatprep.mubr.msk.f32.mxu1 %vm1148_vm8, %v4832_v54 }
 0x78b   :  { %5199 = vmatmul.mubr.msk.f32.vlgmr.msra.gmra.mrb[2].mxu1 %vm1148_vm8, %v4833_v55 }
 0x78c   :  { %5205 = vmatprep.mubr.msk.f32.mxu1 %vm1148_vm8, %v4837_v56  ;;  %v4843_v56 = vld [vmem:[%s6690_s20 + $0x10] sm:$0xff] }
 0x78d   :  { %5212 = vmatprep.mubr.msk.f32.mxu0 %vm1148_vm8, %v4843_v56  ;;  %v4409_v56 = vld [vmem:[%s6691_s21 + $0x8] sm:$0xff] }
 0x7c3   :  { %v5627_v57 = vpop.permute.xlu0 %5626  ;;  %v5622_v60 = vpop.permute.xlu1 %5621 }
 0x7c4   :  { %v5629_v8 = vunpack.i.h.bf16 %v5627_v57  ;;  %v5628_v30 = vunpack.i.l.bf16 %v5627_v57  ;;  %v5624_v58 = vunpack.i.h.bf16 %v5622_v60  ;;  %v5623_v59 = vunpack.i.l.bf16 %v5622_v60 }
 0x7c6   :  { %v3244_v61 = vsel %vm942_vm7, %v5623_v59, %v5624_v58  ;;  %v3245_v63 = vsel %vm942_vm7, %v5628_v30, %v5629_v8 }
 0x7c7   :  { %v5351_v7 = vpack.c.bf16 %v3245_v63, %v3244_v61 }
 0x7c9   :  { %5352 = vmatprep.subr.bf16.mxu1 %v5351_v7 }
 0x7ca   :  { %5354 = vmatpush3.bf16.msra.mxu1 %v5351_v7 }
 0x7cb   :  { %5392 = vmatprep.subr.bf16.mxu1 %v6377_v24 }
 0x7cd   :  { %5206 = vmatmul.mubr.msk.f32.vlgmr.msra.gmra.mrb[2].mxu1 %vm1148_vm8, %v4838_v9 }
 0x7ce   :  { %5394 = vmatpush3.bf16.msra.mxu1 %v6377_v24  ;;  %v4842_v24 = vld [vmem:[%s6749_s13 + $0x1] ss:$0 sm:$0xff]  ;;  %5275 = vmatprep.mubr.msk.f32.mxu1 %vm1148_vm8, %v4472_v48 }
 0x7d1   :  { %5276 = vmatmul.mubr.msk.f32.vlgmr.msra.gmra.mrb[4].mxu1 %vm1148_vm8, %v4473_v50 }
 0x7d4   :  { %v3341_v10 = vpop.permute.xlu0 %3340  ;;  %v3336_v13 = vpop.permute.xlu1 %3335 }
 0x8a0   :  { %v5207_v11 = vpop.f32.mrb[2].mxu1 }
 0x8a1   :  { %v3344_v14 = vadd.f32 %v5207_v11, %v3341_v10  ;;  %v3320_v15 = vpop.f32.mrb[3].mxu1 }
 0x8a2   :  { %v3343_v16 = vadd.f32 %v3336_v13, %v3320_v15 }
 0x8a3   :  { %3347 = vadd.xlane.f32.xlu0 %v3344_v14 }
 0x8a4   :  { %3345 = vadd.xlane.f32.xlu1 %v3343_v16 }
 0x8b5   :  { %3376 = vperm.xlu1 %5469, %v3368_v17  }
 0x8b9   :  { %3371 = vperm.xlu0 %5468, %v3367_v0  }
 0x930   :  { %v3348_v18 = vpop.xlane.xlu0 %3347 }
 0x931   :  { %v3350_v19 = vmul.f32 0.0078125, %v3348_v18  ;;  %v3346_v2 = vpop.xlane.xlu1 %3345 }
 0x932   :  { %v3349_v20 = vmul.f32 0.0078125, %v3346_v2 }
 0x933   :  { %v3352_v21 = vsub.f32 %v3344_v14, %v3350_v19 }
 0x934   :  { %v3351_v1 = vsub.f32 %v3343_v16, %v3349_v20 }
 0x935   :  { %v3354_v22 = vmul.f32 %v3352_v21, %v3352_v21  ;;  %v3377_v29 = vpop.permute.xlu1 %3376 }
 0x936   :  { %v3353_v23 = vmul.f32 %v3351_v1, %v3351_v1 }
 0x937   :  { %3357 = vadd.xlane.f32.xlu1 %v3354_v22 }
 0x938   :  { %3355 = vadd.xlane.f32.xlu0 %v3353_v23  ;;  %v3372_v31 = vpop.permute.xlu0 %3371 }
 0x948   :  { %3385 = vperm.xlu1 %5469, %v3381_v3  }
 0x94c   :  { %3424 = vrot.lane.b32.xlu1 %v4842_v24, %s6767_s26 }
 0x94e   :  { %3390 = vperm.xlu0 %5468, %v3382_v25  }
 0x950   :  { %3634 = vrot.lane.b32.xlu1 %v4849_v4, %s6768_s30 }
 0x952   :  { %3409 = vrot.lane.b32.xlu0 %v4841_v26, %s6752_s12 }
 0x954   :  { %3954 = vrot.lane.b32.xlu1 %v4863_v5, %s6769_s4 }
 0x956   :  { %3749 = vrot.lane.b32.xlu0 %v4854_v27, %s6756_s7 }
 0x958   :  { %4184 = vrot.lane.b32.xlu1 %v4873_v6, %s6757_s10 }
 0x95a   :  { %4069 = vrot.lane.b32.xlu0 %v4868_v28, %s6758_s8 }
 0x9c4   :  { %v3358_v32 = vpop.xlane.xlu1 %3357 }
 0x9c5   :  { %v3360_v12 = vmul.f32 0.0078125, %v3358_v32  ;;  %v3356_v33 = vpop.xlane.xlu0 %3355 }
 0x9c6   :  { %v3359_v34 = vmul.f32 0.0078125, %v3356_v33 }
 0x9c7   :  { %v3362_v35 = vadd.f32 1e-05, %v3360_v12 }
 0x9c8   :  { %v3361_v36 = vadd.f32 1e-05, %v3359_v34  ;;  %v3386_v41 = vpop.permute.xlu1 %3385 }
 0x9c9   :  { %5722 = vrsqrt.f32 %v3362_v35 }
 0x9ca   :  { %5724 = vrsqrt.f32 %v3361_v36 }
 0x9cc   :  { %v3425_v47 = vpop.permute.xlu1 %3424 }
 0x9cd   :  { %v3391_v44 = vpop.permute.xlu0 %3390  ;;  %v3427_v51 = vmul.f32 0.0, %v3425_v47 }
 0x9d0   :  { %v3635_v58 = vpop.permute.xlu1 %3634 }
 0x9d1   :  { %v3410_v55 = vpop.permute.xlu0 %3409  ;;  %v3637_v61 = vmul.f32 0.0, %v3635_v58 }
 0x9d2   :  { %v3412_v60 = vmul.f32 0.0, %v3410_v55 }
 0x9d3   :  { %v5723_v37 = vpop.eup %5722 }
 0x9d4   :  { %v5725_v38 = vpop.eup %5724  ;;  %v3366_v39 = vmul.f32 %v5723_v37, %v3352_v21  ;;  %v3955_v16 = vpop.permute.xlu1 %3954 }
 0x9d5   :  { %v3365_v40 = vmul.f32 %v5725_v38, %v3351_v1  ;;  %v3750_v9 = vpop.permute.xlu0 %3749  ;;  %v3958_v18 = vmul.f32 0.0, %v3955_v16 }
 0x9d6   :  { %v3380_v42 = vmul.f32 %v3377_v29, %v3366_v39  ;;  %v3752_v11 = vmul.f32 0.0, %v3750_v9 }
 0x9d7   :  { %v3379_v43 = vmul.f32 %v3372_v31, %v3365_v40 }
 0x9d8   :  { %v3394_v45 = vadd.f32 %v3391_v44, %v3380_v42  ;;  %v4185_v3 = vpop.permute.xlu1 %4184 }
 0x9d9   :  { %v3393_v46 = vadd.f32 %v3386_v41, %v3379_v43  ;;  %v4188_v4 = vmul.f32 0.0, %v4185_v3 }
 0x9da   :  { %v6484_v49 = vmax.f32 %v3394_v45, 0.0 }
 0x9db   :  { %v6486_v52 = vmax.f32 %v3393_v46, 0.0 }
 0x9dc   :  { %v3430_v53 = vmul.f32 %v3425_v47, %v6484_v49  ;;  %v3415_v7 = vmul.f32 %v3410_v55, %v6484_v49  ;;  %v3640_v15 = vmul.f32 %v3635_v58, %v6484_v49  ;;  %v3755_v2 = vmul.f32 %v3750_v9, %v6484_v49 }
 0x9dd   :  { %v3428_v54 = vmul.f32 %v3425_v47, %v6486_v52  ;;  %v3413_v8 = vmul.f32 %v3410_v55, %v6486_v52  ;;  %v3638_v63 = vmul.f32 %v3635_v58, %v6486_v52  ;;  %v3753_v13 = vmul.f32 %v3750_v9, %v6486_v52  ;;  %v4844_v47 = vld [vmem:[%s6690_s20 + $0x18] sm:$0xff] }
 0x9de   :  { %v5630_v57 = vpack.i.bf16 %v3430_v53, %v3427_v51  ;;  %v5645_v14 = vpack.i.bf16 %v3415_v7, %v3412_v60  ;;  %v3957_v0 = vmul.f32 %v3955_v16, %v6486_v52  ;;  %v5655_v19 = vpack.i.bf16 %v3640_v15, %v3637_v61  ;;  %v3416_v53 = vld [vmem:[%s6690_s20] sm:$0xff]  ;;  %v6544_v7 = vpop.f32.mrb[4].mxu1 }
 0x9df   :  { %v5635_v30 = vpack.i.bf16 %v3428_v54, %v3427_v51  ;;  %v5640_v59 = vpack.i.bf16 %v3413_v8, %v3412_v60  ;;  %v5650_v10 = vpack.i.bf16 %v3638_v63, %v3637_v61  ;;  %v5660_v17 = vpack.i.bf16 %v3753_v13, %v3752_v11  ;;  %v4475_v13 = vld [vmem:[%s6692_s25 + $0x8] sm:$0xff] }
 0x9e0   :  { %5631 = vrot.lane.b32.xlu1 %v5630_v57, %s6757_s10  ;;  %v5670_v20 = vpack.i.bf16 %v3958_v18, %v3957_v0  ;;  %v5665_v22 = vpack.i.bf16 %v3755_v2, %v3752_v11  ;;  %v3959_v23 = vmul.f32 %v3955_v16, %v6484_v49  ;;  %v4187_v25 = vmul.f32 %v4185_v3, %v6486_v52  ;;  %v4408_v57 = vld [vmem:[%s6691_s21] sm:$0xff]  ;;  %v6546_v11 = vpop.f32.mrb[5].mxu1 }
 0x9e1   :  { %5636 = vrot.lane.b32.xlu0 %v5635_v30, %s6757_s10  ;;  %v4189_v28 = vmul.f32 %v4185_v3, %v6484_v49  ;;  %v4851_v3 = vld [vmem:[%s6690_s20 + $0x28] sm:$0xff] }
 0x9e2   :  { %v5675_v26 = vpack.i.bf16 %v3958_v18, %v3959_v23  ;;  %v5690_v27 = vpack.i.bf16 %v4188_v4, %v4187_v25  ;;  %v4855_v25 = vld [vmem:[%s6690_s20 + $0x30] sm:$0xff] }
 0x9e3   :  { %v5695_v48 = vpack.i.bf16 %v4188_v4, %v4189_v28 }
 0x9e4   :  { %5641 = vrot.lane.b32.xlu1 %v5640_v59, %s6761_s11 }
 0x9e5   :  { %4299 = vrot.lane.b32.xlu0 %v6307_v62, %s6761_s11  ;;  %v4070_v62 = vpop.permute.xlu0 %4069 }
 0x9e6   :  { %v4073_v21 = vmul.f32 0.0, %v4070_v62  ;;  %v4072_v1 = vmul.f32 %v4070_v62, %v6486_v52  ;;  %v4074_v5 = vmul.f32 %v4070_v62, %v6484_v49  ;;  %v4850_v62 = vld [vmem:[%s6690_s20 + $0x20] sm:$0xff] }
 0x9e8   :  { %5651 = vrot.lane.b32.xlu1 %v5650_v10, %s6758_s8  ;;  %v5680_v24 = vpack.i.bf16 %v4073_v21, %v4072_v1  ;;  %v5685_v6 = vpack.i.bf16 %v4073_v21, %v4074_v5 }
 0x9e9   :  { %5646 = vrot.lane.b32.xlu0 %v5645_v14, %s6761_s11  ;;  %v4474_v14 = vld [vmem:[%s6692_s25] sm:$0xff]  ;;  %s6772_s11 = sld [smem:[#allocation18_spill]] }
 0x9ec   :  { %5661 = vrot.lane.b32.xlu1 %v5660_v17, %s6769_s4  ;;  %v3417_v17 = vld [vmem:[%s6690_s20 + $0x8] sm:$0xff] }
 0x9ed   :  { %5656 = vrot.lane.b32.xlu0 %v5655_v19, %s6758_s8 }
 0x9f0   :  { %5671 = vrot.lane.b32.xlu1 %v5670_v20, %s6756_s7 }
 0x9f1   :  { %5666 = vrot.lane.b32.xlu0 %v5665_v22, %s6769_s4 }
 0x9f4   :  { %5681 = vrot.lane.b32.xlu1 %v5680_v24, %s6768_s30 }
 0x9f5   :  { %5676 = vrot.lane.b32.xlu0 %v5675_v26, %s6756_s7  ;;  %v5371_v26 = vpack.c.bf16 %v6484_v49, %v6486_v52  ;;  %s6771_s7 = sld [smem:[#allocation17_spill]] }
 0x9f8   :  { %5691 = vrot.lane.b32.xlu1 %v5690_v27, %s6767_s26 }
 0x9f9   :  { %5686 = vrot.lane.b32.xlu0 %v5685_v6, %s6768_s30 }
 0x9fd   :  { %5696 = vrot.lane.b32.xlu0 %v5695_v48, %s6767_s26  ;;  %v4856_v48 = vld [vmem:[%s6690_s20 + $0x38] sm:$0xff] }
 0xa52   :  { %v5632_v50 = vpop.permute.xlu1 %5631 }
 0xa53   :  { %v5634_v29 = vunpack.i.h.bf16 %v5632_v50  ;;  %v5633_v31 = vunpack.i.l.bf16 %v5632_v50  ;;  %v5637_v32 = vpop.permute.xlu0 %5636 }
 0xa54   :  { %v5639_v12 = vunpack.i.h.bf16 %v5637_v32  ;;  %v5638_v33 = vunpack.i.l.bf16 %v5637_v32 }
 0xa55   :  { %v3447_v34 = vsel %vm130_vm0, %v5633_v31, %v5634_v29  ;;  %v4859_v31 = vld [vmem:[%s6690_s20 + $0x40] sm:$0xff] }
 0xa56   :  { %v5642_v35 = vpop.permute.xlu1 %5641  ;;  %v3446_v36 = vsel %vm130_vm0, %v5638_v33, %v5639_v12 }
 0xa57   :  { %v4300_v37 = vpop.permute.xlu0 %4299  ;;  %v5355_v38 = vpack.c.bf16 %v3447_v34, %v3446_v36  ;;  %v5644_v42 = vunpack.i.h.bf16 %v5642_v35  ;;  %v5643_v43 = vunpack.i.l.bf16 %v5642_v35  ;;  %v4860_v36 = vld [vmem:[%s6690_s20 + $0x48] sm:$0xff] }
 0xa58   :  { %v4302_v39 = vmul.f32 %v4300_v37, %v6486_v52  ;;  %v4303_v40 = vmul.f32 0.0, %v4300_v37  ;;  %v4304_v41 = vmul.f32 %v4300_v37, %v6484_v49 }
 0xa59   :  { %5356 = vmatprep.subr.bf16.mxu0 %v5355_v38  ;;  %v3543_v58 = vsel %vm220_vm1, %v5643_v43, %v5644_v42 }
 0xa5a   :  { %v5705_v44 = vpack.i.bf16 %v4303_v40, %v4304_v41  ;;  %v5700_v45 = vpack.i.bf16 %v4303_v40, %v4302_v39  ;;  %v5652_v46 = vpop.permute.xlu1 %5651  ;;  %5358 = vmatpush3.bf16.msra.mxu0 %v5355_v38  ;;  %v4864_v39 = vld [vmem:[%s6690_s20 + $0x50] sm:$0xff] }
 0xa5b   :  { %v5647_v51 = vpop.permute.xlu0 %5646  ;;  %v5654_v60 = vunpack.i.h.bf16 %v5652_v46  ;;  %v5653_v8 = vunpack.i.l.bf16 %v5652_v46 }
 0xa5c   :  { %v5649_v54 = vunpack.i.h.bf16 %v5647_v51  ;;  %v5648_v55 = vunpack.i.l.bf16 %v5647_v51  ;;  %5706 = vrot.lane.b32.xlu0 %v5705_v44, %s6752_s12  ;;  %5701 = vrot.lane.b32.xlu1 %v5700_v45, %s6752_s12 }
 0xa5d   :  { %5213 = vmatmul.mubr.msk.f32.vlgmr.msra.gmra.mrb[4].mxu0 %vm1148_vm8, %v4844_v47  ;;  %v3656_v0 = vsel %vm324_vm2, %v5653_v8, %v5654_v60  ;;  %v4865_v47 = vld [vmem:[%s6690_s20 + $0x58] sm:$0xff]  ;;  %v4879_v8 = vld [vmem:[%s6690_s20 + $0x80] sm:$0xff] }
 0xa5e   :  { %v5662_v30 = vpop.permute.xlu1 %5661  ;;  %v3544_v59 = vsel %vm220_vm1, %v5648_v55, %v5649_v54  ;;  %5219 = vmatprep.mubr.msk.f32.mxu0 %vm1148_vm8, %v3416_v53  ;;  %v4869_v53 = vld [vmem:[%s6690_s20 + $0x60] sm:$0xff]  ;;  %v4875_v60 = vld [vmem:[%s6690_s20 + $0x78] sm:$0xff] }
 0xa5f   :  { %v5657_v61 = vpop.permute.xlu0 %5656  ;;  %v5359_v63 = vpack.c.bf16 %v3544_v59, %v3543_v58  ;;  %v5664_v15 = vunpack.i.h.bf16 %v5662_v30  ;;  %v5663_v16 = vunpack.i.l.bf16 %v5662_v30 }
 0xa60   :  { %v5659_v9 = vunpack.i.h.bf16 %v5657_v61  ;;  %v5658_v10 = vunpack.i.l.bf16 %v5657_v61  ;;  %4417 = vperm.xlu0 %5468, %v4409_v56   ;;  %4412 = vperm.xlu1 %5469, %v4408_v57   ;;  %v4870_v56 = vld [vmem:[%s6690_s20 + $0x68] sm:$0xff]  ;;  %v4874_v57 = vld [vmem:[%s6690_s20 + $0x70] sm:$0xff] }
 0xa61   :  { %5360 = vmatprep.subr.bf16.mxu0 %v5359_v63  ;;  %v3771_v1 = vsel %vm430_vm3, %v5663_v16, %v5664_v15  ;;  %v4880_v15 = vld [vmem:[%s6690_s20 + $0x88] sm:$0xff] }
 0xa62   :  { %5362 = vmatpush3.bf16.msra.mxu0 %v5359_v63  ;;  %v3657_v18 = vsel %vm324_vm2, %v5658_v10, %v5659_v9  ;;  %v5672_v4 = vpop.permute.xlu1 %5671 }
 0xa63   :  { %v5667_v19 = vpop.permute.xlu0 %5666  ;;  %v5363_v2 = vpack.c.bf16 %v3657_v18, %v3656_v0  ;;  %v5674_v6 = vunpack.i.h.bf16 %v5672_v4  ;;  %v5673_v28 = vunpack.i.l.bf16 %v5672_v4 }
 0xa64   :  { %v5669_v20 = vunpack.i.h.bf16 %v5667_v19  ;;  %v5668_v21 = vunpack.i.l.bf16 %v5667_v19  ;;  %4483 = vperm.xlu0 %5468, %v4475_v13   ;;  %4478 = vperm.xlu1 %5469, %v4474_v14  }
 0xa65   :  { %5220 = vmatmul.mubr.msk.f32.vlgmr.msra.gmra.mrb[4].mxu0 %vm1148_vm8, %v3417_v17  ;;  %5364 = vmatprep.subr.bf16.mxu0 %v5363_v2  ;;  %v3976_v49 = vsel %vm624_vm4, %v5673_v28, %v5674_v6 }
 0xa66   :  { %5366 = vmatpush3.bf16.msra.mxu0 %v5363_v2  ;;  %v3772_v22 = vsel %vm430_vm3, %v5668_v21, %v5669_v20  ;;  %5226 = vmatprep.mubr.msk.f32.mxu0 %vm1148_vm8, %v4850_v62  ;;  %v5682_v52 = vpop.permute.xlu1 %5681 }
 0xa67   :  { %v5367_v23 = vpack.c.bf16 %v3772_v22, %v3771_v1  ;;  %v5677_v24 = vpop.permute.xlu0 %5676  ;;  %v5684_v34 = vunpack.i.h.bf16 %v5682_v52  ;;  %v5683_v35 = vunpack.i.l.bf16 %v5682_v52  ;;  %v4623_v22 = vld [vmem:[%s6694_s2] sm:$0xff] }
 0xa68   :  { %v5679_v5 = vunpack.i.h.bf16 %v5677_v24  ;;  %v5678_v27 = vunpack.i.l.bf16 %v5677_v24  ;;  %v4590_v24 = vld [vmem:[%s6770_s3 + $0x8] sm:$0xff] }
 0xa69   :  { %5368 = vmatprep.subr.bf16.mxu0 %v5367_v23  ;;  %v4091_v40 = vsel %vm730_vm5, %v5683_v35, %v5684_v34  ;;  %v4458_v34 = vld [vmem:[%s6771_s7] sm:$0xff] }
 0xa6a   :  { %v3977_v50 = vsel %vm624_vm4, %v5678_v27, %v5679_v5  ;;  %v5692_v41 = vpop.permute.xlu1 %5691 }
 0xa6b   :  { %v5687_v29 = vpop.permute.xlu0 %5686  ;;  %v5375_v32 = vpack.c.bf16 %v3977_v50, %v3976_v49  ;;  %v5694_v45 = vunpack.i.h.bf16 %v5692_v41  ;;  %v5693_v46 = vunpack.i.l.bf16 %v5692_v41 }
 0xa6c   :  { %v5689_v12 = vunpack.i.h.bf16 %v5687_v29  ;;  %v5688_v33 = vunpack.i.l.bf16 %v5687_v29 }
 0xa6d   :  { %5227 = vmatmul.mubr.msk.f32.vlgmr.msra.gmra.mrb[4].mxu0 %vm1148_vm8, %v4851_v3  ;;  %v4206_v54 = vsel %vm836_vm6, %v5693_v46, %v5694_v45  ;;  %v4622_v3 = vld [vmem:[%s6695_s1 + $0x8] sm:$0xff] }
 0xa6e   :  { %5370 = vmatpush3.bf16.msra.mxu0 %v5367_v23  ;;  %5233 = vmatprep.mubr.msk.f32.mxu0 %vm1148_vm8, %v4855_v25  ;;  %v4092_v37 = vsel %vm730_vm5, %v5688_v33, %v5689_v12  ;;  %v4621_v23 = vld [vmem:[%s6695_s1] sm:$0xff]  ;;  %v4459_v25 = vld [vmem:[%s6771_s7 + $0x8] sm:$0xff] }
 0xa6f   :  { %5372 = vmatprep.subr.bf16.mxu0 %v5371_v26  ;;  %v5697_v38 = vpop.permute.xlu0 %5696  ;;  %v5379_v42 = vpack.c.bf16 %v4092_v37, %v4091_v40  ;;  %v4604_v12 = vld [vmem:[%s6772_s11 + $0x8] sm:$0xff] }
 0xa70   :  { %v5699_v43 = vunpack.i.h.bf16 %v5697_v38  ;;  %v5698_v44 = vunpack.i.l.bf16 %v5697_v38  ;;  %v4445_v33 = vld [vmem:[%s6693_s22 + $0x8] sm:$0xff]  ;;  %v4603_v38 = vld [vmem:[%s6772_s11] sm:$0xff] }
 0xa72   :  { %v4207_v51 = vsel %vm836_vm6, %v5698_v44, %v5699_v43 }
 0xa73   :  { %v5383_v55 = vpack.c.bf16 %v4207_v51, %v4206_v54 }
 0xa75   :  { %5234 = vmatmul.mubr.msk.f32.vlgmr.msra.gmra.mrb[4].mxu0 %vm1148_vm8, %v4856_v48 }
 0xa76   :  { %5374 = vmatpush3.bf16.msra.mxu0 %v5371_v26  ;;  %5240 = vmatprep.mubr.msk.f32.mxu0 %vm1148_vm8, %v4859_v31 }
 0xa77   :  { %5376 = vmatprep.subr.bf16.mxu0 %v5375_v32 }
 0xa7d   :  { %5241 = vmatmul.mubr.msk.f32.vlgmr.msra.gmra.mrb[4].mxu0 %vm1148_vm8, %v4860_v36 }
 0xa7e   :  { %5378 = vmatpush3.bf16.msra.mxu0 %v5375_v32  ;;  %5247 = vmatprep.mubr.msk.f32.mxu0 %vm1148_vm8, %v4864_v39 }
 0xa7f   :  { %5380 = vmatprep.subr.bf16.mxu0 %v5379_v42 }
 0xa85   :  { %5248 = vmatmul.mubr.msk.f32.vlgmr.msra.gmra.mrb[4].mxu0 %vm1148_vm8, %v4865_v47 }
 0xa86   :  { %5382 = vmatpush3.bf16.msra.mxu0 %v5379_v42  ;;  %5254 = vmatprep.mubr.msk.f32.mxu0 %vm1148_vm8, %v4869_v53 }
 0xa87   :  { %5384 = vmatprep.subr.bf16.mxu0 %v5383_v55 }
 0xa8d   :  { %5255 = vmatmul.mubr.msk.f32.vlgmr.msra.gmra.mrb[4].mxu0 %vm1148_vm8, %v4870_v56 }
 0xa8e   :  { %5386 = vmatpush3.bf16.msra.mxu0 %v5383_v55  ;;  %5261 = vmatprep.mubr.msk.f32.mxu0 %vm1148_vm8, %v4874_v57 }
 0xa95   :  { %5262 = vmatmul.mubr.msk.f32.vlgmr.msra.gmra.mrb[4].mxu0 %vm1148_vm8, %v4875_v60 }
 0xa96   :  { %5268 = vmatprep.mubr.msk.f32.mxu0 %vm1148_vm8, %v4879_v8 }
 0xace   :  { %v5707_v30 = vpop.permute.xlu0 %5706  ;;  %v5702_v58 = vpop.permute.xlu1 %5701 }
 0xacf   :  { %v5709_v59 = vunpack.i.h.bf16 %v5707_v30  ;;  %v5708_v61 = vunpack.i.l.bf16 %v5707_v30  ;;  %v5704_v63 = vunpack.i.h.bf16 %v5702_v58  ;;  %v5703_v9 = vunpack.i.l.bf16 %v5702_v58 }
 0xad1   :  { %v4321_v10 = vsel %vm942_vm7, %v5703_v9, %v5704_v63  ;;  %v4322_v13 = vsel %vm942_vm7, %v5708_v61, %v5709_v59 }
 0xad2   :  { %v5387_v14 = vpack.c.bf16 %v4322_v13, %v4321_v10 }
 0xad4   :  { %5388 = vmatprep.subr.bf16.mxu0 %v5387_v14 }
 0xad5   :  { %5390 = vmatpush3.bf16.msra.mxu0 %v5387_v14 }
 0xad6   :  { %5278 = vmatprep.subr.mxu0 %v4623_v22 }
 0xad8   :  { %5269 = vmatmul.mubr.msk.f32.vlgmr.msra.gmra.mrb[4].mxu0 %vm1148_vm8, %v4880_v15 }
 0xad9   :  { %5280 = vmatprep.mubr.msk.f32.mxu0 %vm130_vm0, %v4621_v23  ;;  %5279 = vmatpush3.msra.mxu0 %v4623_v22 }
 0xadc   :  { %5281 = vmatmul.mubr.msk.f32.vlgmr.msra.gmra.mrb[6].mxu0 %vm130_vm0, %v4622_v3 }
 0xadf   :  { %v4413_v16 = vpop.permute.xlu1 %4412  ;;  %v4418_v17 = vpop.permute.xlu0 %4417 }
 0xae3   :  { %v4479_v2 = vpop.permute.xlu1 %4478  ;;  %v4484_v20 = vpop.permute.xlu0 %4483 }
 0xae4   :  { %v4559_v21 = vadd.f32 %v6546_v11, %v4479_v2  ;;  %v4564_v1 = vadd.f32 %v6544_v7, %v4484_v20  ;;  %v4444_v11 = vld [vmem:[%s6693_s22] sm:$0xff] }
 0xae5   :  { %v4589_v7 = vld [vmem:[%s6770_s3] sm:$0xff] }
 0xbab   :  { %v5270_v0 = vpop.f32.mrb[4].mxu0 }
 0xbac   :  { %v4421_v18 = vadd.f32 %v5270_v0, %v4418_v17  ;;  %v4397_v19 = vpop.f32.mrb[5].mxu0 }
 0xbad   :  { %v4420_v62 = vadd.f32 %v4413_v16, %v4397_v19 }
 0xbae   :  { %4424 = vadd.xlane.f32.xlu0 %v4421_v18 }
 0xbaf   :  { %4422 = vadd.xlane.f32.xlu1 %v4420_v62  ;;  %v5282_v39 = vpop.f32.mrb[6].mxu0 }
 0xbb0   :  { %v4696_v40 = vpop.f32.mrb[7].mxu0 }
 0xbb2   :  { %4567 = vadd.xlane.f32.xlu0 %v4559_v21 }
 0xbb3   :  { %4569 = vadd.xlane.f32.xlu1 %v4564_v1 }
 0xbc8   :  { %4448 = vperm.xlu0 %5468, %v4444_v11  }
 0xbcc   :  { %4593 = vperm.xlu0 %5468, %v4589_v7  }
 0xbd0   :  { %4598 = vperm.xlu0 %5468, %v4590_v24  }
 0xbd4   :  { %4467 = vperm.xlu0 %5468, %v4459_v25  }
 0xc3b   :  { %v4425_v4 = vpop.xlane.xlu0 %4424 }
 0xc3c   :  { %v4423_v26 = vpop.xlane.xlu1 %4422  ;;  %v4427_v35 = vmul.f32 0.0078125, %v4425_v4 }
 0xc3d   :  { %v4426_v5 = vmul.f32 0.0078125, %v4423_v26 }
 0xc3e   :  { %v4429_v36 = vsub.f32 %v4421_v18, %v4427_v35 }
 0xc3f   :  { %v4428_v27 = vsub.f32 %v4420_v62, %v4426_v5  ;;  %v4568_v6 = vpop.xlane.xlu0 %4567 }
 0xc40   :  { %v4571_v28 = vmul.f32 0.0078125, %v4568_v6  ;;  %v4570_v48 = vpop.xlane.xlu1 %4569  ;;  %v4431_v37 = vmul.f32 %v4429_v36, %v4429_v36 }
 0xc41   :  { %v4572_v50 = vmul.f32 0.0078125, %v4570_v48  ;;  %v4430_v29 = vmul.f32 %v4428_v27, %v4428_v27 }
 0xc42   :  { %v4573_v31 = vsub.f32 %v4559_v21, %v4571_v28 }
 0xc43   :  { %4432 = vadd.xlane.f32.xlu0 %v4430_v29  ;;  %v4574_v49 = vsub.f32 %v4564_v1, %v4572_v50 }
 0xc44   :  { %v4575_v52 = vmul.f32 %v4573_v31, %v4573_v31 }
 0xc45   :  { %v4576_v32 = vmul.f32 %v4574_v49, %v4574_v49 }
 0xc46   :  { %4577 = vadd.xlane.f32.xlu1 %v4575_v52 }
 0xc47   :  { %v4449_v41 = vpop.permute.xlu0 %4448 }
 0xc4a   :  { %4579 = vadd.xlane.f32.xlu1 %v4576_v32 }
 0xc4b   :  { %v4594_v42 = vpop.permute.xlu0 %4593 }
 0xc4f   :  { %v4599_v43 = vpop.permute.xlu0 %4598 }
 0xc53   :  { %v4468_v44 = vpop.permute.xlu0 %4467 }
 0xc59   :  { %4612 = vperm.xlu0 %5468, %v4604_v12  }
 0xc5b   :  { %4453 = vperm.xlu1 %5469, %v4445_v33  }
 0xc5f   :  { %4462 = vperm.xlu1 %5469, %v4458_v34  }
 0xc83   :  { %4434 = vadd.xlane.f32.xlu1 %v4431_v37 }
 0xc94   :  { %4607 = vperm.xlu1 %5469, %v4603_v38  }
 0xcd0   :  { %v4433_v45 = vpop.xlane.xlu0 %4432 }
 0xcd1   :  { %v4436_v47 = vmul.f32 0.0078125, %v4433_v45 }
 0xcd3   :  { %v4578_v46 = vpop.xlane.xlu1 %4577  ;;  %v4438_v53 = vadd.f32 1e-05, %v4436_v47 }
 0xcd4   :  { %v4581_v51 = vmul.f32 0.0078125, %v4578_v46 }
 0xcd5   :  { %5726 = vrsqrt.f32 %v4438_v53 }
 0xcd6   :  { %v4583_v54 = vadd.f32 1e-05, %v4581_v51 }
 0xcd7   :  { %v4580_v55 = vpop.xlane.xlu1 %4579 }
 0xcd8   :  { %5728 = vrsqrt.f32 %v4583_v54  ;;  %v4582_v57 = vmul.f32 0.0078125, %v4580_v55  ;;  %v4613_v23 = vpop.permute.xlu0 %4612 }
 0xcda   :  { %v4584_v8 = vadd.f32 1e-05, %v4582_v57 }
 0xcdb   :  { %v4454_v56 = vpop.permute.xlu1 %4453 }
 0xcdc   :  { %5730 = vrsqrt.f32 %v4584_v8 }
 0xcdf   :  { %v5727_v60 = vpop.eup %5726  ;;  %v4463_v58 = vpop.permute.xlu1 %4462 }
 0xce0   :  { %v4442_v59 = vmul.f32 %v5727_v60, %v4428_v27 }
 0xce2   :  { %v5729_v30 = vpop.eup %5728  ;;  %v4456_v9 = vmul.f32 %v4449_v41, %v4442_v59 }
 0xce3   :  { %v4587_v61 = vmul.f32 %v5729_v30, %v4573_v31 }
 0xce4   :  { %v4470_v16 = vadd.f32 %v4463_v58, %v4456_v9 }
 0xce5   :  { %v4601_v14 = vmul.f32 %v4594_v42, %v4587_v61 }
 0xce6   :  { %v5731_v18 = vpop.eup %5730 }
 0xce7   :  { %v4588_v62 = vmul.f32 %v5731_v18, %v4574_v49 }
 0xce9   :  { %v4602_v21 = vmul.f32 %v4599_v43, %v4588_v62 }
 0xceb   :  { %v4616_v3 = vadd.f32 %v4613_v23, %v4602_v21 }
 0xd10   :  { %v4435_v63 = vpop.xlane.xlu1 %4434 }
 0xd11   :  { %v4437_v10 = vmul.f32 0.0078125, %v4435_v63 }
 0xd13   :  { %v4439_v13 = vadd.f32 1e-05, %v4437_v10 }
 0xd14   :  { %v4608_v15 = vpop.permute.xlu1 %4607 }
 0xd15   :  { %5732 = vrsqrt.f32 %v4439_v13  ;;  %v4615_v17 = vadd.f32 %v4608_v15, %v4601_v14 }
 0xd17   :  { %v4617_v0 = vadd.f32 %v4615_v17, %v4470_v16 }
 0xd19   :  { %v4619_v19 = vmax.f32 %v4617_v0, 0.0 }
 0xd1b   :  { %v4705_v2 = vadd.f32 %v4696_v40, %v4619_v19 }
 0xd1d   :  { %4707 = vst [vmem:[%s6773_s6] sm:$0xff] %v4705_v2 }
 0xd1f   :  { %v5733_v20 = vpop.eup %5732 }
 0xd20   :  { %v4443_v1 = vmul.f32 %v5733_v20, %v4429_v36 }
 0xd22   :  { %v4457_v22 = vmul.f32 %v4454_v56, %v4443_v1 }
 0xd24   :  { %v4471_v11 = vadd.f32 %v4468_v44, %v4457_v22 }
 0xd26   :  { %v4618_v7 = vadd.f32 %v4616_v3, %v4471_v11 }
 0xd28   :  { %v4620_v24 = vmax.f32 %v4618_v7, 0.0 }
 0xd2a   :  { %v4706_v25 = vadd.f32 %v5282_v39, %v4620_v24 }
 0xd2c   :  { %4708 = vst [vmem:[%s6773_s6 + $0x8] sm:$0xff] %v4706_v25 }

// kernel: down_forward.2
= control target key start
LH: loop header
LB: loop body
LE: loop exit
PB: predicated region body
PF: predicated region fallthrough
CT: control target
= control target key end

     0   :  { %v106_v0 = vlaneseq  ;;  %s8652_s30 = smov 112   ;;  %s10384_s29 = smov 113   ;;  %vm172_vm0 = vcmask 916480   ;;  %v8660_v57 = vmov 0.0   ;;  %vm130_vm1 = vcmask 908288   ;;  %s10341_s3 = inlined_call_operand.vmem [shape: f32[9,512], index: 3, kind: input, shape index: {}]   ;;  %s10342_s0 = inlined_call_operand.vmem [shape: f32[8,512], index: 0, kind: input, shape index: {}]   ;;  %s10343_s5 = inlined_call_operand.vmem [shape: f32[8,1], index: 5, kind: input, shape index: {}]   ;;  %s10344_s7 = inlined_call_operand.vmem [shape: f32[8,1], index: 7, kind: input, shape index: {}]   ;;  %s10345_s4 = inlined_call_operand.vmem [shape: f32[9,8,8], index: 4, kind: input, shape index: {}]   ;;  %s10346_s6 = inlined_call_operand.vmem [shape: f32[8,1], index: 6, kind: input, shape index: {}]   ;;  %s10347_s9 = inlined_call_operand.vmem [shape: f32[8,1], index: 9, kind: input, shape index: {}]   ;;  %s10348_s13 = inlined_call_operand.vmem [shape: f32[8,1], index: 13, kind: input, shape index: {}]   ;;  %s10349_s8 = inlined_call_operand.vmem [shape: f32[9,8,8], index: 8, kind: input, shape index: {}]   ;;  %s10350_s12 = inlined_call_operand.vmem [shape: f32[8,8], index: 12, kind: input, shape index: {}]   ;;  %s10351_s10 = inlined_call_operand.vmem [shape: f32[8,1], index: 10, kind: input, shape index: {}]   ;;  %s10352_s14 = inlined_call_operand.vmem [shape: f32[8,1], index: 14, kind: input, shape index: {}]   ;;  %s10353_s11 = inlined_call_operand.vmem [shape: f32[8,1], index: 11, kind: input, shape index: {}]   ;;  %s10354_s15 = inlined_call_operand.vmem [shape: f32[8,1], index: 15, kind: input, shape index: {}]   ;;  %s10355_s17 = inlined_call_operand.vmem [shape: f32[8,1], index: 17, kind: input, shape index: {}]   ;;  %s10356_s18 = inlined_call_operand.vmem [shape: f32[8,1], index: 18, kind: input, shape index: {}]   ;;  %s10357_s16 = inlined_call_operand.vmem [shape: f32[9,8,8], index: 16, kind: input, shape index: {}]   ;;  %s10358_s19 = inlined_call_operand.vmem [shape: f32[8,1], index: 19, kind: input, shape index: {}]   ;;  %s10359_s21 = inlined_call_operand.vmem [shape: f32[8,1], index: 21, kind: input, shape index: {}]   ;;  %s10360_s25 = inlined_call_operand.vmem [shape: f32[8,1], index: 25, kind: input, shape index: {}]   ;;  %s10361_s20 = inlined_call_operand.vmem [shape: f32[9,8,8], index: 20, kind: input, shape index: {}]   ;;  %s10362_s24 = inlined_call_operand.vmem [shape: f32[8,8], index: 24, kind: input, shape index: {}]   ;;  %s10363_s2 = inlined_call_operand.vmem [shape: f32[8,512], index: 2, kind: input, shape index: {}]   ;;  %s10364_s1 = inlined_call_operand.vmem [shape: f32[8,8], index: 1, kind: input, shape index: {}]   ;;  %s10365_s22 = inlined_call_operand.vmem [shape: f32[8,1], index: 22, kind: input, shape index: {}]   ;;  %s10366_s23 = inlined_call_operand.vmem [shape: f32[8,1], index: 23, kind: input, shape index: {}]   ;;  %s10367_s27 = inlined_call_operand.vmem [shape: f32[8,1], index: 27, kind: input, shape index: {}]   ;;  %s10368_s26 = inlined_call_operand.vmem [shape: f32[8,1], index: 26, kind: input, shape index: {}]   ;;  %s10369_s28 = inlined_call_operand.vmem [shape: f32[8,512], index: 28, kind: output, shape index: {}]  }
   0x1   :  { %10388 = sst [smem:[#allocation3_spill]] %s10341_s3  ;;  %280 = vmatprep.mubr.f32.mxu0 %v8660_v57  ;;  %351 = vmatprep.mubr.f32.mxu1 %v8660_v57  ;;  %vm554_vm2 = vcmask 924672   ;;  %vm770_vm3 = vcmask 1039360   ;;  %vm801_vm4 = vcmask 7168   ;;  %vm585_vm5 = vcmask 121856  }
   0x2   :  { %10389 = sst [smem:[#allocation4_spill]] %s10342_s0  ;;  %v107_v1 = vshrl.u32 %v106_v0, 7  ;;  %vm203_vm6 = vcmask 130048   ;;  %vm373_vm7 = vcmask 138240   ;;  %vm212_vm8 = vcmask 64512  }
   0x3   :  { %10390 = sst [smem:[#allocation5_spill]] %s10343_s5  ;;  %s10374_s5 = smov 17  }
   0x4   :  { %10391 = sst [smem:[#allocation6_spill]] %s10344_s7  ;;  %v8810_v3 = vsub.s32 2, %v107_v1  ;;  %v8812_v4 = vsub.s32 0, %v107_v1  ;;  %v8814_v5 = vsub.s32 3, %v107_v1  ;;  %v8816_v6 = vsub.s32 1, %v107_v1  ;;  %s10402_s0 = sld [smem:[#allocation4_spill]] }
   0x5   :  { %10392 = sst [smem:[#allocation7_spill]] %s10345_s4  ;;  %s10376_s4 = smov 16  }
   0x6   :  { %10393 = sst [smem:[#allocation8_spill]] %s10346_s6  ;;  %s10403_s6 = sld [smem:[#allocation5_spill]] }
   0x7   :  { %10394 = sst [smem:[#allocation9_spill]] %s10347_s9  ;;  %s10378_s9 = smov 15  }
   0x8   :  { %10395 = sst [smem:[#allocation10_spill]] %s10348_s13  ;;  %s10405_s3 = sld [smem:[#allocation7_spill]] }
   0x9   :  { %10396 = sst [smem:[#allocation11_spill]] %s10349_s8  ;;  %s10380_s8 = smov 1  }
   0xa   :  { %10397 = sst [smem:[#allocation12_spill]] %s10350_s12  ;;  %s10401_s12 = sld [smem:[#allocation3_spill]]  ;;  %v8906_v49 = vld [vmem:[%s10402_s0 + $0x18] sm:$0xff]  ;;  %v8914_v54 = vld [vmem:[%s10402_s0] sm:$0xff]  ;;  %v8927_v0 = vld [vmem:[%s10402_s0 + $0x8] sm:$0xff] }
   0xb   :  { %10398 = sst [smem:[#allocation13_spill]] %s10351_s10  ;;  %s10386_s10 = smov 111  }
   0xc   :  { %10399 = sst [smem:[#allocation14_spill]] %s10352_s14  ;;  %s10406_s13 = sld [smem:[#allocation8_spill]] }
   0xd   :  { %10400 = sst [smem:[#allocation15_spill]] %s10353_s11  ;;  %s10382_s11 = smov 127  }
   0xe   :  { %s10408_s7 = smov 17   ;;  %s10418_s14 = smov 127  }
  0x10   :  { %v8358_v2 = vld [vmem:[%s10401_s12 + $0x1] ss:$8 sm:$0xf]  ;;  %v104_v11 = vld [vmem:[%s10401_s12] ss:$8 sm:$0xf] }
  0x11   :  { %v159_v7 = vrot.slane %v8358_v2, %v8810_v3  ;;  %v151_v8 = vrot.slane %v8358_v2, %v8812_v4  ;;  %v163_v9 = vrot.slane %v8358_v2, %v8814_v5  ;;  %v155_v10 = vrot.slane %v8358_v2, %v8816_v6  ;;  %v8364_v16 = vld [vmem:[%s10401_s12 + $0x2] ss:$8 sm:$0xf]  ;;  %v8368_v21 = vld [vmem:[%s10401_s12 + $0x3] ss:$8 sm:$0xf] }
  0x12   :  { %v113_v12 = vrot.slane %v104_v11, %v8816_v6  ;;  %v109_v13 = vrot.slane %v104_v11, %v8812_v4  ;;  %v121_v14 = vrot.slane %v104_v11, %v8814_v5  ;;  %v117_v15 = vrot.slane %v104_v11, %v8810_v3  ;;  %v8375_v26 = vld [vmem:[%s10401_s12 + $0x5] ss:$8 sm:$0xf]  ;;  %v8379_v31 = vld [vmem:[%s10401_s12 + $0x6] ss:$8 sm:$0xf] }
  0x13   :  { %168 = vrot.lane.b32.xlu1 %v159_v7, %s8652_s30  ;;  %164 = vrot.lane.b32.xlu0 %v151_v8, %s8652_s30  ;;  %v533_v17 = vrot.slane %v8364_v16, %v8812_v4  ;;  %v537_v18 = vrot.slane %v8364_v16, %v8816_v6  ;;  %v545_v19 = vrot.slane %v8364_v16, %v8814_v5  ;;  %v8383_v36 = vld [vmem:[%s10401_s12 + $0x7] ss:$8 sm:$0xf]  ;;  %v8387_v41 = vld [vmem:[%s10401_s12 + $0x20] ss:$8 sm:$0xf] }
  0x14   :  { %v541_v20 = vrot.slane %v8364_v16, %v8810_v3  ;;  %v753_v22 = vrot.slane %v8368_v21, %v8816_v6  ;;  %v749_v23 = vrot.slane %v8368_v21, %v8812_v4  ;;  %v757_v24 = vrot.slane %v8368_v21, %v8810_v3  ;;  %v8936_v11 = vld [vmem:[%s10402_s0 + $0x10] sm:$0xff] }
  0x15   :  { %v761_v25 = vrot.slane %v8368_v21, %v8814_v5  ;;  %v1121_v27 = vrot.slane %v8375_v26, %v8812_v4  ;;  %v1125_v28 = vrot.slane %v8375_v26, %v8816_v6  ;;  %v1129_v29 = vrot.slane %v8375_v26, %v8810_v3 }
  0x16   :  { %v1133_v30 = vrot.slane %v8375_v26, %v8814_v5  ;;  %v1335_v32 = vrot.slane %v8379_v31, %v8812_v4  ;;  %v1339_v33 = vrot.slane %v8379_v31, %v8816_v6  ;;  %v1343_v34 = vrot.slane %v8379_v31, %v8810_v3 }
  0x17   :  { %170 = vrot.lane.b32.xlu1 %v163_v9, %s8652_s30  ;;  %166 = vrot.lane.b32.xlu0 %v155_v10, %s8652_s30  ;;  %v1347_v35 = vrot.slane %v8379_v31, %v8814_v5  ;;  %v1553_v37 = vrot.slane %v8383_v36, %v8816_v6  ;;  %v1549_v38 = vrot.slane %v8383_v36, %v8812_v4 }
  0x18   :  { %v1561_v39 = vrot.slane %v8383_v36, %v8814_v5  ;;  %v1557_v40 = vrot.slane %v8383_v36, %v8810_v3  ;;  %v1763_v42 = vrot.slane %v8387_v41, %v8812_v4  ;;  %v1767_v43 = vrot.slane %v8387_v41, %v8816_v6 }
  0x19   :  { %v1771_v44 = vrot.slane %v8387_v41, %v8810_v3  ;;  %v1775_v45 = vrot.slane %v8387_v41, %v8814_v5 }
  0x1b   :  { %124 = vrot.lane.b32.xlu1 %v113_v12, %s10386_s10  ;;  %122 = vrot.lane.b32.xlu0 %v109_v13, %s10386_s10 }
  0x1f   :  { %128 = vrot.lane.b32.xlu1 %v121_v14, %s10386_s10  ;;  %126 = vrot.lane.b32.xlu0 %v117_v15, %s10386_s10 }
  0x23   :  { %546 = vrot.lane.b32.xlu0 %v533_v17, %s10384_s29  ;;  %548 = vrot.lane.b32.xlu1 %v537_v18, %s10384_s29 }
  0x27   :  { %552 = vrot.lane.b32.xlu1 %v545_v19, %s10384_s29  ;;  %550 = vrot.lane.b32.xlu0 %v541_v20, %s10384_s29 }
  0x2b   :  { %764 = vrot.lane.b32.xlu1 %v753_v22, %s10382_s11  ;;  %762 = vrot.lane.b32.xlu0 %v749_v23, %s10382_s11 }
  0x2f   :  { %766 = vrot.lane.b32.xlu0 %v757_v24, %s10382_s11  ;;  %768 = vrot.lane.b32.xlu1 %v761_v25, %s10382_s11 }
  0x33   :  { %1134 = vrot.lane.b32.xlu0 %v1121_v27, %s10380_s8  ;;  %1136 = vrot.lane.b32.xlu1 %v1125_v28, %s10380_s8 }
  0x37   :  { %1138 = vrot.lane.b32.xlu0 %v1129_v29, %s10380_s8  ;;  %1140 = vrot.lane.b32.xlu1 %v1133_v30, %s10380_s8 }
  0x3b   :  { %1348 = vrot.lane.b32.xlu0 %v1335_v32, %s10378_s9  ;;  %1350 = vrot.lane.b32.xlu1 %v1339_v33, %s10378_s9 }
  0x3f   :  { %1352 = vrot.lane.b32.xlu0 %v1343_v34, %s10378_s9  ;;  %1354 = vrot.lane.b32.xlu1 %v1347_v35, %s10378_s9 }
  0x43   :  { %1564 = vrot.lane.b32.xlu1 %v1553_v37, %s10376_s4  ;;  %1562 = vrot.lane.b32.xlu0 %v1549_v38, %s10376_s4 }
  0x47   :  { %1568 = vrot.lane.b32.xlu1 %v1561_v39, %s10376_s4  ;;  %1566 = vrot.lane.b32.xlu0 %v1557_v40, %s10376_s4 }
  0x4b   :  { %1776 = vrot.lane.b32.xlu1 %v1763_v42, %s10374_s5  ;;  %1778 = vrot.lane.b32.xlu0 %v1767_v43, %s10374_s5 }
  0x4f   :  { %1780 = vrot.lane.b32.xlu1 %v1771_v44, %s10374_s5  ;;  %1782 = vrot.lane.b32.xlu0 %v1775_v45, %s10374_s5 }
  0x85   :  { %v169_v46 = vpop.permute.xlu1 %168  ;;  %v165_v47 = vpop.permute.xlu0 %164 }
  0x86   :  { %v181_v48 = vmul.f32 0.0, %v165_v47 }
  0x88   :  { %193 = vrot.lane.b32.xlu0 %v181_v48, %s10376_s4 }
  0x89   :  { %v171_v50 = vpop.permute.xlu1 %170  ;;  %v167_v51 = vpop.permute.xlu0 %166 }
  0x8a   :  { %v185_v52 = vmul.f32 %v171_v50, %v8906_v49  ;;  %v173_v53 = vsel %vm172_vm0, %v165_v47, %v167_v51  ;;  %v174_v63 = vsel %vm172_vm0, %v167_v51, %v169_v46  ;;  %v175_v9 = vsel %vm172_vm0, %v169_v46, %v171_v50 }
  0x8b   :  { %v182_v59 = vmul.f32 %v173_v53, %v8914_v54  ;;  %v183_v8 = vmul.f32 %v174_v63, %v8927_v0  ;;  %v184_v14 = vmul.f32 %v175_v9, %v8936_v11 }
  0x8c   :  { %201 = vrot.lane.b32.xlu0 %v185_v52, %s10376_s4 }
  0x8d   :  { %v125_v55 = vpop.permute.xlu1 %124  ;;  %v123_v56 = vpop.permute.xlu0 %122 }
  0x8e   :  { %v139_v58 = vmul.f32 0.0, %v123_v56  ;;  %v131_v16 = vsel %vm130_vm1, %v123_v56, %v125_v55 }
  0x8f   :  { %v140_v21 = vmul.f32 %v131_v16, %v8914_v54 }
  0x90   :  { %363 = vrot.lane.b32.xlu1 %v139_v58, %s10374_s5  ;;  %195 = vrot.lane.b32.xlu0 %v182_v59, %s10376_s4 }
  0x91   :  { %v129_v60 = vpop.permute.xlu1 %128  ;;  %v127_v61 = vpop.permute.xlu0 %126 }
  0x92   :  { %v143_v62 = vmul.f32 %v129_v60, %v8906_v49  ;;  %v132_v10 = vsel %vm130_vm1, %v125_v55, %v127_v61  ;;  %v133_v17 = vsel %vm130_vm1, %v127_v61, %v129_v60 }
  0x93   :  { %v141_v15 = vmul.f32 %v132_v10, %v8927_v0  ;;  %v142_v20 = vmul.f32 %v133_v17, %v8936_v11 }
  0x94   :  { %371 = vrot.lane.b32.xlu1 %v143_v62, %s10374_s5 }
  0x95   :  { %v547_v1 = vpop.permute.xlu0 %546  ;;  %v549_v2 = vpop.permute.xlu1 %548 }
  0x96   :  { %v563_v7 = vmul.f32 0.0, %v547_v1  ;;  %v555_v22 = vsel %vm554_vm2, %v547_v1, %v549_v2 }
  0x97   :  { %v564_v26 = vmul.f32 %v555_v22, %v8914_v54 }
  0x98   :  { %197 = vrot.lane.b32.xlu1 %v183_v8, %s10376_s4  ;;  %575 = vrot.lane.b32.xlu0 %v563_v7, %s10378_s9 }
  0x99   :  { %v553_v12 = vpop.permute.xlu1 %552  ;;  %v551_v13 = vpop.permute.xlu0 %550 }
  0x9a   :  { %v556_v27 = vsel %vm554_vm2, %v549_v2, %v551_v13  ;;  %v567_v29 = vmul.f32 %v553_v12, %v8906_v49  ;;  %v557_v32 = vsel %vm554_vm2, %v551_v13, %v553_v12 }
  0x9b   :  { %v565_v30 = vmul.f32 %v556_v27, %v8927_v0  ;;  %v566_v36 = vmul.f32 %v557_v32, %v8936_v11 }
  0x9c   :  { %199 = vrot.lane.b32.xlu1 %v184_v14, %s10376_s4  ;;  %367 = vrot.lane.b32.xlu0 %v141_v15, %s10374_s5  ;;  %s10407_s4 = smov 16  }
  0x9d   :  { %v765_v18 = vpop.permute.xlu1 %764  ;;  %v763_v19 = vpop.permute.xlu0 %762 }
  0x9e   :  { %v779_v23 = vmul.f32 0.0, %v763_v19  ;;  %v771_v37 = vsel %vm770_vm3, %v763_v19, %v765_v18 }
  0x9f   :  { %v780_v41 = vmul.f32 %v771_v37, %v8914_v54 }
  0xa0   :  { %369 = vrot.lane.b32.xlu0 %v142_v20, %s10374_s5  ;;  %365 = vrot.lane.b32.xlu1 %v140_v21, %s10374_s5  ;;  %s10404_s5 = sld [smem:[#allocation6_spill]] }
  0xa1   :  { %v767_v24 = vpop.permute.xlu0 %766  ;;  %v769_v25 = vpop.permute.xlu1 %768 }
  0xa2   :  { %v772_v33 = vsel %vm770_vm3, %v765_v18, %v767_v24  ;;  %v773_v38 = vsel %vm770_vm3, %v767_v24, %v769_v25  ;;  %v783_v43 = vmul.f32 %v769_v25, %v8906_v49 }
  0xa3   :  { %v781_v35 = vmul.f32 %v772_v33, %v8927_v0  ;;  %v782_v40 = vmul.f32 %v773_v38, %v8936_v11  ;;  %v1971_v33 = vld [vmem:[%s10403_s6] sm:$0xff] }
  0xa4   :  { %577 = vrot.lane.b32.xlu0 %v564_v26, %s10378_s9  ;;  %791 = vrot.lane.b32.xlu1 %v779_v23, %s10380_s8 }
  0xa5   :  { %v1137_v28 = vpop.permute.xlu1 %1136  ;;  %v1135_v31 = vpop.permute.xlu0 %1134 }
  0xa6   :  { %v1150_v44 = vmul.f32 %v1135_v31, %v8914_v54  ;;  %v1142_v50 = vsel %vm801_vm4, %v1135_v31, %v1137_v28 }
  0xa7   :  { %v1151_v55 = vmul.f32 %v1142_v50, %v8927_v0 }
  0xa8   :  { %583 = vrot.lane.b32.xlu0 %v567_v29, %s10378_s9  ;;  %579 = vrot.lane.b32.xlu1 %v565_v30, %s10378_s9  ;;  %v8661_v29 = vmov 0  }
  0xa9   :  { %v1141_v34 = vpop.permute.xlu1 %1140  ;;  %v1139_v39 = vpop.permute.xlu0 %1138  ;;  %8634 = vset.pattern.permute.xlu0 %v8661_v29  ;;  %8635 = vset.pattern.permute.xlu1 %v8661_v29 }
  0xaa   :  { %v1154_v48 = vmul.f32 0.0, %v1141_v34  ;;  %v1143_v56 = vsel %vm801_vm4, %v1137_v28, %v1139_v39  ;;  %v1144_v63 = vsel %vm801_vm4, %v1139_v39, %v1141_v34  ;;  %v2018_v34 = vld [vmem:[%s10404_s5] sm:$0xff]  ;;  %s10419_s5 = smov 1  }
  0xab   :  { %v1152_v61 = vmul.f32 %v1143_v56, %v8936_v11  ;;  %v1153_v8 = vmul.f32 %v1144_v63, %v8906_v49 }
  0xac   :  { %795 = vrot.lane.b32.xlu0 %v781_v35, %s10380_s8  ;;  %581 = vrot.lane.b32.xlu1 %v566_v36, %s10378_s9 }
  0xad   :  { %v1351_v42 = vpop.permute.xlu1 %1350  ;;  %v1349_v45 = vpop.permute.xlu0 %1348 }
  0xae   :  { %v1364_v46 = vmul.f32 %v1349_v45, %v8914_v54  ;;  %v1356_v10 = vsel %vm585_vm5, %v1349_v45, %v1351_v42 }
  0xaf   :  { %v1365_v15 = vmul.f32 %v1356_v10, %v8927_v0 }
  0xb0   :  { %797 = vrot.lane.b32.xlu0 %v782_v40, %s10380_s8  ;;  %793 = vrot.lane.b32.xlu1 %v780_v41, %s10380_s8 }
  0xb1   :  { %v1355_v47 = vpop.permute.xlu1 %1354  ;;  %v1353_v51 = vpop.permute.xlu0 %1352 }
  0xb2   :  { %v1368_v52 = vmul.f32 0.0, %v1355_v47  ;;  %v1357_v58 = vsel %vm585_vm5, %v1351_v42, %v1353_v51  ;;  %v1358_v1 = vsel %vm585_vm5, %v1353_v51, %v1355_v47 }
  0xb3   :  { %v1366_v60 = vmul.f32 %v1357_v58, %v8936_v11  ;;  %v1367_v7 = vmul.f32 %v1358_v1, %v8906_v49  ;;  %v144_v58 = vld [vmem:[%s10405_s3] sm:$0xff]  ;;  %v8365_v1 = vld [vmem:[%s10405_s3 + $0x10] sm:$0xff] }
  0xb4   :  { %1162 = vrot.lane.b32.xlu0 %v1150_v44, %s10382_s11  ;;  %799 = vrot.lane.b32.xlu1 %v783_v43, %s10380_s8  ;;  %v8359_v43 = vld [vmem:[%s10405_s3 + $0x8] sm:$0xff] }
  0xb5   :  { %v1565_v53 = vpop.permute.xlu1 %1564  ;;  %v1563_v59 = vpop.permute.xlu0 %1562 }
  0xb6   :  { %v1570_v2 = vsel %vm203_vm6, %v1563_v59, %v1565_v53  ;;  %v1578_v18 = vmul.f32 %v1563_v59, %v8914_v54 }
  0xb7   :  { %v1579_v12 = vmul.f32 %v1570_v2, %v8927_v0 }
  0xb8   :  { %1170 = vrot.lane.b32.xlu0 %v1154_v48, %s10382_s11  ;;  %1376 = vrot.lane.b32.xlu1 %v1364_v46, %s10384_s29 }
  0xb9   :  { %v1569_v62 = vpop.permute.xlu1 %1568  ;;  %v1567_v9 = vpop.permute.xlu0 %1566 }
  0xba   :  { %v1571_v14 = vsel %vm203_vm6, %v1565_v53, %v1567_v9  ;;  %v1572_v20 = vsel %vm203_vm6, %v1567_v9, %v1569_v62  ;;  %v1582_v21 = vmul.f32 0.0, %v1569_v62 }
  0xbb   :  { %v1580_v16 = vmul.f32 %v1571_v14, %v8936_v11  ;;  %v1581_v24 = vmul.f32 %v1572_v20, %v8906_v49 }
  0xbc   :  { %1164 = vrot.lane.b32.xlu0 %v1151_v55, %s10382_s11  ;;  %1384 = vrot.lane.b32.xlu1 %v1368_v52, %s10384_s29 }
  0xbd   :  { %v1777_v13 = vpop.permute.xlu1 %1776  ;;  %v1779_v17 = vpop.permute.xlu0 %1778 }
  0xbe   :  { %v1784_v22 = vsel %vm373_vm7, %v1777_v13, %v1779_v17  ;;  %v1792_v31 = vmul.f32 %v1777_v13, %v8914_v54 }
  0xbf   :  { %v1793_v27 = vmul.f32 %v1784_v22, %v8927_v0 }
  0xc0   :  { %1380 = vrot.lane.b32.xlu0 %v1366_v60, %s10384_s29  ;;  %1166 = vrot.lane.b32.xlu1 %v1152_v61, %s10382_s11 }
  0xc1   :  { %v1781_v19 = vpop.permute.xlu1 %1780  ;;  %v1783_v25 = vpop.permute.xlu0 %1782 }
  0xc2   :  { %v1785_v23 = vsel %vm373_vm7, %v1779_v17, %v1781_v19  ;;  %v1786_v28 = vsel %vm373_vm7, %v1781_v19, %v1783_v25  ;;  %v1796_v32 = vmul.f32 0.0, %v1783_v25 }
  0xc3   :  { %v1794_v26 = vmul.f32 %v1785_v23, %v8936_v11  ;;  %v1795_v30 = vmul.f32 %v1786_v28, %v8906_v49 }
  0xc4   :  { %1382 = vrot.lane.b32.xlu0 %v1367_v7, %s10384_s29  ;;  %1168 = vrot.lane.b32.xlu1 %v1153_v8, %s10382_s11 }
  0xc8   :  { %1592 = vrot.lane.b32.xlu0 %v1579_v12, %s8652_s30  ;;  %1378 = vrot.lane.b32.xlu1 %v1365_v15, %s10384_s29 }
  0xcc   :  { %1590 = vrot.lane.b32.xlu0 %v1578_v18, %s8652_s30  ;;  %1594 = vrot.lane.b32.xlu1 %v1580_v16, %s8652_s30  ;;  %v8369_v16 = vld [vmem:[%s10405_s3 + $0x18] sm:$0xff] }
  0xd0   :  { %1598 = vrot.lane.b32.xlu0 %v1582_v21, %s8652_s30  ;;  %1596 = vrot.lane.b32.xlu1 %v1581_v24, %s8652_s30 }
  0xd4   :  { %1808 = vrot.lane.b32.xlu0 %v1794_v26, %s10386_s10  ;;  %1806 = vrot.lane.b32.xlu1 %v1793_v27, %s10386_s10  ;;  %v8376_v26 = vld [vmem:[%s10405_s3 + $0x28] sm:$0xff] }
  0xd8   :  { %1810 = vrot.lane.b32.xlu0 %v1795_v30, %s10386_s10  ;;  %1804 = vrot.lane.b32.xlu1 %v1792_v31, %s10386_s10 }
  0xdc   :  { %1812 = vrot.lane.b32.xlu1 %v1796_v32, %s10386_s10  ;;  %1974 = vperm.xlu0 %8634, %v1971_v33  }
  0xe0   :  { %2021 = vperm.xlu0 %8634, %v2018_v34  }
  0xfa   :  { %v194_v35 = vpop.permute.xlu0 %193 }
  0xfe   :  { %v202_v36 = vpop.permute.xlu0 %201 }
 0x102   :  { %v364_v37 = vpop.permute.xlu1 %363  ;;  %v196_v38 = vpop.permute.xlu0 %195 }
 0x103   :  { %v204_v44 = vsel %vm203_vm6, %v194_v35, %v196_v38 }
 0x106   :  { %v372_v39 = vpop.permute.xlu1 %371 }
 0x10a   :  { %v198_v40 = vpop.permute.xlu1 %197  ;;  %v576_v41 = vpop.permute.xlu0 %575 }
 0x10b   :  { %v205_v42 = vsel %vm203_vm6, %v196_v38, %v198_v40 }
 0x10c   :  { %216 = vmatprep.subr.mxu0 %v205_v42 }
 0x10d   :  { %217 = vmatpush1.msra.mxu0 %v204_v44 }
 0x10e   :  { %v200_v45 = vpop.permute.xlu1 %199  ;;  %8360 = vmatmul.mubr.msk.f32.vlgmr.msra.gmra.mrb[0].mxu0 %vm212_vm8, %v8359_v43  ;;  %v368_v46 = vpop.permute.xlu0 %367 }
 0x10f   :  { %v207_v47 = vsel %vm203_vm6, %v200_v45, %v202_v36  ;;  %v206_v48 = vsel %vm203_vm6, %v198_v40, %v200_v45  ;;  %449 = vmatprep.mubr.f32.mxu0 %v8660_v57 }
 0x110   :  { %287 = vmatprep.subr.mxu1 %v207_v47 }
 0x111   :  { %288 = vmatpush1.msra.mxu1 %v206_v48 }
 0x112   :  { %8361 = vmatmul.mubr.msk.f32.vlgmr.msra.gmra.mrb[0].mxu1 %vm212_vm8, %v8359_v43  ;;  %v370_v50 = vpop.permute.xlu0 %369  ;;  %v366_v51 = vpop.permute.xlu1 %365 }
 0x113   :  { %v375_v52 = vsel %vm373_vm7, %v366_v51, %v368_v46  ;;  %v377_v53 = vsel %vm373_vm7, %v370_v50, %v372_v39  ;;  %v374_v55 = vsel %vm373_vm7, %v364_v37, %v366_v51  ;;  %v376_v56 = vsel %vm373_vm7, %v368_v46, %v370_v50  ;;  %520 = vmatprep.mubr.f32.mxu1 %v8660_v57  ;;  %v8380_v37 = vld [vmem:[%s10405_s3 + $0x30] sm:$0xff]  ;;  %v8384_v46 = vld [vmem:[%s10405_s3 + $0x38] sm:$0xff] }
 0x114   :  { %385 = vmatprep.subr.mxu0 %v375_v52  ;;  %456 = vmatprep.subr.mxu1 %v377_v53  ;;  %v8388_v53 = vld [vmem:[%s10405_s3 + $0x40] sm:$0xff] }
 0x115   :  { %386 = vmatpush1.msra.mxu0 %v374_v55  ;;  %457 = vmatpush1.msra.mxu1 %v376_v56 }
 0x116   :  { %v578_v59 = vpop.permute.xlu0 %577  ;;  %8362 = vmatmul.mubr.msk.f32.vlgmr.msra.gmra.mrb[0].mxu0 %vm212_vm8, %v144_v58  ;;  %v792_v60 = vpop.permute.xlu1 %791 }
 0x117   :  { %661 = vmatprep.mubr.f32.mxu0 %v8660_v57  ;;  %v586_v2 = vsel %vm585_vm5, %v576_v41, %v578_v59 }
 0x11a   :  { %8363 = vmatmul.mubr.msk.f32.vlgmr.msra.gmra.mrb[0].mxu1 %vm212_vm8, %v144_v58  ;;  %v584_v61 = vpop.permute.xlu0 %583  ;;  %v580_v62 = vpop.permute.xlu1 %579 }
 0x11b   :  { %v587_v63 = vsel %vm585_vm5, %v578_v59, %v580_v62  ;;  %732 = vmatprep.mubr.f32.mxu1 %v8660_v57 }
 0x11c   :  { %597 = vmatprep.subr.mxu0 %v587_v63 }
 0x11d   :  { %598 = vmatpush1.msra.mxu0 %v586_v2 }
 0x11e   :  { %v796_v7 = vpop.permute.xlu0 %795  ;;  %8366 = vmatmul.mubr.msk.f32.vlgmr.msra.gmra.mrb[0].mxu0 %vm212_vm8, %v8365_v1  ;;  %v582_v8 = vpop.permute.xlu1 %581 }
 0x11f   :  { %v589_v9 = vsel %vm585_vm5, %v582_v8, %v584_v61  ;;  %v588_v10 = vsel %vm585_vm5, %v580_v62, %v582_v8  ;;  %877 = vmatprep.mubr.f32.mxu0 %v8660_v57 }
 0x120   :  { %668 = vmatprep.subr.mxu1 %v589_v9 }
 0x121   :  { %669 = vmatpush1.msra.mxu1 %v588_v10 }
 0x122   :  { %v798_v12 = vpop.permute.xlu0 %797  ;;  %8367 = vmatmul.mubr.msk.f32.vlgmr.msra.gmra.mrb[0].mxu1 %vm212_vm8, %v8365_v1  ;;  %v794_v13 = vpop.permute.xlu1 %793 }
 0x123   :  { %v803_v14 = vsel %vm801_vm4, %v794_v13, %v796_v7  ;;  %v802_v15 = vsel %vm801_vm4, %v792_v60, %v794_v13  ;;  %948 = vmatprep.mubr.f32.mxu1 %v8660_v57  ;;  %v804_v20 = vsel %vm801_vm4, %v796_v7, %v798_v12 }
 0x124   :  { %813 = vmatprep.subr.mxu0 %v803_v14  ;;  %v2008_v14 = vld [vmem:[%s10406_s13] sm:$0xff]  ;;  %s10409_s13 = sld [smem:[#allocation9_spill]] }
 0x125   :  { %814 = vmatpush1.msra.mxu0 %v802_v15  ;;  %v8391_v15 = vld [vmem:[%s10401_s12 + $0x1] ss:$8 sm:$0xf] }
 0x126   :  { %v1163_v17 = vpop.permute.xlu0 %1162  ;;  %8370 = vmatmul.mubr.msk.f32.vlgmr.msra.gmra.mrb[0].mxu0 %vm212_vm8, %v8369_v16  ;;  %v800_v18 = vpop.permute.xlu1 %799  ;;  %964 = vmatprep.subr.mxu0 %v8927_v0  ;;  %v8372_v0 = vld [vmem:[%s10405_s3 + $0x20] sm:$0xff]  ;;  %s10411_s3 = sld [smem:[#allocation11_spill]] }
 0x127   :  { %v805_v19 = vsel %vm801_vm4, %v798_v12, %v800_v18  ;;  %965 = vmatpush1.msra.mxu0 %v8914_v54  ;;  %1028 = vmatprep.mubr.f32.mxu0 %v8660_v57  ;;  %v2098_v18 = vrot.slane %v8391_v15, %v8814_v5 }
 0x128   :  { %884 = vmatprep.subr.mxu1 %v805_v19  ;;  %v2041_v19 = vld [vmem:[%s10401_s12] ss:$8 sm:$0xf] }
 0x129   :  { %885 = vmatpush1.msra.mxu1 %v804_v20  ;;  %v2050_v20 = vrot.slane %v2041_v19, %v8816_v6 }
 0x12a   :  { %v1171_v21 = vpop.permute.xlu0 %1170  ;;  %8371 = vmatmul.mubr.msk.f32.vlgmr.msra.gmra.mrb[0].mxu1 %vm212_vm8, %v8369_v16  ;;  %v1377_v22 = vpop.permute.xlu1 %1376  ;;  %1035 = vmatprep.subr.mxu1 %v8906_v49  ;;  %v2086_v16 = vrot.slane %v8391_v15, %v8812_v4 }
 0x12b   :  { %1036 = vmatpush1.msra.mxu1 %v8936_v11  ;;  %1099 = vmatprep.mubr.f32.mxu1 %v8660_v57 }
 0x12e   :  { %v1165_v54 = vpop.permute.xlu0 %1164  ;;  %8373 = vmatmul.mubr.msk.f32.vlgmr.msra.gmra.mrb[0].mxu0 %vm212_vm8, %v8372_v0  ;;  %v1385_v23 = vpop.permute.xlu1 %1384 }
 0x12f   :  { %1247 = vmatprep.mubr.f32.mxu0 %v8660_v57  ;;  %v1172_v11 = vsel %vm770_vm3, %v1163_v17, %v1165_v54  ;;  %v2090_v17 = vrot.slane %v8391_v15, %v8816_v6 }
 0x132   :  { %v1381_v24 = vpop.permute.xlu0 %1380  ;;  %8374 = vmatmul.mubr.msk.f32.vlgmr.msra.gmra.mrb[0].mxu1 %vm212_vm8, %v8372_v0  ;;  %v1167_v25 = vpop.permute.xlu1 %1166 }
 0x133   :  { %v1173_v49 = vsel %vm770_vm3, %v1165_v54, %v1167_v25  ;;  %1318 = vmatprep.mubr.f32.mxu1 %v8660_v57 }
 0x134   :  { %1183 = vmatprep.subr.mxu0 %v1173_v49  ;;  %v8408_v49 = vld [vmem:[%s10401_s12 + $0x5] ss:$8 sm:$0xf] }
 0x135   :  { %1184 = vmatpush1.msra.mxu0 %v1172_v11  ;;  %v3057_v11 = vrot.slane %v8408_v49, %v8814_v5 }
 0x136   :  { %v1383_v27 = vpop.permute.xlu0 %1382  ;;  %8377 = vmatmul.mubr.msk.f32.vlgmr.msra.gmra.mrb[0].mxu0 %vm212_vm8, %v8376_v26  ;;  %v1169_v28 = vpop.permute.xlu1 %1168 }
 0x137   :  { %v1175_v29 = vsel %vm770_vm3, %v1169_v28, %v1171_v21  ;;  %v1174_v30 = vsel %vm770_vm3, %v1167_v25, %v1169_v28  ;;  %1461 = vmatprep.mubr.f32.mxu0 %v8660_v57  ;;  %v1389_v31 = vsel %vm554_vm2, %v1383_v27, %v1385_v23  ;;  %v1388_v34 = vsel %vm554_vm2, %v1381_v24, %v1383_v27  ;;  %v8401_v23 = vld [vmem:[%s10401_s12 + $0x3] ss:$8 sm:$0xf]  ;;  %v8412_v27 = vld [vmem:[%s10401_s12 + $0x6] ss:$8 sm:$0xf] }
 0x138   :  { %1254 = vmatprep.subr.mxu1 %v1175_v29  ;;  %v2058_v21 = vrot.slane %v2041_v19, %v8814_v5  ;;  %v2688_v25 = vrot.slane %v8401_v23, %v8814_v5  ;;  %v3262_v28 = vrot.slane %v8412_v27, %v8816_v6  ;;  %v3270_v29 = vrot.slane %v8412_v27, %v8814_v5 }
 0x139   :  { %1255 = vmatpush1.msra.mxu1 %v1174_v30  ;;  %v8416_v30 = vld [vmem:[%s10401_s12 + $0x7] ss:$8 sm:$0xf] }
 0x13a   :  { %v1593_v32 = vpop.permute.xlu0 %1592  ;;  %8378 = vmatmul.mubr.msk.f32.vlgmr.msra.gmra.mrb[0].mxu1 %vm212_vm8, %v8376_v26  ;;  %1468 = vmatprep.subr.mxu1 %v1389_v31  ;;  %v1379_v33 = vpop.permute.xlu1 %1378  ;;  %v3049_v26 = vrot.slane %v8408_v49, %v8816_v6  ;;  %v3475_v31 = vrot.slane %v8416_v30, %v8816_v6 }
 0x13b   :  { %1469 = vmatpush1.msra.mxu1 %v1388_v34  ;;  %v1387_v35 = vsel %vm554_vm2, %v1379_v33, %v1381_v24  ;;  %v1386_v36 = vsel %vm554_vm2, %v1377_v22, %v1379_v33  ;;  %1532 = vmatprep.mubr.f32.mxu1 %v8660_v57  ;;  %v8397_v22 = vld [vmem:[%s10401_s12 + $0x2] ss:$8 sm:$0xf]  ;;  %v2680_v24 = vrot.slane %v8401_v23, %v8816_v6  ;;  %v8420_v33 = vld [vmem:[%s10401_s12 + $0x20] ss:$8 sm:$0xf] }
 0x13c   :  { %1397 = vmatprep.subr.mxu0 %v1387_v35  ;;  %v2467_v0 = vrot.slane %v8397_v22, %v8816_v6  ;;  %v2475_v54 = vrot.slane %v8397_v22, %v8814_v5  ;;  %v3684_v34 = vrot.slane %v8420_v33, %v8812_v4  ;;  %v3692_v35 = vrot.slane %v8420_v33, %v8810_v3 }
 0x13d   :  { %1398 = vmatpush1.msra.mxu0 %v1386_v36 }
 0x13e   :  { %v1591_v38 = vpop.permute.xlu0 %1590  ;;  %8381 = vmatmul.mubr.msk.f32.vlgmr.msra.gmra.mrb[0].mxu0 %vm212_vm8, %v8380_v37  ;;  %v1595_v39 = vpop.permute.xlu1 %1594 }
 0x13f   :  { %v1600_v40 = vsel %vm172_vm0, %v1591_v38, %v1593_v32  ;;  %v1601_v41 = vsel %vm172_vm0, %v1593_v32, %v1595_v39  ;;  %1675 = vmatprep.mubr.f32.mxu0 %v8660_v57  ;;  %v3483_v32 = vrot.slane %v8416_v30, %v8814_v5 }
 0x140   :  { %1611 = vmatprep.subr.mxu0 %v1601_v41 }
 0x141   :  { %1612 = vmatpush1.msra.mxu0 %v1600_v40 }
 0x142   :  { %v1599_v42 = vpop.permute.xlu0 %1598  ;;  %8382 = vmatmul.mubr.msk.f32.vlgmr.msra.gmra.mrb[0].mxu1 %vm212_vm8, %v8380_v37  ;;  %v1597_v43 = vpop.permute.xlu1 %1596 }
 0x143   :  { %v1603_v44 = vsel %vm172_vm0, %v1597_v43, %v1599_v42  ;;  %v1602_v45 = vsel %vm172_vm0, %v1595_v39, %v1597_v43  ;;  %1746 = vmatprep.mubr.f32.mxu1 %v8660_v57 }
 0x144   :  { %1682 = vmatprep.subr.mxu1 %v1603_v44 }
 0x145   :  { %1683 = vmatpush1.msra.mxu1 %v1602_v45 }
 0x146   :  { %v1809_v47 = vpop.permute.xlu0 %1808  ;;  %8385 = vmatmul.mubr.msk.f32.vlgmr.msra.gmra.mrb[0].mxu0 %vm212_vm8, %v8384_v46  ;;  %v1807_v48 = vpop.permute.xlu1 %1806 }
 0x147   :  { %v1815_v50 = vsel %vm130_vm1, %v1807_v48, %v1809_v47  ;;  %1889 = vmatprep.mubr.f32.mxu0 %v8660_v57 }
 0x148   :  { %1825 = vmatprep.subr.mxu0 %v1815_v50  ;;  %v2094_v50 = vrot.slane %v8391_v15, %v8810_v3 }
 0x14a   :  { %8386 = vmatmul.mubr.msk.f32.vlgmr.msra.gmra.mrb[0].mxu1 %vm212_vm8, %v8384_v46  ;;  %v1805_v51 = vpop.permute.xlu1 %1804  ;;  %v1811_v55 = vpop.permute.xlu0 %1810 }
 0x14b   :  { %v1814_v52 = vsel %vm130_vm1, %v1805_v51, %v1807_v48  ;;  %1960 = vmatprep.mubr.f32.mxu1 %v8660_v57  ;;  %v1816_v59 = vsel %vm130_vm1, %v1809_v47, %v1811_v55  ;;  %v2046_v51 = vrot.slane %v2041_v19, %v8812_v4 }
 0x14c   :  { %1826 = vmatpush1.msra.mxu0 %v1814_v52  ;;  %v2054_v52 = vrot.slane %v2041_v19, %v8810_v3 }
 0x14e   :  { %8389 = vmatmul.mubr.msk.f32.vlgmr.msra.gmra.mrb[0].mxu0 %vm212_vm8, %v8388_v53  ;;  %v1813_v56 = vpop.permute.xlu1 %1812 }
 0x14f   :  { %v1817_v58 = vsel %vm130_vm1, %v1811_v55, %v1813_v56  ;;  %2212 = vmatprep.mubr.f32.mxu0 %v8660_v57  ;;  %v2471_v55 = vrot.slane %v8397_v22, %v8810_v3  ;;  %v2676_v56 = vrot.slane %v8401_v23, %v8812_v4 }
 0x150   :  { %1896 = vmatprep.subr.mxu1 %v1817_v58  ;;  %v2684_v58 = vrot.slane %v8401_v23, %v8810_v3 }
 0x151   :  { %1897 = vmatpush1.msra.mxu1 %v1816_v59  ;;  %v3045_v59 = vrot.slane %v8408_v49, %v8812_v4 }
 0x152   :  { %8390 = vmatmul.mubr.msk.f32.vlgmr.msra.gmra.mrb[0].mxu1 %vm212_vm8, %v8388_v53  ;;  %v2463_v53 = vrot.slane %v8397_v22, %v8812_v4 }
 0x153   :  { %2283 = vmatprep.mubr.f32.mxu1 %v8660_v57 }
 0x15b   :  { %v1975_v60 = vpop.permute.xlu0 %1974 }
 0x221   :  { %v1891_v61 = vpop.f32.mrb[0].mxu0 }
 0x222   :  { %v1977_v62 = vadd.f32 %v1975_v60, %v1891_v61  ;;  %v1893_v63 = vpop.f32.mrb[1].mxu0  ;;  %v3258_v61 = vrot.slane %v8412_v27, %v8812_v4 }
 0x223   :  { %v1978_v1 = vadd.f32 %v1975_v60, %v1893_v63 }
 0x225   :  { %v1981_v2 = vadd.f32 %v1978_v1, %v1977_v62  ;;  %v1962_v7 = vpop.f32.mrb[0].mxu1 }
 0x226   :  { %v1979_v8 = vadd.f32 %v1975_v60, %v1962_v7  ;;  %v1964_v9 = vpop.f32.mrb[1].mxu1 }
 0x227   :  { %v1980_v10 = vadd.f32 %v1975_v60, %v1964_v9  ;;  %v3053_v60 = vrot.slane %v8408_v49, %v8810_v3  ;;  %v3688_v9 = vrot.slane %v8420_v33, %v8816_v6 }
 0x228   :  { %v1982_v12 = vadd.f32 %v1981_v2, %v1979_v8  ;;  %v3479_v2 = vrot.slane %v8416_v30, %v8810_v3 }
 0x22a   :  { %v1983_v13 = vadd.f32 %v1982_v12, %v1980_v10 }
 0x22c   :  { %1984 = vadd.xlane.f32.xlu1 %v1983_v13  ;;  %v2022_v13 = vpop.permute.xlu0 %2021 }
 0x23d   :  { %2011 = vperm.xlu1 %8635, %v2008_v14  }
 0x241   :  { %2099 = vrot.lane.b32.xlu1 %v2086_v16, %s8652_s30 }
 0x245   :  { %2101 = vrot.lane.b32.xlu1 %v2090_v17, %s8652_s30 }
 0x249   :  { %2105 = vrot.lane.b32.xlu1 %v2098_v18, %s8652_s30 }
 0x24d   :  { %2061 = vrot.lane.b32.xlu1 %v2050_v20, %s10386_s10 }
 0x251   :  { %2065 = vrot.lane.b32.xlu1 %v2058_v21, %s10386_s10 }
 0x255   :  { %2478 = vrot.lane.b32.xlu1 %v2467_v0, %s10384_s29 }
 0x259   :  { %2482 = vrot.lane.b32.xlu1 %v2475_v54, %s10384_s29 }
 0x25d   :  { %2691 = vrot.lane.b32.xlu1 %v2680_v24, %s10382_s11 }
 0x261   :  { %2695 = vrot.lane.b32.xlu1 %v2688_v25, %s10382_s11 }
 0x265   :  { %3060 = vrot.lane.b32.xlu1 %v3049_v26, %s10380_s8 }
 0x269   :  { %3064 = vrot.lane.b32.xlu1 %v3057_v11, %s10380_s8 }
 0x26d   :  { %3273 = vrot.lane.b32.xlu1 %v3262_v28, %s10378_s9 }
 0x271   :  { %3277 = vrot.lane.b32.xlu1 %v3270_v29, %s10378_s9 }
 0x275   :  { %3486 = vrot.lane.b32.xlu1 %v3475_v31, %s10407_s4 }
 0x279   :  { %3490 = vrot.lane.b32.xlu1 %v3483_v32, %s10407_s4 }
 0x27d   :  { %3697 = vrot.lane.b32.xlu1 %v3684_v34, %s10408_s7 }
 0x281   :  { %3701 = vrot.lane.b32.xlu1 %v3692_v35, %s10408_s7 }
 0x2b9   :  { %v1985_v36 = vpop.xlane.xlu1 %1984 }
 0x2ba   :  { %v1987_v37 = vmul.f32 0.001953125, %v1985_v36 }
 0x2bc   :  { %v1988_v38 = vsub.f32 %v1977_v62, %v1987_v37  ;;  %v1989_v39 = vsub.f32 %v1978_v1, %v1987_v37  ;;  %v9187_v40 = vsub.f32 %v1979_v8, %v1987_v37  ;;  %v1991_v41 = vsub.f32 %v1980_v10, %v1987_v37 }
 0x2bd   :  { %v3266_v62 = vrot.slane %v8412_v27, %v8810_v3  ;;  %v2012_v63 = vpop.permute.xlu1 %2011  ;;  %v3471_v1 = vrot.slane %v8416_v30, %v8812_v4  ;;  %v3696_v10 = vrot.slane %v8420_v33, %v8814_v5 }
 0x2be   :  { %v1992_v42 = vmul.f32 %v1988_v38, %v1988_v38  ;;  %v1993_v43 = vmul.f32 %v1989_v39, %v1989_v39  ;;  %v1994_v44 = vmul.f32 %v9187_v40, %v9187_v40  ;;  %v1995_v46 = vmul.f32 %v1991_v41, %v1991_v41 }
 0x2c0   :  { %v1996_v45 = vadd.f32 %v1993_v43, %v1992_v42 }
 0x2c1   :  { %v2100_v7 = vpop.permute.xlu1 %2099 }
 0x2c2   :  { %v1997_v47 = vadd.f32 %v1996_v45, %v1994_v44  ;;  %v2115_v8 = vmul.f32 0.0, %v2100_v7 }
 0x2c4   :  { %v1998_v48 = vadd.f32 %v1997_v47, %v1995_v46 }
 0x2c5   :  { %v2102_v12 = vpop.permute.xlu1 %2101 }
 0x2c6   :  { %1999 = vadd.xlane.f32.xlu0 %v1998_v48 }
 0x2c9   :  { %v2106_v14 = vpop.permute.xlu1 %2105 }
 0x2cd   :  { %v2062_v19 = vpop.permute.xlu1 %2061 }
 0x2d1   :  { %v2066_v22 = vpop.permute.xlu1 %2065 }
 0x2d5   :  { %v2479_v26 = vpop.permute.xlu1 %2478 }
 0x2d9   :  { %v2483_v37 = vpop.permute.xlu1 %2482 }
 0x2dc   :  { %2103 = vrot.lane.b32.xlu0 %v2094_v50, %s8652_s30 }
 0x2dd   :  { %v2692_v45 = vpop.permute.xlu1 %2691 }
 0x2e0   :  { %2059 = vrot.lane.b32.xlu0 %v2046_v51, %s10386_s10 }
 0x2e4   :  { %2063 = vrot.lane.b32.xlu0 %v2054_v52, %s10386_s10 }
 0x2e8   :  { %2476 = vrot.lane.b32.xlu0 %v2463_v53, %s10384_s29 }
 0x2ec   :  { %2480 = vrot.lane.b32.xlu0 %v2471_v55, %s10384_s29 }
 0x2f0   :  { %2689 = vrot.lane.b32.xlu0 %v2676_v56, %s10382_s11 }
 0x2f4   :  { %2693 = vrot.lane.b32.xlu0 %v2684_v58, %s10382_s11  ;;  %v2696_v58 = vpop.permute.xlu1 %2695 }
 0x2f8   :  { %3058 = vrot.lane.b32.xlu0 %v3045_v59, %s10380_s8 }
 0x2fc   :  { %3062 = vrot.lane.b32.xlu0 %v3053_v60, %s10380_s8 }
 0x300   :  { %3271 = vrot.lane.b32.xlu0 %v3258_v61, %s10378_s9 }
 0x304   :  { %3275 = vrot.lane.b32.xlu0 %v3266_v62, %s10378_s9 }
 0x308   :  { %3484 = vrot.lane.b32.xlu0 %v3471_v1, %s10407_s4  ;;  %v3061_v1 = vpop.permute.xlu1 %3060 }
 0x30c   :  { %3488 = vrot.lane.b32.xlu0 %v3479_v2, %s10407_s4 }
 0x310   :  { %2127 = vrot.lane.b32.xlu0 %v2115_v8, %s10407_s4 }
 0x314   :  { %3699 = vrot.lane.b32.xlu0 %v3688_v9, %s10408_s7 }
 0x318   :  { %3703 = vrot.lane.b32.xlu0 %v3696_v10, %s10408_s7 }
 0x353   :  { %v2000_v15 = vpop.xlane.xlu0 %1999 }
 0x354   :  { %v2001_v16 = vmul.f32 0.001953125, %v2000_v15 }
 0x356   :  { %v2002_v17 = vadd.f32 1e-05, %v2001_v16 }
 0x357   :  { %v2104_v18 = vpop.permute.xlu0 %2103 }
 0x358   :  { %8636 = vrsqrt.f32 %v2002_v17  ;;  %v2108_v46 = vsel %vm172_vm0, %v2102_v12, %v2104_v18  ;;  %v2109_v51 = vsel %vm172_vm0, %v2104_v18, %v2106_v14 }
 0x35b   :  { %v2060_v20 = vpop.permute.xlu0 %2059 }
 0x35c   :  { %v2075_v21 = vmul.f32 0.0, %v2060_v20  ;;  %v2067_v59 = vsel %vm130_vm1, %v2060_v20, %v2062_v19 }
 0x35e   :  { %2295 = vrot.lane.b32.xlu1 %v2075_v21, %s10408_s7 }
 0x35f   :  { %v2064_v0 = vpop.permute.xlu0 %2063 }
 0x360   :  { %v2068_v52 = vsel %vm130_vm1, %v2062_v19, %v2064_v0  ;;  %v2069_v60 = vsel %vm130_vm1, %v2064_v0, %v2066_v22 }
 0x362   :  { %v8637_v54 = vpop.eup %8636 }
 0x363   :  { %v2004_v23 = vmul.f32 %v8637_v54, %v1988_v38  ;;  %v2005_v24 = vmul.f32 %v8637_v54, %v1989_v39  ;;  %v2007_v25 = vmul.f32 %v8637_v54, %v1991_v41  ;;  %v2477_v49 = vpop.permute.xlu0 %2476  ;;  %v2006_v11 = vmul.f32 %v8637_v54, %v9187_v40 }
 0x364   :  { %v2492_v27 = vmul.f32 0.0, %v2477_v49  ;;  %v2107_v39 = vsel %vm172_vm0, %v2100_v7, %v2102_v12  ;;  %v2484_v2 = vsel %vm554_vm2, %v2477_v49, %v2479_v26 }
 0x365   :  { %v2017_v28 = vmul.f32 %v2012_v63, %v2007_v25  ;;  %v2015_v29 = vmul.f32 %v2012_v63, %v2005_v24  ;;  %v2014_v30 = vmul.f32 %v2012_v63, %v2004_v23  ;;  %v2016_v33 = vmul.f32 %v2012_v63, %v2006_v11 }
 0x366   :  { %2504 = vrot.lane.b32.xlu0 %v2492_v27, %s10378_s9 }
 0x367   :  { %v2024_v31 = vadd.f32 %v2022_v13, %v2014_v30  ;;  %v2481_v32 = vpop.permute.xlu0 %2480  ;;  %v2025_v34 = vadd.f32 %v2022_v13, %v2015_v29  ;;  %v2027_v36 = vadd.f32 %v2022_v13, %v2017_v28  ;;  %v2026_v41 = vadd.f32 %v2022_v13, %v2016_v33 }
 0x368   :  { %v2485_v9 = vsel %vm554_vm2, %v2479_v26, %v2481_v32  ;;  %v2486_v16 = vsel %vm554_vm2, %v2481_v32, %v2483_v37 }
 0x369   :  { %v9225_v35 = vmax.f32 %v2024_v31, 0.0  ;;  %v9228_v42 = vmax.f32 %v2025_v34, 0.0  ;;  %v9231_v44 = vmax.f32 %v2027_v36, 0.0  ;;  %v9236_v47 = vmax.f32 %v2026_v41, 0.0 }
 0x36b   :  { %v2690_v38 = vpop.permute.xlu0 %2689  ;;  %v2116_v43 = vmul.f32 %v2107_v39, %v9225_v35  ;;  %v2117_v48 = vmul.f32 %v2108_v46, %v9228_v42  ;;  %v2119_v50 = vmul.f32 %v2106_v14, %v9231_v44  ;;  %v2118_v53 = vmul.f32 %v2109_v51, %v9236_v47  ;;  %v3065_v14 = vpop.permute.xlu1 %3064 }
 0x36c   :  { %v2705_v40 = vmul.f32 0.0, %v2690_v38  ;;  %v2077_v55 = vmul.f32 %v2068_v52, %v9228_v42  ;;  %v2076_v61 = vmul.f32 %v2067_v59, %v9225_v35  ;;  %v2078_v62 = vmul.f32 %v2069_v60, %v9236_v47 }
 0x36d   :  { %2129 = vrot.lane.b32.xlu0 %v2116_v43, %s10407_s4  ;;  %v2493_v7 = vmul.f32 %v2484_v2, %v9225_v35  ;;  %v2079_v8 = vmul.f32 %v2066_v22, %v9231_v44  ;;  %v2494_v10 = vmul.f32 %v2485_v9, %v9228_v42  ;;  %v2496_v13 = vmul.f32 %v2483_v37, %v9231_v44 }
 0x36e   :  { %2717 = vrot.lane.b32.xlu1 %v2705_v40, %s10380_s8  ;;  %v2495_v17 = vmul.f32 %v2486_v16, %v9236_v47  ;;  %v2697_v19 = vsel %vm770_vm3, %v2690_v38, %v2692_v45  ;;  %v3078_v23 = vmul.f32 0.0, %v3065_v14  ;;  %v2709_v25 = vmul.f32 %v2696_v58, %v9231_v44 }
 0x36f   :  { %v2694_v56 = vpop.permute.xlu0 %2693  ;;  %v3274_v22 = vpop.permute.xlu1 %3273  ;;  %v2706_v0 = vmul.f32 %v2697_v19, %v9225_v35 }
 0x370   :  { %v2698_v15 = vsel %vm770_vm3, %v2692_v45, %v2694_v56  ;;  %v2699_v20 = vsel %vm770_vm3, %v2694_v56, %v2696_v58 }
 0x371   :  { %2135 = vrot.lane.b32.xlu0 %v2119_v50, %s10407_s4  ;;  %v2707_v18 = vmul.f32 %v2698_v15, %v9228_v42  ;;  %v2708_v54 = vmul.f32 %v2699_v20, %v9236_v47 }
 0x372   :  { %2131 = vrot.lane.b32.xlu1 %v2117_v48, %s10407_s4 }
 0x373   :  { %v3059_v63 = vpop.permute.xlu0 %3058  ;;  %v3278_v49 = vpop.permute.xlu1 %3277 }
 0x374   :  { %v3066_v26 = vsel %vm801_vm4, %v3059_v63, %v3061_v1  ;;  %v3291_v11 = vmul.f32 0.0, %v3278_v49  ;;  %v3074_v30 = vmul.f32 %v3059_v63, %v9225_v35 }
 0x375   :  { %2299 = vrot.lane.b32.xlu0 %v2077_v55, %s10408_s7  ;;  %v3075_v27 = vmul.f32 %v3066_v26, %v9228_v42 }
 0x376   :  { %2133 = vrot.lane.b32.xlu1 %v2118_v53, %s10407_s4 }
 0x377   :  { %v3063_v12 = vpop.permute.xlu0 %3062  ;;  %v3487_v34 = vpop.permute.xlu1 %3486 }
 0x378   :  { %v3067_v28 = vsel %vm801_vm4, %v3061_v1, %v3063_v12  ;;  %v3068_v32 = vsel %vm801_vm4, %v3063_v12, %v3065_v14  ;;  %v3892_v14 = vld [vmem:[%s10409_s13] sm:$0xff] }
 0x379   :  { %2301 = vrot.lane.b32.xlu0 %v2078_v62, %s10408_s7  ;;  %v3076_v31 = vmul.f32 %v3067_v28, %v9236_v47  ;;  %v3077_v36 = vmul.f32 %v3068_v32, %v9231_v44 }
 0x37a   :  { %2297 = vrot.lane.b32.xlu1 %v2076_v61, %s10408_s7 }
 0x37b   :  { %v3272_v21 = vpop.permute.xlu0 %3271  ;;  %v3491_v40 = vpop.permute.xlu1 %3490 }
 0x37c   :  { %v3279_v39 = vsel %vm585_vm5, %v3272_v21, %v3274_v22  ;;  %v3287_v50 = vmul.f32 %v3272_v21, %v9225_v35  ;;  %v3504_v60 = vmul.f32 0.0, %v3491_v40 }
 0x37d   :  { %2506 = vrot.lane.b32.xlu0 %v2493_v7, %s10378_s9  ;;  %v3288_v43 = vmul.f32 %v3279_v39, %v9228_v42 }
 0x37e   :  { %2303 = vrot.lane.b32.xlu1 %v2079_v8, %s10408_s7 }
 0x37f   :  { %v3276_v24 = vpop.permute.xlu0 %3275  ;;  %v3698_v53 = vpop.permute.xlu1 %3697 }
 0x380   :  { %v3280_v33 = vsel %vm585_vm5, %v3274_v22, %v3276_v24  ;;  %v3281_v41 = vsel %vm585_vm5, %v3276_v24, %v3278_v49 }
 0x381   :  { %2512 = vrot.lane.b32.xlu0 %v2496_v13, %s10378_s9  ;;  %v3289_v37 = vmul.f32 %v3280_v33, %v9236_v47  ;;  %v3290_v45 = vmul.f32 %v3281_v41, %v9231_v44 }
 0x382   :  { %2508 = vrot.lane.b32.xlu1 %v2494_v10, %s10378_s9  ;;  %v3713_v10 = vmul.f32 %v3698_v53, %v9225_v35 }
 0x383   :  { %v3485_v29 = vpop.permute.xlu0 %3484  ;;  %v3702_v61 = vpop.permute.xlu1 %3701 }
 0x384   :  { %v3492_v46 = vsel %vm203_vm6, %v3485_v29, %v3487_v34  ;;  %v3500_v55 = vmul.f32 %v3485_v29, %v9225_v35  ;;  %v2080_v29 = vld [vmem:[%s10411_s3] sm:$0xff] }
 0x385   :  { %2721 = vrot.lane.b32.xlu0 %v2707_v18, %s10380_s8  ;;  %v3501_v51 = vmul.f32 %v3492_v46, %v9228_v42 }
 0x386   :  { %2510 = vrot.lane.b32.xlu1 %v2495_v17, %s10378_s9  ;;  %s10410_s9 = sld [smem:[#allocation10_spill]] }
 0x387   :  { %v3489_v38 = vpop.permute.xlu0 %3488 }
 0x388   :  { %v3493_v52 = vsel %vm203_vm6, %v3487_v34, %v3489_v38  ;;  %v3494_v59 = vsel %vm203_vm6, %v3489_v38, %v3491_v40  ;;  %v8398_v38 = vld [vmem:[%s10411_s3 + $0x10] sm:$0xff] }
 0x389   :  { %2723 = vrot.lane.b32.xlu0 %v2708_v54, %s10380_s8  ;;  %v3502_v56 = vmul.f32 %v3493_v52, %v9236_v47  ;;  %v3503_v62 = vmul.f32 %v3494_v59, %v9231_v44  ;;  %v8402_v52 = vld [vmem:[%s10411_s3 + $0x18] sm:$0xff] }
 0x38a   :  { %2719 = vrot.lane.b32.xlu1 %v2706_v0, %s10380_s8  ;;  %v8392_v0 = vld [vmem:[%s10411_s3 + $0x8] sm:$0xff] }
 0x38b   :  { %v2128_v48 = vpop.permute.xlu0 %2127 }
 0x38c   :  { %v3949_v15 = vld [vmem:[%s10410_s9] sm:$0xff] }
 0x38d   :  { %3094 = vrot.lane.b32.xlu0 %v3078_v23, %s10382_s11 }
 0x38e   :  { %2725 = vrot.lane.b32.xlu1 %v2709_v25, %s10380_s8  ;;  %s10414_s8 = sld [smem:[#allocation14_spill]] }
 0x38f   :  { %v3700_v58 = vpop.permute.xlu0 %3699 }
 0x390   :  { %v3705_v63 = vsel %vm373_vm7, %v3698_v53, %v3700_v58  ;;  %v3706_v1 = vsel %vm373_vm7, %v3700_v58, %v3702_v61 }
 0x391   :  { %3088 = vrot.lane.b32.xlu0 %v3075_v27, %s10382_s11  ;;  %v3714_v7 = vmul.f32 %v3705_v63, %v9228_v42  ;;  %v3715_v8 = vmul.f32 %v3706_v1, %v9236_v47 }
 0x392   :  { %3307 = vrot.lane.b32.xlu1 %v3291_v11, %s10384_s29 }
 0x393   :  { %v3704_v2 = vpop.permute.xlu0 %3703 }
 0x394   :  { %v3707_v9 = vsel %vm373_vm7, %v3702_v61, %v3704_v2  ;;  %v3717_v13 = vmul.f32 0.0, %v3704_v2 }
 0x395   :  { %3086 = vrot.lane.b32.xlu0 %v3074_v30, %s10382_s11  ;;  %v3716_v12 = vmul.f32 %v3707_v9, %v9231_v44 }
 0x396   :  { %3090 = vrot.lane.b32.xlu1 %v3076_v31, %s10382_s11 }
 0x399   :  { %3303 = vrot.lane.b32.xlu0 %v3289_v37, %s10384_s29 }
 0x39a   :  { %3092 = vrot.lane.b32.xlu1 %v3077_v36, %s10382_s11  ;;  %s10412_s11 = sld [smem:[#allocation12_spill]] }
 0x39d   :  { %3305 = vrot.lane.b32.xlu0 %v3290_v45, %s10384_s29 }
 0x39e   :  { %3301 = vrot.lane.b32.xlu1 %v3288_v43, %s10384_s29 }
 0x3a1   :  { %3514 = vrot.lane.b32.xlu0 %v3501_v51, %s8652_s30 }
 0x3a2   :  { %3299 = vrot.lane.b32.xlu1 %v3287_v50, %s10384_s29 }
 0x3a5   :  { %3512 = vrot.lane.b32.xlu0 %v3500_v55, %s8652_s30 }
 0x3a6   :  { %3516 = vrot.lane.b32.xlu1 %v3502_v56, %s8652_s30 }
 0x3a9   :  { %3520 = vrot.lane.b32.xlu0 %v3504_v60, %s8652_s30 }
 0x3aa   :  { %3518 = vrot.lane.b32.xlu1 %v3503_v62, %s8652_s30 }
 0x3ad   :  { %3729 = vrot.lane.b32.xlu0 %v3715_v8, %s10386_s10 }
 0x3ae   :  { %3727 = vrot.lane.b32.xlu1 %v3714_v7, %s10386_s10  ;;  %v8409_v7 = vld [vmem:[%s10411_s3 + $0x28] sm:$0xff] }
 0x3b1   :  { %3731 = vrot.lane.b32.xlu0 %v3716_v12, %s10386_s10 }
 0x3b2   :  { %3725 = vrot.lane.b32.xlu1 %v3713_v10, %s10386_s10 }
 0x3b5   :  { %3895 = vperm.xlu0 %8634, %v3892_v14  }
 0x3b6   :  { %3733 = vrot.lane.b32.xlu1 %v3717_v13, %s10386_s10  ;;  %s10415_s10 = sld [smem:[#allocation15_spill]] }
 0x3ba   :  { %3952 = vperm.xlu1 %8635, %v3949_v15  }
 0x3d0   :  { %v2296_v16 = vpop.permute.xlu1 %2295 }
 0x3d8   :  { %v2505_v17 = vpop.permute.xlu0 %2504 }
 0x3df   :  { %v2130_v18 = vpop.permute.xlu0 %2129 }
 0x3e0   :  { %v2718_v19 = vpop.permute.xlu1 %2717  ;;  %v2137_v54 = vsel %vm203_vm6, %v2128_v48, %v2130_v18 }
 0x3e3   :  { %v2136_v20 = vpop.permute.xlu0 %2135 }
 0x3e4   :  { %v2132_v21 = vpop.permute.xlu1 %2131 }
 0x3e5   :  { %v2138_v22 = vsel %vm203_vm6, %v2130_v18, %v2132_v21 }
 0x3e6   :  { %2148 = vmatprep.subr.mxu0 %v2138_v22 }
 0x3e7   :  { %2149 = vmatpush1.msra.mxu0 %v2137_v54  ;;  %v2300_v23 = vpop.permute.xlu0 %2299 }
 0x3e8   :  { %8393 = vmatmul.mubr.msk.f32.vlgmr.msra.gmra.mrb[2].mxu0 %vm212_vm8, %v8392_v0  ;;  %v2134_v24 = vpop.permute.xlu1 %2133 }
 0x3e9   :  { %v2140_v25 = vsel %vm203_vm6, %v2134_v24, %v2136_v20  ;;  %v2139_v49 = vsel %vm203_vm6, %v2132_v21, %v2134_v24  ;;  %2380 = vmatprep.mubr.f32.mxu0 %v8660_v57  ;;  %v8417_v24 = vld [vmem:[%s10411_s3 + $0x38] sm:$0xff] }
 0x3ea   :  { %2219 = vmatprep.subr.mxu1 %v2140_v25 }
 0x3eb   :  { %2220 = vmatpush1.msra.mxu1 %v2139_v49  ;;  %v2302_v26 = vpop.permute.xlu0 %2301 }
 0x3ec   :  { %8394 = vmatmul.mubr.msk.f32.vlgmr.msra.gmra.mrb[2].mxu1 %vm212_vm8, %v8392_v0  ;;  %v2298_v11 = vpop.permute.xlu1 %2297  ;;  %v2307_v33 = vsel %vm373_vm7, %v2300_v23, %v2302_v26 }
 0x3ed   :  { %v2306_v27 = vsel %vm373_vm7, %v2298_v11, %v2300_v23  ;;  %v2305_v28 = vsel %vm373_vm7, %v2296_v16, %v2298_v11  ;;  %2451 = vmatprep.mubr.f32.mxu1 %v8660_v57 }
 0x3ee   :  { %2316 = vmatprep.subr.mxu0 %v2306_v27 }
 0x3ef   :  { %2317 = vmatpush1.msra.mxu0 %v2305_v28  ;;  %v2507_v30 = vpop.permute.xlu0 %2506  ;;  %v8421_v28 = vld [vmem:[%s10411_s3 + $0x40] sm:$0xff] }
 0x3f0   :  { %8395 = vmatmul.mubr.msk.f32.vlgmr.msra.gmra.mrb[2].mxu0 %vm212_vm8, %v2080_v29  ;;  %v2304_v31 = vpop.permute.xlu1 %2303  ;;  %v2514_v39 = vsel %vm585_vm5, %v2505_v17, %v2507_v30  ;;  %v8413_v17 = vld [vmem:[%s10411_s3 + $0x30] sm:$0xff] }
 0x3f1   :  { %v2308_v32 = vsel %vm373_vm7, %v2302_v26, %v2304_v31  ;;  %2589 = vmatprep.mubr.f32.mxu0 %v8660_v57 }
 0x3f2   :  { %2387 = vmatprep.subr.mxu1 %v2308_v32 }
 0x3f3   :  { %2388 = vmatpush1.msra.mxu1 %v2307_v33  ;;  %v2513_v34 = vpop.permute.xlu0 %2512  ;;  %v8649_v33 = vld [vmem:[%s10402_s0] sm:$0xff] }
 0x3f4   :  { %8396 = vmatmul.mubr.msk.f32.vlgmr.msra.gmra.mrb[2].mxu1 %vm212_vm8, %v2080_v29  ;;  %v2509_v36 = vpop.permute.xlu1 %2508 }
 0x3f5   :  { %v2515_v37 = vsel %vm585_vm5, %v2507_v30, %v2509_v36  ;;  %2660 = vmatprep.mubr.f32.mxu1 %v8660_v57  ;;  %v8648_v30 = vld [vmem:[%s10402_s0 + $0x8] sm:$0xff] }
 0x3f6   :  { %2525 = vmatprep.subr.mxu0 %v2515_v37  ;;  %v8650_v37 = vld [vmem:[%s10402_s0 + $0x18] sm:$0xff] }
 0x3f7   :  { %2526 = vmatpush1.msra.mxu0 %v2514_v39  ;;  %v2722_v41 = vpop.permute.xlu0 %2721 }
 0x3f8   :  { %8399 = vmatmul.mubr.msk.f32.vlgmr.msra.gmra.mrb[2].mxu0 %vm212_vm8, %v8398_v38  ;;  %v2511_v40 = vpop.permute.xlu1 %2510 }
 0x3f9   :  { %v2517_v43 = vsel %vm585_vm5, %v2511_v40, %v2513_v34  ;;  %v2516_v45 = vsel %vm585_vm5, %v2509_v36, %v2511_v40  ;;  %2802 = vmatprep.mubr.f32.mxu0 %v8660_v57  ;;  %v3948_v34 = vld [vmem:[%s10412_s11] sm:$0xff]  ;;  %s10417_s11 = smov 113  }
 0x3fa   :  { %2596 = vmatprep.subr.mxu1 %v2517_v43 }
 0x3fb   :  { %2597 = vmatpush1.msra.mxu1 %v2516_v45  ;;  %v2724_v46 = vpop.permute.xlu0 %2723 }
 0x3fc   :  { %8400 = vmatmul.mubr.msk.f32.vlgmr.msra.gmra.mrb[2].mxu1 %vm212_vm8, %v8398_v38  ;;  %v2720_v48 = vpop.permute.xlu1 %2719  ;;  %v2729_v58 = vsel %vm801_vm4, %v2722_v41, %v2724_v46  ;;  %v8651_v38 = vld [vmem:[%s10402_s0 + $0x10] sm:$0xff] }
 0x3fd   :  { %v2728_v50 = vsel %vm801_vm4, %v2720_v48, %v2722_v41  ;;  %v2727_v51 = vsel %vm801_vm4, %v2718_v19, %v2720_v48  ;;  %2873 = vmatprep.mubr.f32.mxu1 %v8660_v57 }
 0x3fe   :  { %2738 = vmatprep.subr.mxu0 %v2728_v50 }
 0x3ff   :  { %2739 = vmatpush1.msra.mxu0 %v2727_v51  ;;  %v3095_v53 = vpop.permute.xlu0 %3094 }
 0x400   :  { %8403 = vmatmul.mubr.msk.f32.vlgmr.msra.gmra.mrb[2].mxu0 %vm212_vm8, %v8402_v52  ;;  %2889 = vmatprep.subr.mxu0 %v9228_v42  ;;  %v2726_v55 = vpop.permute.xlu1 %2725 }
 0x401   :  { %2890 = vmatpush1.msra.mxu0 %v9225_v35  ;;  %v2730_v56 = vsel %vm801_vm4, %v2724_v46, %v2726_v55  ;;  %2953 = vmatprep.mubr.f32.mxu0 %v8660_v57  ;;  %v8405_v35 = vld [vmem:[%s10411_s3 + $0x20] sm:$0xff]  ;;  %s10413_s3 = sld [smem:[#allocation13_spill]] }
 0x402   :  { %2809 = vmatprep.subr.mxu1 %v2730_v56 }
 0x403   :  { %2810 = vmatpush1.msra.mxu1 %v2729_v58  ;;  %v3089_v59 = vpop.permute.xlu0 %3088 }
 0x404   :  { %8404 = vmatmul.mubr.msk.f32.vlgmr.msra.gmra.mrb[2].mxu1 %vm212_vm8, %v8402_v52  ;;  %2960 = vmatprep.subr.mxu1 %v9231_v44  ;;  %v3308_v60 = vpop.permute.xlu1 %3307 }
 0x405   :  { %2961 = vmatpush1.msra.mxu1 %v9236_v47  ;;  %3024 = vmatprep.mubr.f32.mxu1 %v8660_v57 }
 0x407   :  { %v3087_v42 = vpop.permute.xlu0 %3086 }
 0x408   :  { %8406 = vmatmul.mubr.msk.f32.vlgmr.msra.gmra.mrb[2].mxu0 %vm212_vm8, %v8405_v35  ;;  %v3091_v61 = vpop.permute.xlu1 %3090  ;;  %v3096_v63 = vsel %vm770_vm3, %v3087_v42, %v3089_v59 }
 0x409   :  { %v3097_v62 = vsel %vm770_vm3, %v3089_v59, %v3091_v61  ;;  %3171 = vmatprep.mubr.f32.mxu0 %v8660_v57 }
 0x40a   :  { %3107 = vmatprep.subr.mxu0 %v3097_v62 }
 0x40b   :  { %3108 = vmatpush1.msra.mxu0 %v3096_v63  ;;  %v3304_v44 = vpop.permute.xlu0 %3303 }
 0x40c   :  { %8407 = vmatmul.mubr.msk.f32.vlgmr.msra.gmra.mrb[2].mxu1 %vm212_vm8, %v8405_v35  ;;  %v3093_v47 = vpop.permute.xlu1 %3092 }
 0x40d   :  { %v3099_v1 = vsel %vm770_vm3, %v3093_v47, %v3095_v53  ;;  %v3098_v2 = vsel %vm770_vm3, %v3091_v61, %v3093_v47  ;;  %3242 = vmatprep.mubr.f32.mxu1 %v8660_v57 }
 0x40e   :  { %3178 = vmatprep.subr.mxu1 %v3099_v1 }
 0x40f   :  { %3179 = vmatpush1.msra.mxu1 %v3098_v2  ;;  %v3306_v8 = vpop.permute.xlu0 %3305  ;;  %v3928_v2 = vld [vmem:[%s10413_s3] sm:$0xff]  ;;  %s10420_s3 = smov 15  }
 0x410   :  { %8410 = vmatmul.mubr.msk.f32.vlgmr.msra.gmra.mrb[2].mxu0 %vm212_vm8, %v8409_v7  ;;  %v3302_v9 = vpop.permute.xlu1 %3301  ;;  %v3312_v10 = vsel %vm554_vm2, %v3306_v8, %v3308_v60  ;;  %v3311_v14 = vsel %vm554_vm2, %v3304_v44, %v3306_v8  ;;  %v9483_v8 = vld [vmem:[%s10401_s12 + $0x1] ss:$8 sm:$0xf] }
 0x411   :  { %v3310_v12 = vsel %vm554_vm2, %v3302_v9, %v3304_v44  ;;  %3384 = vmatprep.mubr.f32.mxu0 %v8660_v57  ;;  %3391 = vmatprep.subr.mxu1 %v3312_v10  ;;  %v4208_v10 = vrot.slane %v9483_v8, %v8812_v4 }
 0x412   :  { %3320 = vmatprep.subr.mxu0 %v3310_v12  ;;  %v4136_v12 = vld [vmem:[%s10354_s15] sm:$0xff]  ;;  %s10416_s15 = smov 111  }
 0x413   :  { %v3515_v13 = vpop.permute.xlu0 %3514 }
 0x414   :  { %8411 = vmatmul.mubr.msk.f32.vlgmr.msra.gmra.mrb[2].mxu1 %vm212_vm8, %v8409_v7  ;;  %v3300_v15 = vpop.permute.xlu1 %3299  ;;  %v4126_v7 = vld [vmem:[%s10414_s8] sm:$0xff] }
 0x415   :  { %3392 = vmatpush1.msra.mxu1 %v3311_v14  ;;  %v3309_v16 = vsel %vm554_vm2, %v3300_v15, %v3302_v9  ;;  %3455 = vmatprep.mubr.f32.mxu1 %v8660_v57  ;;  %v3938_v9 = vld [vmem:[%s10415_s10] sm:$0xff]  ;;  %v4220_v14 = vrot.slane %v9483_v8, %v8814_v5 }
 0x416   :  { %3321 = vmatpush1.msra.mxu0 %v3309_v16  ;;  %v9502_v15 = vld [vmem:[%s10401_s12] ss:$8 sm:$0xf] }
 0x417   :  { %v3513_v18 = vpop.permute.xlu0 %3512  ;;  %v4172_v16 = vrot.slane %v9502_v15, %v8816_v6 }
 0x418   :  { %8414 = vmatmul.mubr.msk.f32.vlgmr.msra.gmra.mrb[2].mxu0 %vm212_vm8, %v8413_v17  ;;  %v3517_v19 = vpop.permute.xlu1 %3516  ;;  %v3522_v21 = vsel %vm172_vm0, %v3513_v18, %v3515_v13  ;;  %v9513_v18 = vld [vmem:[%s10401_s12 + $0x2] ss:$8 sm:$0xf] }
 0x419   :  { %v3523_v20 = vsel %vm172_vm0, %v3515_v13, %v3517_v19  ;;  %3597 = vmatprep.mubr.f32.mxu0 %v8660_v57  ;;  %v4212_v13 = vrot.slane %v9483_v8, %v8816_v6 }
 0x41a   :  { %3533 = vmatprep.subr.mxu0 %v3523_v20  ;;  %v4597_v20 = vrot.slane %v9513_v18, %v8814_v5 }
 0x41b   :  { %3534 = vmatpush1.msra.mxu0 %v3522_v21  ;;  %v3521_v22 = vpop.permute.xlu0 %3520  ;;  %v9524_v21 = vld [vmem:[%s10401_s12 + $0x3] ss:$8 sm:$0xf] }
 0x41c   :  { %8415 = vmatmul.mubr.msk.f32.vlgmr.msra.gmra.mrb[2].mxu1 %vm212_vm8, %v8413_v17  ;;  %v3519_v0 = vpop.permute.xlu1 %3518  ;;  %v4180_v17 = vrot.slane %v9502_v15, %v8814_v5 }
 0x41d   :  { %v3525_v54 = vsel %vm172_vm0, %v3519_v0, %v3521_v22  ;;  %v3524_v23 = vsel %vm172_vm0, %v3517_v19, %v3519_v0  ;;  %3668 = vmatprep.mubr.f32.mxu1 %v8660_v57  ;;  %v4589_v19 = vrot.slane %v9513_v18, %v8816_v6  ;;  %v4802_v22 = vrot.slane %v9524_v21, %v8816_v6 }
 0x41e   :  { %3604 = vmatprep.subr.mxu1 %v3525_v54  ;;  %v4810_v0 = vrot.slane %v9524_v21, %v8814_v5  ;;  %v9535_v54 = vld [vmem:[%s10401_s12 + $0x5] ss:$8 sm:$0xf] }
 0x41f   :  { %3605 = vmatpush1.msra.mxu1 %v3524_v23  ;;  %v3730_v25 = vpop.permute.xlu0 %3729  ;;  %v5171_v23 = vrot.slane %v9535_v54, %v8816_v6 }
 0x420   :  { %8418 = vmatmul.mubr.msk.f32.vlgmr.msra.gmra.mrb[2].mxu0 %vm212_vm8, %v8417_v24  ;;  %v3728_v49 = vpop.permute.xlu1 %3727 }
 0x421   :  { %v3736_v26 = vsel %vm130_vm1, %v3728_v49, %v3730_v25  ;;  %3810 = vmatprep.mubr.f32.mxu0 %v8660_v57 }
 0x422   :  { %3746 = vmatprep.subr.mxu0 %v3736_v26 }
 0x423   :  { %v3732_v29 = vpop.permute.xlu0 %3731 }
 0x424   :  { %8419 = vmatmul.mubr.msk.f32.vlgmr.msra.gmra.mrb[2].mxu1 %vm212_vm8, %v8417_v24  ;;  %v3726_v11 = vpop.permute.xlu1 %3725  ;;  %v3737_v36 = vsel %vm130_vm1, %v3730_v25, %v3732_v29  ;;  %v5179_v24 = vrot.slane %v9535_v54, %v8814_v5  ;;  %v9546_v25 = vld [vmem:[%s10401_s12 + $0x6] ss:$8 sm:$0xf] }
 0x425   :  { %v3735_v27 = vsel %vm130_vm1, %v3726_v11, %v3728_v49  ;;  %3881 = vmatprep.mubr.f32.mxu1 %v8660_v57  ;;  %v5384_v49 = vrot.slane %v9546_v25, %v8816_v6  ;;  %v5392_v26 = vrot.slane %v9546_v25, %v8814_v5  ;;  %v9557_v11 = vld [vmem:[%s10401_s12 + $0x7] ss:$8 sm:$0xf] }
 0x426   :  { %3747 = vmatpush1.msra.mxu0 %v3735_v27  ;;  %v5597_v27 = vrot.slane %v9557_v11, %v8816_v6 }
 0x427   :  { %3958 = vmatprep.subr.mxu0 %v8648_v30 }
 0x428   :  { %8422 = vmatmul.mubr.msk.f32.vlgmr.msra.gmra.mrb[2].mxu0 %vm212_vm8, %v8421_v28  ;;  %v3734_v31 = vpop.permute.xlu1 %3733 }
 0x429   :  { %v3738_v32 = vsel %vm130_vm1, %v3732_v29, %v3734_v31  ;;  %3959 = vmatpush1.msra.mxu0 %v8649_v33  ;;  %4022 = vmatprep.mubr.f32.mxu0 %v8660_v57  ;;  %v9568_v29 = vld [vmem:[%s10401_s12 + $0x20] ss:$8 sm:$0xf] }
 0x42a   :  { %3817 = vmatprep.subr.mxu1 %v3738_v32  ;;  %v5806_v30 = vrot.slane %v9568_v29, %v8812_v4  ;;  %v5814_v31 = vrot.slane %v9568_v29, %v8810_v3 }
 0x42b   :  { %3818 = vmatpush1.msra.mxu1 %v3737_v36 }
 0x42c   :  { %8423 = vmatmul.mubr.msk.f32.vlgmr.msra.gmra.mrb[2].mxu1 %vm212_vm8, %v8421_v28  ;;  %8424 = vmatmul.mubr.msk.f32.vlgmr.msra.gmra.mrb[4].mxu0 %vm212_vm8, %v3948_v34  ;;  %v5605_v28 = vrot.slane %v9557_v11, %v8814_v5 }
 0x42d   :  { %4029 = vmatprep.subr.mxu1 %v8650_v37  ;;  %4093 = vmatprep.mubr.f32.mxu1 %v8660_v57 }
 0x42e   :  { %4030 = vmatpush1.msra.mxu1 %v8651_v38  ;;  %4334 = vmatprep.mubr.f32.mxu0 %v8660_v57 }
 0x430   :  { %8425 = vmatmul.mubr.msk.f32.vlgmr.msra.gmra.mrb[4].mxu1 %vm212_vm8, %v3948_v34 }
 0x431   :  { %4405 = vmatprep.mubr.f32.mxu1 %v8660_v57 }
 0x434   :  { %v3896_v39 = vpop.permute.xlu0 %3895 }
 0x439   :  { %v3953_v46 = vpop.permute.xlu1 %3952 }
 0x4fb   :  { %v3812_v41 = vpop.f32.mrb[2].mxu0 }
 0x4fc   :  { %v9450_v40 = vadd.f32 %v3896_v39, %v3812_v41  ;;  %v3814_v43 = vpop.f32.mrb[3].mxu0 }
 0x4fd   :  { %v9452_v45 = vadd.f32 %v3896_v39, %v3814_v43 }
 0x4ff   :  { %v3902_v48 = vadd.f32 %v9452_v45, %v9450_v40  ;;  %v3883_v50 = vpop.f32.mrb[2].mxu1  ;;  %v4024_v51 = vpop.f32.mrb[4].mxu0 }
 0x500   :  { %v9456_v52 = vadd.f32 %v3896_v39, %v3883_v50  ;;  %v9458_v53 = vadd.f32 %v4024_v51, %v3953_v46  ;;  %v3885_v55 = vpop.f32.mrb[3].mxu1  ;;  %v4026_v56 = vpop.f32.mrb[5].mxu0 }
 0x501   :  { %v9460_v58 = vadd.f32 %v3896_v39, %v3885_v55  ;;  %v9462_v59 = vadd.f32 %v4026_v56, %v3953_v46 }
 0x502   :  { %v3903_v60 = vadd.f32 %v3902_v48, %v9456_v52 }
 0x503   :  { %v4100_v35 = vadd.f32 %v9462_v59, %v9458_v53  ;;  %v4095_v42 = vpop.f32.mrb[4].mxu1 }
 0x504   :  { %v3904_v61 = vadd.f32 %v3903_v60, %v9460_v58  ;;  %v9468_v62 = vadd.f32 %v4095_v42, %v3953_v46  ;;  %v4097_v63 = vpop.f32.mrb[5].mxu1 }
 0x505   :  { %v9470_v44 = vadd.f32 %v4097_v63, %v3953_v46  ;;  %v4216_v63 = vrot.slane %v9483_v8, %v8810_v3  ;;  %v4806_v8 = vrot.slane %v9524_v21, %v8810_v3 }
 0x506   :  { %v4101_v47 = vadd.f32 %v4100_v35, %v9468_v62  ;;  %3905 = vadd.xlane.f32.xlu0 %v3904_v61 }
 0x508   :  { %v4102_v1 = vadd.f32 %v4101_v47, %v9470_v44  ;;  %v4176_v47 = vrot.slane %v9502_v15, %v8810_v3 }
 0x50a   :  { %4103 = vadd.xlane.f32.xlu1 %v4102_v1  ;;  %v4585_v1 = vrot.slane %v9513_v18, %v8812_v4 }
 0x51b   :  { %3931 = vperm.xlu1 %8635, %v3928_v2   ;;  %v4593_v2 = vrot.slane %v9513_v18, %v8810_v3 }
 0x51c   :  { %4129 = vperm.xlu0 %8634, %v4126_v7   ;;  %v4798_v7 = vrot.slane %v9524_v21, %v8812_v4 }
 0x51f   :  { %3941 = vperm.xlu1 %8635, %v3938_v9   ;;  %v5167_v9 = vrot.slane %v9535_v54, %v8812_v4 }
 0x520   :  { %4221 = vrot.lane.b32.xlu0 %v4208_v10, %s8652_s30  ;;  %v5175_v10 = vrot.slane %v9535_v54, %v8810_v3 }
 0x523   :  { %4139 = vperm.xlu1 %8635, %v4136_v12   ;;  %v5380_v12 = vrot.slane %v9546_v25, %v8812_v4 }
 0x527   :  { %4223 = vrot.lane.b32.xlu1 %v4212_v13, %s8652_s30  ;;  %v5388_v13 = vrot.slane %v9546_v25, %v8810_v3 }
 0x52b   :  { %4227 = vrot.lane.b32.xlu1 %v4220_v14, %s8652_s30  ;;  %v5593_v14 = vrot.slane %v9557_v11, %v8812_v4 }
 0x52f   :  { %4183 = vrot.lane.b32.xlu1 %v4172_v16, %s10416_s15  ;;  %v5601_v16 = vrot.slane %v9557_v11, %v8810_v3 }
 0x533   :  { %4187 = vrot.lane.b32.xlu1 %v4180_v17, %s10416_s15 }
 0x537   :  { %4600 = vrot.lane.b32.xlu1 %v4589_v19, %s10417_s11  ;;  %v5810_v19 = vrot.slane %v9568_v29, %v8816_v6 }
 0x53b   :  { %4604 = vrot.lane.b32.xlu1 %v4597_v20, %s10417_s11  ;;  %v5818_v20 = vrot.slane %v9568_v29, %v8814_v5 }
 0x53f   :  { %4813 = vrot.lane.b32.xlu1 %v4802_v22, %s10418_s14 }
 0x543   :  { %4817 = vrot.lane.b32.xlu1 %v4810_v0, %s10418_s14 }
 0x547   :  { %5182 = vrot.lane.b32.xlu1 %v5171_v23, %s10419_s5 }
 0x54b   :  { %5186 = vrot.lane.b32.xlu1 %v5179_v24, %s10419_s5 }
 0x54f   :  { %5395 = vrot.lane.b32.xlu1 %v5384_v49, %s10420_s3 }
 0x553   :  { %5399 = vrot.lane.b32.xlu1 %v5392_v26, %s10420_s3 }
 0x557   :  { %5608 = vrot.lane.b32.xlu1 %v5597_v27, %s10407_s4 }
 0x55b   :  { %5612 = vrot.lane.b32.xlu1 %v5605_v28, %s10407_s4 }
 0x55f   :  { %5819 = vrot.lane.b32.xlu1 %v5806_v30, %s10408_s7 }
 0x563   :  { %5823 = vrot.lane.b32.xlu1 %v5814_v31, %s10408_s7 }
 0x593   :  { %v3906_v32 = vpop.xlane.xlu0 %3905 }
 0x594   :  { %v3907_v33 = vmul.f32 0.001953125, %v3906_v32 }
 0x596   :  { %v9578_v34 = vsub.f32 %v9450_v40, %v3907_v33  ;;  %v9581_v36 = vsub.f32 %v9452_v45, %v3907_v33  ;;  %v9584_v37 = vsub.f32 %v9456_v52, %v3907_v33  ;;  %v9587_v39 = vsub.f32 %v9460_v58, %v3907_v33 }
 0x597   :  { %v4104_v38 = vpop.xlane.xlu1 %4103 }
 0x598   :  { %v4105_v41 = vmul.f32 0.001953125, %v4104_v38  ;;  %v3912_v43 = vmul.f32 %v9578_v34, %v9578_v34  ;;  %v3913_v46 = vmul.f32 %v9581_v36, %v9581_v36  ;;  %v3914_v40 = vmul.f32 %v9584_v37, %v9584_v37 }
 0x599   :  { %v3915_v52 = vmul.f32 %v9587_v39, %v9587_v39 }
 0x59a   :  { %v9596_v45 = vsub.f32 %v9458_v53, %v4105_v41  ;;  %v9599_v48 = vsub.f32 %v9462_v59, %v4105_v41  ;;  %v9602_v50 = vsub.f32 %v9468_v62, %v4105_v41  ;;  %v3916_v51 = vadd.f32 %v3913_v46, %v3912_v43 }
 0x59b   :  { %v9607_v56 = vsub.f32 %v9470_v44, %v4105_v41  ;;  %v4168_v44 = vrot.slane %v9502_v15, %v8812_v4  ;;  %v4130_v15 = vpop.permute.xlu0 %4129  ;;  %v3932_v21 = vpop.permute.xlu1 %3931 }
 0x59c   :  { %v3917_v55 = vadd.f32 %v3916_v51, %v3914_v40  ;;  %v4110_v58 = vmul.f32 %v9596_v45, %v9596_v45  ;;  %v4111_v53 = vmul.f32 %v9599_v48, %v9599_v48  ;;  %v4112_v59 = vmul.f32 %v9602_v50, %v9602_v50 }
 0x59d   :  { %v4113_v42 = vmul.f32 %v9607_v56, %v9607_v56 }
 0x59e   :  { %v3918_v60 = vadd.f32 %v3917_v55, %v3915_v52  ;;  %v4114_v35 = vadd.f32 %v4111_v53, %v4110_v58 }
 0x59f   :  { %v9655_v17 = vpop.permute.xlu0 %4221  ;;  %v3942_v22 = vpop.permute.xlu1 %3941 }
 0x5a0   :  { %3919 = vadd.xlane.f32.xlu0 %v3918_v60  ;;  %v4115_v61 = vadd.f32 %v4114_v35, %v4112_v59  ;;  %v4237_v18 = vmul.f32 0.0, %v9655_v17 }
 0x5a2   :  { %v4116_v62 = vadd.f32 %v4115_v61, %v4113_v42 }
 0x5a3   :  { %v4140_v0 = vpop.permute.xlu1 %4139 }
 0x5a4   :  { %4117 = vadd.xlane.f32.xlu0 %v4116_v62 }
 0x5a7   :  { %v4224_v54 = vpop.permute.xlu1 %4223 }
 0x5ab   :  { %v9666_v25 = vpop.permute.xlu1 %4227 }
 0x5af   :  { %v9668_v30 = vpop.permute.xlu1 %4183 }
 0x5b3   :  { %v9673_v33 = vpop.permute.xlu1 %4187 }
 0x5b7   :  { %v9684_v53 = vpop.permute.xlu1 %4600 }
 0x5ba   :  { %4225 = vrot.lane.b32.xlu0 %v4216_v63, %s8652_s30 }
 0x5be   :  { %4181 = vrot.lane.b32.xlu0 %v4168_v44, %s10416_s15 }
 0x5c2   :  { %4185 = vrot.lane.b32.xlu0 %v4176_v47, %s10416_s15 }
 0x5c6   :  { %4598 = vrot.lane.b32.xlu0 %v4585_v1, %s10417_s11 }
 0x5ca   :  { %4602 = vrot.lane.b32.xlu0 %v4593_v2, %s10417_s11 }
 0x5ce   :  { %4811 = vrot.lane.b32.xlu0 %v4798_v7, %s10418_s14 }
 0x5d2   :  { %4815 = vrot.lane.b32.xlu0 %v4806_v8, %s10418_s14 }
 0x5d6   :  { %5180 = vrot.lane.b32.xlu0 %v5167_v9, %s10419_s5 }
 0x5da   :  { %5184 = vrot.lane.b32.xlu0 %v5175_v10, %s10419_s5 }
 0x5de   :  { %5393 = vrot.lane.b32.xlu0 %v5380_v12, %s10420_s3 }
 0x5e2   :  { %5397 = vrot.lane.b32.xlu0 %v5388_v13, %s10420_s3 }
 0x5e6   :  { %5606 = vrot.lane.b32.xlu0 %v5593_v14, %s10407_s4 }
 0x5ea   :  { %5610 = vrot.lane.b32.xlu0 %v5601_v16, %s10407_s4 }
 0x5ee   :  { %4249 = vrot.lane.b32.xlu0 %v4237_v18, %s10407_s4 }
 0x5f2   :  { %5821 = vrot.lane.b32.xlu0 %v5810_v19, %s10408_s7  ;;  %v4229_v19 = vsel %vm172_vm0, %v9655_v17, %v4224_v54 }
 0x5f6   :  { %5825 = vrot.lane.b32.xlu0 %v5818_v20, %s10408_s7 }
 0x62d   :  { %v3920_v23 = vpop.xlane.xlu0 %3919 }
 0x62e   :  { %v3921_v24 = vmul.f32 0.001953125, %v3920_v23 }
 0x630   :  { %v3922_v49 = vadd.f32 1e-05, %v3921_v24 }
 0x631   :  { %v4118_v26 = vpop.xlane.xlu0 %4117 }
 0x632   :  { %8638 = vrsqrt.f32 %v3922_v49  ;;  %v4119_v11 = vmul.f32 0.001953125, %v4118_v26 }
 0x634   :  { %v4120_v27 = vadd.f32 1e-05, %v4119_v11 }
 0x635   :  { %v4226_v28 = vpop.permute.xlu0 %4225 }
 0x636   :  { %8640 = vrsqrt.f32 %v4120_v27  ;;  %v4231_v49 = vsel %vm172_vm0, %v4226_v28, %v9666_v25 }
 0x639   :  { %v9670_v29 = vpop.permute.xlu0 %4181 }
 0x63a   :  { %v4197_v31 = vmul.f32 0.0, %v9670_v29  ;;  %v4189_v27 = vsel %vm130_vm1, %v9670_v29, %v9668_v30 }
 0x63c   :  { %v8639_v32 = vpop.eup %8638  ;;  %4417 = vrot.lane.b32.xlu1 %v4197_v31, %s10408_s7 }
 0x63d   :  { %v3924_v38 = vmul.f32 %v8639_v32, %v9578_v34  ;;  %v3925_v41 = vmul.f32 %v8639_v32, %v9581_v36  ;;  %v9678_v43 = vpop.permute.xlu0 %4185  ;;  %v3926_v46 = vmul.f32 %v8639_v32, %v9584_v37  ;;  %v3927_v51 = vmul.f32 %v8639_v32, %v9587_v39 }
 0x63e   :  { %v4190_v31 = vsel %vm130_vm1, %v9668_v30, %v9678_v43 }
 0x63f   :  { %v3934_v52 = vmul.f32 %v3932_v21, %v3924_v38  ;;  %v3935_v55 = vmul.f32 %v3932_v21, %v3925_v41  ;;  %v3936_v35 = vmul.f32 %v3932_v21, %v3926_v46  ;;  %v3937_v63 = vmul.f32 %v3932_v21, %v3927_v51 }
 0x640   :  { %v8641_v40 = vpop.eup %8640  ;;  %v4230_v21 = vsel %vm172_vm0, %v4224_v54, %v4226_v28  ;;  %v4191_v38 = vsel %vm130_vm1, %v9678_v43, %v9673_v33 }
 0x641   :  { %v9682_v58 = vpop.permute.xlu0 %4598  ;;  %v4122_v60 = vmul.f32 %v8641_v40, %v9596_v45  ;;  %v4123_v59 = vmul.f32 %v8641_v40, %v9599_v48  ;;  %v4124_v34 = vmul.f32 %v8641_v40, %v9602_v50  ;;  %v4125_v36 = vmul.f32 %v8641_v40, %v9607_v56  ;;  %v4605_v50 = vpop.permute.xlu1 %4604 }
 0x642   :  { %v4614_v37 = vmul.f32 0.0, %v9682_v58  ;;  %v3944_v44 = vadd.f32 %v3942_v22, %v3934_v52  ;;  %v3945_v1 = vadd.f32 %v3942_v22, %v3935_v55  ;;  %v3946_v8 = vadd.f32 %v3942_v22, %v3936_v35 }
 0x643   :  { %v4132_v42 = vmul.f32 %v4130_v15, %v4122_v60  ;;  %v4133_v61 = vmul.f32 %v4130_v15, %v4123_v59  ;;  %v4134_v39 = vmul.f32 %v4130_v15, %v4124_v34  ;;  %v4135_v62 = vmul.f32 %v4130_v15, %v4125_v36 }
 0x644   :  { %4626 = vrot.lane.b32.xlu0 %v4614_v37, %s10420_s3  ;;  %v3947_v10 = vadd.f32 %v3942_v22, %v3937_v63  ;;  %v4606_v30 = vsel %vm554_vm2, %v9682_v58, %v9684_v53 }
 0x645   :  { %v4603_v47 = vpop.permute.xlu0 %4602  ;;  %v4142_v45 = vadd.f32 %v4140_v0, %v4132_v42  ;;  %v4143_v2 = vadd.f32 %v4140_v0, %v4133_v61  ;;  %v4144_v48 = vadd.f32 %v4140_v0, %v4134_v39  ;;  %v4145_v7 = vadd.f32 %v4140_v0, %v4135_v62  ;;  %v4814_v20 = vpop.permute.xlu1 %4813 }
 0x646   :  { %v4607_v40 = vsel %vm554_vm2, %v9684_v53, %v4603_v47 }
 0x647   :  { %v4146_v56 = vadd.f32 %v4142_v45, %v3944_v44  ;;  %v4147_v9 = vadd.f32 %v4143_v2, %v3945_v1  ;;  %v4148_v13 = vadd.f32 %v4144_v48, %v3946_v8  ;;  %v4149_v14 = vadd.f32 %v4145_v7, %v3947_v10 }
 0x649   :  { %v4812_v12 = vpop.permute.xlu0 %4811  ;;  %v9692_v16 = vmax.f32 %v4146_v56, 0.0  ;;  %v9694_v15 = vmax.f32 %v4147_v9, 0.0  ;;  %v9700_v0 = vmax.f32 %v4148_v13, 0.0  ;;  %v9702_v23 = vmax.f32 %v4149_v14, 0.0  ;;  %v4818_v26 = vpop.permute.xlu1 %4817 }
 0x64a   :  { %v4827_v18 = vmul.f32 0.0, %v4812_v12  ;;  %v4819_v58 = vsel %vm770_vm3, %v4812_v12, %v4814_v20 }
 0x64b   :  { %v4239_v22 = vmul.f32 %v4230_v21, %v9694_v15  ;;  %v4238_v24 = vmul.f32 %v4229_v19, %v9692_v16  ;;  %v4240_v17 = vmul.f32 %v4231_v49, %v9700_v0  ;;  %v4241_v54 = vmul.f32 %v9666_v25, %v9702_v23 }
 0x64c   :  { %4839 = vrot.lane.b32.xlu1 %v4827_v18, %s10419_s5  ;;  %v4198_v28 = vmul.f32 %v4189_v27, %v9692_v16  ;;  %v4199_v32 = vmul.f32 %v4190_v31, %v9694_v15  ;;  %v4200_v41 = vmul.f32 %v4191_v38, %v9700_v0  ;;  %v4201_v46 = vmul.f32 %v9673_v33, %v9702_v23 }
 0x64d   :  { %4251 = vrot.lane.b32.xlu0 %v4238_v24, %s10407_s4  ;;  %v4816_v11 = vpop.permute.xlu0 %4815  ;;  %v5183_v25 = vpop.permute.xlu1 %5182  ;;  %v4615_v51 = vmul.f32 %v4606_v30, %v9692_v16  ;;  %v4616_v43 = vmul.f32 %v4607_v40, %v9694_v15  ;;  %v4608_v33 = vsel %vm554_vm2, %v4603_v47, %v4605_v50  ;;  %v4618_v59 = vmul.f32 %v4605_v50, %v9702_v23 }
 0x64e   :  { %v4617_v60 = vmul.f32 %v4608_v33, %v9700_v0  ;;  %v4820_v53 = vsel %vm770_vm3, %v4814_v20, %v4816_v11  ;;  %v4828_v36 = vmul.f32 %v4819_v58, %v9692_v16  ;;  %v4821_v42 = vsel %vm770_vm3, %v4816_v11, %v4818_v26  ;;  %v6014_v33 = vld [vmem:[%s10355_s17] sm:$0xff] }
 0x64f   :  { %v4829_v35 = vmul.f32 %v4820_v53, %v9694_v15  ;;  %v4830_v61 = vmul.f32 %v4821_v42, %v9700_v0  ;;  %v4831_v39 = vmul.f32 %v4818_v26, %v9702_v23 }
 0x650   :  { %4253 = vrot.lane.b32.xlu1 %v4239_v22, %s10407_s4 }
 0x651   :  { %4257 = vrot.lane.b32.xlu0 %v4241_v54, %s10407_s4  ;;  %v5181_v29 = vpop.permute.xlu0 %5180  ;;  %v5187_v52 = vpop.permute.xlu1 %5186 }
 0x652   :  { %v5200_v47 = vmul.f32 0.0, %v5187_v52  ;;  %v5188_v1 = vsel %vm801_vm4, %v5181_v29, %v5183_v25  ;;  %v5196_v8 = vmul.f32 %v5181_v29, %v9692_v16 }
 0x653   :  { %v5197_v2 = vmul.f32 %v5188_v1, %v9694_v15 }
 0x654   :  { %4255 = vrot.lane.b32.xlu1 %v4240_v17, %s10407_s4 }
 0x655   :  { %4421 = vrot.lane.b32.xlu0 %v4199_v32, %s10408_s7  ;;  %v5185_v55 = vpop.permute.xlu0 %5184  ;;  %v5396_v34 = vpop.permute.xlu1 %5395 }
 0x656   :  { %v5189_v45 = vsel %vm801_vm4, %v5183_v25, %v5185_v55  ;;  %v5190_v50 = vsel %vm801_vm4, %v5185_v55, %v5187_v52 }
 0x657   :  { %v5198_v48 = vmul.f32 %v5189_v45, %v9700_v0  ;;  %v5199_v56 = vmul.f32 %v5190_v50, %v9702_v23 }
 0x658   :  { %4419 = vrot.lane.b32.xlu1 %v4198_v28, %s10408_s7 }
 0x659   :  { %4423 = vrot.lane.b32.xlu0 %v4200_v41, %s10408_s7  ;;  %v5394_v37 = vpop.permute.xlu0 %5393  ;;  %v5400_v62 = vpop.permute.xlu1 %5399 }
 0x65a   :  { %v5413_v63 = vmul.f32 0.0, %v5400_v62  ;;  %v5401_v9 = vsel %vm585_vm5, %v5394_v37, %v5396_v34  ;;  %v5409_v21 = vmul.f32 %v5394_v37, %v9692_v16  ;;  %v8427_v37 = vld [vmem:[%s10357_s16 + $0x8] sm:$0xff] }
 0x65b   :  { %v5410_v14 = vmul.f32 %v5401_v9, %v9694_v15 }
 0x65c   :  { %4425 = vrot.lane.b32.xlu1 %v4201_v46, %s10408_s7 }
 0x65d   :  { %4628 = vrot.lane.b32.xlu0 %v4615_v51, %s10420_s3  ;;  %v5398_v44 = vpop.permute.xlu0 %5397  ;;  %v5609_v12 = vpop.permute.xlu1 %5608 }
 0x65e   :  { %v5402_v10 = vsel %vm585_vm5, %v5396_v34, %v5398_v44  ;;  %v5403_v19 = vsel %vm585_vm5, %v5398_v44, %v5400_v62 }
 0x65f   :  { %v5411_v18 = vmul.f32 %v5402_v10, %v9700_v0  ;;  %v5412_v22 = vmul.f32 %v5403_v19, %v9702_v23 }
 0x660   :  { %4630 = vrot.lane.b32.xlu1 %v4616_v43, %s10420_s3 }
 0x661   :  { %4634 = vrot.lane.b32.xlu0 %v4618_v59, %s10420_s3  ;;  %v5607_v7 = vpop.permute.xlu0 %5606  ;;  %v5613_v20 = vpop.permute.xlu1 %5612 }
 0x662   :  { %v5614_v49 = vsel %vm203_vm6, %v5607_v7, %v5609_v12  ;;  %v5622_v28 = vmul.f32 %v5607_v7, %v9692_v16  ;;  %v5626_v41 = vmul.f32 0.0, %v5613_v20 }
 0x663   :  { %v5623_v54 = vmul.f32 %v5614_v49, %v9694_v15 }
 0x664   :  { %4632 = vrot.lane.b32.xlu1 %v4617_v60, %s10420_s3  ;;  %v6050_v60 = vld [vmem:[%s10356_s18] sm:$0xff] }
 0x665   :  { %4843 = vrot.lane.b32.xlu0 %v4829_v35, %s10419_s5  ;;  %v5611_v13 = vpop.permute.xlu0 %5610  ;;  %v5820_v27 = vpop.permute.xlu1 %5819 }
 0x666   :  { %v5615_v17 = vsel %vm203_vm6, %v5609_v12, %v5611_v13  ;;  %v5616_v11 = vsel %vm203_vm6, %v5611_v13, %v5613_v20  ;;  %v5835_v40 = vmul.f32 %v5820_v27, %v9692_v16  ;;  %v8433_v12 = vld [vmem:[%s10357_s16 + $0x10] sm:$0xff] }
 0x667   :  { %v5624_v26 = vmul.f32 %v5615_v17, %v9700_v0  ;;  %v5625_v32 = vmul.f32 %v5616_v11, %v9702_v23  ;;  %v8437_v17 = vld [vmem:[%s10357_s16 + $0x18] sm:$0xff] }
 0x668   :  { %4841 = vrot.lane.b32.xlu1 %v4828_v36, %s10419_s5 }
 0x669   :  { %4845 = vrot.lane.b32.xlu0 %v4830_v61, %s10419_s5  ;;  %v4250_v24 = vpop.permute.xlu0 %4249  ;;  %v5824_v38 = vpop.permute.xlu1 %5823 }
 0x66c   :  { %4847 = vrot.lane.b32.xlu1 %v4831_v39, %s10419_s5 }
 0x66d   :  { %5216 = vrot.lane.b32.xlu0 %v5200_v47, %s10418_s14  ;;  %v5822_v31 = vpop.permute.xlu0 %5821 }
 0x66e   :  { %v5827_v25 = vsel %vm373_vm7, %v5820_v27, %v5822_v31  ;;  %v5828_v46 = vsel %vm373_vm7, %v5822_v31, %v5824_v38 }
 0x66f   :  { %v5836_v29 = vmul.f32 %v5827_v25, %v9694_v15  ;;  %v5837_v51 = vmul.f32 %v5828_v46, %v9700_v0 }
 0x670   :  { %5429 = vrot.lane.b32.xlu1 %v5413_v63, %s10417_s11 }
 0x671   :  { %5210 = vrot.lane.b32.xlu0 %v5197_v2, %s10418_s14  ;;  %v5826_v30 = vpop.permute.xlu0 %5825  ;;  %v4202_v2 = vld [vmem:[%s10357_s16] sm:$0xff] }
 0x672   :  { %v5829_v43 = vsel %vm373_vm7, %v5824_v38, %v5826_v30  ;;  %v5839_v52 = vmul.f32 0.0, %v5826_v30 }
 0x673   :  { %v5838_v55 = vmul.f32 %v5829_v43, %v9702_v23  ;;  %v8444_v43 = vld [vmem:[%s10357_s16 + $0x28] sm:$0xff] }
 0x674   :  { %5212 = vrot.lane.b32.xlu1 %v5198_v48, %s10418_s14 }
 0x675   :  { %5208 = vrot.lane.b32.xlu0 %v5196_v8, %s10418_s14 }
 0x678   :  { %5214 = vrot.lane.b32.xlu1 %v5199_v56, %s10418_s14 }
 0x679   :  { %5425 = vrot.lane.b32.xlu0 %v5411_v18, %s10417_s11 }
 0x67c   :  { %5423 = vrot.lane.b32.xlu1 %v5410_v14, %s10417_s11 }
 0x67d   :  { %5427 = vrot.lane.b32.xlu0 %v5412_v22, %s10417_s11 }
 0x680   :  { %5421 = vrot.lane.b32.xlu1 %v5409_v21, %s10417_s11 }
 0x681   :  { %5636 = vrot.lane.b32.xlu0 %v5623_v54, %s8652_s30 }
 0x684   :  { %5638 = vrot.lane.b32.xlu1 %v5624_v26, %s8652_s30 }
 0x685   :  { %5634 = vrot.lane.b32.xlu0 %v5622_v28, %s8652_s30 }
 0x688   :  { %5640 = vrot.lane.b32.xlu1 %v5625_v32, %s8652_s30  ;;  %v8440_v32 = vld [vmem:[%s10357_s16 + $0x20] sm:$0xff] }
 0x689   :  { %5642 = vrot.lane.b32.xlu0 %v5626_v41, %s8652_s30 }
 0x68c   :  { %5849 = vrot.lane.b32.xlu1 %v5836_v29, %s10416_s15 }
 0x68d   :  { %5851 = vrot.lane.b32.xlu0 %v5837_v51, %s10416_s15 }
 0x690   :  { %5847 = vrot.lane.b32.xlu1 %v5835_v40, %s10416_s15 }
 0x691   :  { %5853 = vrot.lane.b32.xlu0 %v5838_v55, %s10416_s15 }
 0x694   :  { %5855 = vrot.lane.b32.xlu1 %v5839_v52, %s10416_s15 }
 0x695   :  { %6017 = vperm.xlu0 %8634, %v6014_v33  }
 0x699   :  { %6053 = vperm.xlu0 %8634, %v6050_v60  }
 0x6ae   :  { %v4418_v59 = vpop.permute.xlu1 %4417 }
 0x6b6   :  { %v4627_v58 = vpop.permute.xlu0 %4626 }
 0x6be   :  { %v4840_v53 = vpop.permute.xlu1 %4839 }
 0x6bf   :  { %v4252_v34 = vpop.permute.xlu0 %4251 }
 0x6c0   :  { %v4259_v42 = vsel %vm203_vm6, %v4250_v24, %v4252_v34 }
 0x6c2   :  { %v4254_v36 = vpop.permute.xlu1 %4253 }
 0x6c3   :  { %v4260_v35 = vsel %vm203_vm6, %v4252_v34, %v4254_v36  ;;  %v4258_v61 = vpop.permute.xlu0 %4257 }
 0x6c4   :  { %4270 = vmatprep.subr.mxu0 %v4260_v35 }
 0x6c5   :  { %4271 = vmatpush1.msra.mxu0 %v4259_v42 }
 0x6c6   :  { %8428 = vmatmul.mubr.msk.f32.vlgmr.msra.gmra.mrb[6].mxu0 %vm212_vm8, %v8427_v37  ;;  %v4256_v39 = vpop.permute.xlu1 %4255 }
 0x6c7   :  { %v4262_v62 = vsel %vm203_vm6, %v4256_v39, %v4258_v61  ;;  %v4261_v63 = vsel %vm203_vm6, %v4254_v36, %v4256_v39  ;;  %4502 = vmatprep.mubr.f32.mxu0 %v8660_v57  ;;  %v4422_v44 = vpop.permute.xlu0 %4421  ;;  %v8448_v36 = vld [vmem:[%s10357_s16 + $0x30] sm:$0xff] }
 0x6c8   :  { %4341 = vmatprep.subr.mxu1 %v4262_v62 }
 0x6c9   :  { %4342 = vmatpush1.msra.mxu1 %v4261_v63  ;;  %v8452_v63 = vld [vmem:[%s10357_s16 + $0x38] sm:$0xff] }
 0x6ca   :  { %8429 = vmatmul.mubr.msk.f32.vlgmr.msra.gmra.mrb[6].mxu1 %vm212_vm8, %v8427_v37  ;;  %v4420_v47 = vpop.permute.xlu1 %4419 }
 0x6cb   :  { %v4428_v1 = vsel %vm373_vm7, %v4420_v47, %v4422_v44  ;;  %v4427_v45 = vsel %vm373_vm7, %v4418_v59, %v4420_v47  ;;  %4573 = vmatprep.mubr.f32.mxu1 %v8660_v57  ;;  %v4424_v48 = vpop.permute.xlu0 %4423 }
 0x6cc   :  { %4438 = vmatprep.subr.mxu0 %v4428_v1  ;;  %v4429_v8 = vsel %vm373_vm7, %v4422_v44, %v4424_v48 }
 0x6cd   :  { %4439 = vmatpush1.msra.mxu0 %v4427_v45 }
 0x6ce   :  { %8430 = vmatmul.mubr.msk.f32.vlgmr.msra.gmra.mrb[6].mxu0 %vm212_vm8, %v4202_v2  ;;  %v4426_v7 = vpop.permute.xlu1 %4425 }
 0x6cf   :  { %v4430_v50 = vsel %vm373_vm7, %v4424_v48, %v4426_v7  ;;  %4711 = vmatprep.mubr.f32.mxu0 %v8660_v57  ;;  %v4629_v56 = vpop.permute.xlu0 %4628 }
 0x6d0   :  { %4509 = vmatprep.subr.mxu1 %v4430_v50  ;;  %v4636_v13 = vsel %vm585_vm5, %v4627_v58, %v4629_v56 }
 0x6d1   :  { %4510 = vmatpush1.msra.mxu1 %v4429_v8  ;;  %v8456_v8 = vld [vmem:[%s10357_s16 + $0x40] sm:$0xff] }
 0x6d2   :  { %8431 = vmatmul.mubr.msk.f32.vlgmr.msra.gmra.mrb[6].mxu1 %vm212_vm8, %v4202_v2  ;;  %v4631_v9 = vpop.permute.xlu1 %4630 }
 0x6d3   :  { %v4637_v10 = vsel %vm585_vm5, %v4629_v56, %v4631_v9  ;;  %4782 = vmatprep.mubr.f32.mxu1 %v8660_v57  ;;  %v4635_v14 = vpop.permute.xlu0 %4634 }
 0x6d4   :  { %4647 = vmatprep.subr.mxu0 %v4637_v10 }
 0x6d5   :  { %4648 = vmatpush1.msra.mxu0 %v4636_v13  ;;  %v9914_v13 = vld [vmem:[%s10401_s12 + $0x1] ss:$8 sm:$0xf] }
 0x6d6   :  { %8434 = vmatmul.mubr.msk.f32.vlgmr.msra.gmra.mrb[6].mxu0 %vm212_vm8, %v8433_v12  ;;  %v4633_v18 = vpop.permute.xlu1 %4632 }
 0x6d7   :  { %v4639_v19 = vsel %vm585_vm5, %v4633_v18, %v4635_v14  ;;  %v4638_v20 = vsel %vm585_vm5, %v4631_v9, %v4633_v18  ;;  %4924 = vmatprep.mubr.f32.mxu0 %v8660_v57  ;;  %v4844_v21 = vpop.permute.xlu0 %4843  ;;  %v6132_v14 = vrot.slane %v9914_v13, %v8816_v6 }
 0x6d8   :  { %4718 = vmatprep.subr.mxu1 %v4639_v19 }
 0x6d9   :  { %4719 = vmatpush1.msra.mxu1 %v4638_v20  ;;  %6143 = vrot.lane.b32.xlu0 %v6132_v14, %s8652_s30 }
 0x6da   :  { %8435 = vmatmul.mubr.msk.f32.vlgmr.msra.gmra.mrb[6].mxu1 %vm212_vm8, %v8433_v12  ;;  %v4842_v22 = vpop.permute.xlu1 %4841 }
 0x6db   :  { %v4850_v24 = vsel %vm801_vm4, %v4842_v22, %v4844_v21  ;;  %v4849_v49 = vsel %vm801_vm4, %v4840_v53, %v4842_v22  ;;  %4995 = vmatprep.mubr.f32.mxu1 %v8660_v57  ;;  %v4846_v54 = vpop.permute.xlu0 %4845 }
 0x6dc   :  { %4860 = vmatprep.subr.mxu0 %v4850_v24  ;;  %v4851_v27 = vsel %vm801_vm4, %v4844_v21, %v4846_v54 }
 0x6dd   :  { %4861 = vmatpush1.msra.mxu0 %v4849_v49 }
 0x6de   :  { %8438 = vmatmul.mubr.msk.f32.vlgmr.msra.gmra.mrb[6].mxu0 %vm212_vm8, %v8437_v17  ;;  %5011 = vmatprep.subr.mxu0 %v9694_v15  ;;  %v4848_v26 = vpop.permute.xlu1 %4847 }
 0x6df   :  { %5012 = vmatpush1.msra.mxu0 %v9692_v16  ;;  %v4852_v11 = vsel %vm801_vm4, %v4846_v54, %v4848_v26  ;;  %5075 = vmatprep.mubr.f32.mxu0 %v8660_v57  ;;  %v5217_v31 = vpop.permute.xlu0 %5216 }
 0x6e0   :  { %4931 = vmatprep.subr.mxu1 %v4852_v11 }
 0x6e1   :  { %4932 = vmatpush1.msra.mxu1 %v4851_v27 }
 0x6e2   :  { %8439 = vmatmul.mubr.msk.f32.vlgmr.msra.gmra.mrb[6].mxu1 %vm212_vm8, %v8437_v17  ;;  %5082 = vmatprep.subr.mxu1 %v9702_v23  ;;  %v5430_v28 = vpop.permute.xlu1 %5429 }
 0x6e3   :  { %5083 = vmatpush1.msra.mxu1 %v9700_v0  ;;  %5146 = vmatprep.mubr.f32.mxu1 %v8660_v57  ;;  %v5211_v25 = vpop.permute.xlu0 %5210 }
 0x6e6   :  { %8441 = vmatmul.mubr.msk.f32.vlgmr.msra.gmra.mrb[6].mxu0 %vm212_vm8, %v8440_v32  ;;  %v5213_v38 = vpop.permute.xlu1 %5212 }
 0x6e7   :  { %v5219_v41 = vsel %vm770_vm3, %v5211_v25, %v5213_v38  ;;  %5293 = vmatprep.mubr.f32.mxu0 %v8660_v57  ;;  %v5209_v29 = vpop.permute.xlu0 %5208 }
 0x6e8   :  { %5229 = vmatprep.subr.mxu0 %v5219_v41  ;;  %v5218_v30 = vsel %vm770_vm3, %v5209_v29, %v5211_v25  ;;  %v9931_v25 = vld [vmem:[%s10401_s12] ss:$8 sm:$0xf]  ;;  %v9941_v29 = vld [vmem:[%s10401_s12 + $0x2] ss:$8 sm:$0xf] }
 0x6e9   :  { %5230 = vmatpush1.msra.mxu0 %v5218_v30  ;;  %v6096_v41 = vrot.slane %v9931_v25, %v8810_v3  ;;  %v6513_v30 = vrot.slane %v9941_v29, %v8810_v3 }
 0x6ea   :  { %8442 = vmatmul.mubr.msk.f32.vlgmr.msra.gmra.mrb[6].mxu1 %vm212_vm8, %v8440_v32  ;;  %v5215_v46 = vpop.permute.xlu1 %5214  ;;  %v6136_v32 = vrot.slane %v9914_v13, %v8810_v3 }
 0x6eb   :  { %v5221_v40 = vsel %vm770_vm3, %v5215_v46, %v5217_v31  ;;  %v5220_v51 = vsel %vm770_vm3, %v5213_v38, %v5215_v46  ;;  %5364 = vmatprep.mubr.f32.mxu1 %v8660_v57  ;;  %v5426_v52 = vpop.permute.xlu0 %5425  ;;  %v6060_v31 = vld [vmem:[%s10358_s19] sm:$0xff]  ;;  %v6088_v38 = vrot.slane %v9931_v25, %v8812_v4  ;;  %v6505_v46 = vrot.slane %v9941_v29, %v8812_v4 }
 0x6ec   :  { %5300 = vmatprep.subr.mxu1 %v5221_v40  ;;  %v9952_v40 = vld [vmem:[%s10401_s12 + $0x3] ss:$8 sm:$0xf] }
 0x6ed   :  { %5301 = vmatpush1.msra.mxu1 %v5220_v51  ;;  %v6718_v51 = vrot.slane %v9952_v40, %v8812_v4 }
 0x6ee   :  { %8445 = vmatmul.mubr.msk.f32.vlgmr.msra.gmra.mrb[6].mxu0 %vm212_vm8, %v8444_v43  ;;  %v5424_v55 = vpop.permute.xlu1 %5423 }
 0x6ef   :  { %v5432_v33 = vsel %vm554_vm2, %v5424_v55, %v5426_v52  ;;  %5506 = vmatprep.mubr.f32.mxu0 %v8660_v57  ;;  %v5428_v60 = vpop.permute.xlu0 %5427 }
 0x6f0   :  { %5442 = vmatprep.subr.mxu0 %v5432_v33  ;;  %v5434_v58 = vsel %vm554_vm2, %v5428_v60, %v5430_v28  ;;  %v5433_v53 = vsel %vm554_vm2, %v5426_v52, %v5428_v60  ;;  %v6128_v28 = vrot.slane %v9914_v13, %v8812_v4  ;;  %v8476_v52 = vld [vmem:[%s10401_s12 + $0x5] ss:$8 sm:$0xf]  ;;  %v8480_v60 = vld [vmem:[%s10401_s12 + $0x6] ss:$8 sm:$0xf] }
 0x6f1   :  { %5513 = vmatprep.subr.mxu1 %v5434_v58  ;;  %v7095_v33 = vrot.slane %v8476_v52, %v8810_v3  ;;  %v7308_v58 = vrot.slane %v8480_v60, %v8810_v3 }
 0x6f2   :  { %8446 = vmatmul.mubr.msk.f32.vlgmr.msra.gmra.mrb[6].mxu1 %vm212_vm8, %v8444_v43  ;;  %v5422_v59 = vpop.permute.xlu1 %5421  ;;  %v6726_v43 = vrot.slane %v9952_v40, %v8810_v3 }
 0x6f3   :  { %v5431_v34 = vsel %vm554_vm2, %v5422_v59, %v5424_v55  ;;  %5577 = vmatprep.mubr.f32.mxu1 %v8660_v57  ;;  %5514 = vmatpush1.msra.mxu1 %v5433_v53  ;;  %v5637_v35 = vpop.permute.xlu0 %5636  ;;  %v7087_v55 = vrot.slane %v8476_v52, %v8812_v4  ;;  %v7300_v59 = vrot.slane %v8480_v60, %v8812_v4  ;;  %v8484_v53 = vld [vmem:[%s10401_s12 + $0x7] ss:$8 sm:$0xf] }
 0x6f4   :  { %5443 = vmatpush1.msra.mxu0 %v5431_v34  ;;  %v7513_v34 = vrot.slane %v8484_v53, %v8812_v4 }
 0x6f6   :  { %8449 = vmatmul.mubr.msk.f32.vlgmr.msra.gmra.mrb[6].mxu0 %vm212_vm8, %v8448_v36  ;;  %v5639_v37 = vpop.permute.xlu1 %5638 }
 0x6f7   :  { %v5645_v42 = vsel %vm172_vm0, %v5637_v35, %v5639_v37  ;;  %5719 = vmatprep.mubr.f32.mxu0 %v8660_v57  ;;  %v5635_v61 = vpop.permute.xlu0 %5634 }
 0x6f8   :  { %5655 = vmatprep.subr.mxu0 %v5645_v42  ;;  %v5644_v62 = vsel %vm172_vm0, %v5635_v61, %v5637_v35 }
 0x6f9   :  { %5656 = vmatpush1.msra.mxu0 %v5644_v62 }
 0x6fa   :  { %8450 = vmatmul.mubr.msk.f32.vlgmr.msra.gmra.mrb[6].mxu1 %vm212_vm8, %v8448_v36  ;;  %v5641_v39 = vpop.permute.xlu1 %5640  ;;  %v7521_v36 = vrot.slane %v8484_v53, %v8810_v3 }
 0x6fb   :  { %5790 = vmatprep.mubr.f32.mxu1 %v8660_v57  ;;  %v5643_v44 = vpop.permute.xlu0 %5642  ;;  %v5646_v45 = vsel %vm172_vm0, %v5639_v37, %v5641_v39 }
 0x6fc   :  { %v5647_v1 = vsel %vm172_vm0, %v5641_v39, %v5643_v44 }
 0x6fd   :  { %5726 = vmatprep.subr.mxu1 %v5647_v1 }
 0x6fe   :  { %8453 = vmatmul.mubr.msk.f32.vlgmr.msra.gmra.mrb[6].mxu0 %vm212_vm8, %v8452_v63  ;;  %v5850_v47 = vpop.permute.xlu1 %5849  ;;  %5727 = vmatpush1.msra.mxu1 %v5646_v45 }
 0x6ff   :  { %5932 = vmatprep.mubr.f32.mxu0 %v8660_v57  ;;  %v5852_v2 = vpop.permute.xlu0 %5851 }
 0x700   :  { %v5858_v7 = vsel %vm130_vm1, %v5850_v47, %v5852_v2 }
 0x701   :  { %5868 = vmatprep.subr.mxu0 %v5858_v7 }
 0x702   :  { %8454 = vmatmul.mubr.msk.f32.vlgmr.msra.gmra.mrb[6].mxu1 %vm212_vm8, %v8452_v63  ;;  %v5848_v48 = vpop.permute.xlu1 %5847 }
 0x703   :  { %v5857_v50 = vsel %vm130_vm1, %v5848_v48, %v5850_v47  ;;  %6003 = vmatprep.mubr.f32.mxu1 %v8660_v57  ;;  %v5854_v56 = vpop.permute.xlu0 %5853  ;;  %v8488_v48 = vld [vmem:[%s10401_s12 + $0x20] ss:$8 sm:$0xf] }
 0x704   :  { %5869 = vmatpush1.msra.mxu0 %v5857_v50  ;;  %v5859_v12 = vsel %vm130_vm1, %v5852_v2, %v5854_v56 }
 0x706   :  { %8457 = vmatmul.mubr.msk.f32.vlgmr.msra.gmra.mrb[6].mxu0 %vm212_vm8, %v8456_v8  ;;  %v5856_v9 = vpop.permute.xlu1 %5855 }
 0x707   :  { %v5860_v10 = vsel %vm130_vm1, %v5854_v56, %v5856_v9  ;;  %6254 = vmatprep.mubr.f32.mxu0 %v8660_v57  ;;  %v7730_v9 = vrot.slane %v8488_v48, %v8816_v6 }
 0x708   :  { %5939 = vmatprep.subr.mxu1 %v5860_v10 }
 0x709   :  { %5940 = vmatpush1.msra.mxu1 %v5859_v12  ;;  %v7738_v12 = vrot.slane %v8488_v48, %v8814_v5 }
 0x70a   :  { %8458 = vmatmul.mubr.msk.f32.vlgmr.msra.gmra.mrb[6].mxu1 %vm212_vm8, %v8456_v8 }
 0x70b   :  { %6325 = vmatprep.mubr.f32.mxu1 %v8660_v57 }
 0x714   :  { %v6018_v18 = vpop.permute.xlu0 %6017 }
 0x7d9   :  { %v5934_v19 = vpop.f32.mrb[6].mxu0 }
 0x7da   :  { %v6020_v20 = vadd.f32 %v6018_v18, %v5934_v19  ;;  %v5936_v21 = vpop.f32.mrb[7].mxu0 }
 0x7db   :  { %v6021_v22 = vadd.f32 %v6018_v18, %v5936_v21  ;;  %v6140_v21 = vrot.slane %v9914_v13, %v8814_v5  ;;  %v6517_v13 = vrot.slane %v9941_v29, %v8814_v5 }
 0x7dd   :  { %v6024_v24 = vadd.f32 %v6021_v22, %v6020_v20  ;;  %v6005_v49 = vpop.f32.mrb[6].mxu1 }
 0x7de   :  { %v6022_v17 = vadd.f32 %v6018_v18, %v6005_v49  ;;  %v6007_v54 = vpop.f32.mrb[7].mxu1  ;;  %v6509_v49 = vrot.slane %v9941_v29, %v8816_v6 }
 0x7df   :  { %v6023_v26 = vadd.f32 %v6018_v18, %v6007_v54  ;;  %v6730_v54 = vrot.slane %v9952_v40, %v8814_v5 }
 0x7e0   :  { %v6025_v11 = vadd.f32 %v6024_v24, %v6022_v17  ;;  %v6100_v24 = vrot.slane %v9931_v25, %v8814_v5 }
 0x7e2   :  { %v6026_v27 = vadd.f32 %v6025_v11, %v6023_v26  ;;  %v7099_v11 = vrot.slane %v8476_v52, %v8814_v5 }
 0x7e4   :  { %6027 = vadd.xlane.f32.xlu1 %v6026_v27  ;;  %v7304_v27 = vrot.slane %v8480_v60, %v8816_v6 }
 0x7f5   :  { %6063 = vperm.xlu1 %8635, %v6060_v31   ;;  %v7312_v31 = vrot.slane %v8480_v60, %v8814_v5 }
 0x7f9   :  { %6141 = vrot.lane.b32.xlu1 %v6128_v28, %s8652_s30  ;;  %v7517_v28 = vrot.slane %v8484_v53, %v8816_v6 }
 0x7fd   :  { %6145 = vrot.lane.b32.xlu1 %v6136_v32, %s8652_s30  ;;  %v7525_v32 = vrot.slane %v8484_v53, %v8814_v5  ;;  %v6054_v5 = vpop.permute.xlu0 %6053 }
 0x801   :  { %6101 = vrot.lane.b32.xlu1 %v6088_v38, %s10416_s15  ;;  %v7734_v38 = vrot.slane %v8488_v48, %v8810_v3 }
 0x805   :  { %6105 = vrot.lane.b32.xlu1 %v6096_v41, %s10416_s15 }
 0x809   :  { %6518 = vrot.lane.b32.xlu1 %v6505_v46, %s10417_s11 }
 0x80d   :  { %6522 = vrot.lane.b32.xlu1 %v6513_v30, %s10417_s11 }
 0x811   :  { %6731 = vrot.lane.b32.xlu1 %v6718_v51, %s10418_s14 }
 0x815   :  { %6735 = vrot.lane.b32.xlu1 %v6726_v43, %s10418_s14 }
 0x819   :  { %7100 = vrot.lane.b32.xlu1 %v7087_v55, %s10419_s5 }
 0x81d   :  { %7104 = vrot.lane.b32.xlu1 %v7095_v33, %s10419_s5 }
 0x821   :  { %7313 = vrot.lane.b32.xlu1 %v7300_v59, %s10420_s3 }
 0x825   :  { %7317 = vrot.lane.b32.xlu1 %v7308_v58, %s10420_s3 }
 0x829   :  { %7526 = vrot.lane.b32.xlu1 %v7513_v34, %s10407_s4 }
 0x82d   :  { %7530 = vrot.lane.b32.xlu1 %v7521_v36, %s10407_s4 }
 0x871   :  { %v6028_v35 = vpop.xlane.xlu1 %6027 }
 0x872   :  { %v6029_v37 = vmul.f32 0.001953125, %v6028_v35 }
 0x874   :  { %v9982_v42 = vsub.f32 %v6020_v20, %v6029_v37  ;;  %v9984_v61 = vsub.f32 %v6021_v22, %v6029_v37  ;;  %v9986_v39 = vsub.f32 %v6022_v17, %v6029_v37  ;;  %v9990_v63 = vsub.f32 %v6023_v26, %v6029_v37 }
 0x875   :  { %v9988_v62 = vpop.permute.xlu1 %6063  ;;  %v6092_v22 = vrot.slane %v9931_v25, %v8816_v6  ;;  %v6722_v17 = vrot.slane %v9952_v40, %v8816_v6  ;;  %v7091_v26 = vrot.slane %v8476_v52, %v8816_v6  ;;  %v7726_v25 = vrot.slane %v8488_v48, %v8812_v4  ;;  %v6144_v4 = vpop.permute.xlu0 %6143 }
 0x876   :  { %v6034_v44 = vmul.f32 %v9982_v42, %v9982_v42  ;;  %v6035_v47 = vmul.f32 %v9984_v61, %v9984_v61  ;;  %v6036_v1 = vmul.f32 %v9986_v39, %v9986_v39  ;;  %v6037_v7 = vmul.f32 %v9990_v63, %v9990_v63 }
 0x878   :  { %v6038_v45 = vadd.f32 %v6035_v47, %v6034_v44 }
 0x879   :  { %v9998_v2 = vpop.permute.xlu1 %6141 }
 0x87a   :  { %v6039_v50 = vadd.f32 %v6038_v45, %v6036_v1  ;;  %v6157_v8 = vmul.f32 0.0, %v9998_v2 }
 0x87c   :  { %v6040_v56 = vadd.f32 %v6039_v50, %v6037_v7  ;;  %6169 = vrot.lane.b32.xlu1 %v6157_v8, %s10407_s4 }
 0x87d   :  { %v10008_v10 = vpop.permute.xlu1 %6145 }
 0x87e   :  { %6041 = vadd.xlane.f32.xlu0 %v6040_v56 }
 0x880   :  { %7741 = vrot.lane.b32.xlu1 %v7730_v9, %s10408_s7 }
 0x881   :  { %v10012_v14 = vpop.permute.xlu1 %6101 }
 0x882   :  { %v6117_v29 = vmul.f32 0.0, %v10012_v14 }
 0x884   :  { %7745 = vrot.lane.b32.xlu1 %v7738_v12, %s10408_s7 }
 0x885   :  { %v10015_v18 = vpop.permute.xlu1 %6105 }
 0x889   :  { %v10017_v19 = vpop.permute.xlu1 %6518 }
 0x88a   :  { %v6534_v20 = vmul.f32 0.0, %v10017_v19 }
 0x88c   :  { %6546 = vrot.lane.b32.xlu1 %v6534_v20, %s10420_s3 }
 0x88d   :  { %v10057_v41 = vpop.permute.xlu1 %6522 }
 0x891   :  { %v10061_v46 = vpop.permute.xlu1 %6731 }
 0x892   :  { %v6747_v6 = vmul.f32 0.0, %v10061_v46 }
 0x894   :  { %6147 = vrot.lane.b32.xlu0 %v6140_v21, %s8652_s30 }
 0x898   :  { %6103 = vrot.lane.b32.xlu0 %v6092_v22, %s10416_s15 }
 0x89c   :  { %6107 = vrot.lane.b32.xlu0 %v6100_v24, %s10416_s15 }
 0x8a0   :  { %6520 = vrot.lane.b32.xlu0 %v6509_v49, %s10417_s11  ;;  %v6736_v49 = vpop.permute.xlu1 %6735 }
 0x8a4   :  { %6524 = vrot.lane.b32.xlu0 %v6517_v13, %s10417_s11 }
 0x8a8   :  { %6733 = vrot.lane.b32.xlu0 %v6722_v17, %s10418_s14 }
 0x8ac   :  { %6737 = vrot.lane.b32.xlu0 %v6730_v54, %s10418_s14 }
 0x8b0   :  { %7102 = vrot.lane.b32.xlu0 %v7091_v26, %s10419_s5 }
 0x8b4   :  { %7106 = vrot.lane.b32.xlu0 %v7099_v11, %s10419_s5 }
 0x8b8   :  { %7315 = vrot.lane.b32.xlu0 %v7304_v27, %s10420_s3 }
 0x8bc   :  { %7319 = vrot.lane.b32.xlu0 %v7312_v31, %s10420_s3 }
 0x8c0   :  { %7528 = vrot.lane.b32.xlu0 %v7517_v28, %s10407_s4 }
 0x8c4   :  { %7532 = vrot.lane.b32.xlu0 %v7525_v32, %s10407_s4 }
 0x8c8   :  { %7739 = vrot.lane.b32.xlu0 %v7726_v25, %s10408_s7 }
 0x8cc   :  { %7743 = vrot.lane.b32.xlu0 %v7734_v38, %s10408_s7 }
 0x8d0   :  { %6337 = vrot.lane.b32.xlu0 %v6117_v29, %s10408_s7 }
 0x8d4   :  { %6759 = vrot.lane.b32.xlu0 %v6747_v6, %s10419_s5 }
 0x90b   :  { %v6042_v30 = vpop.xlane.xlu0 %6041 }
 0x90c   :  { %v6043_v40 = vmul.f32 0.001953125, %v6042_v30 }
 0x90e   :  { %v6044_v51 = vadd.f32 1e-05, %v6043_v40 }
 0x90f   :  { %v6148_v3 = vpop.permute.xlu0 %6147 }
 0x910   :  { %8642 = vrsqrt.f32 %v6044_v51 }
 0x913   :  { %v6104_v43 = vpop.permute.xlu0 %6103 }
 0x914   :  { %v6110_v21 = vsel %vm130_vm1, %v6104_v43, %v10015_v18  ;;  %v6109_v22 = vsel %vm130_vm1, %v10012_v14, %v6104_v43  ;;  %v7101_v14 = vpop.permute.xlu1 %7100 }
 0x917   :  { %v6108_v52 = vpop.permute.xlu0 %6107 }
 0x918   :  { %v6111_v13 = vsel %vm130_vm1, %v10015_v18, %v6108_v52 }
 0x91a   :  { %v8643_v55 = vpop.eup %8642 }
 0x91b   :  { %v6046_v33 = vmul.f32 %v8643_v55, %v9982_v42  ;;  %v6047_v60 = vmul.f32 %v8643_v55, %v9984_v61  ;;  %v6048_v59 = vmul.f32 %v8643_v55, %v9986_v39  ;;  %v6049_v58 = vmul.f32 %v8643_v55, %v9990_v63  ;;  %v6521_v53 = vpop.permute.xlu0 %6520 }
 0x91c   :  { %v6149_v39 = vsel %vm172_vm0, %v9998_v2, %v6144_v4  ;;  %v6150_v63 = vsel %vm172_vm0, %v6144_v4, %v10008_v10  ;;  %v6526_v11 = vsel %vm554_vm2, %v10017_v19, %v6521_v53  ;;  %v6527_v27 = vsel %vm554_vm2, %v6521_v53, %v10057_v41  ;;  %v7105_v19 = vpop.permute.xlu1 %7104 }
 0x91d   :  { %v6056_v34 = vmul.f32 %v6054_v5, %v6046_v33  ;;  %v6057_v36 = vmul.f32 %v6054_v5, %v6047_v60  ;;  %v6059_v35 = vmul.f32 %v6054_v5, %v6049_v58  ;;  %v6058_v37 = vmul.f32 %v6054_v5, %v6048_v59 }
 0x91f   :  { %v6066_v44 = vadd.f32 %v9988_v62, %v6056_v34  ;;  %v6067_v47 = vadd.f32 %v9988_v62, %v6057_v36  ;;  %v6525_v1 = vpop.permute.xlu0 %6524  ;;  %v6069_v45 = vadd.f32 %v9988_v62, %v6059_v35  ;;  %v6068_v42 = vadd.f32 %v9988_v62, %v6058_v37 }
 0x920   :  { %v6151_v62 = vsel %vm172_vm0, %v10008_v10, %v6148_v3  ;;  %v6528_v32 = vsel %vm554_vm2, %v10057_v41, %v6525_v1  ;;  %v7314_v40 = vpop.permute.xlu1 %7313 }
 0x921   :  { %v10073_v48 = vmax.f32 %v6066_v44, 0.0  ;;  %v10076_v61 = vmax.f32 %v6067_v47, 0.0  ;;  %v10082_v7 = vmax.f32 %v6069_v45, 0.0  ;;  %v10085_v56 = vmax.f32 %v6068_v42, 0.0 }
 0x923   :  { %v6734_v50 = vpop.permute.xlu0 %6733  ;;  %v6158_v8 = vmul.f32 %v6149_v39, %v10073_v48  ;;  %v6159_v9 = vmul.f32 %v6150_v63, %v10076_v61  ;;  %v6161_v2 = vmul.f32 %v6148_v3, %v10082_v7  ;;  %v6160_v12 = vmul.f32 %v6151_v62, %v10085_v56 }
 0x924   :  { %v6119_v24 = vmul.f32 %v6110_v21, %v10076_v61  ;;  %v6118_v10 = vmul.f32 %v6109_v22, %v10073_v48  ;;  %v6120_v17 = vmul.f32 %v6111_v13, %v10085_v56  ;;  %v6121_v26 = vmul.f32 %v6108_v52, %v10082_v7  ;;  %v7318_v55 = vpop.permute.xlu1 %7317 }
 0x925   :  { %6171 = vrot.lane.b32.xlu1 %v6158_v8, %s10407_s4  ;;  %6173 = vrot.lane.b32.xlu0 %v6159_v9, %s10407_s4  ;;  %v6535_v18 = vmul.f32 %v6526_v11, %v10073_v48  ;;  %v6536_v31 = vmul.f32 %v6527_v27, %v10076_v61  ;;  %v6538_v25 = vmul.f32 %v6525_v1, %v10082_v7 }
 0x926   :  { %v6537_v38 = vmul.f32 %v6528_v32, %v10085_v56  ;;  %v6740_v29 = vsel %vm770_vm3, %v6734_v50, %v6736_v49  ;;  %v6739_v6 = vsel %vm770_vm3, %v10061_v46, %v6734_v50  ;;  %v7116_v36 = vmul.f32 %v7101_v14, %v10073_v48 }
 0x927   :  { %v6738_v20 = vpop.permute.xlu0 %6737  ;;  %v6749_v5 = vmul.f32 %v6740_v29, %v10076_v61  ;;  %v6748_v30 = vmul.f32 %v6739_v6, %v10073_v48  ;;  %v7329_v8 = vmul.f32 %v7314_v40, %v10073_v48 }
 0x928   :  { %v6741_v41 = vsel %vm770_vm3, %v6736_v49, %v6738_v20  ;;  %v6751_v46 = vmul.f32 %v6738_v20, %v10082_v7  ;;  %v7527_v34 = vpop.permute.xlu1 %7526 }
 0x929   :  { %6177 = vrot.lane.b32.xlu1 %v6161_v2, %s10407_s4  ;;  %6175 = vrot.lane.b32.xlu0 %v6160_v12, %s10407_s4  ;;  %v6750_v51 = vmul.f32 %v6741_v41, %v10085_v56  ;;  %v7542_v49 = vmul.f32 %v7527_v34, %v10073_v48 }
 0x92b   :  { %v7103_v54 = vpop.permute.xlu0 %7102 }
 0x92c   :  { %v7108_v33 = vsel %vm801_vm4, %v7101_v14, %v7103_v54  ;;  %v7109_v60 = vsel %vm801_vm4, %v7103_v54, %v7105_v19  ;;  %v7531_v1 = vpop.permute.xlu1 %7530 }
 0x92d   :  { %6341 = vrot.lane.b32.xlu1 %v6119_v24, %s10408_s7  ;;  %6339 = vrot.lane.b32.xlu0 %v6118_v10, %s10408_s7  ;;  %v7117_v59 = vmul.f32 %v7108_v33, %v10076_v61  ;;  %v7118_v58 = vmul.f32 %v7109_v60, %v10085_v56 }
 0x92f   :  { %v7107_v28 = vpop.permute.xlu0 %7106 }
 0x930   :  { %v7120_v52 = vmul.f32 0.0, %v7107_v28  ;;  %v7110_v53 = vsel %vm801_vm4, %v7105_v19, %v7107_v28  ;;  %v6170_v62 = vpop.permute.xlu1 %6169  ;;  %v7991_v19 = vld [vmem:[%s10360_s25] sm:$0xff] }
 0x931   :  { %6343 = vrot.lane.b32.xlu1 %v6120_v17, %s10408_s7  ;;  %6345 = vrot.lane.b32.xlu0 %v6121_v26, %s10408_s7  ;;  %v7119_v37 = vmul.f32 %v7110_v53, %v10082_v7 }
 0x933   :  { %v7316_v4 = vpop.permute.xlu0 %7315 }
 0x934   :  { %v7322_v44 = vsel %vm585_vm5, %v7316_v4, %v7318_v55  ;;  %v7321_v47 = vsel %vm585_vm5, %v7314_v40, %v7316_v4  ;;  %v7742_v24 = vpop.permute.xlu1 %7741  ;;  %v8460_v40 = vld [vmem:[%s10361_s20 + $0x8] sm:$0xff] }
 0x935   :  { %6548 = vrot.lane.b32.xlu1 %v6535_v18, %s10420_s3  ;;  %6550 = vrot.lane.b32.xlu0 %v6536_v31, %s10420_s3  ;;  %v7331_v45 = vmul.f32 %v7322_v44, %v10085_v56  ;;  %v7330_v42 = vmul.f32 %v7321_v47, %v10076_v61 }
 0x937   :  { %v7320_v3 = vpop.permute.xlu0 %7319 }
 0x938   :  { %v7333_v43 = vmul.f32 0.0, %v7320_v3  ;;  %v7323_v39 = vsel %vm585_vm5, %v7318_v55, %v7320_v3  ;;  %v7746_v11 = vpop.permute.xlu1 %7745 }
 0x939   :  { %6554 = vrot.lane.b32.xlu1 %v6538_v25, %s10420_s3  ;;  %6552 = vrot.lane.b32.xlu0 %v6537_v38, %s10420_s3  ;;  %v7332_v50 = vmul.f32 %v7323_v39, %v10082_v7  ;;  %v7759_v28 = vmul.f32 0.0, %v7746_v11  ;;  %v7934_v25 = vld [vmem:[%s10359_s21] sm:$0xff] }
 0x93b   :  { %v7529_v35 = vpop.permute.xlu0 %7528 }
 0x93c   :  { %v7534_v9 = vsel %vm203_vm6, %v7527_v34, %v7529_v35  ;;  %v7535_v2 = vsel %vm203_vm6, %v7529_v35, %v7531_v1  ;;  %v6547_v6 = vpop.permute.xlu1 %6546 }
 0x93d   :  { %6763 = vrot.lane.b32.xlu1 %v6749_v5, %s10419_s5  ;;  %6761 = vrot.lane.b32.xlu0 %v6748_v30, %s10419_s5  ;;  %v7543_v12 = vmul.f32 %v7534_v9, %v10076_v61  ;;  %v7544_v21 = vmul.f32 %v7535_v2, %v10085_v56  ;;  %v8470_v2 = vld [vmem:[%s10361_s20 + $0x18] sm:$0xff] }
 0x93f   :  { %v7533_v63 = vpop.permute.xlu0 %7532 }
 0x940   :  { %v7536_v22 = vsel %vm203_vm6, %v7531_v1, %v7533_v63  ;;  %v7546_v54 = vmul.f32 0.0, %v7533_v63  ;;  %v8466_v1 = vld [vmem:[%s10361_s20 + $0x10] sm:$0xff] }
 0x941   :  { %6765 = vrot.lane.b32.xlu1 %v6750_v51, %s10419_s5  ;;  %6767 = vrot.lane.b32.xlu0 %v6751_v46, %s10419_s5  ;;  %v7545_v10 = vmul.f32 %v7536_v22, %v10082_v7 }
 0x943   :  { %v7740_v20 = vpop.permute.xlu0 %7739 }
 0x944   :  { %v7747_v13 = vsel %vm373_vm7, %v7740_v20, %v7742_v24  ;;  %v7755_v18 = vmul.f32 %v7740_v20, %v10073_v48 }
 0x945   :  { %7136 = vrot.lane.b32.xlu1 %v7120_v52, %s10418_s14  ;;  %7349 = vrot.lane.b32.xlu0 %v7333_v43, %s10417_s11  ;;  %v7756_v26 = vmul.f32 %v7747_v13, %v10076_v61 }
 0x947   :  { %v7744_v17 = vpop.permute.xlu0 %7743 }
 0x948   :  { %v7748_v14 = vsel %vm373_vm7, %v7742_v24, %v7744_v17  ;;  %v7749_v31 = vsel %vm373_vm7, %v7744_v17, %v7746_v11 }
 0x949   :  { %7130 = vrot.lane.b32.xlu1 %v7117_v59, %s10418_s14  ;;  %7132 = vrot.lane.b32.xlu0 %v7118_v58, %s10418_s14  ;;  %v7757_v27 = vmul.f32 %v7748_v14, %v10085_v56  ;;  %v7758_v32 = vmul.f32 %v7749_v31, %v10082_v7  ;;  %v6122_v59 = vld [vmem:[%s10361_s20] sm:$0xff]  ;;  %v8477_v14 = vld [vmem:[%s10361_s20 + $0x28] sm:$0xff] }
 0x94b   :  { %v6338_v38 = vpop.permute.xlu0 %6337 }
 0x94d   :  { %7128 = vrot.lane.b32.xlu1 %v7116_v36, %s10418_s14  ;;  %7134 = vrot.lane.b32.xlu0 %v7119_v37, %s10418_s14 }
 0x94f   :  { %v6760_v29 = vpop.permute.xlu0 %6759 }
 0x951   :  { %7345 = vrot.lane.b32.xlu1 %v7331_v45, %s10417_s11  ;;  %7343 = vrot.lane.b32.xlu0 %v7330_v42, %s10417_s11 }
 0x955   :  { %7347 = vrot.lane.b32.xlu1 %v7332_v50, %s10417_s11  ;;  %7341 = vrot.lane.b32.xlu0 %v7329_v8, %s10417_s11 }
 0x959   :  { %7556 = vrot.lane.b32.xlu1 %v7543_v12, %s8652_s30  ;;  %7558 = vrot.lane.b32.xlu0 %v7544_v21, %s8652_s30 }
 0x95d   :  { %7554 = vrot.lane.b32.xlu1 %v7542_v49, %s8652_s30  ;;  %7560 = vrot.lane.b32.xlu0 %v7545_v10, %s8652_s30 }
 0x961   :  { %7562 = vrot.lane.b32.xlu1 %v7546_v54, %s8652_s30  ;;  %7769 = vrot.lane.b32.xlu0 %v7756_v26, %s10416_s15 }
 0x965   :  { %7771 = vrot.lane.b32.xlu1 %v7757_v27, %s10416_s15  ;;  %7767 = vrot.lane.b32.xlu0 %v7755_v18, %s10416_s15 }
 0x969   :  { %7773 = vrot.lane.b32.xlu1 %v7758_v32, %s10416_s15  ;;  %7775 = vrot.lane.b32.xlu0 %v7759_v28, %s10416_s15 }
 0x96d   :  { %7937 = vperm.xlu1 %8635, %v7934_v25   ;;  %7994 = vperm.xlu0 %8634, %v7991_v19  }
 0x997   :  { %v6172_v5 = vpop.permute.xlu1 %6171  ;;  %v6174_v4 = vpop.permute.xlu0 %6173 }
 0x998   :  { %v6179_v30 = vsel %vm203_vm6, %v6170_v62, %v6172_v5  ;;  %v6180_v41 = vsel %vm203_vm6, %v6172_v5, %v6174_v4 }
 0x999   :  { %6190 = vmatprep.subr.mxu0 %v6180_v41 }
 0x99a   :  { %6191 = vmatpush1.msra.mxu0 %v6179_v30 }
 0x99b   :  { %v6178_v51 = vpop.permute.xlu1 %6177  ;;  %v6176_v46 = vpop.permute.xlu0 %6175  ;;  %8461 = vmatmul.mubr.msk.f32.vlgmr.msra.gmra.mrb[8].mxu0 %vm212_vm8, %v8460_v40 }
 0x99c   :  { %v6181_v3 = vsel %vm203_vm6, %v6174_v4, %v6176_v46  ;;  %v6182_v43 = vsel %vm203_vm6, %v6176_v46, %v6178_v51  ;;  %6422 = vmatprep.mubr.f32.mxu0 %v8660_v57 }
 0x99d   :  { %6261 = vmatprep.subr.mxu1 %v6182_v43 }
 0x99e   :  { %6262 = vmatpush1.msra.mxu1 %v6181_v3 }
 0x99f   :  { %v6342_v52 = vpop.permute.xlu1 %6341  ;;  %v6340_v55 = vpop.permute.xlu0 %6339  ;;  %8462 = vmatmul.mubr.msk.f32.vlgmr.msra.gmra.mrb[8].mxu1 %vm212_vm8, %v8460_v40  ;;  %v8485_v40 = vld [vmem:[%s10361_s20 + $0x38] sm:$0xff] }
 0x9a0   :  { %v6347_v33 = vsel %vm373_vm7, %v6338_v38, %v6340_v55  ;;  %v6348_v60 = vsel %vm373_vm7, %v6340_v55, %v6342_v52  ;;  %6493 = vmatprep.mubr.f32.mxu1 %v8660_v57  ;;  %v8481_v38 = vld [vmem:[%s10361_s20 + $0x30] sm:$0xff] }
 0x9a1   :  { %6358 = vmatprep.subr.mxu0 %v6348_v60 }
 0x9a2   :  { %6359 = vmatpush1.msra.mxu0 %v6347_v33 }
 0x9a3   :  { %v6344_v58 = vpop.permute.xlu1 %6343  ;;  %v6346_v53 = vpop.permute.xlu0 %6345  ;;  %8463 = vmatmul.mubr.msk.f32.vlgmr.msra.gmra.mrb[8].mxu0 %vm212_vm8, %v6122_v59 }
 0x9a4   :  { %v6349_v34 = vsel %vm373_vm7, %v6342_v52, %v6344_v58  ;;  %v6350_v36 = vsel %vm373_vm7, %v6344_v58, %v6346_v53  ;;  %6631 = vmatprep.mubr.f32.mxu0 %v8660_v57 }
 0x9a5   :  { %6429 = vmatprep.subr.mxu1 %v6350_v36 }
 0x9a6   :  { %6430 = vmatpush1.msra.mxu1 %v6349_v34 }
 0x9a7   :  { %v6549_v35 = vpop.permute.xlu1 %6548  ;;  %v6551_v37 = vpop.permute.xlu0 %6550  ;;  %8464 = vmatmul.mubr.msk.f32.vlgmr.msra.gmra.mrb[8].mxu1 %vm212_vm8, %v6122_v59  ;;  %v8489_v59 = vld [vmem:[%s10361_s20 + $0x40] sm:$0xff] }
 0x9a8   :  { %v6556_v44 = vsel %vm585_vm5, %v6547_v6, %v6549_v35  ;;  %v6557_v47 = vsel %vm585_vm5, %v6549_v35, %v6551_v37  ;;  %6702 = vmatprep.mubr.f32.mxu1 %v8660_v57  ;;  %v7990_v35 = vld [vmem:[%s10362_s24] sm:$0xff] }
 0x9a9   :  { %6567 = vmatprep.subr.mxu0 %v6557_v47 }
 0x9aa   :  { %6568 = vmatpush1.msra.mxu0 %v6556_v44 }
 0x9ab   :  { %v6555_v45 = vpop.permute.xlu1 %6554  ;;  %v6553_v42 = vpop.permute.xlu0 %6552  ;;  %8467 = vmatmul.mubr.msk.f32.vlgmr.msra.gmra.mrb[8].mxu0 %vm212_vm8, %v8466_v1 }
 0x9ac   :  { %v6558_v39 = vsel %vm585_vm5, %v6551_v37, %v6553_v42  ;;  %v6559_v63 = vsel %vm585_vm5, %v6553_v42, %v6555_v45  ;;  %6844 = vmatprep.mubr.f32.mxu0 %v8660_v57 }
 0x9ad   :  { %6638 = vmatprep.subr.mxu1 %v6559_v63 }
 0x9ae   :  { %6639 = vmatpush1.msra.mxu1 %v6558_v39 }
 0x9af   :  { %v6764_v50 = vpop.permute.xlu1 %6763  ;;  %v6762_v8 = vpop.permute.xlu0 %6761  ;;  %8468 = vmatmul.mubr.msk.f32.vlgmr.msra.gmra.mrb[8].mxu1 %vm212_vm8, %v8466_v1 }
 0x9b0   :  { %v6769_v9 = vsel %vm801_vm4, %v6760_v29, %v6762_v8  ;;  %v6770_v62 = vsel %vm801_vm4, %v6762_v8, %v6764_v50  ;;  %6915 = vmatprep.mubr.f32.mxu1 %v8660_v57 }
 0x9b1   :  { %6780 = vmatprep.subr.mxu0 %v6770_v62 }
 0x9b2   :  { %6781 = vmatpush1.msra.mxu0 %v6769_v9 }
 0x9b3   :  { %v6766_v12 = vpop.permute.xlu1 %6765  ;;  %v6768_v20 = vpop.permute.xlu0 %6767  ;;  %8471 = vmatmul.mubr.msk.f32.vlgmr.msra.gmra.mrb[8].mxu0 %vm212_vm8, %v8470_v2  ;;  %6931 = vmatprep.subr.mxu0 %v10076_v61  ;;  %v8473_v61 = vld [vmem:[%s10361_s20 + $0x20] sm:$0xff] }
 0x9b4   :  { %v6771_v21 = vsel %vm801_vm4, %v6764_v50, %v6766_v12  ;;  %6932 = vmatpush1.msra.mxu0 %v10073_v48  ;;  %v6772_v22 = vsel %vm801_vm4, %v6766_v12, %v6768_v20  ;;  %6995 = vmatprep.mubr.f32.mxu0 %v8660_v57 }
 0x9b5   :  { %6851 = vmatprep.subr.mxu1 %v6772_v22 }
 0x9b6   :  { %6852 = vmatpush1.msra.mxu1 %v6771_v21 }
 0x9b7   :  { %v7137_v24 = vpop.permute.xlu1 %7136  ;;  %v7350_v49 = vpop.permute.xlu0 %7349  ;;  %8472 = vmatmul.mubr.msk.f32.vlgmr.msra.gmra.mrb[8].mxu1 %vm212_vm8, %v8470_v2  ;;  %7002 = vmatprep.subr.mxu1 %v10082_v7 }
 0x9b8   :  { %7003 = vmatpush1.msra.mxu1 %v10085_v56  ;;  %7066 = vmatprep.mubr.f32.mxu1 %v8660_v57 }
 0x9bb   :  { %v7131_v48 = vpop.permute.xlu1 %7130  ;;  %v7133_v10 = vpop.permute.xlu0 %7132  ;;  %8474 = vmatmul.mubr.msk.f32.vlgmr.msra.gmra.mrb[8].mxu0 %vm212_vm8, %v8473_v61 }
 0x9bc   :  { %v7139_v13 = vsel %vm770_vm3, %v7131_v48, %v7133_v10  ;;  %7213 = vmatprep.mubr.f32.mxu0 %v8660_v57 }
 0x9bd   :  { %7149 = vmatprep.subr.mxu0 %v7139_v13 }
 0x9bf   :  { %v7129_v17 = vpop.permute.xlu1 %7128  ;;  %v7135_v54 = vpop.permute.xlu0 %7134  ;;  %8475 = vmatmul.mubr.msk.f32.vlgmr.msra.gmra.mrb[8].mxu1 %vm212_vm8, %v8473_v61 }
 0x9c0   :  { %v7138_v7 = vsel %vm770_vm3, %v7129_v17, %v7131_v48  ;;  %v7140_v56 = vsel %vm770_vm3, %v7133_v10, %v7135_v54  ;;  %v7141_v26 = vsel %vm770_vm3, %v7135_v54, %v7137_v24  ;;  %7284 = vmatprep.mubr.f32.mxu1 %v8660_v57  ;;  %v7970_v54 = vld [vmem:[%s10365_s22] sm:$0xff] }
 0x9c1   :  { %7150 = vmatpush1.msra.mxu0 %v7138_v7  ;;  %7220 = vmatprep.subr.mxu1 %v7141_v26  ;;  %v7980_v7 = vld [vmem:[%s10366_s23] sm:$0xff] }
 0x9c2   :  { %7221 = vmatpush1.msra.mxu1 %v7140_v56  ;;  %v8178_v56 = vld [vmem:[%s10367_s27] sm:$0xff] }
 0x9c3   :  { %v7346_v11 = vpop.permute.xlu1 %7345  ;;  %v7344_v27 = vpop.permute.xlu0 %7343  ;;  %8478 = vmatmul.mubr.msk.f32.vlgmr.msra.gmra.mrb[8].mxu0 %vm212_vm8, %v8477_v14 }
 0x9c4   :  { %v7352_v18 = vsel %vm554_vm2, %v7344_v27, %v7346_v11  ;;  %7426 = vmatprep.mubr.f32.mxu0 %v8660_v57 }
 0x9c5   :  { %7362 = vmatprep.subr.mxu0 %v7352_v18 }
 0x9c7   :  { %v7348_v31 = vpop.permute.xlu1 %7347  ;;  %v7342_v28 = vpop.permute.xlu0 %7341  ;;  %8479 = vmatmul.mubr.msk.f32.vlgmr.msra.gmra.mrb[8].mxu1 %vm212_vm8, %v8477_v14 }
 0x9c8   :  { %v7353_v32 = vsel %vm554_vm2, %v7346_v11, %v7348_v31  ;;  %v7354_v25 = vsel %vm554_vm2, %v7348_v31, %v7350_v49  ;;  %v7351_v19 = vsel %vm554_vm2, %v7342_v28, %v7344_v27  ;;  %7497 = vmatprep.mubr.f32.mxu1 %v8660_v57 }
 0x9c9   :  { %7433 = vmatprep.subr.mxu1 %v7354_v25  ;;  %7363 = vmatpush1.msra.mxu0 %v7351_v19 }
 0x9ca   :  { %7434 = vmatpush1.msra.mxu1 %v7353_v32 }
 0x9cb   :  { %v7557_v29 = vpop.permute.xlu1 %7556  ;;  %v7559_v6 = vpop.permute.xlu0 %7558  ;;  %8482 = vmatmul.mubr.msk.f32.vlgmr.msra.gmra.mrb[8].mxu0 %vm212_vm8, %v8481_v38 }
 0x9cc   :  { %v7565_v5 = vsel %vm172_vm0, %v7557_v29, %v7559_v6  ;;  %7639 = vmatprep.mubr.f32.mxu0 %v8660_v57 }
 0x9cd   :  { %7575 = vmatprep.subr.mxu0 %v7565_v5 }
 0x9cf   :  { %v7555_v4 = vpop.permute.xlu1 %7554  ;;  %v7561_v30 = vpop.permute.xlu0 %7560  ;;  %8483 = vmatmul.mubr.msk.f32.vlgmr.msra.gmra.mrb[8].mxu1 %vm212_vm8, %v8481_v38 }
 0x9d0   :  { %v7564_v41 = vsel %vm172_vm0, %v7555_v4, %v7557_v29  ;;  %7710 = vmatprep.mubr.f32.mxu1 %v8660_v57  ;;  %v7566_v43 = vsel %vm172_vm0, %v7559_v6, %v7561_v30 }
 0x9d1   :  { %7576 = vmatpush1.msra.mxu0 %v7564_v41 }
 0x9d3   :  { %v7563_v51 = vpop.permute.xlu1 %7562  ;;  %v7770_v46 = vpop.permute.xlu0 %7769  ;;  %8486 = vmatmul.mubr.msk.f32.vlgmr.msra.gmra.mrb[8].mxu0 %vm212_vm8, %v8485_v40 }
 0x9d4   :  { %v7567_v3 = vsel %vm172_vm0, %v7561_v30, %v7563_v51  ;;  %7852 = vmatprep.mubr.f32.mxu0 %v8660_v57 }
 0x9d5   :  { %7646 = vmatprep.subr.mxu1 %v7567_v3 }
 0x9d6   :  { %7647 = vmatpush1.msra.mxu1 %v7566_v43 }
 0x9d7   :  { %v7772_v52 = vpop.permute.xlu1 %7771  ;;  %v7768_v55 = vpop.permute.xlu0 %7767  ;;  %8487 = vmatmul.mubr.msk.f32.vlgmr.msra.gmra.mrb[8].mxu1 %vm212_vm8, %v8485_v40 }
 0x9d8   :  { %v7778_v33 = vsel %vm130_vm1, %v7770_v46, %v7772_v52  ;;  %v7777_v60 = vsel %vm130_vm1, %v7768_v55, %v7770_v46  ;;  %7923 = vmatprep.mubr.f32.mxu1 %v8660_v57 }
 0x9d9   :  { %7788 = vmatprep.subr.mxu0 %v7778_v33 }
 0x9da   :  { %7789 = vmatpush1.msra.mxu0 %v7777_v60 }
 0x9db   :  { %8000 = vmatprep.subr.mxu0 %v9694_v15  ;;  %v7774_v58 = vpop.permute.xlu1 %7773  ;;  %v7776_v53 = vpop.permute.xlu0 %7775  ;;  %8490 = vmatmul.mubr.msk.f32.vlgmr.msra.gmra.mrb[8].mxu0 %vm212_vm8, %v8489_v59  ;;  %v8200_v15 = vld [vmem:[%s10363_s2 + $0x18] sm:$0xff] }
 0x9dc   :  { %v7779_v34 = vsel %vm130_vm1, %v7772_v52, %v7774_v58  ;;  %8001 = vmatpush1.msra.mxu0 %v9692_v16  ;;  %v7780_v36 = vsel %vm130_vm1, %v7774_v58, %v7776_v53  ;;  %8064 = vmatprep.mubr.f32.mxu0 %v8660_v57  ;;  %v8198_v16 = vld [vmem:[%s10363_s2 + $0x8] sm:$0xff] }
 0x9dd   :  { %7859 = vmatprep.subr.mxu1 %v7780_v36  ;;  %8204 = vmatprep.subr.mxu0 %v8198_v16 }
 0x9de   :  { %7860 = vmatpush1.msra.mxu1 %v7779_v34 }
 0x9df   :  { %8491 = vmatmul.mubr.msk.f32.vlgmr.msra.gmra.mrb[8].mxu1 %vm212_vm8, %v8489_v59  ;;  %8492 = vmatmul.mubr.msk.f32.vlgmr.msra.gmra.mrb[10].mxu0 %vm212_vm8, %v7990_v35  ;;  %v8168_v59 = vld [vmem:[%s10368_s26] sm:$0xff] }
 0x9e0   :  { %8071 = vmatprep.subr.mxu1 %v9702_v23  ;;  %8135 = vmatprep.mubr.f32.mxu1 %v8660_v57  ;;  %v8197_v23 = vld [vmem:[%s10363_s2] sm:$0xff] }
 0x9e1   :  { %8072 = vmatpush1.msra.mxu1 %v9700_v0  ;;  %8268 = vmatprep.mubr.f32.mxu0 %v8660_v57  ;;  %v8199_v0 = vld [vmem:[%s10363_s2 + $0x10] sm:$0xff] }
 0x9e2   :  { %8275 = vmatprep.subr.mxu1 %v8200_v15  ;;  %8205 = vmatpush1.msra.mxu0 %v8197_v23 }
 0x9e3   :  { %8493 = vmatmul.mubr.msk.f32.vlgmr.msra.gmra.mrb[10].mxu1 %vm212_vm8, %v7990_v35 }
 0x9e4   :  { %8339 = vmatprep.mubr.f32.mxu1 %v8660_v57  ;;  %v8196_v57 = vld [vmem:[%s10364_s1] sm:$0xff]  ;;  %8276 = vmatpush1.msra.mxu1 %v8199_v0 }
 0x9e5   :  { %8494 = vmatmul.mubr.msk.f32.vlgmr.msra.gmra.mrb[12].mxu0 %vm212_vm8, %v8196_v57 }
 0x9e7   :  { %8495 = vmatmul.mubr.msk.f32.vlgmr.msra.gmra.mrb[12].mxu1 %vm212_vm8, %v8196_v57 }
 0x9ec   :  { %v7938_v37 = vpop.permute.xlu1 %7937  ;;  %v7995_v42 = vpop.permute.xlu0 %7994 }
 0xaae   :  { %v7854_v44 = vpop.f32.mrb[8].mxu0 }
 0xaaf   :  { %v7940_v47 = vadd.f32 %v7938_v37, %v7854_v44  ;;  %v7856_v1 = vpop.f32.mrb[9].mxu0 }
 0xab0   :  { %v7941_v45 = vadd.f32 %v7938_v37, %v7856_v1 }
 0xab2   :  { %v7944_v39 = vadd.f32 %v7941_v45, %v7940_v47  ;;  %v7925_v63 = vpop.f32.mrb[8].mxu1  ;;  %v8066_v50 = vpop.f32.mrb[10].mxu0 }
 0xab3   :  { %v7942_v8 = vadd.f32 %v7938_v37, %v7925_v63  ;;  %v8067_v9 = vadd.f32 %v8066_v50, %v7995_v42  ;;  %v7927_v62 = vpop.f32.mrb[9].mxu1  ;;  %v8068_v2 = vpop.f32.mrb[11].mxu0 }
 0xab4   :  { %v7943_v12 = vadd.f32 %v7938_v37, %v7927_v62  ;;  %v8069_v20 = vadd.f32 %v8068_v2, %v7995_v42 }
 0xab5   :  { %v7945_v21 = vadd.f32 %v7944_v39, %v7942_v8 }
 0xab6   :  { %v8142_v22 = vadd.f32 %v8069_v20, %v8067_v9  ;;  %v8137_v24 = vpop.f32.mrb[10].mxu1 }
 0xab7   :  { %v7946_v49 = vadd.f32 %v7945_v21, %v7943_v12  ;;  %v8138_v61 = vadd.f32 %v8137_v24, %v7995_v42  ;;  %v8139_v48 = vpop.f32.mrb[11].mxu1 }
 0xab8   :  { %v8140_v10 = vadd.f32 %v8139_v48, %v7995_v42  ;;  %v8270_v58 = vpop.f32.mrb[12].mxu0 }
 0xab9   :  { %v8143_v13 = vadd.f32 %v8142_v22, %v8138_v61  ;;  %7947 = vadd.xlane.f32.xlu1 %v7946_v49  ;;  %v8272_v34 = vpop.f32.mrb[13].mxu0 }
 0xaba   :  { %v8341_v53 = vpop.f32.mrb[12].mxu1 }
 0xabb   :  { %v8144_v17 = vadd.f32 %v8143_v13, %v8140_v10  ;;  %v8343_v36 = vpop.f32.mrb[13].mxu1 }
 0xabd   :  { %8145 = vadd.xlane.f32.xlu0 %v8144_v17 }
 0xaca   :  { %7973 = vperm.xlu1 %8635, %v7970_v54  }
 0xace   :  { %7983 = vperm.xlu1 %8635, %v7980_v7  }
 0xad2   :  { %8181 = vperm.xlu1 %8635, %v8178_v56  }
 0xb46   :  { %v7948_v26 = vpop.xlane.xlu1 %7947 }
 0xb47   :  { %v7949_v14 = vmul.f32 0.001953125, %v7948_v26 }
 0xb49   :  { %v7950_v11 = vsub.f32 %v7940_v47, %v7949_v14  ;;  %v7951_v27 = vsub.f32 %v7941_v45, %v7949_v14  ;;  %v7952_v18 = vsub.f32 %v7942_v8, %v7949_v14  ;;  %v7953_v28 = vsub.f32 %v7943_v12, %v7949_v14 }
 0xb4a   :  { %v8146_v31 = vpop.xlane.xlu0 %8145  ;;  %v7974_v37 = vpop.permute.xlu1 %7973 }
 0xb4b   :  { %v8147_v32 = vmul.f32 0.001953125, %v8146_v31  ;;  %v7954_v25 = vmul.f32 %v7950_v11, %v7950_v11  ;;  %v7955_v19 = vmul.f32 %v7951_v27, %v7951_v27  ;;  %v7956_v38 = vmul.f32 %v7952_v18, %v7952_v18 }
 0xb4c   :  { %v7957_v30 = vmul.f32 %v7953_v28, %v7953_v28 }
 0xb4d   :  { %v8148_v29 = vsub.f32 %v8067_v9, %v8147_v32  ;;  %v8149_v6 = vsub.f32 %v8069_v20, %v8147_v32  ;;  %v8150_v5 = vsub.f32 %v8138_v61, %v8147_v32  ;;  %v7958_v4 = vadd.f32 %v7955_v19, %v7954_v25 }
 0xb4e   :  { %v8151_v40 = vsub.f32 %v8140_v10, %v8147_v32  ;;  %v7984_v39 = vpop.permute.xlu1 %7983 }
 0xb4f   :  { %v7959_v41 = vadd.f32 %v7958_v4, %v7956_v38  ;;  %v8152_v51 = vmul.f32 %v8148_v29, %v8148_v29  ;;  %v8153_v46 = vmul.f32 %v8149_v6, %v8149_v6  ;;  %v8154_v43 = vmul.f32 %v8150_v5, %v8150_v5 }
 0xb50   :  { %v8155_v55 = vmul.f32 %v8151_v40, %v8151_v40 }
 0xb51   :  { %v7960_v3 = vadd.f32 %v7959_v41, %v7957_v30  ;;  %v8156_v52 = vadd.f32 %v8153_v46, %v8152_v51 }
 0xb52   :  { %v8182_v10 = vpop.permute.xlu1 %8181 }
 0xb53   :  { %7961 = vadd.xlane.f32.xlu0 %v7960_v3  ;;  %v8157_v33 = vadd.f32 %v8156_v52, %v8154_v43 }
 0xb55   :  { %v8158_v60 = vadd.f32 %v8157_v33, %v8155_v55 }
 0xb57   :  { %8159 = vadd.xlane.f32.xlu0 %v8158_v60 }
 0xb6d   :  { %8171 = vperm.xlu0 %8634, %v8168_v59  }
 0xbe0   :  { %v7962_v35 = vpop.xlane.xlu0 %7961 }
 0xbe1   :  { %v7963_v16 = vmul.f32 0.001953125, %v7962_v35 }
 0xbe3   :  { %v7964_v15 = vadd.f32 1e-05, %v7963_v16 }
 0xbe4   :  { %v8160_v23 = vpop.xlane.xlu0 %8159 }
 0xbe5   :  { %8644 = vrsqrt.f32 %v7964_v15  ;;  %v8161_v0 = vmul.f32 0.001953125, %v8160_v23 }
 0xbe7   :  { %v8162_v57 = vadd.f32 1e-05, %v8161_v0 }
 0xbe9   :  { %8646 = vrsqrt.f32 %v8162_v57 }
 0xbec   :  { %v8172_v22 = vpop.permute.xlu0 %8171 }
 0xbef   :  { %v8645_v44 = vpop.eup %8644 }
 0xbf0   :  { %v7966_v47 = vmul.f32 %v8645_v44, %v7950_v11  ;;  %v7968_v1 = vmul.f32 %v8645_v44, %v7952_v18  ;;  %v7967_v45 = vmul.f32 %v8645_v44, %v7951_v27  ;;  %v7969_v42 = vmul.f32 %v8645_v44, %v7953_v28 }
 0xbf2   :  { %v7976_v50 = vmul.f32 %v7974_v37, %v7966_v47  ;;  %v7978_v8 = vmul.f32 %v7974_v37, %v7968_v1  ;;  %v7977_v9 = vmul.f32 %v7974_v37, %v7967_v45  ;;  %v7979_v62 = vmul.f32 %v7974_v37, %v7969_v42 }
 0xbf3   :  { %v8647_v63 = vpop.eup %8646 }
 0xbf4   :  { %v8164_v2 = vmul.f32 %v8647_v63, %v8148_v29  ;;  %v8165_v12 = vmul.f32 %v8647_v63, %v8149_v6  ;;  %v8166_v20 = vmul.f32 %v8647_v63, %v8150_v5  ;;  %v8167_v21 = vmul.f32 %v8647_v63, %v8151_v40 }
 0xbf5   :  { %v7986_v13 = vadd.f32 %v7984_v39, %v7976_v50  ;;  %v7988_v17 = vadd.f32 %v7984_v39, %v7978_v8  ;;  %v7987_v54 = vadd.f32 %v7984_v39, %v7977_v9  ;;  %v7989_v7 = vadd.f32 %v7984_v39, %v7979_v62 }
 0xbf6   :  { %v8174_v24 = vmul.f32 %v8172_v22, %v8164_v2  ;;  %v8175_v49 = vmul.f32 %v8172_v22, %v8165_v12  ;;  %v8176_v61 = vmul.f32 %v8172_v22, %v8166_v20  ;;  %v8177_v48 = vmul.f32 %v8172_v22, %v8167_v21 }
 0xbf8   :  { %v8184_v56 = vadd.f32 %v8182_v10, %v8174_v24  ;;  %v8186_v26 = vadd.f32 %v8182_v10, %v8176_v61  ;;  %v8185_v14 = vadd.f32 %v8182_v10, %v8175_v49  ;;  %v8187_v11 = vadd.f32 %v8182_v10, %v8177_v48 }
 0xbfa   :  { %v8188_v27 = vadd.f32 %v8184_v56, %v7986_v13  ;;  %v8190_v18 = vadd.f32 %v8186_v26, %v7988_v17  ;;  %v8189_v31 = vadd.f32 %v8185_v14, %v7987_v54  ;;  %v8191_v28 = vadd.f32 %v8187_v11, %v7989_v7 }
 0xbfc   :  { %v8192_v32 = vmax.f32 %v8188_v27, 0.0  ;;  %v8194_v25 = vmax.f32 %v8190_v18, 0.0  ;;  %v8193_v19 = vmax.f32 %v8189_v31, 0.0  ;;  %v8195_v38 = vmax.f32 %v8191_v28, 0.0 }
 0xbfe   :  { %v8346_v29 = vadd.f32 %v8270_v58, %v8192_v32  ;;  %v8348_v6 = vadd.f32 %v8341_v53, %v8194_v25  ;;  %v8347_v5 = vadd.f32 %v8272_v34, %v8193_v19  ;;  %v8349_v4 = vadd.f32 %v8343_v36, %v8195_v38 }
 0xc00   :  { %8350 = vst [vmem:[%s10369_s28] sm:$0xff] %v8346_v29  ;;  %8352 = vst [vmem:[%s10369_s28 + $0x10] sm:$0xff] %v8348_v6 }
 0xc01   :  { %8351 = vst [vmem:[%s10369_s28 + $0x8] sm:$0xff] %v8347_v5  ;;  %8353 = vst [vmem:[%s10369_s28 + $0x18] sm:$0xff] %v8349_v4 }

</bundles_post_ra>
